<compile_context>
chip_gen: v7x
topology: tpu7x:2x2x1
jax: 0.10.0
libtpu: 0.0.40
codegen_flags: <defaults>
</compile_context>

<pallas_src>
import functools

import jax
import jax.numpy as jnp
from jax import random
from jax.experimental import pallas as pl
from jax.experimental.pallas import tpu as pltpu

BN_EPS = 1e-5
LANES = 128   # all output-channel dims are padded to one lane-dense 128 tile


def _ru(x, m):
    return (x + m - 1) // m * m


def _pick_tm(m_rows, tm):
    """Row-tile: multiple of 16 (bf16 sublane pack); keep >= 2 row tiles whenever
    M >= 128 so the ('parallel',) grid axis can shard across v7x's 2 TensorCores."""
    tm_eff = min(tm, _ru(m_rows, 16))
    if m_rows >= 128 and _ru(m_rows, tm_eff) // tm_eff < 2:
        tm_eff = _ru((m_rows + 1) // 2, 16)
    return tm_eff


# --------------------------------------------------------------------------
# Pallas kernels
# --------------------------------------------------------------------------

def _gemm_bn_relu_kernel(a_ref, b_ref, scale_ref, shift_ref, o_ref):
    """Stem: one-shot GEMM (full K in VMEM) + folded BN + ReLU."""
    acc = jnp.dot(a_ref[...], b_ref[...], preferred_element_type=jnp.float32)
    y = acc * scale_ref[...] + shift_ref[...]
    o_ref[...] = jnp.maximum(y, 0.0).astype(o_ref.dtype)


def _dual_gemm_bn_kernel(a_ref, b1_ref, s1_ref, t1_ref, b2_ref, s2_ref, t2_ref,
                         h_ref, sc_ref):
    """BasicBlock front: conv1 (+BN+ReLU) and shortcut (+BN) from the SAME A tile.

    b2 is the 1x1-shortcut (or identity) weight pre-embedded at the centre-tap rows
    of the 3x3 im2col matrix, so both outputs are plain GEMMs on the same operand.
    """
    a = a_ref[...]
    acc1 = jnp.dot(a, b1_ref[...], preferred_element_type=jnp.float32)
    h_ref[...] = jnp.maximum(acc1 * s1_ref[...] + t1_ref[...], 0.0).astype(h_ref.dtype)
    acc2 = jnp.dot(a, b2_ref[...], preferred_element_type=jnp.float32)
    sc_ref[...] = (acc2 * s2_ref[...] + t2_ref[...]).astype(sc_ref.dtype)


def _gemm_bn_res_relu_kernel(a_ref, b_ref, scale_ref, shift_ref, res_ref, o_ref):
    """BasicBlock tail: conv2 GEMM + folded BN + fused residual add + ReLU."""
    acc = jnp.dot(a_ref[...], b_ref[...], preferred_element_type=jnp.float32)
    y = acc * scale_ref[...] + shift_ref[...] + res_ref[...].astype(jnp.float32)
    o_ref[...] = jnp.maximum(y, 0.0).astype(o_ref.dtype)


def _head_kernel(x_ref, w_ref, b_ref, logits_ref, probas_ref, *, num_classes):
    """Fused head: global avg-pool + FC(+bias) + softmax (padded cols masked out)."""
    pooled = jnp.mean(x_ref[...].astype(jnp.float32), axis=1)            # (N, C)
    logits = jnp.dot(pooled, w_ref[...],
                     preferred_element_type=jnp.float32) + b_ref[...]    # (N, 128)
    col = jax.lax.broadcasted_iota(jnp.int32, logits.shape, 1)
    masked = jnp.where(col < num_classes, logits, jnp.float32(-1e30))
    m = jnp.max(masked, axis=-1, keepdims=True)
    e = jnp.exp(masked - m)
    probas = e / jnp.sum(e, axis=-1, keepdims=True)
    logits_ref[...] = logits
    probas_ref[...] = probas


# --------------------------------------------------------------------------
# Pallas wrappers
# --------------------------------------------------------------------------

def gemm_bn_relu(a, packed, *, out_dtype=jnp.bfloat16, tm=512):
    w_p, scale_p, shift_p = packed
    M, K = a.shape
    Kp, Np = w_p.shape
    tm_eff = _pick_tm(M, tm)
    Mp = _ru(M, tm_eff)
    a_p = jnp.pad(a.astype(jnp.bfloat16), ((0, Mp - M), (0, Kp - K)))
    return pl.pallas_call(
        _gemm_bn_relu_kernel,
        out_shape=jax.ShapeDtypeStruct((Mp, Np), out_dtype),
        grid=(Mp // tm_eff,),
        in_specs=[pl.BlockSpec((tm_eff, Kp), lambda i: (i, 0)),
                  pl.BlockSpec((Kp, Np), lambda i: (0, 0)),
                  pl.BlockSpec((1, Np), lambda i: (0, 0)),
                  pl.BlockSpec((1, Np), lambda i: (0, 0))],
        out_specs=pl.BlockSpec((tm_eff, Np), lambda i: (i, 0)),
        compiler_params=pltpu.CompilerParams(dimension_semantics=("parallel",)),
    )(a_p, w_p, scale_p, shift_p)


def dual_gemm_bn(a, main_packed, sc_packed, *, out_dtype=jnp.bfloat16, tm=512):
    """Returns (h_padded, sc_padded), both (Mp, 128)."""
    w1, s1, t1 = main_packed
    w2, s2, t2 = sc_packed
    M, K = a.shape
    Kp, Np = w1.shape
    tm_eff = _pick_tm(M, tm)
    Mp = _ru(M, tm_eff)
    a_p = jnp.pad(a.astype(jnp.bfloat16), ((0, Mp - M), (0, Kp - K)))
    return pl.pallas_call(
        _dual_gemm_bn_kernel,
        out_shape=(jax.ShapeDtypeStruct((Mp, Np), out_dtype),
                   jax.ShapeDtypeStruct((Mp, Np), out_dtype)),
        grid=(Mp // tm_eff,),
        in_specs=[pl.BlockSpec((tm_eff, Kp), lambda i: (i, 0)),
                  pl.BlockSpec((Kp, Np), lambda i: (0, 0)),
                  pl.BlockSpec((1, Np), lambda i: (0, 0)),
                  pl.BlockSpec((1, Np), lambda i: (0, 0)),
                  pl.BlockSpec((Kp, Np), lambda i: (0, 0)),
                  pl.BlockSpec((1, Np), lambda i: (0, 0)),
                  pl.BlockSpec((1, Np), lambda i: (0, 0))],
        out_specs=[pl.BlockSpec((tm_eff, Np), lambda i: (i, 0)),
                   pl.BlockSpec((tm_eff, Np), lambda i: (i, 0))],
        compiler_params=pltpu.CompilerParams(dimension_semantics=("parallel",)),
    )(a_p, w1, s1, t1, w2, s2, t2)


def gemm_bn_res_relu(a, packed, res_p, *, out_dtype=jnp.bfloat16, tm=512):
    """conv2 GEMM + BN + residual + ReLU; res_p is fed in its padded (Mp, 128) form."""
    w_p, scale_p, shift_p = packed
    M, K = a.shape
    Kp, Np = w_p.shape
    tm_eff = _pick_tm(M, tm)
    Mp = _ru(M, tm_eff)
    assert res_p.shape == (Mp, Np), (res_p.shape, (Mp, Np))
    a_p = jnp.pad(a.astype(jnp.bfloat16), ((0, Mp - M), (0, Kp - K)))
    return pl.pallas_call(
        _gemm_bn_res_relu_kernel,
        out_shape=jax.ShapeDtypeStruct((Mp, Np), out_dtype),
        grid=(Mp // tm_eff,),
        in_specs=[pl.BlockSpec((tm_eff, Kp), lambda i: (i, 0)),
                  pl.BlockSpec((Kp, Np), lambda i: (0, 0)),
                  pl.BlockSpec((1, Np), lambda i: (0, 0)),
                  pl.BlockSpec((1, Np), lambda i: (0, 0)),
                  pl.BlockSpec((tm_eff, Np), lambda i: (i, 0))],
        out_specs=pl.BlockSpec((tm_eff, Np), lambda i: (i, 0)),
        compiler_params=pltpu.CompilerParams(dimension_semantics=("parallel",)),
    )(a_p, w_p, scale_p, shift_p, res_p)


def head_gap_fc_softmax(x_nhwc, fc_packed, num_classes):
    """Fused global-avg-pool + FC + softmax (single grid-less kernel)."""
    # TODO(synk): only equivalent to F.avg_pool2d(out, out.size(3)) for square maps.
    w_p, b_p = fc_packed
    N, H, W, C = x_nhwc.shape
    x3 = x_nhwc.reshape(N, H * W, C)
    Np = w_p.shape[1]
    logits, probas = pl.pallas_call(
        functools.partial(_head_kernel, num_classes=num_classes),
        out_shape=(jax.ShapeDtypeStruct((N, Np), jnp.float32),
                   jax.ShapeDtypeStruct((N, Np), jnp.float32)),
        in_specs=[pl.BlockSpec(memory_space=pltpu.MemorySpace.VMEM)] * 3,
        out_specs=[pl.BlockSpec(memory_space=pltpu.MemorySpace.VMEM)] * 2,
    )(x3, w_p, b_p)
    return logits[:, :num_classes], probas[:, :num_classes]


# --------------------------------------------------------------------------
# Glue: im2col, BasicBlock, full model
# --------------------------------------------------------------------------

def im2col(x, kh, kw, stride, pad):
    """NHWC -> (N*Ho*Wo, kh*kw*Cin) bf16 patches, feature order (kh, kw, Cin)."""
    N, H, W, C = x.shape
    if pad:
        x = jnp.pad(x, ((0, 0), (pad, pad), (pad, pad), (0, 0)))
    Ho = (H + 2 * pad - kh) // stride + 1
    Wo = (W + 2 * pad - kw) // stride + 1
    cols = []
    for dh in range(kh):
        for dw in range(kw):
            cols.append(x[:, dh:dh + stride * (Ho - 1) + 1:stride,
                            dw:dw + stride * (Wo - 1) + 1:stride, :])
    patches = jnp.concatenate(cols, axis=-1)            # (N, Ho, Wo, kh*kw*C)
    return patches.reshape(N * Ho * Wo, kh * kw * C), Ho, Wo


def basic_block(x_nhwc, bp, bcfg):
    planes, stride = bcfg['planes'], bcfg['stride']
    N = x_nhwc.shape[0]
    a1, Ho, Wo = im2col(x_nhwc, 3, 3, stride, 1)
    M2 = a1.shape[0]
    # conv1+BN+ReLU and (1x1 conv / identity) shortcut+BN share one kernel / one A.
    h_p, sc_p = dual_gemm_bn(a1, bp['conv1'], bp['shortcut'])
    h_nhwc = h_p[:M2, :planes].reshape(N, Ho, Wo, planes)
    a2, _, _ = im2col(h_nhwc, 3, 3, 1, 1)
    # conv2 + BN + residual add + ReLU in one GEMM epilogue; residual kept padded.
    out_p = gemm_bn_res_relu(a2, bp['conv2'], sc_p)
    return out_p[:M2, :planes].reshape(N, Ho, Wo, planes)


def resnet_forward(params, x_nchw, cfg):
    x = jnp.transpose(x_nchw, (0, 2, 3, 1)).astype(jnp.bfloat16)    # NCHW -> NHWC
    N = x.shape[0]
    a0, Ho, Wo = im2col(x, 3, 3, 1, 1)
    stem_p = gemm_bn_relu(a0, params['stem'])
    out = stem_p[:N * Ho * Wo, :cfg['stem_planes']].reshape(N, Ho, Wo,
                                                            cfg['stem_planes'])
    for layer_cfg, layer_p in zip(cfg['layers'], params['layers']):
        for bcfg, bp in zip(layer_cfg, layer_p):
            out = basic_block(out, bp, bcfg)
    logits, probas = head_gap_fc_softmax(out, params['fc'], cfg['num_classes'])
    return logits, probas


# --------------------------------------------------------------------------
# Configuration / deterministic raw parameters / GEMM-ready packing
# --------------------------------------------------------------------------

def make_config(num_blocks=(1, 1, 1), num_classes=10):
    in_planes = 16
    layers = []
    for planes, nb, stride in zip((16, 32, 64), num_blocks, (1, 2, 2)):
        strides = [stride] + [1] * (nb - 1)
        blocks = []
        for s in strides:
            blocks.append(dict(in_planes=in_planes, planes=planes, stride=s))
            in_planes = planes   # BasicBlock.expansion == 1
        layers.append(blocks)
    return dict(stem_planes=16, layers=layers, fc_in=in_planes,
                num_classes=num_classes)


def init_raw_params(key, cfg):
    keys = iter(jax.random.split(key, 256))

    def convw(cout, cin, kh, kw):
        fan = cin * kh * kw
        return jax.random.normal(next(keys), (cout, cin, kh, kw),
                                 jnp.float32) * (2.0 / fan) ** 0.5

    def bn(c):
        return dict(
            gamma=1.0 + 0.1 * jax.random.normal(next(keys), (c,), jnp.float32),
            beta=0.1 * jax.random.normal(next(keys), (c,), jnp.float32),
            mean=0.1 * jax.random.normal(next(keys), (c,), jnp.float32),
            var=1.0 + 0.1 * jax.random.uniform(next(keys), (c,), jnp.float32),
        )

    raw = dict(conv1_w=convw(cfg['stem_planes'], 3, 3, 3),
               bn1=bn(cfg['stem_planes']), layers=[])
    for layer in cfg['layers']:
        blks = []
        for b in layer:
            cin, cout, s = b['in_planes'], b['planes'], b['stride']
            bp = dict(conv1_w=convw(cout, cin, 3, 3), bn1=bn(cout),
                      conv2_w=convw(cout, cout, 3, 3), bn2=bn(cout))
            if s != 1 or cin != cout:
                bp['sc_conv_w'] = convw(cout, cin, 1, 1)
                bp['sc_bn'] = bn(cout)
            blks.append(bp)
        raw['layers'].append(blks)
    raw['fc_w'] = jax.random.normal(next(keys), (cfg['num_classes'], cfg['fc_in']),
                                    jnp.float32) * (1.0 / cfg['fc_in']) ** 0.5
    raw['fc_b'] = 0.01 * jax.random.normal(next(keys), (cfg['num_classes'],),
                                           jnp.float32)
    return raw


def _fold_bn(bn):
    scale = bn['gamma'] * jax.lax.rsqrt(bn['var'] + BN_EPS)
    shift = bn['beta'] - bn['mean'] * scale
    return scale, shift


def _pad_row(v, Np):
    return jnp.pad(v.reshape(1, -1).astype(jnp.float32), ((0, 0), (0, Np - v.size)))


def _prep_conv_bn(w_oihw, bn):
    """Fold BN, pack to (Kp, 128) bf16 GEMM layout. K padded to 16 only (not 128)."""
    cout, cin, kh, kw = w_oihw.shape
    K = kh * kw * cin
    Kp, Np = _ru(K, 16), _ru(cout, LANES)
    w2 = jnp.transpose(w_oihw, (2, 3, 1, 0)).reshape(K, cout)       # (kh,kw,cin) major
    scale, shift = _fold_bn(bn)
    return (jnp.pad(w2, ((0, Kp - K), (0, Np - cout))).astype(jnp.bfloat16),
            _pad_row(scale, Np), _pad_row(shift, Np))


def _prep_shortcut_embedded(w_sc_oihw, bn, cin, Kp):
    """1x1 shortcut conv embedded at the centre-tap rows of the 3x3 im2col matrix."""
    cout = w_sc_oihw.shape[0]
    Np = _ru(cout, LANES)
    w = jnp.zeros((Kp, cout), jnp.float32)
    w = w.at[4 * cin:5 * cin, :].set(w_sc_oihw[:, :, 0, 0].T)
    scale, shift = _fold_bn(bn)
    return (jnp.pad(w, ((0, 0), (0, Np - cout))).astype(jnp.bfloat16),
            _pad_row(scale, Np), _pad_row(shift, Np))


def _prep_identity_embedded(planes, Kp):
    """Identity shortcut expressed as a centre-tap 'conv' (numerically exact)."""
    Np = _ru(planes, LANES)
    w = jnp.zeros((Kp, planes), jnp.float32)
    w = w.at[4 * planes:5 * planes, :].set(jnp.eye(planes, dtype=jnp.float32))
    return (jnp.pad(w, ((0, 0), (0, Np - planes))).astype(jnp.bfloat16),
            _pad_row(jnp.ones((planes,), jnp.float32), Np),
            _pad_row(jnp.zeros((planes,), jnp.float32), Np))


def _prep_fc(fc_w, fc_b):
    nc, c = fc_w.shape
    Np = _ru(nc, LANES)
    w = jnp.pad(fc_w.T.astype(jnp.float32), ((0, 0), (0, Np - nc)))   # (C, Np)
    b = _pad_row(fc_b, Np)
    return (w, b)


def prep_params(raw, cfg):
    params = dict(stem=_prep_conv_bn(raw['conv1_w'], raw['bn1']), layers=[])
    for layer_cfg, layer_raw in zip(cfg['layers'], raw['layers']):
        blks = []
        for bcfg, braw in zip(layer_cfg, layer_raw):
            cin = bcfg['in_planes']
            Kp1 = _ru(9 * cin, 16)
            bp = dict(conv1=_prep_conv_bn(braw['conv1_w'], braw['bn1']),
                      conv2=_prep_conv_bn(braw['conv2_w'], braw['bn2']))
            if 'sc_conv_w' in braw:
                bp['shortcut'] = _prep_shortcut_embedded(braw['sc_conv_w'],
                                                         braw['sc_bn'], cin, Kp1)
            else:
                bp['shortcut'] = _prep_identity_embedded(bcfg['planes'], Kp1)
            blks.append(bp)
        params['layers'].append(blks)
    params['fc'] = _prep_fc(raw['fc_w'], raw['fc_b'])
    return params


# --------------------------------------------------------------------------

if __name__ == "__main__":
    cfg = make_config(num_blocks=(1, 1, 1), num_classes=10)
    key = random.PRNGKey(0)
    pkey, xkey = random.split(key)
    raw = init_raw_params(pkey, cfg)
    params = prep_params(raw, cfg)   # GEMM-ready packed weights, done once outside jit

    # CIFAR-style input: NCHW, 3 channels, 32x32 spatial (downsample factor 4 -> 8x8).
    x = random.normal(xkey, (2, 3, 32, 32), jnp.float32)

    fwd = jax.jit(lambda p, xx: resnet_forward(p, xx, cfg))
    logits, probas = fwd(params, x)
    jax.block_until_ready((logits, probas))

    assert logits.shape == (2, 10) and probas.shape == (2, 10)
    assert bool(jnp.all(jnp.isfinite(logits))) and bool(jnp.all(jnp.isfinite(probas)))
    assert bool(jnp.allclose(jnp.sum(probas, axis=1), 1.0, atol=1e-4))
    print("KERNEL_OK")
</pallas_src>

<mosaic_0001>
module attributes {stable_mosaic.version = 11 : i64} {
  func.func @_gemm_bn_relu_kernel(%arg0: i32, %arg1: memref<512x32xbf16, #tpu.memory_space<vmem>>, %arg2: memref<32x128xbf16, #tpu.memory_space<vmem>>, %arg3: memref<1x128xf32, #tpu.memory_space<vmem>>, %arg4: memref<1x128xf32, #tpu.memory_space<vmem>>, %arg5: memref<512x128xbf16, #tpu.memory_space<vmem>>) attributes {dimension_semantics = [#tpu.dimension_semantics<parallel>], iteration_bounds = array<i64: 4>, scalar_prefetch = 0 : i64, scratch_operands = 0 : i64, tpu.core_type = #tpu.core_type<tc>, window_params = [{transform_indices = @transform_0, window_bounds = array<i64: 512, 32>}, {pipeline_mode = #tpu.pipeline_mode<synchronous>, transform_indices = @transform_1, window_bounds = array<i64: 32, 128>}, {pipeline_mode = #tpu.pipeline_mode<synchronous>, transform_indices = @transform_2, window_bounds = array<i64: 1, 128>}, {pipeline_mode = #tpu.pipeline_mode<synchronous>, transform_indices = @transform_3, window_bounds = array<i64: 1, 128>}, {transform_indices = @transform_4, window_bounds = array<i64: 512, 128>}]} {
    %c0 = arith.constant 0 : index
    %c0_0 = arith.constant 0 : index
    %0 = vector.load %arg1[%c0, %c0_0] : memref<512x32xbf16, #tpu.memory_space<vmem>>, vector<512x32xbf16>
    %c0_1 = arith.constant 0 : index
    %c0_2 = arith.constant 0 : index
    %1 = vector.load %arg2[%c0_1, %c0_2] : memref<32x128xbf16, #tpu.memory_space<vmem>>, vector<32x128xbf16>
    %cst = arith.constant dense<0.000000e+00> : vector<512x128xf32>
    %2 = tpu.matmul %0, %1, %cst {dimension_numbers = #tpu.dot_dimension_numbers<[1], [0], [0], [1], [0, 0, 1, 1], [], []>} : vector<512x32xbf16>, vector<32x128xbf16>, vector<512x128xf32> -> vector<512x128xf32>
    %c0_3 = arith.constant 0 : index
    %c0_4 = arith.constant 0 : index
    %3 = vector.load %arg3[%c0_3, %c0_4] : memref<1x128xf32, #tpu.memory_space<vmem>>, vector<1x128xf32>
    %4 = vector.broadcast %3 : vector<1x128xf32> to vector<512x128xf32>
    %5 = arith.mulf %2, %4 : vector<512x128xf32>
    %c0_5 = arith.constant 0 : index
    %c0_6 = arith.constant 0 : index
    %6 = vector.load %arg4[%c0_5, %c0_6] : memref<1x128xf32, #tpu.memory_space<vmem>>, vector<1x128xf32>
    %7 = vector.broadcast %6 : vector<1x128xf32> to vector<512x128xf32>
    %8 = arith.addf %5, %7 : vector<512x128xf32>
    %cst_7 = arith.constant 0.000000e+00 : f32
    %9 = vector.broadcast %cst_7 : f32 to vector<512x128xf32>
    %10 = arith.maximumf %8, %9 : vector<512x128xf32>
    %11 = arith.truncf %10 : vector<512x128xf32> to vector<512x128xbf16>
    %c0_8 = arith.constant 0 : index
    %c0_9 = arith.constant 0 : index
    %12 = vector.load %arg5[%c0_8, %c0_9] : memref<512x128xbf16, #tpu.memory_space<vmem>>, vector<512x128xbf16>
    tpu.vector_store %arg5[%c0_8, %c0_9], %11 {strides = array<i32>} : memref<512x128xbf16, #tpu.memory_space<vmem>>, vector<512x128xbf16>,
    return
  }
  func.func @transform_0(%arg0: i32) -> (i32, i32) {
    %c0_i32 = arith.constant 0 : i32
    %c0_i32_0 = arith.constant 0 : i32
    return %arg0, %c0_i32 : i32, i32
  }
  func.func @transform_1(%arg0: i32) -> (i32, i32) {
    %c0_i32 = arith.constant 0 : i32
    %c0_i32_0 = arith.constant 0 : i32
    %c0_i32_1 = arith.constant 0 : i32
    return %c0_i32, %c0_i32_0 : i32, i32
  }
  func.func @transform_2(%arg0: i32) -> (i32, i32) {
    %c0_i32 = arith.constant 0 : i32
    %c0_i32_0 = arith.constant 0 : i32
    %c0_i32_1 = arith.constant 0 : i32
    return %c0_i32, %c0_i32_0 : i32, i32
  }
  func.func @transform_3(%arg0: i32) -> (i32, i32) {
    %c0_i32 = arith.constant 0 : i32
    %c0_i32_0 = arith.constant 0 : i32
    %c0_i32_1 = arith.constant 0 : i32
    return %c0_i32, %c0_i32_0 : i32, i32
  }
  func.func @transform_4(%arg0: i32) -> (i32, i32) {
    %c0_i32 = arith.constant 0 : i32
    %c0_i32_0 = arith.constant 0 : i32
    return %arg0, %c0_i32 : i32, i32
  }
}

module attributes {stable_mosaic.version = 11 : i64} {
  func.func @_dual_gemm_bn_kernel(%arg0: i32, %arg1: memref<512x144xbf16, #tpu.memory_space<vmem>>, %arg2: memref<144x128xbf16, #tpu.memory_space<vmem>>, %arg3: memref<1x128xf32, #tpu.memory_space<vmem>>, %arg4: memref<1x128xf32, #tpu.memory_space<vmem>>, %arg5: memref<144x128xbf16, #tpu.memory_space<vmem>>, %arg6: memref<1x128xf32, #tpu.memory_space<vmem>>, %arg7: memref<1x128xf32, #tpu.memory_space<vmem>>, %arg8: memref<512x128xbf16, #tpu.memory_space<vmem>>, %arg9: memref<512x128xbf16, #tpu.memory_space<vmem>>) attributes {dimension_semantics = [#tpu.dimension_semantics<parallel>], iteration_bounds = array<i64: 4>, scalar_prefetch = 0 : i64, scratch_operands = 0 : i64, tpu.core_type = #tpu.core_type<tc>, window_params = [{transform_indices = @transform_0, window_bounds = array<i64: 512, 144>}, {pipeline_mode = #tpu.pipeline_mode<synchronous>, transform_indices = @transform_1, window_bounds = array<i64: 144, 128>}, {pipeline_mode = #tpu.pipeline_mode<synchronous>, transform_indices = @transform_2, window_bounds = array<i64: 1, 128>}, {pipeline_mode = #tpu.pipeline_mode<synchronous>, transform_indices = @transform_3, window_bounds = array<i64: 1, 128>}, {pipeline_mode = #tpu.pipeline_mode<synchronous>, transform_indices = @transform_4, window_bounds = array<i64: 144, 128>}, {pipeline_mode = #tpu.pipeline_mode<synchronous>, transform_indices = @transform_5, window_bounds = array<i64: 1, 128>}, {pipeline_mode = #tpu.pipeline_mode<synchronous>, transform_indices = @transform_6, window_bounds = array<i64: 1, 128>}, {transform_indices = @transform_7, window_bounds = array<i64: 512, 128>}, {transform_indices = @transform_8, window_bounds = array<i64: 512, 128>}]} {
    %c0 = arith.constant 0 : index
    %c0_0 = arith.constant 0 : index
    %0 = vector.load %arg1[%c0, %c0_0] : memref<512x144xbf16, #tpu.memory_space<vmem>>, vector<512x144xbf16>
    %c0_1 = arith.constant 0 : index
    %c0_2 = arith.constant 0 : index
    %1 = vector.load %arg2[%c0_1, %c0_2] : memref<144x128xbf16, #tpu.memory_space<vmem>>, vector<144x128xbf16>
    %cst = arith.constant dense<0.000000e+00> : vector<512x128xf32>
    %2 = tpu.matmul %0, %1, %cst {dimension_numbers = #tpu.dot_dimension_numbers<[1], [0], [0], [1], [0, 0, 1, 1], [], []>} : vector<512x144xbf16>, vector<144x128xbf16>, vector<512x128xf32> -> vector<512x128xf32>
    %c0_3 = arith.constant 0 : index
    %c0_4 = arith.constant 0 : index
    %3 = vector.load %arg3[%c0_3, %c0_4] : memref<1x128xf32, #tpu.memory_space<vmem>>, vector<1x128xf32>
    %4 = vector.broadcast %3 : vector<1x128xf32> to vector<512x128xf32>
    %5 = arith.mulf %2, %4 : vector<512x128xf32>
    %c0_5 = arith.constant 0 : index
    %c0_6 = arith.constant 0 : index
    %6 = vector.load %arg4[%c0_5, %c0_6] : memref<1x128xf32, #tpu.memory_space<vmem>>, vector<1x128xf32>
    %7 = vector.broadcast %6 : vector<1x128xf32> to vector<512x128xf32>
    %8 = arith.addf %5, %7 : vector<512x128xf32>
    %cst_7 = arith.constant 0.000000e+00 : f32
    %9 = vector.broadcast %cst_7 : f32 to vector<512x128xf32>
    %10 = arith.maximumf %8, %9 : vector<512x128xf32>
    %11 = arith.truncf %10 : vector<512x128xf32> to vector<512x128xbf16>
    %c0_8 = arith.constant 0 : index
    %c0_9 = arith.constant 0 : index
    %12 = vector.load %arg8[%c0_8, %c0_9] : memref<512x128xbf16, #tpu.memory_space<vmem>>, vector<512x128xbf16>
    tpu.vector_store %arg8[%c0_8, %c0_9], %11 {strides = array<i32>} : memref<512x128xbf16, #tpu.memory_space<vmem>>, vector<512x128xbf16>,
    %c0_10 = arith.constant 0 : index
    %c0_11 = arith.constant 0 : index
    %13 = vector.load %arg5[%c0_10, %c0_11] : memref<144x128xbf16, #tpu.memory_space<vmem>>, vector<144x128xbf16>
    %cst_12 = arith.constant dense<0.000000e+00> : vector<512x128xf32>
    %14 = tpu.matmul %0, %13, %cst_12 {dimension_numbers = #tpu.dot_dimension_numbers<[1], [0], [0], [1], [0, 0, 1, 1], [], []>} : vector<512x144xbf16>, vector<144x128xbf16>, vector<512x128xf32> -> vector<512x128xf32>
    %c0_13 = arith.constant 0 : index
    %c0_14 = arith.constant 0 : index
    %15 = vector.load %arg6[%c0_13, %c0_14] : memref<1x128xf32, #tpu.memory_space<vmem>>, vector<1x128xf32>
    %16 = vector.broadcast %15 : vector<1x128xf32> to vector<512x128xf32>
    %17 = arith.mulf %14, %16 : vector<512x128xf32>
    %c0_15 = arith.constant 0 : index
    %c0_16 = arith.constant 0 : index
    %18 = vector.load %arg7[%c0_15, %c0_16] : memref<1x128xf32, #tpu.memory_space<vmem>>, vector<1x128xf32>
    %19 = vector.broadcast %18 : vector<1x128xf32> to vector<512x128xf32>
    %20 = arith.addf %17, %19 : vector<512x128xf32>
    %21 = arith.truncf %20 : vector<512x128xf32> to vector<512x128xbf16>
    %c0_17 = arith.constant 0 : index
    %c0_18 = arith.constant 0 : index
    %22 = vector.load %arg9[%c0_17, %c0_18] : memref<512x128xbf16, #tpu.memory_space<vmem>>, vector<512x128xbf16>
    tpu.vector_store %arg9[%c0_17, %c0_18], %21 {strides = array<i32>} : memref<512x128xbf16, #tpu.memory_space<vmem>>, vector<512x128xbf16>,
    return
  }
  func.func @transform_0(%arg0: i32) -> (i32, i32) {
    %c0_i32 = arith.constant 0 : i32
    %c0_i32_0 = arith.constant 0 : i32
    return %arg0, %c0_i32 : i32, i32
  }
  func.func @transform_1(%arg0: i32) -> (i32, i32) {
    %c0_i32 = arith.constant 0 : i32
    %c0_i32_0 = arith.constant 0 : i32
    %c0_i32_1 = arith.constant 0 : i32
    return %c0_i32, %c0_i32_0 : i32, i32
  }
  func.func @transform_2(%arg0: i32) -> (i32, i32) {
    %c0_i32 = arith.constant 0 : i32
    %c0_i32_0 = arith.constant 0 : i32
    %c0_i32_1 = arith.constant 0 : i32
    return %c0_i32, %c0_i32_0 : i32, i32
  }
  func.func @transform_3(%arg0: i32) -> (i32, i32) {
    %c0_i32 = arith.constant 0 : i32
    %c0_i32_0 = arith.constant 0 : i32
    %c0_i32_1 = arith.constant 0 : i32
    return %c0_i32, %c0_i32_0 : i32, i32
  }
  func.func @transform_4(%arg0: i32) -> (i32, i32) {
    %c0_i32 = arith.constant 0 : i32
    %c0_i32_0 = arith.constant 0 : i32
    %c0_i32_1 = arith.constant 0 : i32
    return %c0_i32, %c0_i32_0 : i32, i32
  }
  func.func @transform_5(%arg0: i32) -> (i32, i32) {
    %c0_i32 = arith.constant 0 : i32
    %c0_i32_0 = arith.constant 0 : i32
    %c0_i32_1 = arith.constant 0 : i32
    return %c0_i32, %c0_i32_0 : i32, i32
  }
  func.func @transform_6(%arg0: i32) -> (i32, i32) {
    %c0_i32 = arith.constant 0 : i32
    %c0_i32_0 = arith.constant 0 : i32
    %c0_i32_1 = arith.constant 0 : i32
    return %c0_i32, %c0_i32_0 : i32, i32
  }
  func.func @transform_7(%arg0: i32) -> (i32, i32) {
    %c0_i32 = arith.constant 0 : i32
    %c0_i32_0 = arith.constant 0 : i32
    return %arg0, %c0_i32 : i32, i32
  }
  func.func @transform_8(%arg0: i32) -> (i32, i32) {
    %c0_i32 = arith.constant 0 : i32
    %c0_i32_0 = arith.constant 0 : i32
    return %arg0, %c0_i32 : i32, i32
  }
}

module attributes {stable_mosaic.version = 11 : i64} {
  func.func @_gemm_bn_res_relu_kernel(%arg0: i32, %arg1: memref<512x144xbf16, #tpu.memory_space<vmem>>, %arg2: memref<144x128xbf16, #tpu.memory_space<vmem>>, %arg3: memref<1x128xf32, #tpu.memory_space<vmem>>, %arg4: memref<1x128xf32, #tpu.memory_space<vmem>>, %arg5: memref<512x128xbf16, #tpu.memory_space<vmem>>, %arg6: memref<512x128xbf16, #tpu.memory_space<vmem>>) attributes {dimension_semantics = [#tpu.dimension_semantics<parallel>], iteration_bounds = array<i64: 4>, scalar_prefetch = 0 : i64, scratch_operands = 0 : i64, tpu.core_type = #tpu.core_type<tc>, window_params = [{transform_indices = @transform_0, window_bounds = array<i64: 512, 144>}, {pipeline_mode = #tpu.pipeline_mode<synchronous>, transform_indices = @transform_1, window_bounds = array<i64: 144, 128>}, {pipeline_mode = #tpu.pipeline_mode<synchronous>, transform_indices = @transform_2, window_bounds = array<i64: 1, 128>}, {pipeline_mode = #tpu.pipeline_mode<synchronous>, transform_indices = @transform_3, window_bounds = array<i64: 1, 128>}, {transform_indices = @transform_4, window_bounds = array<i64: 512, 128>}, {transform_indices = @transform_5, window_bounds = array<i64: 512, 128>}]} {
    %c0 = arith.constant 0 : index
    %c0_0 = arith.constant 0 : index
    %0 = vector.load %arg1[%c0, %c0_0] : memref<512x144xbf16, #tpu.memory_space<vmem>>, vector<512x144xbf16>
    %c0_1 = arith.constant 0 : index
    %c0_2 = arith.constant 0 : index
    %1 = vector.load %arg2[%c0_1, %c0_2] : memref<144x128xbf16, #tpu.memory_space<vmem>>, vector<144x128xbf16>
    %cst = arith.constant dense<0.000000e+00> : vector<512x128xf32>
    %2 = tpu.matmul %0, %1, %cst {dimension_numbers = #tpu.dot_dimension_numbers<[1], [0], [0], [1], [0, 0, 1, 1], [], []>} : vector<512x144xbf16>, vector<144x128xbf16>, vector<512x128xf32> -> vector<512x128xf32>
    %c0_3 = arith.constant 0 : index
    %c0_4 = arith.constant 0 : index
    %3 = vector.load %arg3[%c0_3, %c0_4] : memref<1x128xf32, #tpu.memory_space<vmem>>, vector<1x128xf32>
    %4 = vector.broadcast %3 : vector<1x128xf32> to vector<512x128xf32>
    %5 = arith.mulf %2, %4 : vector<512x128xf32>
    %c0_5 = arith.constant 0 : index
    %c0_6 = arith.constant 0 : index
    %6 = vector.load %arg4[%c0_5, %c0_6] : memref<1x128xf32, #tpu.memory_space<vmem>>, vector<1x128xf32>
    %7 = vector.broadcast %6 : vector<1x128xf32> to vector<512x128xf32>
    %8 = arith.addf %5, %7 : vector<512x128xf32>
    %c0_7 = arith.constant 0 : index
    %c0_8 = arith.constant 0 : index
    %9 = vector.load %arg5[%c0_7, %c0_8] : memref<512x128xbf16, #tpu.memory_space<vmem>>, vector<512x128xbf16>
    %10 = arith.extf %9 : vector<512x128xbf16> to vector<512x128xf32>
    %11 = arith.addf %8, %10 : vector<512x128xf32>
    %cst_9 = arith.constant 0.000000e+00 : f32
    %12 = vector.broadcast %cst_9 : f32 to vector<512x128xf32>
    %13 = arith.maximumf %11, %12 : vector<512x128xf32>
    %14 = arith.truncf %13 : vector<512x128xf32> to vector<512x128xbf16>
    %c0_10 = arith.constant 0 : index
    %c0_11 = arith.constant 0 : index
    %15 = vector.load %arg6[%c0_10, %c0_11] : memref<512x128xbf16, #tpu.memory_space<vmem>>, vector<512x128xbf16>
    tpu.vector_store %arg6[%c0_10, %c0_11], %14 {strides = array<i32>} : memref<512x128xbf16, #tpu.memory_space<vmem>>, vector<512x128xbf16>,
    return
  }
  func.func @transform_0(%arg0: i32) -> (i32, i32) {
    %c0_i32 = arith.constant 0 : i32
    %c0_i32_0 = arith.constant 0 : i32
    return %arg0, %c0_i32 : i32, i32
  }
  func.func @transform_1(%arg0: i32) -> (i32, i32) {
    %c0_i32 = arith.constant 0 : i32
    %c0_i32_0 = arith.constant 0 : i32
    %c0_i32_1 = arith.constant 0 : i32
    return %c0_i32, %c0_i32_0 : i32, i32
  }
  func.func @transform_2(%arg0: i32) -> (i32, i32) {
    %c0_i32 = arith.constant 0 : i32
    %c0_i32_0 = arith.constant 0 : i32
    %c0_i32_1 = arith.constant 0 : i32
    return %c0_i32, %c0_i32_0 : i32, i32
  }
  func.func @transform_3(%arg0: i32) -> (i32, i32) {
    %c0_i32 = arith.constant 0 : i32
    %c0_i32_0 = arith.constant 0 : i32
    %c0_i32_1 = arith.constant 0 : i32
    return %c0_i32, %c0_i32_0 : i32, i32
  }
  func.func @transform_4(%arg0: i32) -> (i32, i32) {
    %c0_i32 = arith.constant 0 : i32
    %c0_i32_0 = arith.constant 0 : i32
    return %arg0, %c0_i32 : i32, i32
  }
  func.func @transform_5(%arg0: i32) -> (i32, i32) {
    %c0_i32 = arith.constant 0 : i32
    %c0_i32_0 = arith.constant 0 : i32
    return %arg0, %c0_i32 : i32, i32
  }
}

module attributes {stable_mosaic.version = 11 : i64} {
  func.func @_dual_gemm_bn_kernel(%arg0: i32, %arg1: memref<256x144xbf16, #tpu.memory_space<vmem>>, %arg2: memref<144x128xbf16, #tpu.memory_space<vmem>>, %arg3: memref<1x128xf32, #tpu.memory_space<vmem>>, %arg4: memref<1x128xf32, #tpu.memory_space<vmem>>, %arg5: memref<144x128xbf16, #tpu.memory_space<vmem>>, %arg6: memref<1x128xf32, #tpu.memory_space<vmem>>, %arg7: memref<1x128xf32, #tpu.memory_space<vmem>>, %arg8: memref<256x128xbf16, #tpu.memory_space<vmem>>, %arg9: memref<256x128xbf16, #tpu.memory_space<vmem>>) attributes {dimension_semantics = [#tpu.dimension_semantics<parallel>], iteration_bounds = array<i64: 2>, scalar_prefetch = 0 : i64, scratch_operands = 0 : i64, tpu.core_type = #tpu.core_type<tc>, window_params = [{transform_indices = @transform_0, window_bounds = array<i64: 256, 144>}, {pipeline_mode = #tpu.pipeline_mode<synchronous>, transform_indices = @transform_1, window_bounds = array<i64: 144, 128>}, {pipeline_mode = #tpu.pipeline_mode<synchronous>, transform_indices = @transform_2, window_bounds = array<i64: 1, 128>}, {pipeline_mode = #tpu.pipeline_mode<synchronous>, transform_indices = @transform_3, window_bounds = array<i64: 1, 128>}, {pipeline_mode = #tpu.pipeline_mode<synchronous>, transform_indices = @transform_4, window_bounds = array<i64: 144, 128>}, {pipeline_mode = #tpu.pipeline_mode<synchronous>, transform_indices = @transform_5, window_bounds = array<i64: 1, 128>}, {pipeline_mode = #tpu.pipeline_mode<synchronous>, transform_indices = @transform_6, window_bounds = array<i64: 1, 128>}, {transform_indices = @transform_7, window_bounds = array<i64: 256, 128>}, {transform_indices = @transform_8, window_bounds = array<i64: 256, 128>}]} {
    %c0 = arith.constant 0 : index
    %c0_0 = arith.constant 0 : index
    %0 = vector.load %arg1[%c0, %c0_0] : memref<256x144xbf16, #tpu.memory_space<vmem>>, vector<256x144xbf16>
    %c0_1 = arith.constant 0 : index
    %c0_2 = arith.constant 0 : index
    %1 = vector.load %arg2[%c0_1, %c0_2] : memref<144x128xbf16, #tpu.memory_space<vmem>>, vector<144x128xbf16>
    %cst = arith.constant dense<0.000000e+00> : vector<256x128xf32>
    %2 = tpu.matmul %0, %1, %cst {dimension_numbers = #tpu.dot_dimension_numbers<[1], [0], [0], [1], [0, 0, 1, 1], [], []>} : vector<256x144xbf16>, vector<144x128xbf16>, vector<256x128xf32> -> vector<256x128xf32>
    %c0_3 = arith.constant 0 : index
    %c0_4 = arith.constant 0 : index
    %3 = vector.load %arg3[%c0_3, %c0_4] : memref<1x128xf32, #tpu.memory_space<vmem>>, vector<1x128xf32>
    %4 = vector.broadcast %3 : vector<1x128xf32> to vector<256x128xf32>
    %5 = arith.mulf %2, %4 : vector<256x128xf32>
    %c0_5 = arith.constant 0 : index
    %c0_6 = arith.constant 0 : index
    %6 = vector.load %arg4[%c0_5, %c0_6] : memref<1x128xf32, #tpu.memory_space<vmem>>, vector<1x128xf32>
    %7 = vector.broadcast %6 : vector<1x128xf32> to vector<256x128xf32>
    %8 = arith.addf %5, %7 : vector<256x128xf32>
    %cst_7 = arith.constant 0.000000e+00 : f32
    %9 = vector.broadcast %cst_7 : f32 to vector<256x128xf32>
    %10 = arith.maximumf %8, %9 : vector<256x128xf32>
    %11 = arith.truncf %10 : vector<256x128xf32> to vector<256x128xbf16>
    %c0_8 = arith.constant 0 : index
    %c0_9 = arith.constant 0 : index
    %12 = vector.load %arg8[%c0_8, %c0_9] : memref<256x128xbf16, #tpu.memory_space<vmem>>, vector<256x128xbf16>
    tpu.vector_store %arg8[%c0_8, %c0_9], %11 {strides = array<i32>} : memref<256x128xbf16, #tpu.memory_space<vmem>>, vector<256x128xbf16>,
    %c0_10 = arith.constant 0 : index
    %c0_11 = arith.constant 0 : index
    %13 = vector.load %arg5[%c0_10, %c0_11] : memref<144x128xbf16, #tpu.memory_space<vmem>>, vector<144x128xbf16>
    %cst_12 = arith.constant dense<0.000000e+00> : vector<256x128xf32>
    %14 = tpu.matmul %0, %13, %cst_12 {dimension_numbers = #tpu.dot_dimension_numbers<[1], [0], [0], [1], [0, 0, 1, 1], [], []>} : vector<256x144xbf16>, vector<144x128xbf16>, vector<256x128xf32> -> vector<256x128xf32>
    %c0_13 = arith.constant 0 : index
    %c0_14 = arith.constant 0 : index
    %15 = vector.load %arg6[%c0_13, %c0_14] : memref<1x128xf32, #tpu.memory_space<vmem>>, vector<1x128xf32>
    %16 = vector.broadcast %15 : vector<1x128xf32> to vector<256x128xf32>
    %17 = arith.mulf %14, %16 : vector<256x128xf32>
    %c0_15 = arith.constant 0 : index
    %c0_16 = arith.constant 0 : index
    %18 = vector.load %arg7[%c0_15, %c0_16] : memref<1x128xf32, #tpu.memory_space<vmem>>, vector<1x128xf32>
    %19 = vector.broadcast %18 : vector<1x128xf32> to vector<256x128xf32>
    %20 = arith.addf %17, %19 : vector<256x128xf32>
    %21 = arith.truncf %20 : vector<256x128xf32> to vector<256x128xbf16>
    %c0_17 = arith.constant 0 : index
    %c0_18 = arith.constant 0 : index
    %22 = vector.load %arg9[%c0_17, %c0_18] : memref<256x128xbf16, #tpu.memory_space<vmem>>, vector<256x128xbf16>
    tpu.vector_store %arg9[%c0_17, %c0_18], %21 {strides = array<i32>} : memref<256x128xbf16, #tpu.memory_space<vmem>>, vector<256x128xbf16>,
    return
  }
  func.func @transform_0(%arg0: i32) -> (i32, i32) {
    %c0_i32 = arith.constant 0 : i32
    %c0_i32_0 = arith.constant 0 : i32
    return %arg0, %c0_i32 : i32, i32
  }
  func.func @transform_1(%arg0: i32) -> (i32, i32) {
    %c0_i32 = arith.constant 0 : i32
    %c0_i32_0 = arith.constant 0 : i32
    %c0_i32_1 = arith.constant 0 : i32
    return %c0_i32, %c0_i32_0 : i32, i32
  }
  func.func @transform_2(%arg0: i32) -> (i32, i32) {
    %c0_i32 = arith.constant 0 : i32
    %c0_i32_0 = arith.constant 0 : i32
    %c0_i32_1 = arith.constant 0 : i32
    return %c0_i32, %c0_i32_0 : i32, i32
  }
  func.func @transform_3(%arg0: i32) -> (i32, i32) {
    %c0_i32 = arith.constant 0 : i32
    %c0_i32_0 = arith.constant 0 : i32
    %c0_i32_1 = arith.constant 0 : i32
    return %c0_i32, %c0_i32_0 : i32, i32
  }
  func.func @transform_4(%arg0: i32) -> (i32, i32) {
    %c0_i32 = arith.constant 0 : i32
    %c0_i32_0 = arith.constant 0 : i32
    %c0_i32_1 = arith.constant 0 : i32
    return %c0_i32, %c0_i32_0 : i32, i32
  }
  func.func @transform_5(%arg0: i32) -> (i32, i32) {
    %c0_i32 = arith.constant 0 : i32
    %c0_i32_0 = arith.constant 0 : i32
    %c0_i32_1 = arith.constant 0 : i32
    return %c0_i32, %c0_i32_0 : i32, i32
  }
  func.func @transform_6(%arg0: i32) -> (i32, i32) {
    %c0_i32 = arith.constant 0 : i32
    %c0_i32_0 = arith.constant 0 : i32
    %c0_i32_1 = arith.constant 0 : i32
    return %c0_i32, %c0_i32_0 : i32, i32
  }
  func.func @transform_7(%arg0: i32) -> (i32, i32) {
    %c0_i32 = arith.constant 0 : i32
    %c0_i32_0 = arith.constant 0 : i32
    return %arg0, %c0_i32 : i32, i32
  }
  func.func @transform_8(%arg0: i32) -> (i32, i32) {
    %c0_i32 = arith.constant 0 : i32
    %c0_i32_0 = arith.constant 0 : i32
    return %arg0, %c0_i32 : i32, i32
  }
}

module attributes {stable_mosaic.version = 11 : i64} {
  func.func @_gemm_bn_res_relu_kernel(%arg0: i32, %arg1: memref<256x288xbf16, #tpu.memory_space<vmem>>, %arg2: memref<288x128xbf16, #tpu.memory_space<vmem>>, %arg3: memref<1x128xf32, #tpu.memory_space<vmem>>, %arg4: memref<1x128xf32, #tpu.memory_space<vmem>>, %arg5: memref<256x128xbf16, #tpu.memory_space<vmem>>, %arg6: memref<256x128xbf16, #tpu.memory_space<vmem>>) attributes {dimension_semantics = [#tpu.dimension_semantics<parallel>], iteration_bounds = array<i64: 2>, scalar_prefetch = 0 : i64, scratch_operands = 0 : i64, tpu.core_type = #tpu.core_type<tc>, window_params = [{transform_indices = @transform_0, window_bounds = array<i64: 256, 288>}, {pipeline_mode = #tpu.pipeline_mode<synchronous>, transform_indices = @transform_1, window_bounds = array<i64: 288, 128>}, {pipeline_mode = #tpu.pipeline_mode<synchronous>, transform_indices = @transform_2, window_bounds = array<i64: 1, 128>}, {pipeline_mode = #tpu.pipeline_mode<synchronous>, transform_indices = @transform_3, window_bounds = array<i64: 1, 128>}, {transform_indices = @transform_4, window_bounds = array<i64: 256, 128>}, {transform_indices = @transform_5, window_bounds = array<i64: 256, 128>}]} {
    %c0 = arith.constant 0 : index
    %c0_0 = arith.constant 0 : index
    %0 = vector.load %arg1[%c0, %c0_0] : memref<256x288xbf16, #tpu.memory_space<vmem>>, vector<256x288xbf16>
    %c0_1 = arith.constant 0 : index
    %c0_2 = arith.constant 0 : index
    %1 = vector.load %arg2[%c0_1, %c0_2] : memref<288x128xbf16, #tpu.memory_space<vmem>>, vector<288x128xbf16>
    %cst = arith.constant dense<0.000000e+00> : vector<256x128xf32>
    %2 = tpu.matmul %0, %1, %cst {dimension_numbers = #tpu.dot_dimension_numbers<[1], [0], [0], [1], [0, 0, 1, 1], [], []>} : vector<256x288xbf16>, vector<288x128xbf16>, vector<256x128xf32> -> vector<256x128xf32>
    %c0_3 = arith.constant 0 : index
    %c0_4 = arith.constant 0 : index
    %3 = vector.load %arg3[%c0_3, %c0_4] : memref<1x128xf32, #tpu.memory_space<vmem>>, vector<1x128xf32>
    %4 = vector.broadcast %3 : vector<1x128xf32> to vector<256x128xf32>
    %5 = arith.mulf %2, %4 : vector<256x128xf32>
    %c0_5 = arith.constant 0 : index
    %c0_6 = arith.constant 0 : index
    %6 = vector.load %arg4[%c0_5, %c0_6] : memref<1x128xf32, #tpu.memory_space<vmem>>, vector<1x128xf32>
    %7 = vector.broadcast %6 : vector<1x128xf32> to vector<256x128xf32>
    %8 = arith.addf %5, %7 : vector<256x128xf32>
    %c0_7 = arith.constant 0 : index
    %c0_8 = arith.constant 0 : index
    %9 = vector.load %arg5[%c0_7, %c0_8] : memref<256x128xbf16, #tpu.memory_space<vmem>>, vector<256x128xbf16>
    %10 = arith.extf %9 : vector<256x128xbf16> to vector<256x128xf32>
    %11 = arith.addf %8, %10 : vector<256x128xf32>
    %cst_9 = arith.constant 0.000000e+00 : f32
    %12 = vector.broadcast %cst_9 : f32 to vector<256x128xf32>
    %13 = arith.maximumf %11, %12 : vector<256x128xf32>
    %14 = arith.truncf %13 : vector<256x128xf32> to vector<256x128xbf16>
    %c0_10 = arith.constant 0 : index
    %c0_11 = arith.constant 0 : index
    %15 = vector.load %arg6[%c0_10, %c0_11] : memref<256x128xbf16, #tpu.memory_space<vmem>>, vector<256x128xbf16>
    tpu.vector_store %arg6[%c0_10, %c0_11], %14 {strides = array<i32>} : memref<256x128xbf16, #tpu.memory_space<vmem>>, vector<256x128xbf16>,
    return
  }
  func.func @transform_0(%arg0: i32) -> (i32, i32) {
    %c0_i32 = arith.constant 0 : i32
    %c0_i32_0 = arith.constant 0 : i32
    return %arg0, %c0_i32 : i32, i32
  }
  func.func @transform_1(%arg0: i32) -> (i32, i32) {
    %c0_i32 = arith.constant 0 : i32
    %c0_i32_0 = arith.constant 0 : i32
    %c0_i32_1 = arith.constant 0 : i32
    return %c0_i32, %c0_i32_0 : i32, i32
  }
  func.func @transform_2(%arg0: i32) -> (i32, i32) {
    %c0_i32 = arith.constant 0 : i32
    %c0_i32_0 = arith.constant 0 : i32
    %c0_i32_1 = arith.constant 0 : i32
    return %c0_i32, %c0_i32_0 : i32, i32
  }
  func.func @transform_3(%arg0: i32) -> (i32, i32) {
    %c0_i32 = arith.constant 0 : i32
    %c0_i32_0 = arith.constant 0 : i32
    %c0_i32_1 = arith.constant 0 : i32
    return %c0_i32, %c0_i32_0 : i32, i32
  }
  func.func @transform_4(%arg0: i32) -> (i32, i32) {
    %c0_i32 = arith.constant 0 : i32
    %c0_i32_0 = arith.constant 0 : i32
    return %arg0, %c0_i32 : i32, i32
  }
  func.func @transform_5(%arg0: i32) -> (i32, i32) {
    %c0_i32 = arith.constant 0 : i32
    %c0_i32_0 = arith.constant 0 : i32
    return %arg0, %c0_i32 : i32, i32
  }
}

module attributes {stable_mosaic.version = 11 : i64} {
  func.func @_dual_gemm_bn_kernel(%arg0: i32, %arg1: memref<64x288xbf16, #tpu.memory_space<vmem>>, %arg2: memref<288x128xbf16, #tpu.memory_space<vmem>>, %arg3: memref<1x128xf32, #tpu.memory_space<vmem>>, %arg4: memref<1x128xf32, #tpu.memory_space<vmem>>, %arg5: memref<288x128xbf16, #tpu.memory_space<vmem>>, %arg6: memref<1x128xf32, #tpu.memory_space<vmem>>, %arg7: memref<1x128xf32, #tpu.memory_space<vmem>>, %arg8: memref<64x128xbf16, #tpu.memory_space<vmem>>, %arg9: memref<64x128xbf16, #tpu.memory_space<vmem>>) attributes {dimension_semantics = [#tpu.dimension_semantics<parallel>], iteration_bounds = array<i64: 2>, scalar_prefetch = 0 : i64, scratch_operands = 0 : i64, tpu.core_type = #tpu.core_type<tc>, window_params = [{transform_indices = @transform_0, window_bounds = array<i64: 64, 288>}, {pipeline_mode = #tpu.pipeline_mode<synchronous>, transform_indices = @transform_1, window_bounds = array<i64: 288, 128>}, {pipeline_mode = #tpu.pipeline_mode<synchronous>, transform_indices = @transform_2, window_bounds = array<i64: 1, 128>}, {pipeline_mode = #tpu.pipeline_mode<synchronous>, transform_indices = @transform_3, window_bounds = array<i64: 1, 128>}, {pipeline_mode = #tpu.pipeline_mode<synchronous>, transform_indices = @transform_4, window_bounds = array<i64: 288, 128>}, {pipeline_mode = #tpu.pipeline_mode<synchronous>, transform_indices = @transform_5, window_bounds = array<i64: 1, 128>}, {pipeline_mode = #tpu.pipeline_mode<synchronous>, transform_indices = @transform_6, window_bounds = array<i64: 1, 128>}, {transform_indices = @transform_7, window_bounds = array<i64: 64, 128>}, {transform_indices = @transform_8, window_bounds = array<i64: 64, 128>}]} {
    %c0 = arith.constant 0 : index
    %c0_0 = arith.constant 0 : index
    %0 = vector.load %arg1[%c0, %c0_0] : memref<64x288xbf16, #tpu.memory_space<vmem>>, vector<64x288xbf16>
    %c0_1 = arith.constant 0 : index
    %c0_2 = arith.constant 0 : index
    %1 = vector.load %arg2[%c0_1, %c0_2] : memref<288x128xbf16, #tpu.memory_space<vmem>>, vector<288x128xbf16>
    %cst = arith.constant dense<0.000000e+00> : vector<64x128xf32>
    %2 = tpu.matmul %0, %1, %cst {dimension_numbers = #tpu.dot_dimension_numbers<[1], [0], [0], [1], [0, 0, 1, 1], [], []>} : vector<64x288xbf16>, vector<288x128xbf16>, vector<64x128xf32> -> vector<64x128xf32>
    %c0_3 = arith.constant 0 : index
    %c0_4 = arith.constant 0 : index
    %3 = vector.load %arg3[%c0_3, %c0_4] : memref<1x128xf32, #tpu.memory_space<vmem>>, vector<1x128xf32>
    %4 = vector.broadcast %3 : vector<1x128xf32> to vector<64x128xf32>
    %5 = arith.mulf %2, %4 : vector<64x128xf32>
    %c0_5 = arith.constant 0 : index
    %c0_6 = arith.constant 0 : index
    %6 = vector.load %arg4[%c0_5, %c0_6] : memref<1x128xf32, #tpu.memory_space<vmem>>, vector<1x128xf32>
    %7 = vector.broadcast %6 : vector<1x128xf32> to vector<64x128xf32>
    %8 = arith.addf %5, %7 : vector<64x128xf32>
    %cst_7 = arith.constant 0.000000e+00 : f32
    %9 = vector.broadcast %cst_7 : f32 to vector<64x128xf32>
    %10 = arith.maximumf %8, %9 : vector<64x128xf32>
    %11 = arith.truncf %10 : vector<64x128xf32> to vector<64x128xbf16>
    %c0_8 = arith.constant 0 : index
    %c0_9 = arith.constant 0 : index
    %12 = vector.load %arg8[%c0_8, %c0_9] : memref<64x128xbf16, #tpu.memory_space<vmem>>, vector<64x128xbf16>
    tpu.vector_store %arg8[%c0_8, %c0_9], %11 {strides = array<i32>} : memref<64x128xbf16, #tpu.memory_space<vmem>>, vector<64x128xbf16>,
    %c0_10 = arith.constant 0 : index
    %c0_11 = arith.constant 0 : index
    %13 = vector.load %arg5[%c0_10, %c0_11] : memref<288x128xbf16, #tpu.memory_space<vmem>>, vector<288x128xbf16>
    %cst_12 = arith.constant dense<0.000000e+00> : vector<64x128xf32>
    %14 = tpu.matmul %0, %13, %cst_12 {dimension_numbers = #tpu.dot_dimension_numbers<[1], [0], [0], [1], [0, 0, 1, 1], [], []>} : vector<64x288xbf16>, vector<288x128xbf16>, vector<64x128xf32> -> vector<64x128xf32>
    %c0_13 = arith.constant 0 : index
    %c0_14 = arith.constant 0 : index
    %15 = vector.load %arg6[%c0_13, %c0_14] : memref<1x128xf32, #tpu.memory_space<vmem>>, vector<1x128xf32>
    %16 = vector.broadcast %15 : vector<1x128xf32> to vector<64x128xf32>
    %17 = arith.mulf %14, %16 : vector<64x128xf32>
    %c0_15 = arith.constant 0 : index
    %c0_16 = arith.constant 0 : index
    %18 = vector.load %arg7[%c0_15, %c0_16] : memref<1x128xf32, #tpu.memory_space<vmem>>, vector<1x128xf32>
    %19 = vector.broadcast %18 : vector<1x128xf32> to vector<64x128xf32>
    %20 = arith.addf %17, %19 : vector<64x128xf32>
    %21 = arith.truncf %20 : vector<64x128xf32> to vector<64x128xbf16>
    %c0_17 = arith.constant 0 : index
    %c0_18 = arith.constant 0 : index
    %22 = vector.load %arg9[%c0_17, %c0_18] : memref<64x128xbf16, #tpu.memory_space<vmem>>, vector<64x128xbf16>
    tpu.vector_store %arg9[%c0_17, %c0_18], %21 {strides = array<i32>} : memref<64x128xbf16, #tpu.memory_space<vmem>>, vector<64x128xbf16>,
    return
  }
  func.func @transform_0(%arg0: i32) -> (i32, i32) {
    %c0_i32 = arith.constant 0 : i32
    %c0_i32_0 = arith.constant 0 : i32
    return %arg0, %c0_i32 : i32, i32
  }
  func.func @transform_1(%arg0: i32) -> (i32, i32) {
    %c0_i32 = arith.constant 0 : i32
    %c0_i32_0 = arith.constant 0 : i32
    %c0_i32_1 = arith.constant 0 : i32
    return %c0_i32, %c0_i32_0 : i32, i32
  }
  func.func @transform_2(%arg0: i32) -> (i32, i32) {
    %c0_i32 = arith.constant 0 : i32
    %c0_i32_0 = arith.constant 0 : i32
    %c0_i32_1 = arith.constant 0 : i32
    return %c0_i32, %c0_i32_0 : i32, i32
  }
  func.func @transform_3(%arg0: i32) -> (i32, i32) {
    %c0_i32 = arith.constant 0 : i32
    %c0_i32_0 = arith.constant 0 : i32
    %c0_i32_1 = arith.constant 0 : i32
    return %c0_i32, %c0_i32_0 : i32, i32
  }
  func.func @transform_4(%arg0: i32) -> (i32, i32) {
    %c0_i32 = arith.constant 0 : i32
    %c0_i32_0 = arith.constant 0 : i32
    %c0_i32_1 = arith.constant 0 : i32
    return %c0_i32, %c0_i32_0 : i32, i32
  }
  func.func @transform_5(%arg0: i32) -> (i32, i32) {
    %c0_i32 = arith.constant 0 : i32
    %c0_i32_0 = arith.constant 0 : i32
    %c0_i32_1 = arith.constant 0 : i32
    return %c0_i32, %c0_i32_0 : i32, i32
  }
  func.func @transform_6(%arg0: i32) -> (i32, i32) {
    %c0_i32 = arith.constant 0 : i32
    %c0_i32_0 = arith.constant 0 : i32
    %c0_i32_1 = arith.constant 0 : i32
    return %c0_i32, %c0_i32_0 : i32, i32
  }
  func.func @transform_7(%arg0: i32) -> (i32, i32) {
    %c0_i32 = arith.constant 0 : i32
    %c0_i32_0 = arith.constant 0 : i32
    return %arg0, %c0_i32 : i32, i32
  }
  func.func @transform_8(%arg0: i32) -> (i32, i32) {
    %c0_i32 = arith.constant 0 : i32
    %c0_i32_0 = arith.constant 0 : i32
    return %arg0, %c0_i32 : i32, i32
  }
}

module attributes {stable_mosaic.version = 11 : i64} {
  func.func @_gemm_bn_res_relu_kernel(%arg0: i32, %arg1: memref<64x576xbf16, #tpu.memory_space<vmem>>, %arg2: memref<576x128xbf16, #tpu.memory_space<vmem>>, %arg3: memref<1x128xf32, #tpu.memory_space<vmem>>, %arg4: memref<1x128xf32, #tpu.memory_space<vmem>>, %arg5: memref<64x128xbf16, #tpu.memory_space<vmem>>, %arg6: memref<64x128xbf16, #tpu.memory_space<vmem>>) attributes {dimension_semantics = [#tpu.dimension_semantics<parallel>], iteration_bounds = array<i64: 2>, scalar_prefetch = 0 : i64, scratch_operands = 0 : i64, tpu.core_type = #tpu.core_type<tc>, window_params = [{transform_indices = @transform_0, window_bounds = array<i64: 64, 576>}, {pipeline_mode = #tpu.pipeline_mode<synchronous>, transform_indices = @transform_1, window_bounds = array<i64: 576, 128>}, {pipeline_mode = #tpu.pipeline_mode<synchronous>, transform_indices = @transform_2, window_bounds = array<i64: 1, 128>}, {pipeline_mode = #tpu.pipeline_mode<synchronous>, transform_indices = @transform_3, window_bounds = array<i64: 1, 128>}, {transform_indices = @transform_4, window_bounds = array<i64: 64, 128>}, {transform_indices = @transform_5, window_bounds = array<i64: 64, 128>}]} {
    %c0 = arith.constant 0 : index
    %c0_0 = arith.constant 0 : index
    %0 = vector.load %arg1[%c0, %c0_0] : memref<64x576xbf16, #tpu.memory_space<vmem>>, vector<64x576xbf16>
    %c0_1 = arith.constant 0 : index
    %c0_2 = arith.constant 0 : index
    %1 = vector.load %arg2[%c0_1, %c0_2] : memref<576x128xbf16, #tpu.memory_space<vmem>>, vector<576x128xbf16>
    %cst = arith.constant dense<0.000000e+00> : vector<64x128xf32>
    %2 = tpu.matmul %0, %1, %cst {dimension_numbers = #tpu.dot_dimension_numbers<[1], [0], [0], [1], [0, 0, 1, 1], [], []>} : vector<64x576xbf16>, vector<576x128xbf16>, vector<64x128xf32> -> vector<64x128xf32>
    %c0_3 = arith.constant 0 : index
    %c0_4 = arith.constant 0 : index
    %3 = vector.load %arg3[%c0_3, %c0_4] : memref<1x128xf32, #tpu.memory_space<vmem>>, vector<1x128xf32>
    %4 = vector.broadcast %3 : vector<1x128xf32> to vector<64x128xf32>
    %5 = arith.mulf %2, %4 : vector<64x128xf32>
    %c0_5 = arith.constant 0 : index
    %c0_6 = arith.constant 0 : index
    %6 = vector.load %arg4[%c0_5, %c0_6] : memref<1x128xf32, #tpu.memory_space<vmem>>, vector<1x128xf32>
    %7 = vector.broadcast %6 : vector<1x128xf32> to vector<64x128xf32>
    %8 = arith.addf %5, %7 : vector<64x128xf32>
    %c0_7 = arith.constant 0 : index
    %c0_8 = arith.constant 0 : index
    %9 = vector.load %arg5[%c0_7, %c0_8] : memref<64x128xbf16, #tpu.memory_space<vmem>>, vector<64x128xbf16>
    %10 = arith.extf %9 : vector<64x128xbf16> to vector<64x128xf32>
    %11 = arith.addf %8, %10 : vector<64x128xf32>
    %cst_9 = arith.constant 0.000000e+00 : f32
    %12 = vector.broadcast %cst_9 : f32 to vector<64x128xf32>
    %13 = arith.maximumf %11, %12 : vector<64x128xf32>
    %14 = arith.truncf %13 : vector<64x128xf32> to vector<64x128xbf16>
    %c0_10 = arith.constant 0 : index
    %c0_11 = arith.constant 0 : index
    %15 = vector.load %arg6[%c0_10, %c0_11] : memref<64x128xbf16, #tpu.memory_space<vmem>>, vector<64x128xbf16>
    tpu.vector_store %arg6[%c0_10, %c0_11], %14 {strides = array<i32>} : memref<64x128xbf16, #tpu.memory_space<vmem>>, vector<64x128xbf16>,
    return
  }
  func.func @transform_0(%arg0: i32) -> (i32, i32) {
    %c0_i32 = arith.constant 0 : i32
    %c0_i32_0 = arith.constant 0 : i32
    return %arg0, %c0_i32 : i32, i32
  }
  func.func @transform_1(%arg0: i32) -> (i32, i32) {
    %c0_i32 = arith.constant 0 : i32
    %c0_i32_0 = arith.constant 0 : i32
    %c0_i32_1 = arith.constant 0 : i32
    return %c0_i32, %c0_i32_0 : i32, i32
  }
  func.func @transform_2(%arg0: i32) -> (i32, i32) {
    %c0_i32 = arith.constant 0 : i32
    %c0_i32_0 = arith.constant 0 : i32
    %c0_i32_1 = arith.constant 0 : i32
    return %c0_i32, %c0_i32_0 : i32, i32
  }
  func.func @transform_3(%arg0: i32) -> (i32, i32) {
    %c0_i32 = arith.constant 0 : i32
    %c0_i32_0 = arith.constant 0 : i32
    %c0_i32_1 = arith.constant 0 : i32
    return %c0_i32, %c0_i32_0 : i32, i32
  }
  func.func @transform_4(%arg0: i32) -> (i32, i32) {
    %c0_i32 = arith.constant 0 : i32
    %c0_i32_0 = arith.constant 0 : i32
    return %arg0, %c0_i32 : i32, i32
  }
  func.func @transform_5(%arg0: i32) -> (i32, i32) {
    %c0_i32 = arith.constant 0 : i32
    %c0_i32_0 = arith.constant 0 : i32
    return %arg0, %c0_i32 : i32, i32
  }
}

module attributes {stable_mosaic.version = 11 : i64} {
  func.func @_head_kernel(%arg0: memref<2x64x64xbf16, #tpu.memory_space<vmem>>, %arg1: memref<64x128xf32, #tpu.memory_space<vmem>>, %arg2: memref<1x128xf32, #tpu.memory_space<vmem>>, %arg3: memref<2x128xf32, #tpu.memory_space<vmem>>, %arg4: memref<2x128xf32, #tpu.memory_space<vmem>>) attributes {dimension_semantics = [], scalar_prefetch = 0 : i64, scratch_operands = 0 : i64, tpu.core_type = #tpu.core_type<tc>} {
    %c0 = arith.constant 0 : index
    %c0_0 = arith.constant 0 : index
    %c0_1 = arith.constant 0 : index
    %0 = vector.load %arg0[%c0, %c0_0, %c0_1] : memref<2x64x64xbf16, #tpu.memory_space<vmem>>, vector<2x64x64xbf16>
    %1 = arith.extf %0 : vector<2x64x64xbf16> to vector<2x64x64xf32>
    %cst = arith.constant dense<0.000000e+00> : vector<2x64xf32>
    %2 = vector.multi_reduction <add>, %1, %cst [1] : vector<2x64x64xf32> to vector<2x64xf32>
    %cst_2 = arith.constant 6.400000e+01 : f32
    %3 = vector.broadcast %cst_2 : f32 to vector<2x64xf32>
    %4 = arith.divf %2, %3 : vector<2x64xf32>
    %c0_3 = arith.constant 0 : index
    %c0_4 = arith.constant 0 : index
    %5 = vector.load %arg1[%c0_3, %c0_4] : memref<64x128xf32, #tpu.memory_space<vmem>>, vector<64x128xf32>
    %cst_5 = arith.constant dense<0.000000e+00> : vector<2x128xf32>
    %6 = tpu.matmul %4, %5, %cst_5 {dimension_numbers = #tpu.dot_dimension_numbers<[1], [0], [0], [1], [0, 0, 1, 1], [], []>} : vector<2x64xf32>, vector<64x128xf32>, vector<2x128xf32> -> vector<2x128xf32>
    %c0_6 = arith.constant 0 : index
    %c0_7 = arith.constant 0 : index
    %7 = vector.load %arg2[%c0_6, %c0_7] : memref<1x128xf32, #tpu.memory_space<vmem>>, vector<1x128xf32>
    %8 = vector.broadcast %7 : vector<1x128xf32> to vector<2x128xf32>
    %9 = arith.addf %6, %8 : vector<2x128xf32>
    %10 = tpu.iota {dimensions = array<i32: 1>} : vector<2x128xi32>
    %c10_i32 = arith.constant 10 : i32
    %11 = vector.broadcast %c10_i32 : i32 to vector<2x128xi32>
    %12 = arith.cmpi slt, %10, %11 : vector<2x128xi32>
    %cst_8 = arith.constant -1.000000e+30 : f32
    %13 = vector.broadcast %cst_8 : f32 to vector<2x128xf32>
    %14 = arith.select %12, %9, %13 : vector<2x128xi1>, vector<2x128xf32>
    %cst_9 = arith.constant dense<0xFF800000> : vector<2xf32>
    %15 = vector.multi_reduction <maximumf>, %14, %cst_9 [1] : vector<2x128xf32> to vector<2xf32>
    %16 = vector.shape_cast %15 : vector<2xf32> to vector<2x1xf32>
    %17 = vector.broadcast %16 : vector<2x1xf32> to vector<2x128xf32>
    %18 = arith.subf %14, %17 : vector<2x128xf32>
    %19 = math.exp %18 : vector<2x128xf32>
    %cst_10 = arith.constant dense<0.000000e+00> : vector<2xf32>
    %20 = vector.multi_reduction <add>, %19, %cst_10 [1] : vector<2x128xf32> to vector<2xf32>
    %21 = vector.shape_cast %20 : vector<2xf32> to vector<2x1xf32>
    %22 = vector.broadcast %21 : vector<2x1xf32> to vector<2x128xf32>
    %23 = arith.divf %19, %22 : vector<2x128xf32>
    %c0_11 = arith.constant 0 : index
    %c0_12 = arith.constant 0 : index
    %24 = vector.load %arg3[%c0_11, %c0_12] : memref<2x128xf32, #tpu.memory_space<vmem>>, vector<2x128xf32>
    tpu.vector_store %arg3[%c0_11, %c0_12], %9 {strides = array<i32>} : memref<2x128xf32, #tpu.memory_space<vmem>>, vector<2x128xf32>,
    %c0_13 = arith.constant 0 : index
    %c0_14 = arith.constant 0 : index
    %25 = vector.load %arg4[%c0_13, %c0_14] : memref<2x128xf32, #tpu.memory_space<vmem>>, vector<2x128xf32>
    tpu.vector_store %arg4[%c0_13, %c0_14], %23 {strides = array<i32>} : memref<2x128xf32, #tpu.memory_space<vmem>>, vector<2x128xf32>,
    return
  }
}

</mosaic_0001>

<bundles_post_ra>
// kernel: _lambda_.8
= control target key start
LH: loop header
LB: loop body
LE: loop exit
PB: predicated region body
PF: predicated region fallthrough
CT: control target
= control target key end

     0   :  { %s1989_s15 = smov 0   ;;  %s2257_s0 = inlined_call_operand.vmem [shape: bf16[2048,32], index: 0, kind: input, shape index: {}]   ;;  %s2258_s1 = inlined_call_operand.vmem [shape: bf16[32,128], index: 1, kind: input, shape index: {}]   ;;  %s2259_s2 = inlined_call_operand.vmem [shape: f32[1,128], index: 2, kind: input, shape index: {}]   ;;  %s2260_s3 = inlined_call_operand.vmem [shape: f32[1,128], index: 3, kind: input, shape index: {}]   ;;  %s2261_s4 = inlined_call_operand.vmem [shape: bf16[2048,128], index: 4, kind: output, shape index: {}]  }
   0x1 LB: > { %s1410_s16 = sadd.s32 4294967295, %s1962_s15   ;;  %p1414_p0 = scmp.ge.s32.totalorder %s1962_s15, 1  ;;  %s1962_s15 = sphi %s1989_s15, %s14_s15  }
   0x2   : > { %p163_p1 = scmp.lt.s32.totalorder %s1962_s15, 5 }
   0x4   : > { %p164_p2 = pnand %p1414_p0, %p163_p1 }
   0x5   : > { %v1922_v0 = vld [vmem:[%s2258_s1] sm:$0xff] (!%p164_p2)   ;;  %s1415_s19 = sshll.u32 (!%p164_p2), %s1410_s16, 6  ;;  %v1923_v1 = vld [vmem:[%s2258_s1 + $0x8] sm:$0xff] (!%p164_p2)   ;;  %vm442_vm0 = vcmask (!%p164_p2), 261120  }
   0x6   : > { %167 = sbr.rel (%p164_p2) target bundleno = 300 (0x12c), region = 36  ;;  %p190_p3 = scmp.lt.s32.totalorder (!%p164_p2), %s1415_s19, 255  ;;  %1842 = vmatprep.subr.bf16.mxu0 (!%p164_p2), %v1922_v0  ;;  %1910 = vmatprep.subr.bf16.mxu1 (!%p164_p2), %v1922_v0  ;;  %v2080_v34 = vld [vmem:[%s2259_s2] ss:$0 sm:$0xff] (!%p164_p2) }
   0x7   : > { %1843 = vmatpush3.bf16.msra.mxu0 (!%p164_p2), %v1922_v0  ;;  %1912 = vmatpush3.bf16.msra.mxu1 (!%p164_p2), %v1922_v0  ;;  %v2085_v36 = vld [vmem:[%s2260_s3] ss:$0 sm:$0xff] (!%p164_p2) }
   0x8   : > { %1844 = vmatprep.subr.bf16.mxu0 (!%p164_p2), %v1923_v1  ;;  %1911 = vmatprep.subr.bf16.mxu1 (!%p164_p2), %v1923_v1 }
   0xb   : > { %1845 = vmatpush3.bf16.msra.mxu0 (!%p164_p2), %v1923_v1  ;;  %1913 = vmatpush3.bf16.msra.mxu1 (!%p164_p2), %v1923_v1 }
   0xd   : > { %s2263_s19 = smov (!%p190_p3, %s1415_s19), 255 }
   0xe   : > { %s1416_s22 = sshll.u32 %s2263_s19, 2 }
   0xf   : > { %s2011_s25 = scalar_lea.vmem %s2257_s0, %s1416_s22  ;;  %s2108_s6 = scalar_lea.vmem %s2261_s4, %s1416_s22 }
  0x10   : > { %v1924_v2 = vld [vmem:[%s2011_s25] sm:$0xff]   ;;  %v1926_v4 = vld [vmem:[%s2011_s25 + $0x8] sm:$0xff]   ;;  %v1928_v6 = vld [vmem:[%s2011_s25 + $0x10] sm:$0xff]  }
  0x11   : > { %v1925_v3 = vld [vmem:[%s2011_s25 + $0x80] sm:$0xff]   ;;  %1846 = vmatprep.mubr.msk.bf16.mxu0 %vm442_vm0, %v1924_v2  ;;  %v1927_v5 = vld [vmem:[%s2011_s25 + $0x88] sm:$0xff]   ;;  %v1929_v7 = vld [vmem:[%s2011_s25 + $0x90] sm:$0xff]  }
  0x12   : > { %1878 = vmatprep.mubr.msk.bf16.mxu1 %vm442_vm0, %v1925_v3  ;;  %1847 = vmatmul.mubr.msk.bf16.vlgmr.msra.gmra.mrb[0].mxu0 %vm442_vm0, %v1926_v4  ;;  %v1930_v8 = vld [vmem:[%s2011_s25 + $0x18] sm:$0xff]   ;;  %v1932_v10 = vld [vmem:[%s2011_s25 + $0x20] sm:$0xff]   ;;  %v1934_v12 = vld [vmem:[%s2011_s25 + $0x28] sm:$0xff]  }
  0x13   : > { %1879 = vmatmul.mubr.msk.bf16.vlgmr.msra.gmra.mrb[0].mxu1 %vm442_vm0, %v1927_v5  ;;  %1850 = vmatprep.mubr.msk.bf16.mxu0 %vm442_vm0, %v1928_v6  ;;  %v1931_v9 = vld [vmem:[%s2011_s25 + $0x98] sm:$0xff]   ;;  %v1933_v11 = vld [vmem:[%s2011_s25 + $0xa0] sm:$0xff]   ;;  %v1935_v13 = vld [vmem:[%s2011_s25 + $0xa8] sm:$0xff]  }
  0x14   : > { %1882 = vmatprep.mubr.msk.bf16.mxu1 %vm442_vm0, %v1929_v7  ;;  %v1936_v14 = vld [vmem:[%s2011_s25 + $0x30] sm:$0xff]   ;;  %v1938_v16 = vld [vmem:[%s2011_s25 + $0x38] sm:$0xff]   ;;  %v1940_v18 = vld [vmem:[%s2011_s25 + $0x40] sm:$0xff]  }
  0x15   : > { %v1937_v15 = vld [vmem:[%s2011_s25 + $0xb0] sm:$0xff]   ;;  %v1939_v17 = vld [vmem:[%s2011_s25 + $0xb8] sm:$0xff]   ;;  %v1941_v19 = vld [vmem:[%s2011_s25 + $0xc0] sm:$0xff]  }
  0x16   : > { %v1942_v20 = vld [vmem:[%s2011_s25 + $0x48] sm:$0xff]   ;;  %v1944_v22 = vld [vmem:[%s2011_s25 + $0x50] sm:$0xff]   ;;  %v1946_v24 = vld [vmem:[%s2011_s25 + $0x58] sm:$0xff]  }
  0x17   : > { %v1943_v21 = vld [vmem:[%s2011_s25 + $0xc8] sm:$0xff]   ;;  %v1945_v23 = vld [vmem:[%s2011_s25 + $0xd0] sm:$0xff]   ;;  %v1947_v25 = vld [vmem:[%s2011_s25 + $0xd8] sm:$0xff]  }
  0x18   : > { %v1948_v26 = vld [vmem:[%s2011_s25 + $0x60] sm:$0xff]   ;;  %v1950_v28 = vld [vmem:[%s2011_s25 + $0x68] sm:$0xff]   ;;  %v1952_v30 = vld [vmem:[%s2011_s25 + $0x70] sm:$0xff]  }
  0x19   : > { %v1949_v27 = vld [vmem:[%s2011_s25 + $0xe0] sm:$0xff]   ;;  %v1951_v29 = vld [vmem:[%s2011_s25 + $0xe8] sm:$0xff]   ;;  %v1953_v31 = vld [vmem:[%s2011_s25 + $0xf0] sm:$0xff]  }
  0x1a   : > { %1851 = vmatmul.mubr.msk.bf16.gmra.mrb[4].mxu0 %vm442_vm0, %v1930_v8  ;;  %v1954_v32 = vld [vmem:[%s2011_s25 + $0x78] sm:$0xff]  }
  0x1b   : > { %1883 = vmatmul.mubr.msk.bf16.gmra.mrb[4].mxu1 %vm442_vm0, %v1931_v9  ;;  %1854 = vmatprep.mubr.msk.bf16.mxu0 %vm442_vm0, %v1932_v10  ;;  %v1955_v33 = vld [vmem:[%s2011_s25 + $0xf8] sm:$0xff]  }
  0x1c   : > { %1886 = vmatprep.mubr.msk.bf16.mxu1 %vm442_vm0, %v1933_v11 }
  0x22   : > { %1855 = vmatmul.mubr.msk.bf16.gmra.mrb[8].mxu0 %vm442_vm0, %v1934_v12 }
  0x23   : > { %1887 = vmatmul.mubr.msk.bf16.gmra.mrb[8].mxu1 %vm442_vm0, %v1935_v13  ;;  %1858 = vmatprep.mubr.msk.bf16.mxu0 %vm442_vm0, %v1936_v14 }
  0x24   : > { %1890 = vmatprep.mubr.msk.bf16.mxu1 %vm442_vm0, %v1937_v15 }
  0x2a   : > { %1859 = vmatmul.mubr.msk.bf16.gmra.mrb[12].mxu0 %vm442_vm0, %v1938_v16 }
  0x2b   : > { %1891 = vmatmul.mubr.msk.bf16.gmra.mrb[12].mxu1 %vm442_vm0, %v1939_v17  ;;  %1862 = vmatprep.mubr.msk.bf16.mxu0 %vm442_vm0, %v1940_v18 }
  0x2c   : > { %1894 = vmatprep.mubr.msk.bf16.mxu1 %vm442_vm0, %v1941_v19 }
  0x32   : > { %1863 = vmatmul.mubr.msk.bf16.gmra.mrb[16].mxu0 %vm442_vm0, %v1942_v20 }
  0x33   : > { %1895 = vmatmul.mubr.msk.bf16.gmra.mrb[16].mxu1 %vm442_vm0, %v1943_v21  ;;  %1866 = vmatprep.mubr.msk.bf16.mxu0 %vm442_vm0, %v1944_v22 }
  0x34   : > { %1898 = vmatprep.mubr.msk.bf16.mxu1 %vm442_vm0, %v1945_v23 }
  0x3a   : > { %1867 = vmatmul.mubr.msk.bf16.gmra.mrb[20].mxu0 %vm442_vm0, %v1946_v24 }
  0x3b   : > { %1899 = vmatmul.mubr.msk.bf16.gmra.mrb[20].mxu1 %vm442_vm0, %v1947_v25  ;;  %1870 = vmatprep.mubr.msk.bf16.mxu0 %vm442_vm0, %v1948_v26 }
  0x3c   : > { %1902 = vmatprep.mubr.msk.bf16.mxu1 %vm442_vm0, %v1949_v27 }
  0x42   : > { %1871 = vmatmul.mubr.msk.bf16.gmra.mrb[24].mxu0 %vm442_vm0, %v1950_v28 }
  0x43   : > { %1903 = vmatmul.mubr.msk.bf16.gmra.mrb[24].mxu1 %vm442_vm0, %v1951_v29  ;;  %1874 = vmatprep.mubr.msk.bf16.mxu0 %vm442_vm0, %v1952_v30 }
  0x44   : > { %1906 = vmatprep.mubr.msk.bf16.mxu1 %vm442_vm0, %v1953_v31 }
  0x4a   : > { %1875 = vmatmul.mubr.msk.bf16.gmra.mrb[28].mxu0 %vm442_vm0, %v1954_v32 }
  0x4b   : > { %1907 = vmatmul.mubr.msk.bf16.gmra.mrb[28].mxu1 %vm442_vm0, %v1955_v33 }
  0xe5   : > { %v1848_v35 = vpop.f32.mrb[0].mxu0 }
  0xe6   : > { %v837_v37 = vmul.f32 %v1848_v35, %v2080_v34  ;;  %v1880_v38 = vpop.f32.mrb[0].mxu1  ;;  %v573_v39 = vpop.f32.mrb[1].mxu0 }
  0xe7   : > { %v869_v40 = vmul.f32 %v1880_v38, %v2080_v34  ;;  %v835_v41 = vmul.f32 %v2080_v34, %v573_v39  ;;  %v701_v42 = vpop.f32.mrb[1].mxu1  ;;  %v1849_v43 = vpop.f32.mrb[2].mxu0 }
  0xe8   : > { %v908_v44 = vadd.f32 %v2085_v36, %v837_v37  ;;  %v867_v45 = vmul.f32 %v2080_v34, %v701_v42  ;;  %v838_v46 = vmul.f32 %v1849_v43, %v2080_v34  ;;  %v1881_v47 = vpop.f32.mrb[2].mxu1  ;;  %v576_v48 = vpop.f32.mrb[3].mxu0 }
  0xe9   : > { %v940_v49 = vadd.f32 %v2085_v36, %v869_v40  ;;  %v906_v50 = vadd.f32 %v2085_v36, %v835_v41  ;;  %v870_v51 = vmul.f32 %v1881_v47, %v2080_v34  ;;  %v836_v52 = vmul.f32 %v2080_v34, %v576_v48  ;;  %v704_v53 = vpop.f32.mrb[3].mxu1 }
  0xea   : > { %v938_v54 = vadd.f32 %v2085_v36, %v867_v45  ;;  %v909_v55 = vadd.f32 %v2085_v36, %v838_v46  ;;  %v868_v56 = vmul.f32 %v2080_v34, %v704_v53  ;;  %v972_v59 = vmax.f32 %v908_v44, 0.0 }
  0xeb   : > { %v941_v57 = vadd.f32 %v2085_v36, %v870_v51  ;;  %v907_v58 = vadd.f32 %v2085_v36, %v836_v52  ;;  %v1004_v62 = vmax.f32 %v940_v49, 0.0  ;;  %v970_v63 = vmax.f32 %v906_v50, 0.0 }
  0xec   : > { %v973_v60 = vmax.f32 %v909_v55, 0.0  ;;  %v939_v61 = vadd.f32 %v2085_v36, %v868_v56  ;;  %v1002_v3 = vmax.f32 %v938_v54, 0.0 }
  0xed   : > { %v1005_v0 = vmax.f32 %v941_v57, 0.0  ;;  %v971_v1 = vmax.f32 %v907_v58, 0.0  ;;  %v1852_v2 = vpop.f32.mrb[4].mxu0 }
  0xee   : > { %v1625_v4 = vpack.c.bf16 %v973_v60, %v972_v59  ;;  %v1003_v5 = vmax.f32 %v939_v61, 0.0  ;;  %v841_v6 = vmul.f32 %v1852_v2, %v2080_v34  ;;  %v1884_v7 = vpop.f32.mrb[4].mxu1  ;;  %v589_v8 = vpop.f32.mrb[5].mxu0 }
  0xef   : > { %v1705_v9 = vpack.c.bf16 %v1005_v0, %v1004_v62  ;;  %v1620_v10 = vpack.c.bf16 %v971_v1, %v970_v63  ;;  %v873_v11 = vmul.f32 %v1884_v7, %v2080_v34  ;;  %v839_v12 = vmul.f32 %v2080_v34, %v589_v8  ;;  %v717_v13 = vpop.f32.mrb[5].mxu1  ;;  %v1853_v14 = vpop.f32.mrb[6].mxu0 }
  0xf0   : > { %1777 = vst [vmem:[%s2108_s6 + $0x8] sm:$0xff] %v1625_v4   ;;  %v1700_v15 = vpack.c.bf16 %v1003_v5, %v1002_v3  ;;  %v912_v16 = vadd.f32 %v2085_v36, %v841_v6  ;;  %v871_v17 = vmul.f32 %v2080_v34, %v717_v13  ;;  %v842_v18 = vmul.f32 %v1853_v14, %v2080_v34  ;;  %v1885_v19 = vpop.f32.mrb[6].mxu1  ;;  %v592_v20 = vpop.f32.mrb[7].mxu0 }
  0xf1   : > { %1793 = vst [vmem:[%s2108_s6 + $0x88] sm:$0xff] %v1705_v9   ;;  %1621 = vst [vmem:[%s2108_s6] sm:$0xff] %v1620_v10   ;;  %v944_v21 = vadd.f32 %v2085_v36, %v873_v11  ;;  %v910_v22 = vadd.f32 %v2085_v36, %v839_v12  ;;  %v874_v23 = vmul.f32 %v1885_v19, %v2080_v34  ;;  %v720_v25 = vpop.f32.mrb[7].mxu1 }
  0xf2   : > { %v840_v24 = vmul.f32 %v2080_v34, %v592_v20  ;;  %1792 = vst [vmem:[%s2108_s6 + $0x80] sm:$0xff] %v1700_v15   ;;  %v942_v26 = vadd.f32 %v2085_v36, %v871_v17  ;;  %v913_v27 = vadd.f32 %v2085_v36, %v842_v18  ;;  %v872_v28 = vmul.f32 %v2080_v34, %v720_v25 }
  0xf3   : > { %v945_v29 = vadd.f32 %v2085_v36, %v874_v23  ;;  %v976_v31 = vmax.f32 %v912_v16, 0.0  ;;  %v1008_v35 = vmax.f32 %v944_v21, 0.0  ;;  %v974_v37 = vmax.f32 %v910_v22, 0.0 }
  0xf4   : > { %v911_v30 = vadd.f32 %v2085_v36, %v840_v24  ;;  %v977_v32 = vmax.f32 %v913_v27, 0.0  ;;  %v943_v33 = vadd.f32 %v2085_v36, %v872_v28  ;;  %v1006_v41 = vmax.f32 %v942_v26, 0.0 }
  0xf5   : > { %v1009_v38 = vmax.f32 %v945_v29, 0.0  ;;  %v1856_v40 = vpop.f32.mrb[8].mxu0 }
  0xf6   : > { %v975_v39 = vmax.f32 %v911_v30, 0.0  ;;  %v1635_v42 = vpack.c.bf16 %v977_v32, %v976_v31  ;;  %v1007_v43 = vmax.f32 %v943_v33, 0.0  ;;  %v845_v44 = vmul.f32 %v1856_v40, %v2080_v34  ;;  %v1888_v45 = vpop.f32.mrb[8].mxu1  ;;  %v605_v46 = vpop.f32.mrb[9].mxu0 }
  0xf7   : > { %v1715_v47 = vpack.c.bf16 %v1009_v38, %v1008_v35  ;;  %v877_v49 = vmul.f32 %v1888_v45, %v2080_v34  ;;  %v843_v50 = vmul.f32 %v2080_v34, %v605_v46  ;;  %v733_v51 = vpop.f32.mrb[9].mxu1  ;;  %v1857_v52 = vpop.f32.mrb[10].mxu0 }
  0xf8   : > { %v1630_v48 = vpack.c.bf16 %v975_v39, %v974_v37  ;;  %1779 = vst [vmem:[%s2108_s6 + $0x18] sm:$0xff] %v1635_v42   ;;  %v1710_v53 = vpack.c.bf16 %v1007_v43, %v1006_v41  ;;  %v916_v54 = vadd.f32 %v2085_v36, %v845_v44  ;;  %v875_v55 = vmul.f32 %v2080_v34, %v733_v51  ;;  %v1889_v57 = vpop.f32.mrb[10].mxu1  ;;  %v608_v58 = vpop.f32.mrb[11].mxu0 }
  0xf9   : > { %v846_v56 = vmul.f32 %v1857_v52, %v2080_v34  ;;  %1795 = vst [vmem:[%s2108_s6 + $0x98] sm:$0xff] %v1715_v47   ;;  %v948_v59 = vadd.f32 %v2085_v36, %v877_v49  ;;  %v914_v60 = vadd.f32 %v2085_v36, %v843_v50  ;;  %v878_v61 = vmul.f32 %v1889_v57, %v2080_v34  ;;  %v736_v63 = vpop.f32.mrb[11].mxu1 }
  0xfa   : > { %1778 = vst [vmem:[%s2108_s6 + $0x10] sm:$0xff] %v1630_v48   ;;  %v844_v62 = vmul.f32 %v2080_v34, %v608_v58  ;;  %1794 = vst [vmem:[%s2108_s6 + $0x90] sm:$0xff] %v1710_v53   ;;  %v946_v0 = vadd.f32 %v2085_v36, %v875_v55  ;;  %v876_v2 = vmul.f32 %v2080_v34, %v736_v63  ;;  %v980_v5 = vmax.f32 %v916_v54, 0.0 }
  0xfb   : > { %v917_v1 = vadd.f32 %v2085_v36, %v846_v56  ;;  %v949_v3 = vadd.f32 %v2085_v36, %v878_v61  ;;  %v1012_v8 = vmax.f32 %v948_v59, 0.0  ;;  %v978_v9 = vmax.f32 %v914_v60, 0.0 }
  0xfc   : > { %v915_v4 = vadd.f32 %v2085_v36, %v844_v62  ;;  %v947_v7 = vadd.f32 %v2085_v36, %v876_v2  ;;  %v1010_v13 = vmax.f32 %v946_v0, 0.0 }
  0xfd   : > { %v981_v6 = vmax.f32 %v917_v1, 0.0  ;;  %v1013_v10 = vmax.f32 %v949_v3, 0.0  ;;  %v1860_v12 = vpop.f32.mrb[12].mxu0 }
  0xfe   : > { %v979_v11 = vmax.f32 %v915_v4, 0.0  ;;  %v1011_v15 = vmax.f32 %v947_v7, 0.0  ;;  %v849_v16 = vmul.f32 %v1860_v12, %v2080_v34  ;;  %v1892_v17 = vpop.f32.mrb[12].mxu1  ;;  %v621_v18 = vpop.f32.mrb[13].mxu0 }
  0xff   : > { %v1645_v14 = vpack.c.bf16 %v981_v6, %v980_v5  ;;  %v1725_v19 = vpack.c.bf16 %v1013_v10, %v1012_v8  ;;  %v881_v21 = vmul.f32 %v1892_v17, %v2080_v34  ;;  %v847_v22 = vmul.f32 %v2080_v34, %v621_v18  ;;  %v749_v23 = vpop.f32.mrb[13].mxu1  ;;  %v1861_v24 = vpop.f32.mrb[14].mxu0 }
 0x100   : > { %v1640_v20 = vpack.c.bf16 %v979_v11, %v978_v9  ;;  %v1720_v25 = vpack.c.bf16 %v1011_v15, %v1010_v13  ;;  %v920_v26 = vadd.f32 %v2085_v36, %v849_v16  ;;  %v879_v27 = vmul.f32 %v2080_v34, %v749_v23  ;;  %v1893_v29 = vpop.f32.mrb[14].mxu1  ;;  %v624_v30 = vpop.f32.mrb[15].mxu0 }
 0x101   : > { %1781 = vst [vmem:[%s2108_s6 + $0x28] sm:$0xff] %v1645_v14   ;;  %v850_v28 = vmul.f32 %v1861_v24, %v2080_v34  ;;  %1797 = vst [vmem:[%s2108_s6 + $0xa8] sm:$0xff] %v1725_v19   ;;  %v952_v31 = vadd.f32 %v2085_v36, %v881_v21  ;;  %v918_v32 = vadd.f32 %v2085_v36, %v847_v22  ;;  %v752_v37 = vpop.f32.mrb[15].mxu1 }
 0x102   : > { %1780 = vst [vmem:[%s2108_s6 + $0x20] sm:$0xff] %v1640_v20   ;;  %v882_v33 = vmul.f32 %v1893_v29, %v2080_v34  ;;  %v848_v35 = vmul.f32 %v2080_v34, %v624_v30  ;;  %1796 = vst [vmem:[%s2108_s6 + $0xa0] sm:$0xff] %v1720_v25   ;;  %v950_v38 = vadd.f32 %v2085_v36, %v879_v27  ;;  %v984_v43 = vmax.f32 %v920_v26, 0.0 }
 0x103   : > { %v921_v39 = vadd.f32 %v2085_v36, %v850_v28  ;;  %v880_v40 = vmul.f32 %v2080_v34, %v752_v37  ;;  %v1016_v46 = vmax.f32 %v952_v31, 0.0  ;;  %v982_v47 = vmax.f32 %v918_v32, 0.0 }
 0x104   : > { %v953_v41 = vadd.f32 %v2085_v36, %v882_v33  ;;  %v919_v42 = vadd.f32 %v2085_v36, %v848_v35  ;;  %v1014_v51 = vmax.f32 %v950_v38, 0.0 }
 0x105   : > { %v985_v44 = vmax.f32 %v921_v39, 0.0  ;;  %v951_v45 = vadd.f32 %v2085_v36, %v880_v40  ;;  %v1864_v50 = vpop.f32.mrb[16].mxu0 }
 0x106   : > { %v1017_v48 = vmax.f32 %v953_v41, 0.0  ;;  %v983_v49 = vmax.f32 %v919_v42, 0.0  ;;  %v853_v54 = vmul.f32 %v1864_v50, %v2080_v34  ;;  %v1896_v55 = vpop.f32.mrb[16].mxu1  ;;  %v637_v56 = vpop.f32.mrb[17].mxu0 }
 0x107   : > { %v1655_v52 = vpack.c.bf16 %v985_v44, %v984_v43  ;;  %v1015_v53 = vmax.f32 %v951_v45, 0.0  ;;  %v885_v59 = vmul.f32 %v1896_v55, %v2080_v34  ;;  %v851_v60 = vmul.f32 %v2080_v34, %v637_v56  ;;  %v765_v61 = vpop.f32.mrb[17].mxu1  ;;  %v1865_v62 = vpop.f32.mrb[18].mxu0 }
 0x108   : > { %v1735_v57 = vpack.c.bf16 %v1017_v48, %v1016_v46  ;;  %v1650_v58 = vpack.c.bf16 %v983_v49, %v982_v47  ;;  %v924_v0 = vadd.f32 %v2085_v36, %v853_v54  ;;  %v883_v1 = vmul.f32 %v2080_v34, %v765_v61  ;;  %v1897_v3 = vpop.f32.mrb[18].mxu1  ;;  %v640_v4 = vpop.f32.mrb[19].mxu0 }
 0x109   : > { %1783 = vst [vmem:[%s2108_s6 + $0x38] sm:$0xff] %v1655_v52   ;;  %v1730_v63 = vpack.c.bf16 %v1015_v53, %v1014_v51  ;;  %v854_v2 = vmul.f32 %v1865_v62, %v2080_v34  ;;  %v956_v5 = vadd.f32 %v2085_v36, %v885_v59  ;;  %v922_v6 = vadd.f32 %v2085_v36, %v851_v60  ;;  %v768_v9 = vpop.f32.mrb[19].mxu1 }
 0x10a   : > { %1799 = vst [vmem:[%s2108_s6 + $0xb8] sm:$0xff] %v1735_v57   ;;  %1782 = vst [vmem:[%s2108_s6 + $0x30] sm:$0xff] %v1650_v58   ;;  %v886_v7 = vmul.f32 %v1897_v3, %v2080_v34  ;;  %v852_v8 = vmul.f32 %v2080_v34, %v640_v4  ;;  %v954_v10 = vadd.f32 %v2085_v36, %v883_v1  ;;  %v988_v15 = vmax.f32 %v924_v0, 0.0 }
 0x10b   : > { %1798 = vst [vmem:[%s2108_s6 + $0xb0] sm:$0xff] %v1730_v63   ;;  %v925_v11 = vadd.f32 %v2085_v36, %v854_v2  ;;  %v884_v12 = vmul.f32 %v2080_v34, %v768_v9  ;;  %v1020_v18 = vmax.f32 %v956_v5, 0.0  ;;  %v986_v19 = vmax.f32 %v922_v6, 0.0 }
 0x10c   : > { %v957_v13 = vadd.f32 %v2085_v36, %v886_v7  ;;  %v923_v14 = vadd.f32 %v2085_v36, %v852_v8  ;;  %v1018_v23 = vmax.f32 %v954_v10, 0.0 }
 0x10d   : > { %v989_v16 = vmax.f32 %v925_v11, 0.0  ;;  %v955_v17 = vadd.f32 %v2085_v36, %v884_v12  ;;  %v1868_v22 = vpop.f32.mrb[20].mxu0 }
 0x10e   : > { %v1021_v20 = vmax.f32 %v957_v13, 0.0  ;;  %v987_v21 = vmax.f32 %v923_v14, 0.0  ;;  %v857_v26 = vmul.f32 %v1868_v22, %v2080_v34  ;;  %v1900_v27 = vpop.f32.mrb[20].mxu1  ;;  %v653_v28 = vpop.f32.mrb[21].mxu0 }
 0x10f   : > { %v1665_v24 = vpack.c.bf16 %v989_v16, %v988_v15  ;;  %v1019_v25 = vmax.f32 %v955_v17, 0.0  ;;  %v889_v31 = vmul.f32 %v1900_v27, %v2080_v34  ;;  %v855_v32 = vmul.f32 %v2080_v34, %v653_v28  ;;  %v781_v33 = vpop.f32.mrb[21].mxu1  ;;  %v1869_v35 = vpop.f32.mrb[22].mxu0 }
 0x110   : > { %v1745_v29 = vpack.c.bf16 %v1021_v20, %v1020_v18  ;;  %v1660_v30 = vpack.c.bf16 %v987_v21, %v986_v19  ;;  %v928_v38 = vadd.f32 %v2085_v36, %v857_v26  ;;  %v887_v39 = vmul.f32 %v2080_v34, %v781_v33  ;;  %v1901_v41 = vpop.f32.mrb[22].mxu1  ;;  %v656_v42 = vpop.f32.mrb[23].mxu0 }
 0x111   : > { %1785 = vst [vmem:[%s2108_s6 + $0x48] sm:$0xff] %v1665_v24   ;;  %v1740_v37 = vpack.c.bf16 %v1019_v25, %v1018_v23  ;;  %v858_v40 = vmul.f32 %v1869_v35, %v2080_v34  ;;  %v960_v43 = vadd.f32 %v2085_v36, %v889_v31  ;;  %v926_v44 = vadd.f32 %v2085_v36, %v855_v32  ;;  %v784_v47 = vpop.f32.mrb[23].mxu1 }
 0x112   : > { %1801 = vst [vmem:[%s2108_s6 + $0xc8] sm:$0xff] %v1745_v29   ;;  %1784 = vst [vmem:[%s2108_s6 + $0x40] sm:$0xff] %v1660_v30   ;;  %v890_v45 = vmul.f32 %v1901_v41, %v2080_v34  ;;  %v856_v46 = vmul.f32 %v2080_v34, %v656_v42  ;;  %v958_v48 = vadd.f32 %v2085_v36, %v887_v39  ;;  %v992_v53 = vmax.f32 %v928_v38, 0.0 }
 0x113   : > { %1800 = vst [vmem:[%s2108_s6 + $0xc0] sm:$0xff] %v1740_v37   ;;  %v929_v49 = vadd.f32 %v2085_v36, %v858_v40  ;;  %v888_v50 = vmul.f32 %v2080_v34, %v784_v47  ;;  %v1024_v56 = vmax.f32 %v960_v43, 0.0  ;;  %v990_v57 = vmax.f32 %v926_v44, 0.0 }
 0x114   : > { %v961_v51 = vadd.f32 %v2085_v36, %v890_v45  ;;  %v927_v52 = vadd.f32 %v2085_v36, %v856_v46  ;;  %v1022_v61 = vmax.f32 %v958_v48, 0.0 }
 0x115   : > { %v993_v54 = vmax.f32 %v929_v49, 0.0  ;;  %v959_v55 = vadd.f32 %v2085_v36, %v888_v50  ;;  %v1872_v60 = vpop.f32.mrb[24].mxu0 }
 0x116   : > { %v1025_v58 = vmax.f32 %v961_v51, 0.0  ;;  %v991_v59 = vmax.f32 %v927_v52, 0.0  ;;  %v861_v0 = vmul.f32 %v1872_v60, %v2080_v34  ;;  %v1904_v1 = vpop.f32.mrb[24].mxu1  ;;  %v669_v2 = vpop.f32.mrb[25].mxu0 }
 0x117   : > { %v1675_v62 = vpack.c.bf16 %v993_v54, %v992_v53  ;;  %v1023_v63 = vmax.f32 %v959_v55, 0.0  ;;  %v893_v5 = vmul.f32 %v1904_v1, %v2080_v34  ;;  %v859_v6 = vmul.f32 %v2080_v34, %v669_v2  ;;  %v797_v7 = vpop.f32.mrb[25].mxu1  ;;  %v1873_v8 = vpop.f32.mrb[26].mxu0 }
 0x118   : > { %v1755_v3 = vpack.c.bf16 %v1025_v58, %v1024_v56  ;;  %v1670_v4 = vpack.c.bf16 %v991_v59, %v990_v57  ;;  %v932_v10 = vadd.f32 %v2085_v36, %v861_v0  ;;  %v891_v11 = vmul.f32 %v2080_v34, %v797_v7  ;;  %v1905_v13 = vpop.f32.mrb[26].mxu1  ;;  %v672_v14 = vpop.f32.mrb[27].mxu0 }
 0x119   : > { %1787 = vst [vmem:[%s2108_s6 + $0x58] sm:$0xff] %v1675_v62   ;;  %v1750_v9 = vpack.c.bf16 %v1023_v63, %v1022_v61  ;;  %v862_v12 = vmul.f32 %v1873_v8, %v2080_v34  ;;  %v964_v15 = vadd.f32 %v2085_v36, %v893_v5  ;;  %v930_v16 = vadd.f32 %v2085_v36, %v859_v6  ;;  %v800_v19 = vpop.f32.mrb[27].mxu1 }
 0x11a   : > { %1803 = vst [vmem:[%s2108_s6 + $0xd8] sm:$0xff] %v1755_v3   ;;  %1786 = vst [vmem:[%s2108_s6 + $0x50] sm:$0xff] %v1670_v4   ;;  %v894_v17 = vmul.f32 %v1905_v13, %v2080_v34  ;;  %v860_v18 = vmul.f32 %v2080_v34, %v672_v14  ;;  %v962_v20 = vadd.f32 %v2085_v36, %v891_v11  ;;  %v996_v25 = vmax.f32 %v932_v10, 0.0 }
 0x11b   : > { %1802 = vst [vmem:[%s2108_s6 + $0xd0] sm:$0xff] %v1750_v9   ;;  %v933_v21 = vadd.f32 %v2085_v36, %v862_v12  ;;  %v892_v22 = vmul.f32 %v2080_v34, %v800_v19  ;;  %v1028_v28 = vmax.f32 %v964_v15, 0.0  ;;  %v994_v29 = vmax.f32 %v930_v16, 0.0 }
 0x11c   : > { %v965_v23 = vadd.f32 %v2085_v36, %v894_v17  ;;  %v931_v24 = vadd.f32 %v2085_v36, %v860_v18  ;;  %v1026_v33 = vmax.f32 %v962_v20, 0.0 }
 0x11d   : > { %v997_v26 = vmax.f32 %v933_v21, 0.0  ;;  %v963_v27 = vadd.f32 %v2085_v36, %v892_v22  ;;  %v1876_v32 = vpop.f32.mrb[28].mxu0 }
 0x11e   : > { %v1029_v30 = vmax.f32 %v965_v23, 0.0  ;;  %v995_v31 = vmax.f32 %v931_v24, 0.0  ;;  %v865_v38 = vmul.f32 %v1876_v32, %v2080_v34  ;;  %v1908_v39 = vpop.f32.mrb[28].mxu1  ;;  %v685_v40 = vpop.f32.mrb[29].mxu0 }
 0x11f   : > { %v1685_v35 = vpack.c.bf16 %v997_v26, %v996_v25  ;;  %v1027_v37 = vmax.f32 %v963_v27, 0.0  ;;  %v897_v43 = vmul.f32 %v1908_v39, %v2080_v34  ;;  %v863_v44 = vmul.f32 %v2080_v34, %v685_v40  ;;  %v813_v45 = vpop.f32.mrb[29].mxu1  ;;  %v1877_v46 = vpop.f32.mrb[30].mxu0 }
 0x120   : > { %v1765_v41 = vpack.c.bf16 %v1029_v30, %v1028_v28  ;;  %v1680_v42 = vpack.c.bf16 %v995_v31, %v994_v29  ;;  %v936_v48 = vadd.f32 %v2085_v36, %v865_v38  ;;  %v895_v49 = vmul.f32 %v2080_v34, %v813_v45  ;;  %v1909_v51 = vpop.f32.mrb[30].mxu1  ;;  %v688_v52 = vpop.f32.mrb[31].mxu0 }
 0x121   : > { %1789 = vst [vmem:[%s2108_s6 + $0x68] sm:$0xff] %v1685_v35   ;;  %v1760_v47 = vpack.c.bf16 %v1027_v37, %v1026_v33  ;;  %v866_v50 = vmul.f32 %v1877_v46, %v2080_v34  ;;  %v968_v53 = vadd.f32 %v2085_v36, %v897_v43  ;;  %v934_v54 = vadd.f32 %v2085_v36, %v863_v44  ;;  %v816_v57 = vpop.f32.mrb[31].mxu1 }
 0x122   : > { %1805 = vst [vmem:[%s2108_s6 + $0xe8] sm:$0xff] %v1765_v41   ;;  %1788 = vst [vmem:[%s2108_s6 + $0x60] sm:$0xff] %v1680_v42   ;;  %v898_v55 = vmul.f32 %v1909_v51, %v2080_v34  ;;  %v864_v56 = vmul.f32 %v2080_v34, %v688_v52  ;;  %v966_v58 = vadd.f32 %v2085_v36, %v895_v49  ;;  %v1000_v63 = vmax.f32 %v936_v48, 0.0 }
 0x123   : > { %1804 = vst [vmem:[%s2108_s6 + $0xe0] sm:$0xff] %v1760_v47   ;;  %v937_v59 = vadd.f32 %v2085_v36, %v866_v50  ;;  %v896_v60 = vmul.f32 %v2080_v34, %v816_v57  ;;  %v1032_v2 = vmax.f32 %v968_v53, 0.0  ;;  %v998_v3 = vmax.f32 %v934_v54, 0.0 }
 0x124   : > { %v969_v61 = vadd.f32 %v2085_v36, %v898_v55  ;;  %v935_v62 = vadd.f32 %v2085_v36, %v864_v56  ;;  %v1030_v6 = vmax.f32 %v966_v58, 0.0 }
 0x125   : > { %v1001_v0 = vmax.f32 %v937_v59, 0.0  ;;  %v967_v1 = vadd.f32 %v2085_v36, %v896_v60 }
 0x126   : > { %v1033_v4 = vmax.f32 %v969_v61, 0.0  ;;  %v999_v5 = vmax.f32 %v935_v62, 0.0 }
 0x127   : > { %v1695_v7 = vpack.c.bf16 %v1001_v0, %v1000_v63  ;;  %v1031_v8 = vmax.f32 %v967_v1, 0.0 }
 0x128   : > { %v1775_v9 = vpack.c.bf16 %v1033_v4, %v1032_v2  ;;  %v1690_v34 = vpack.c.bf16 %v999_v5, %v998_v3 }
 0x129   : > { %1791 = vst [vmem:[%s2108_s6 + $0x78] sm:$0xff] %v1695_v7   ;;  %v1770_v10 = vpack.c.bf16 %v1031_v8, %v1030_v6 }
 0x12a   : > { %1807 = vst [vmem:[%s2108_s6 + $0xf8] sm:$0xff] %v1775_v9   ;;  %1790 = vst [vmem:[%s2108_s6 + $0x70] sm:$0xff] %v1690_v34  }
 0x12b   : > { %1806 = vst [vmem:[%s2108_s6 + $0xf0] sm:$0xff] %v1770_v10  }
 0x12c PF: > { %s14_s15 = sadd.s32 1, %s1962_s15  }
 0x12d   : > { %p11_p4 = scmp.ge.s32.totalorder %s14_s15, 6  }
 0x12f   :  { %13 = sbr.rel (!%p11_p4) target bundleno = 1 (0x1), region = 66 }

// kernel: _lambda_.9
= control target key start
LH: loop header
LB: loop body
LE: loop exit
PB: predicated region body
PF: predicated region fallthrough
CT: control target
= control target key end

     0   :  { %s3560_s27 = smov 0   ;;  %s4132_s0 = inlined_call_operand.vmem [shape: bf16[2048,144], index: 0, kind: input, shape index: {}]   ;;  %s4133_s1 = inlined_call_operand.vmem [shape: bf16[144,128], index: 1, kind: input, shape index: {}]   ;;  %s4134_s2 = inlined_call_operand.vmem [shape: f32[1,128], index: 2, kind: input, shape index: {}]   ;;  %s4135_s3 = inlined_call_operand.vmem [shape: f32[1,128], index: 3, kind: input, shape index: {}]   ;;  %s4136_s4 = inlined_call_operand.vmem [shape: bf16[144,128], index: 4, kind: input, shape index: {}]   ;;  %s4137_s5 = inlined_call_operand.vmem [shape: f32[1,128], index: 5, kind: input, shape index: {}]   ;;  %s4138_s6 = inlined_call_operand.vmem [shape: f32[1,128], index: 6, kind: input, shape index: {}]   ;;  %s4139_s7 = inlined_call_operand.vmem [shape: bf16[2048,128], index: 7, kind: output, shape index: {0}]   ;;  %s4140_s8 = inlined_call_operand.vmem [shape: bf16[2048,128], index: 8, kind: output, shape index: {1}]  }
   0x1 LB: > { %s2576_s28 = sadd.s32 4294967295, %s3512_s27   ;;  %p2580_p0 = scmp.ge.s32.totalorder %s3512_s27, 1  ;;  %s3512_s27 = sphi %s3560_s27, %s19_s27  }
   0x2   : > { %p267_p1 = scmp.lt.s32.totalorder %s3512_s27, 5 }
   0x4   : > { %p268_p2 = pnand %p2580_p0, %p267_p1 }
   0x5   : > { %v3388_v0 = vld [vmem:[%s4133_s1] sm:$0xff] (!%p268_p2)   ;;  %v3514_v1 = vmov (!%p268_p2), 0   ;;  %v3390_v3 = vld [vmem:[%s4133_s1 + $0x8] sm:$0xff] (!%p268_p2)   ;;  %s2581_s13 = sshll.u32 (!%p268_p2), %s2576_s28, 6  ;;  %v3392_v5 = vld [vmem:[%s4133_s1 + $0x10] sm:$0xff] (!%p268_p2)   ;;  %vm751_vm0 = vcmask (!%p268_p2), 130048  }
   0x6   : > { %271 = sbr.rel (%p268_p2) target bundleno = 513 (0x201), region = 48  ;;  %848 = vmatprep.subr.bf16.mxu0 (!%p268_p2), %v3514_v1  ;;  %1735 = vmatprep.subr.bf16.mxu1 (!%p268_p2), %v3514_v1  ;;  %v3389_v2 = vld [vmem:[%s4136_s4] sm:$0xff] (!%p268_p2)   ;;  %v3391_v4 = vld [vmem:[%s4136_s4 + $0x8] sm:$0xff] (!%p268_p2)   ;;  %p308_p3 = scmp.lt.s32.totalorder (!%p268_p2), %s2581_s13, 255  ;;  %v3393_v6 = vld [vmem:[%s4136_s4 + $0x10] sm:$0xff] (!%p268_p2)  }
   0x7   : > { %849 = vmatpush1.bf16.msra.mxu0 (!%p268_p2), %v3388_v0  ;;  %1736 = vmatpush1.bf16.msra.mxu1 (!%p268_p2), %v3389_v2  ;;  %v3394_v7 = vld [vmem:[%s4133_s1 + $0x18] sm:$0xff] (!%p268_p2)   ;;  %v3396_v9 = vld [vmem:[%s4133_s1 + $0x20] sm:$0xff] (!%p268_p2)   ;;  %v3398_v11 = vld [vmem:[%s4133_s1 + $0x28] sm:$0xff] (!%p268_p2)  }
   0x8   : > { %850 = vmatprep.subr.bf16.mxu0 (!%p268_p2), %v3514_v1  ;;  %1737 = vmatprep.subr.bf16.mxu1 (!%p268_p2), %v3514_v1  ;;  %v3395_v8 = vld [vmem:[%s4136_s4 + $0x18] sm:$0xff] (!%p268_p2)   ;;  %v3397_v10 = vld [vmem:[%s4136_s4 + $0x20] sm:$0xff] (!%p268_p2)   ;;  %v3399_v12 = vld [vmem:[%s4136_s4 + $0x28] sm:$0xff] (!%p268_p2)  }
   0x9   : > { %v3400_v14 = vld [vmem:[%s4133_s1 + $0x30] sm:$0xff] (!%p268_p2)   ;;  %v3402_v16 = vld [vmem:[%s4133_s1 + $0x38] sm:$0xff] (!%p268_p2)   ;;  %v3404_v18 = vld [vmem:[%s4133_s1 + $0x40] sm:$0xff] (!%p268_p2)  }
   0xa   : > { %v3401_v15 = vld [vmem:[%s4136_s4 + $0x30] sm:$0xff] (!%p268_p2)   ;;  %v3403_v17 = vld [vmem:[%s4136_s4 + $0x38] sm:$0xff] (!%p268_p2)   ;;  %v3405_v19 = vld [vmem:[%s4136_s4 + $0x40] sm:$0xff] (!%p268_p2)  }
   0xb   : > { %851 = vmatpush1.bf16.msra.mxu0 (!%p268_p2), %v3390_v3  ;;  %1738 = vmatpush1.bf16.msra.mxu1 (!%p268_p2), %v3391_v4 }
   0xc   : > { %852 = vmatprep.subr.bf16.mxu0 (!%p268_p2), %v3514_v1  ;;  %1739 = vmatprep.subr.bf16.mxu1 (!%p268_p2), %v3514_v1 }
   0xd   : > { %s4142_s13 = smov (!%p308_p3, %s2581_s13), 255 }
   0xe   : > { %s2868_s24 = sshll.u32 %s4142_s13, 3  ;;  %s2585_s17 = sshll.u32 %s4142_s13, 2 }
   0xf   : > { %853 = vmatpush1.bf16.msra.mxu0 %v3392_v5  ;;  %1740 = vmatpush1.bf16.msra.mxu1 %v3393_v6  ;;  %s3604_s10 = scalar_lea.vmem %s4132_s0, %s2868_s24  ;;  %s3776_s20 = scalar_lea.vmem %s4140_s8, %s2585_s17 }
  0x10   : > { %854 = vmatprep.subr.bf16.mxu0 %v3514_v1  ;;  %1741 = vmatprep.subr.bf16.mxu1 %v3514_v1  ;;  %v3408_v13 = vld [vmem:[%s3604_s10 + $0x4] ss:$8 sps:$4 sm:$0xff]   ;;  %v3406_v20 = vld [vmem:[%s3604_s10] ss:$8 sps:$4 sm:$0xff]   ;;  %v3409_v21 = vld [vmem:[%s3604_s10 + $0x14] ss:$8 sps:$4 sm:$0xff]   ;;  %s3782_s22 = scalar_lea.vmem %s4139_s7, %s2585_s17 }
  0x11   : > { %2661 = vmatprep.mubr.msk.bf16.mxu0 %vm751_vm0, %v3408_v13  ;;  %2768 = vmatprep.mubr.msk.bf16.mxu1 %vm751_vm0, %v3408_v13  ;;  %v3411_v22 = vld [vmem:[%s3604_s10 + $0x10] ss:$8 sps:$4 sm:$0xff]   ;;  %v3412_v23 = vld [vmem:[%s3604_s10 + $0x24] ss:$8 sps:$4 sm:$0xff]   ;;  %v3414_v24 = vld [vmem:[%s3604_s10 + $0x20] ss:$8 sps:$4 sm:$0xff]  }
  0x12   : > { %v3415_v25 = vld [vmem:[%s3604_s10 + $0x34] ss:$8 sps:$4 sm:$0xff]   ;;  %v3417_v26 = vld [vmem:[%s3604_s10 + $0x30] ss:$8 sps:$4 sm:$0xff]   ;;  %v3418_v27 = vld [vmem:[%s3604_s10 + $0x44] ss:$8 sps:$4 sm:$0xff]  }
  0x13   : > { %855 = vmatpush1.bf16.msra.mxu0 %v3394_v7  ;;  %1742 = vmatpush1.bf16.msra.mxu1 %v3395_v8  ;;  %v3420_v28 = vld [vmem:[%s3604_s10 + $0x40] ss:$8 sps:$4 sm:$0xff]   ;;  %v3421_v29 = vld [vmem:[%s3604_s10 + $0x54] ss:$8 sps:$4 sm:$0xff]   ;;  %v3423_v30 = vld [vmem:[%s3604_s10 + $0x50] ss:$8 sps:$4 sm:$0xff]  }
  0x14   : > { %856 = vmatprep.subr.bf16.mxu0 %v3514_v1  ;;  %1743 = vmatprep.subr.bf16.mxu1 %v3514_v1  ;;  %v3424_v31 = vld [vmem:[%s3604_s10 + $0x64] ss:$8 sps:$4 sm:$0xff]   ;;  %v3426_v32 = vld [vmem:[%s3604_s10 + $0x60] ss:$8 sps:$4 sm:$0xff]   ;;  %v3427_v33 = vld [vmem:[%s3604_s10 + $0x74] ss:$8 sps:$4 sm:$0xff]  }
  0x15   : > { %v3429_v34 = vld [vmem:[%s3604_s10 + $0x70] ss:$8 sps:$4 sm:$0xff]   ;;  %v3430_v35 = vld [vmem:[%s3604_s10 + $0x84] ss:$8 sps:$4 sm:$0xff]   ;;  %v3432_v36 = vld [vmem:[%s3604_s10 + $0x80] ss:$8 sps:$4 sm:$0xff]  }
  0x16   : > { %v3433_v37 = vld [vmem:[%s3604_s10 + $0x94] ss:$8 sps:$4 sm:$0xff]   ;;  %v3435_v38 = vld [vmem:[%s3604_s10 + $0x90] ss:$8 sps:$4 sm:$0xff]   ;;  %v3436_v39 = vld [vmem:[%s3604_s10 + $0xa4] ss:$8 sps:$4 sm:$0xff]  }
  0x17   : > { %857 = vmatpush1.bf16.msra.mxu0 %v3396_v9  ;;  %1744 = vmatpush1.bf16.msra.mxu1 %v3397_v10  ;;  %v3438_v40 = vld [vmem:[%s3604_s10 + $0xa0] ss:$8 sps:$4 sm:$0xff]   ;;  %v3439_v41 = vld [vmem:[%s3604_s10 + $0xb4] ss:$8 sps:$4 sm:$0xff]   ;;  %v3441_v42 = vld [vmem:[%s3604_s10 + $0xb0] ss:$8 sps:$4 sm:$0xff]  }
  0x18   : > { %858 = vmatprep.subr.bf16.mxu0 %v3514_v1  ;;  %1745 = vmatprep.subr.bf16.mxu1 %v3514_v1  ;;  %v3442_v43 = vld [vmem:[%s3604_s10 + $0xc4] ss:$8 sps:$4 sm:$0xff]   ;;  %v3444_v44 = vld [vmem:[%s3604_s10 + $0xc0] ss:$8 sps:$4 sm:$0xff]   ;;  %v3445_v45 = vld [vmem:[%s3604_s10 + $0xd4] ss:$8 sps:$4 sm:$0xff]  }
  0x19   : > { %v3447_v46 = vld [vmem:[%s3604_s10 + $0xd0] ss:$8 sps:$4 sm:$0xff]   ;;  %v3448_v47 = vld [vmem:[%s3604_s10 + $0xe4] ss:$8 sps:$4 sm:$0xff]   ;;  %v3450_v48 = vld [vmem:[%s3604_s10 + $0xe0] ss:$8 sps:$4 sm:$0xff]  }
  0x1a   : > { %v3451_v49 = vld [vmem:[%s3604_s10 + $0xf4] ss:$8 sps:$4 sm:$0xff]   ;;  %v3453_v50 = vld [vmem:[%s3604_s10 + $0xf0] ss:$8 sps:$4 sm:$0xff]   ;;  %v3454_v51 = vld [vmem:[%s3604_s10 + $0x104] ss:$8 sps:$4 sm:$0xff]  }
  0x1b   : > { %859 = vmatpush1.bf16.msra.mxu0 %v3398_v11  ;;  %1746 = vmatpush1.bf16.msra.mxu1 %v3399_v12  ;;  %v3456_v52 = vld [vmem:[%s3604_s10 + $0x100] ss:$8 sps:$4 sm:$0xff]   ;;  %v3457_v53 = vld [vmem:[%s3604_s10 + $0x114] ss:$8 sps:$4 sm:$0xff]   ;;  %v3459_v54 = vld [vmem:[%s3604_s10 + $0x110] ss:$8 sps:$4 sm:$0xff]  }
  0x1c   : > { %860 = vmatprep.subr.bf16.mxu0 %v3514_v1  ;;  %1747 = vmatprep.subr.bf16.mxu1 %v3514_v1  ;;  %v3460_v55 = vld [vmem:[%s3604_s10 + $0x124] ss:$8 sps:$4 sm:$0xff]   ;;  %v3462_v56 = vld [vmem:[%s3604_s10 + $0x120] ss:$8 sps:$4 sm:$0xff]   ;;  %v3463_v57 = vld [vmem:[%s3604_s10 + $0x134] ss:$8 sps:$4 sm:$0xff]  }
  0x1d   : > { %v3465_v58 = vld [vmem:[%s3604_s10 + $0x130] ss:$8 sps:$4 sm:$0xff]   ;;  %v3466_v59 = vld [vmem:[%s3604_s10 + $0x144] ss:$8 sps:$4 sm:$0xff]   ;;  %v3468_v60 = vld [vmem:[%s3604_s10 + $0x140] ss:$8 sps:$4 sm:$0xff]  }
  0x1e   : > { %v3469_v61 = vld [vmem:[%s3604_s10 + $0x154] ss:$8 sps:$4 sm:$0xff]   ;;  %v3471_v62 = vld [vmem:[%s3604_s10 + $0x150] ss:$8 sps:$4 sm:$0xff]   ;;  %v3472_v63 = vld [vmem:[%s3604_s10 + $0x164] ss:$8 sps:$4 sm:$0xff]  }
  0x1f   : > { %861 = vmatpush1.bf16.msra.mxu0 %v3400_v14  ;;  %1748 = vmatpush1.bf16.msra.mxu1 %v3401_v15  ;;  %v3474_v0 = vld [vmem:[%s3604_s10 + $0x160] ss:$8 sps:$4 sm:$0xff]   ;;  %v3477_v2 = vld [vmem:[%s3604_s10 + $0x170] ss:$8 sps:$4 sm:$0xff]   ;;  %v3478_v3 = vld [vmem:[%s3604_s10 + $0x184] ss:$8 sps:$4 sm:$0xff]  }
  0x20   : > { %862 = vmatprep.subr.bf16.mxu0 %v3514_v1  ;;  %1749 = vmatprep.subr.bf16.mxu1 %v3514_v1  ;;  %v3480_v4 = vld [vmem:[%s3604_s10 + $0x180] ss:$8 sps:$4 sm:$0xff]   ;;  %v3481_v5 = vld [vmem:[%s3604_s10 + $0x194] ss:$8 sps:$4 sm:$0xff]   ;;  %v3483_v6 = vld [vmem:[%s3604_s10 + $0x190] ss:$8 sps:$4 sm:$0xff]  }
  0x21   : > { %v3484_v7 = vld [vmem:[%s3604_s10 + $0x1a4] ss:$8 sps:$4 sm:$0xff]   ;;  %v3486_v8 = vld [vmem:[%s3604_s10 + $0x1a0] ss:$8 sps:$4 sm:$0xff]   ;;  %v3487_v9 = vld [vmem:[%s3604_s10 + $0x1b4] ss:$8 sps:$4 sm:$0xff]  }
  0x22   : > { %v3742_v10 = vld [vmem:[%s4134_s2] ss:$0 sm:$0xff] }
  0x23   : > { %863 = vmatpush1.bf16.msra.mxu0 %v3402_v16  ;;  %1750 = vmatpush1.bf16.msra.mxu1 %v3403_v17  ;;  %v3748_v11 = vld [vmem:[%s4137_s5] ss:$0 sm:$0xff] }
  0x24   : > { %864 = vmatprep.subr.bf16.mxu0 %v3514_v1  ;;  %1751 = vmatprep.subr.bf16.mxu1 %v3514_v1  ;;  %v3475_v1 = vld [vmem:[%s3604_s10 + $0x174] ss:$8 sps:$4 sm:$0xff]   ;;  %v3754_v13 = vld [vmem:[%s4135_s3] ss:$0 sm:$0xff] }
  0x25   : > { %v3760_v16 = vld [vmem:[%s4138_s6] ss:$0 sm:$0xff] }
  0x27   : > { %865 = vmatpush1.bf16.msra.mxu0 %v3404_v18  ;;  %1752 = vmatpush1.bf16.msra.mxu1 %v3405_v19  ;;  %v3489_v18 = vld [vmem:[%s3604_s10 + $0x1b0] ss:$8 sps:$4 sm:$0xff]  }
  0x2a   : > { %881 = vmatmul.mubr.bf16.vlgmr.msra.gmra.mrb[0].mxu0 %v3406_v20  ;;  %1768 = vmatmul.mubr.bf16.vlgmr.msra.gmra.mrb[0].mxu1 %v3406_v20 }
  0x2b   : > { %2662 = vmatprep.mubr.msk.bf16.mxu0 %vm751_vm0, %v3409_v21  ;;  %2769 = vmatprep.mubr.msk.bf16.mxu1 %vm751_vm0, %v3409_v21 }
  0x32   : > { %889 = vmatmul.mubr.bf16.gmra.mrb[4].mxu0 %v3411_v22  ;;  %1776 = vmatmul.mubr.bf16.gmra.mrb[4].mxu1 %v3411_v22  ;;  %v3490_v22 = vld [vmem:[%s3604_s10 + $0x1c4] ss:$8 sps:$4 sm:$0xff]  }
  0x33   : > { %2663 = vmatprep.mubr.msk.bf16.mxu0 %vm751_vm0, %v3412_v23  ;;  %2770 = vmatprep.mubr.msk.bf16.mxu1 %vm751_vm0, %v3412_v23 }
  0x3a   : > { %897 = vmatmul.mubr.bf16.gmra.mrb[8].mxu0 %v3414_v24  ;;  %1784 = vmatmul.mubr.bf16.gmra.mrb[8].mxu1 %v3414_v24 }
  0x3b   : > { %2664 = vmatprep.mubr.msk.bf16.mxu0 %vm751_vm0, %v3415_v25  ;;  %2771 = vmatprep.mubr.msk.bf16.mxu1 %vm751_vm0, %v3415_v25 }
  0x42   : > { %905 = vmatmul.mubr.bf16.gmra.mrb[12].mxu0 %v3417_v26  ;;  %1792 = vmatmul.mubr.bf16.gmra.mrb[12].mxu1 %v3417_v26 }
  0x43   : > { %2665 = vmatprep.mubr.msk.bf16.mxu0 %vm751_vm0, %v3418_v27  ;;  %2772 = vmatprep.mubr.msk.bf16.mxu1 %vm751_vm0, %v3418_v27 }
  0x4a   : > { %913 = vmatmul.mubr.bf16.gmra.mrb[16].mxu0 %v3420_v28  ;;  %1800 = vmatmul.mubr.bf16.gmra.mrb[16].mxu1 %v3420_v28 }
  0x4b   : > { %2666 = vmatprep.mubr.msk.bf16.mxu0 %vm751_vm0, %v3421_v29  ;;  %2773 = vmatprep.mubr.msk.bf16.mxu1 %vm751_vm0, %v3421_v29 }
  0x52   : > { %921 = vmatmul.mubr.bf16.gmra.mrb[20].mxu0 %v3423_v30  ;;  %1808 = vmatmul.mubr.bf16.gmra.mrb[20].mxu1 %v3423_v30 }
  0x53   : > { %2667 = vmatprep.mubr.msk.bf16.mxu0 %vm751_vm0, %v3424_v31  ;;  %2774 = vmatprep.mubr.msk.bf16.mxu1 %vm751_vm0, %v3424_v31 }
  0x5a   : > { %929 = vmatmul.mubr.bf16.gmra.mrb[24].mxu0 %v3426_v32  ;;  %1816 = vmatmul.mubr.bf16.gmra.mrb[24].mxu1 %v3426_v32 }
  0x5b   : > { %2668 = vmatprep.mubr.msk.bf16.mxu0 %vm751_vm0, %v3427_v33  ;;  %2775 = vmatprep.mubr.msk.bf16.mxu1 %vm751_vm0, %v3427_v33 }
  0x62   : > { %937 = vmatmul.mubr.bf16.gmra.mrb[28].mxu0 %v3429_v34  ;;  %1824 = vmatmul.mubr.bf16.gmra.mrb[28].mxu1 %v3429_v34 }
  0x63   : > { %2669 = vmatprep.mubr.msk.bf16.mxu0 %vm751_vm0, %v3430_v35  ;;  %2776 = vmatprep.mubr.msk.bf16.mxu1 %vm751_vm0, %v3430_v35 }
  0x6a   : > { %945 = vmatmul.mubr.bf16.gmra.mrb[32].mxu0 %v3432_v36  ;;  %1832 = vmatmul.mubr.bf16.gmra.mrb[32].mxu1 %v3432_v36 }
  0x6b   : > { %2670 = vmatprep.mubr.msk.bf16.mxu0 %vm751_vm0, %v3433_v37  ;;  %2777 = vmatprep.mubr.msk.bf16.mxu1 %vm751_vm0, %v3433_v37 }
  0x72   : > { %953 = vmatmul.mubr.bf16.gmra.mrb[36].mxu0 %v3435_v38  ;;  %1840 = vmatmul.mubr.bf16.gmra.mrb[36].mxu1 %v3435_v38 }
  0x73   : > { %2671 = vmatprep.mubr.msk.bf16.mxu0 %vm751_vm0, %v3436_v39  ;;  %2778 = vmatprep.mubr.msk.bf16.mxu1 %vm751_vm0, %v3436_v39 }
  0x7a   : > { %961 = vmatmul.mubr.bf16.gmra.mrb[40].mxu0 %v3438_v40  ;;  %1848 = vmatmul.mubr.bf16.gmra.mrb[40].mxu1 %v3438_v40  ;;  %v3492_v40 = vld [vmem:[%s3604_s10 + $0x1c0] ss:$8 sps:$4 sm:$0xff]  }
  0x7b   : > { %2672 = vmatprep.mubr.msk.bf16.mxu0 %vm751_vm0, %v3439_v41  ;;  %2779 = vmatprep.mubr.msk.bf16.mxu1 %vm751_vm0, %v3439_v41 }
  0x82   : > { %969 = vmatmul.mubr.bf16.gmra.mrb[44].mxu0 %v3441_v42  ;;  %1856 = vmatmul.mubr.bf16.gmra.mrb[44].mxu1 %v3441_v42 }
  0x83   : > { %2673 = vmatprep.mubr.msk.bf16.mxu0 %vm751_vm0, %v3442_v43  ;;  %2780 = vmatprep.mubr.msk.bf16.mxu1 %vm751_vm0, %v3442_v43 }
  0x8a   : > { %977 = vmatmul.mubr.bf16.gmra.mrb[48].mxu0 %v3444_v44  ;;  %1864 = vmatmul.mubr.bf16.gmra.mrb[48].mxu1 %v3444_v44  ;;  %v3493_v44 = vld [vmem:[%s3604_s10 + $0x1d4] ss:$8 sps:$4 sm:$0xff]  }
  0x8b   : > { %2674 = vmatprep.mubr.msk.bf16.mxu0 %vm751_vm0, %v3445_v45  ;;  %2781 = vmatprep.mubr.msk.bf16.mxu1 %vm751_vm0, %v3445_v45 }
  0x92   : > { %985 = vmatmul.mubr.bf16.gmra.mrb[52].mxu0 %v3447_v46  ;;  %1872 = vmatmul.mubr.bf16.gmra.mrb[52].mxu1 %v3447_v46 }
  0x93   : > { %2675 = vmatprep.mubr.msk.bf16.mxu0 %vm751_vm0, %v3448_v47  ;;  %2782 = vmatprep.mubr.msk.bf16.mxu1 %vm751_vm0, %v3448_v47 }
  0x9a   : > { %993 = vmatmul.mubr.bf16.gmra.mrb[56].mxu0 %v3450_v48  ;;  %1880 = vmatmul.mubr.bf16.gmra.mrb[56].mxu1 %v3450_v48 }
  0x9b   : > { %2676 = vmatprep.mubr.msk.bf16.mxu0 %vm751_vm0, %v3451_v49  ;;  %2783 = vmatprep.mubr.msk.bf16.mxu1 %vm751_vm0, %v3451_v49 }
  0xa2   : > { %1001 = vmatmul.mubr.bf16.gmra.mrb[60].mxu0 %v3453_v50  ;;  %1888 = vmatmul.mubr.bf16.gmra.mrb[60].mxu1 %v3453_v50 }
  0xa3   : > { %2677 = vmatprep.mubr.msk.bf16.mxu0 %vm751_vm0, %v3454_v51  ;;  %2784 = vmatprep.mubr.msk.bf16.mxu1 %vm751_vm0, %v3454_v51 }
  0xaa   : > { %1009 = vmatmul.mubr.bf16.gmra.mrb[64].mxu0 %v3456_v52  ;;  %1896 = vmatmul.mubr.bf16.gmra.mrb[64].mxu1 %v3456_v52 }
  0xab   : > { %2678 = vmatprep.mubr.msk.bf16.mxu0 %vm751_vm0, %v3457_v53  ;;  %2785 = vmatprep.mubr.msk.bf16.mxu1 %vm751_vm0, %v3457_v53 }
  0xb2   : > { %1017 = vmatmul.mubr.bf16.gmra.mrb[68].mxu0 %v3459_v54  ;;  %1904 = vmatmul.mubr.bf16.gmra.mrb[68].mxu1 %v3459_v54 }
  0xb3   : > { %2679 = vmatprep.mubr.msk.bf16.mxu0 %vm751_vm0, %v3460_v55  ;;  %2786 = vmatprep.mubr.msk.bf16.mxu1 %vm751_vm0, %v3460_v55 }
  0xba   : > { %1025 = vmatmul.mubr.bf16.gmra.mrb[72].mxu0 %v3462_v56  ;;  %1912 = vmatmul.mubr.bf16.gmra.mrb[72].mxu1 %v3462_v56 }
  0xbb   : > { %2680 = vmatprep.mubr.msk.bf16.mxu0 %vm751_vm0, %v3463_v57  ;;  %2787 = vmatprep.mubr.msk.bf16.mxu1 %vm751_vm0, %v3463_v57 }
  0xc2   : > { %1033 = vmatmul.mubr.bf16.gmra.mrb[76].mxu0 %v3465_v58  ;;  %1920 = vmatmul.mubr.bf16.gmra.mrb[76].mxu1 %v3465_v58 }
  0xc3   : > { %2681 = vmatprep.mubr.msk.bf16.mxu0 %vm751_vm0, %v3466_v59  ;;  %2788 = vmatprep.mubr.msk.bf16.mxu1 %vm751_vm0, %v3466_v59 }
  0xca   : > { %1041 = vmatmul.mubr.bf16.gmra.mrb[80].mxu0 %v3468_v60  ;;  %1928 = vmatmul.mubr.bf16.gmra.mrb[80].mxu1 %v3468_v60 }
  0xcb   : > { %2682 = vmatprep.mubr.msk.bf16.mxu0 %vm751_vm0, %v3469_v61  ;;  %2789 = vmatprep.mubr.msk.bf16.mxu1 %vm751_vm0, %v3469_v61 }
  0xd2   : > { %1049 = vmatmul.mubr.bf16.gmra.mrb[84].mxu0 %v3471_v62  ;;  %1936 = vmatmul.mubr.bf16.gmra.mrb[84].mxu1 %v3471_v62  ;;  %v3495_v62 = vld [vmem:[%s3604_s10 + $0x1d0] ss:$8 sps:$4 sm:$0xff]  }
  0xd3   : > { %2683 = vmatprep.mubr.msk.bf16.mxu0 %vm751_vm0, %v3472_v63  ;;  %2790 = vmatprep.mubr.msk.bf16.mxu1 %vm751_vm0, %v3472_v63 }
  0xda   : > { %1057 = vmatmul.mubr.bf16.gmra.mrb[88].mxu0 %v3474_v0  ;;  %1944 = vmatmul.mubr.bf16.gmra.mrb[88].mxu1 %v3474_v0 }
  0xdb   : > { %2684 = vmatprep.mubr.msk.bf16.mxu0 %vm751_vm0, %v3475_v1  ;;  %2791 = vmatprep.mubr.msk.bf16.mxu1 %vm751_vm0, %v3475_v1 }
  0xe2   : > { %1065 = vmatmul.mubr.bf16.gmra.mrb[92].mxu0 %v3477_v2  ;;  %1952 = vmatmul.mubr.bf16.gmra.mrb[92].mxu1 %v3477_v2  ;;  %v3496_v2 = vld [vmem:[%s3604_s10 + $0x1e4] ss:$8 sps:$4 sm:$0xff]  }
  0xe3   : > { %2685 = vmatprep.mubr.msk.bf16.mxu0 %vm751_vm0, %v3478_v3  ;;  %2792 = vmatprep.mubr.msk.bf16.mxu1 %vm751_vm0, %v3478_v3 }
  0xea   : > { %1073 = vmatmul.mubr.bf16.gmra.mrb[96].mxu0 %v3480_v4  ;;  %1960 = vmatmul.mubr.bf16.gmra.mrb[96].mxu1 %v3480_v4 }
  0xeb   : > { %2686 = vmatprep.mubr.msk.bf16.mxu0 %vm751_vm0, %v3481_v5  ;;  %2793 = vmatprep.mubr.msk.bf16.mxu1 %vm751_vm0, %v3481_v5 }
  0xf2   : > { %1081 = vmatmul.mubr.bf16.gmra.mrb[100].mxu0 %v3483_v6  ;;  %1968 = vmatmul.mubr.bf16.gmra.mrb[100].mxu1 %v3483_v6 }
  0xf3   : > { %2687 = vmatprep.mubr.msk.bf16.mxu0 %vm751_vm0, %v3484_v7  ;;  %2794 = vmatprep.mubr.msk.bf16.mxu1 %vm751_vm0, %v3484_v7 }
  0xfa   : > { %1089 = vmatmul.mubr.bf16.gmra.mrb[104].mxu0 %v3486_v8  ;;  %1976 = vmatmul.mubr.bf16.gmra.mrb[104].mxu1 %v3486_v8 }
  0xfb   : > { %2688 = vmatprep.mubr.msk.bf16.mxu0 %vm751_vm0, %v3487_v9  ;;  %2795 = vmatprep.mubr.msk.bf16.mxu1 %vm751_vm0, %v3487_v9 }
  0xfd   : > { %v882_v12 = vpop.f32.mrb[0].mxu0  ;;  %v1769_v15 = vpop.f32.mrb[0].mxu1 }
  0xfe   : > { %v1144_v14 = vmul.f32 %v3742_v10, %v882_v12  ;;  %v884_v17 = vpop.f32.mrb[1].mxu0  ;;  %v2031_v19 = vmul.f32 %v3748_v11, %v1769_v15  ;;  %v1771_v20 = vpop.f32.mrb[1].mxu1 }
  0xff   : > { %v885_v21 = vpop.f32.mrb[2].mxu0  ;;  %v1772_v25 = vpop.f32.mrb[2].mxu1 }
 0x100   : > { %v1215_v23 = vadd.f32 %v3754_v13, %v1144_v14  ;;  %v1145_v24 = vmul.f32 %v3742_v10, %v885_v21  ;;  %v887_v26 = vpop.f32.mrb[3].mxu0  ;;  %v2102_v27 = vadd.f32 %v3760_v16, %v2031_v19  ;;  %v2032_v28 = vmul.f32 %v3748_v11, %v1772_v25  ;;  %v1774_v29 = vpop.f32.mrb[3].mxu1 }
 0x102   : > { %v1216_v30 = vadd.f32 %v3754_v13, %v1145_v24  ;;  %1097 = vmatmul.mubr.bf16.gmra.mrb[108].mxu0 %v3489_v18  ;;  %v2103_v31 = vadd.f32 %v3760_v16, %v2032_v28  ;;  %1984 = vmatmul.mubr.bf16.gmra.mrb[108].mxu1 %v3489_v18  ;;  %v1279_v32 = vmax.f32 %v1215_v23, 0.0  ;;  %v3498_v24 = vld [vmem:[%s3604_s10 + $0x1e0] ss:$8 sps:$4 sm:$0xff]   ;;  %v3499_v28 = vld [vmem:[%s3604_s10 + $0x1f4] ss:$8 sps:$4 sm:$0xff]  }
 0x103   : > { %2689 = vmatprep.mubr.msk.bf16.mxu0 %vm751_vm0, %v3490_v22  ;;  %2796 = vmatprep.mubr.msk.bf16.mxu1 %vm751_vm0, %v3490_v22 }
 0x104   : > { %v1280_v33 = vmax.f32 %v1216_v30, 0.0  ;;  %v3160_v34 = vpack.c.bf16 %v2103_v31, %v2102_v27 }
 0x105   : > { %v890_v35 = vpop.f32.mrb[4].mxu0  ;;  %v1777_v38 = vpop.f32.mrb[4].mxu1 }
 0x106   : > { %v3000_v36 = vpack.c.bf16 %v1280_v33, %v1279_v32  ;;  %v1146_v37 = vmul.f32 %v3742_v10, %v890_v35  ;;  %v892_v39 = vpop.f32.mrb[5].mxu0  ;;  %3161 = vst [vmem:[%s3776_s20] sm:$0xff] %v3160_v34   ;;  %v2033_v41 = vmul.f32 %v3748_v11, %v1777_v38  ;;  %v1779_v42 = vpop.f32.mrb[5].mxu1 }
 0x107   : > { %v893_v43 = vpop.f32.mrb[6].mxu0  ;;  %v1780_v47 = vpop.f32.mrb[6].mxu1 }
 0x108   : > { %3001 = vst [vmem:[%s3782_s22] sm:$0xff] %v3000_v36   ;;  %v1217_v45 = vadd.f32 %v3754_v13, %v1146_v37  ;;  %v1147_v46 = vmul.f32 %v3742_v10, %v893_v43  ;;  %v895_v48 = vpop.f32.mrb[7].mxu0  ;;  %v2104_v49 = vadd.f32 %v3760_v16, %v2033_v41  ;;  %v2034_v50 = vmul.f32 %v3748_v11, %v1780_v47  ;;  %v1782_v51 = vpop.f32.mrb[7].mxu1 }
 0x10a   : > { %v1218_v52 = vadd.f32 %v3754_v13, %v1147_v46  ;;  %1105 = vmatmul.mubr.bf16.gmra.mrb[112].mxu0 %v3492_v40  ;;  %v2105_v53 = vadd.f32 %v3760_v16, %v2034_v50  ;;  %1992 = vmatmul.mubr.bf16.gmra.mrb[112].mxu1 %v3492_v40  ;;  %v1281_v54 = vmax.f32 %v1217_v45, 0.0  ;;  %v3501_v46 = vld [vmem:[%s3604_s10 + $0x1f0] ss:$8 sps:$4 sm:$0xff]  }
 0x10b   : > { %2690 = vmatprep.mubr.msk.bf16.mxu0 %vm751_vm0, %v3493_v44  ;;  %2797 = vmatprep.mubr.msk.bf16.mxu1 %vm751_vm0, %v3493_v44 }
 0x10c   : > { %v1282_v55 = vmax.f32 %v1218_v52, 0.0  ;;  %v3165_v56 = vpack.c.bf16 %v2105_v53, %v2104_v49 }
 0x10d   : > { %v898_v57 = vpop.f32.mrb[8].mxu0  ;;  %v1785_v60 = vpop.f32.mrb[8].mxu1 }
 0x10e   : > { %v3005_v58 = vpack.c.bf16 %v1282_v55, %v1281_v54  ;;  %v1148_v59 = vmul.f32 %v3742_v10, %v898_v57  ;;  %v900_v61 = vpop.f32.mrb[9].mxu0  ;;  %3348 = vst [vmem:[%s3776_s20 + $0x8] sm:$0xff] %v3165_v56   ;;  %v2035_v63 = vmul.f32 %v3748_v11, %v1785_v60  ;;  %v1787_v0 = vpop.f32.mrb[9].mxu1 }
 0x10f   : > { %v901_v1 = vpop.f32.mrb[10].mxu0  ;;  %v1788_v5 = vpop.f32.mrb[10].mxu1 }
 0x110   : > { %3317 = vst [vmem:[%s3782_s22 + $0x8] sm:$0xff] %v3005_v58   ;;  %v1219_v3 = vadd.f32 %v3754_v13, %v1148_v59  ;;  %v1149_v4 = vmul.f32 %v3742_v10, %v901_v1  ;;  %v903_v6 = vpop.f32.mrb[11].mxu0  ;;  %v2106_v7 = vadd.f32 %v3760_v16, %v2035_v63  ;;  %v2036_v8 = vmul.f32 %v3748_v11, %v1788_v5  ;;  %v1790_v9 = vpop.f32.mrb[11].mxu1 }
 0x112   : > { %v1220_v12 = vadd.f32 %v3754_v13, %v1149_v4  ;;  %1113 = vmatmul.mubr.bf16.gmra.mrb[116].mxu0 %v3495_v62  ;;  %v2107_v14 = vadd.f32 %v3760_v16, %v2036_v8  ;;  %2000 = vmatmul.mubr.bf16.gmra.mrb[116].mxu1 %v3495_v62  ;;  %v1283_v15 = vmax.f32 %v1219_v3, 0.0 }
 0x113   : > { %2691 = vmatprep.mubr.msk.bf16.mxu0 %vm751_vm0, %v3496_v2  ;;  %2798 = vmatprep.mubr.msk.bf16.mxu1 %vm751_vm0, %v3496_v2 }
 0x114   : > { %v1284_v17 = vmax.f32 %v1220_v12, 0.0  ;;  %v3170_v18 = vpack.c.bf16 %v2107_v14, %v2106_v7 }
 0x115   : > { %v906_v19 = vpop.f32.mrb[12].mxu0  ;;  %v1793_v22 = vpop.f32.mrb[12].mxu1 }
 0x116   : > { %v3010_v20 = vpack.c.bf16 %v1284_v17, %v1283_v15  ;;  %v1150_v21 = vmul.f32 %v3742_v10, %v906_v19  ;;  %v908_v23 = vpop.f32.mrb[13].mxu0  ;;  %3349 = vst [vmem:[%s3776_s20 + $0x10] sm:$0xff] %v3170_v18   ;;  %v2037_v25 = vmul.f32 %v3748_v11, %v1793_v22  ;;  %v1795_v26 = vpop.f32.mrb[13].mxu1 }
 0x117   : > { %v909_v27 = vpop.f32.mrb[14].mxu0  ;;  %v1796_v31 = vpop.f32.mrb[14].mxu1 }
 0x118   : > { %3318 = vst [vmem:[%s3782_s22 + $0x10] sm:$0xff] %v3010_v20   ;;  %v1221_v29 = vadd.f32 %v3754_v13, %v1150_v21  ;;  %v1151_v30 = vmul.f32 %v3742_v10, %v909_v27  ;;  %v911_v32 = vpop.f32.mrb[15].mxu0  ;;  %v2108_v33 = vadd.f32 %v3760_v16, %v2037_v25  ;;  %v2038_v34 = vmul.f32 %v3748_v11, %v1796_v31  ;;  %v1798_v35 = vpop.f32.mrb[15].mxu1 }
 0x11a   : > { %v1222_v36 = vadd.f32 %v3754_v13, %v1151_v30  ;;  %1121 = vmatmul.mubr.bf16.gmra.mrb[120].mxu0 %v3498_v24  ;;  %v2109_v37 = vadd.f32 %v3760_v16, %v2038_v34  ;;  %2008 = vmatmul.mubr.bf16.gmra.mrb[120].mxu1 %v3498_v24  ;;  %v1285_v38 = vmax.f32 %v1221_v29, 0.0 }
 0x11b   : > { %2692 = vmatprep.mubr.msk.bf16.mxu0 %vm751_vm0, %v3499_v28  ;;  %2799 = vmatprep.mubr.msk.bf16.mxu1 %vm751_vm0, %v3499_v28 }
 0x11c   : > { %v1286_v39 = vmax.f32 %v1222_v36, 0.0  ;;  %v3175_v40 = vpack.c.bf16 %v2109_v37, %v2108_v33 }
 0x11d   : > { %v914_v41 = vpop.f32.mrb[16].mxu0  ;;  %v1801_v44 = vpop.f32.mrb[16].mxu1 }
 0x11e   : > { %v3015_v42 = vpack.c.bf16 %v1286_v39, %v1285_v38  ;;  %v1152_v43 = vmul.f32 %v3742_v10, %v914_v41  ;;  %v916_v45 = vpop.f32.mrb[17].mxu0  ;;  %3350 = vst [vmem:[%s3776_s20 + $0x18] sm:$0xff] %v3175_v40   ;;  %v2039_v47 = vmul.f32 %v3748_v11, %v1801_v44  ;;  %v1803_v48 = vpop.f32.mrb[17].mxu1 }
 0x11f   : > { %v917_v49 = vpop.f32.mrb[18].mxu0  ;;  %v1804_v52 = vpop.f32.mrb[18].mxu1 }
 0x120   : > { %3319 = vst [vmem:[%s3782_s22 + $0x18] sm:$0xff] %v3015_v42   ;;  %v1223_v50 = vadd.f32 %v3754_v13, %v1152_v43  ;;  %v1153_v51 = vmul.f32 %v3742_v10, %v917_v49  ;;  %v919_v53 = vpop.f32.mrb[19].mxu0  ;;  %v2110_v54 = vadd.f32 %v3760_v16, %v2039_v47  ;;  %v2040_v55 = vmul.f32 %v3748_v11, %v1804_v52  ;;  %v1806_v56 = vpop.f32.mrb[19].mxu1 }
 0x122   : > { %v1224_v57 = vadd.f32 %v3754_v13, %v1153_v51  ;;  %1129 = vmatmul.mubr.bf16.gmra.mrb[124].mxu0 %v3501_v46  ;;  %v2111_v58 = vadd.f32 %v3760_v16, %v2040_v55  ;;  %2016 = vmatmul.mubr.bf16.gmra.mrb[124].mxu1 %v3501_v46  ;;  %v1287_v59 = vmax.f32 %v1223_v50, 0.0 }
 0x124   : > { %v1288_v60 = vmax.f32 %v1224_v57, 0.0  ;;  %v3180_v61 = vpack.c.bf16 %v2111_v58, %v2110_v54 }
 0x125   : > { %v922_v62 = vpop.f32.mrb[20].mxu0  ;;  %v1809_v1 = vpop.f32.mrb[20].mxu1 }
 0x126   : > { %v3020_v63 = vpack.c.bf16 %v1288_v60, %v1287_v59  ;;  %v1154_v0 = vmul.f32 %v3742_v10, %v922_v62  ;;  %v924_v2 = vpop.f32.mrb[21].mxu0  ;;  %3351 = vst [vmem:[%s3776_s20 + $0x20] sm:$0xff] %v3180_v61   ;;  %v2041_v3 = vmul.f32 %v3748_v11, %v1809_v1  ;;  %v1811_v4 = vpop.f32.mrb[21].mxu1 }
 0x127   : > { %v925_v5 = vpop.f32.mrb[22].mxu0  ;;  %v1812_v8 = vpop.f32.mrb[22].mxu1 }
 0x128   : > { %3320 = vst [vmem:[%s3782_s22 + $0x20] sm:$0xff] %v3020_v63   ;;  %v1225_v6 = vadd.f32 %v3754_v13, %v1154_v0  ;;  %v1155_v7 = vmul.f32 %v3742_v10, %v925_v5  ;;  %v927_v9 = vpop.f32.mrb[23].mxu0  ;;  %v2112_v12 = vadd.f32 %v3760_v16, %v2041_v3  ;;  %v2042_v14 = vmul.f32 %v3748_v11, %v1812_v8  ;;  %v1814_v15 = vpop.f32.mrb[23].mxu1 }
 0x12a   : > { %v1226_v17 = vadd.f32 %v3754_v13, %v1155_v7  ;;  %v2113_v18 = vadd.f32 %v3760_v16, %v2042_v14  ;;  %v1289_v19 = vmax.f32 %v1225_v6, 0.0 }
 0x12c   : > { %v1290_v20 = vmax.f32 %v1226_v17, 0.0  ;;  %v3185_v21 = vpack.c.bf16 %v2113_v18, %v2112_v12 }
 0x12d   : > { %v930_v22 = vpop.f32.mrb[24].mxu0  ;;  %v1817_v25 = vpop.f32.mrb[24].mxu1 }
 0x12e   : > { %v3025_v23 = vpack.c.bf16 %v1290_v20, %v1289_v19  ;;  %v1156_v24 = vmul.f32 %v3742_v10, %v930_v22  ;;  %v932_v26 = vpop.f32.mrb[25].mxu0  ;;  %3352 = vst [vmem:[%s3776_s20 + $0x28] sm:$0xff] %v3185_v21   ;;  %v2043_v27 = vmul.f32 %v3748_v11, %v1817_v25  ;;  %v1819_v28 = vpop.f32.mrb[25].mxu1 }
 0x12f   : > { %v933_v29 = vpop.f32.mrb[26].mxu0  ;;  %v1820_v32 = vpop.f32.mrb[26].mxu1 }
 0x130   : > { %3321 = vst [vmem:[%s3782_s22 + $0x28] sm:$0xff] %v3025_v23   ;;  %v1227_v30 = vadd.f32 %v3754_v13, %v1156_v24  ;;  %v1157_v31 = vmul.f32 %v3742_v10, %v933_v29  ;;  %v935_v33 = vpop.f32.mrb[27].mxu0  ;;  %v2114_v34 = vadd.f32 %v3760_v16, %v2043_v27  ;;  %v2044_v35 = vmul.f32 %v3748_v11, %v1820_v32  ;;  %v1822_v36 = vpop.f32.mrb[27].mxu1 }
 0x132   : > { %v1228_v37 = vadd.f32 %v3754_v13, %v1157_v31  ;;  %v2115_v38 = vadd.f32 %v3760_v16, %v2044_v35  ;;  %v1291_v39 = vmax.f32 %v1227_v30, 0.0 }
 0x134   : > { %v1292_v40 = vmax.f32 %v1228_v37, 0.0  ;;  %v3190_v41 = vpack.c.bf16 %v2115_v38, %v2114_v34 }
 0x135   : > { %v938_v42 = vpop.f32.mrb[28].mxu0  ;;  %v1825_v45 = vpop.f32.mrb[28].mxu1 }
 0x136   : > { %v3030_v43 = vpack.c.bf16 %v1292_v40, %v1291_v39  ;;  %v1158_v44 = vmul.f32 %v3742_v10, %v938_v42  ;;  %v940_v46 = vpop.f32.mrb[29].mxu0  ;;  %3353 = vst [vmem:[%s3776_s20 + $0x30] sm:$0xff] %v3190_v41   ;;  %v2045_v47 = vmul.f32 %v3748_v11, %v1825_v45  ;;  %v1827_v48 = vpop.f32.mrb[29].mxu1 }
 0x137   : > { %v941_v49 = vpop.f32.mrb[30].mxu0  ;;  %v1828_v52 = vpop.f32.mrb[30].mxu1 }
 0x138   : > { %3322 = vst [vmem:[%s3782_s22 + $0x30] sm:$0xff] %v3030_v43   ;;  %v1229_v50 = vadd.f32 %v3754_v13, %v1158_v44  ;;  %v1159_v51 = vmul.f32 %v3742_v10, %v941_v49  ;;  %v943_v53 = vpop.f32.mrb[31].mxu0  ;;  %v2116_v54 = vadd.f32 %v3760_v16, %v2045_v47  ;;  %v2046_v55 = vmul.f32 %v3748_v11, %v1828_v52  ;;  %v1830_v56 = vpop.f32.mrb[31].mxu1 }
 0x13a   : > { %v1230_v57 = vadd.f32 %v3754_v13, %v1159_v51  ;;  %v2117_v58 = vadd.f32 %v3760_v16, %v2046_v55  ;;  %v1293_v59 = vmax.f32 %v1229_v50, 0.0 }
 0x13c   : > { %v1294_v60 = vmax.f32 %v1230_v57, 0.0  ;;  %v3195_v61 = vpack.c.bf16 %v2117_v58, %v2116_v54 }
 0x13d   : > { %v946_v62 = vpop.f32.mrb[32].mxu0  ;;  %v1833_v1 = vpop.f32.mrb[32].mxu1 }
 0x13e   : > { %v3035_v63 = vpack.c.bf16 %v1294_v60, %v1293_v59  ;;  %v1160_v0 = vmul.f32 %v3742_v10, %v946_v62  ;;  %v948_v2 = vpop.f32.mrb[33].mxu0  ;;  %3354 = vst [vmem:[%s3776_s20 + $0x38] sm:$0xff] %v3195_v61   ;;  %v2047_v3 = vmul.f32 %v3748_v11, %v1833_v1  ;;  %v1835_v4 = vpop.f32.mrb[33].mxu1 }
 0x13f   : > { %v949_v5 = vpop.f32.mrb[34].mxu0  ;;  %v1836_v8 = vpop.f32.mrb[34].mxu1 }
 0x140   : > { %3323 = vst [vmem:[%s3782_s22 + $0x38] sm:$0xff] %v3035_v63   ;;  %v1231_v6 = vadd.f32 %v3754_v13, %v1160_v0  ;;  %v1161_v7 = vmul.f32 %v3742_v10, %v949_v5  ;;  %v951_v9 = vpop.f32.mrb[35].mxu0  ;;  %v2118_v12 = vadd.f32 %v3760_v16, %v2047_v3  ;;  %v2048_v14 = vmul.f32 %v3748_v11, %v1836_v8  ;;  %v1838_v15 = vpop.f32.mrb[35].mxu1 }
 0x142   : > { %v1232_v17 = vadd.f32 %v3754_v13, %v1161_v7  ;;  %v2119_v18 = vadd.f32 %v3760_v16, %v2048_v14  ;;  %v1295_v19 = vmax.f32 %v1231_v6, 0.0 }
 0x144   : > { %v1296_v20 = vmax.f32 %v1232_v17, 0.0  ;;  %v3200_v21 = vpack.c.bf16 %v2119_v18, %v2118_v12 }
 0x145   : > { %v954_v22 = vpop.f32.mrb[36].mxu0  ;;  %v1841_v25 = vpop.f32.mrb[36].mxu1 }
 0x146   : > { %v3040_v23 = vpack.c.bf16 %v1296_v20, %v1295_v19  ;;  %v1162_v24 = vmul.f32 %v3742_v10, %v954_v22  ;;  %v956_v26 = vpop.f32.mrb[37].mxu0  ;;  %3355 = vst [vmem:[%s3776_s20 + $0x40] sm:$0xff] %v3200_v21   ;;  %v2049_v27 = vmul.f32 %v3748_v11, %v1841_v25  ;;  %v1843_v28 = vpop.f32.mrb[37].mxu1 }
 0x147   : > { %v957_v29 = vpop.f32.mrb[38].mxu0  ;;  %v1844_v32 = vpop.f32.mrb[38].mxu1 }
 0x148   : > { %3324 = vst [vmem:[%s3782_s22 + $0x40] sm:$0xff] %v3040_v23   ;;  %v1233_v30 = vadd.f32 %v3754_v13, %v1162_v24  ;;  %v1163_v31 = vmul.f32 %v3742_v10, %v957_v29  ;;  %v959_v33 = vpop.f32.mrb[39].mxu0  ;;  %v2120_v34 = vadd.f32 %v3760_v16, %v2049_v27  ;;  %v2050_v35 = vmul.f32 %v3748_v11, %v1844_v32  ;;  %v1846_v36 = vpop.f32.mrb[39].mxu1 }
 0x14a   : > { %v1234_v37 = vadd.f32 %v3754_v13, %v1163_v31  ;;  %v2121_v38 = vadd.f32 %v3760_v16, %v2050_v35  ;;  %v1297_v39 = vmax.f32 %v1233_v30, 0.0 }
 0x14c   : > { %v1298_v40 = vmax.f32 %v1234_v37, 0.0  ;;  %v3205_v41 = vpack.c.bf16 %v2121_v38, %v2120_v34 }
 0x14d   : > { %v962_v42 = vpop.f32.mrb[40].mxu0  ;;  %v1849_v45 = vpop.f32.mrb[40].mxu1 }
 0x14e   : > { %v3045_v43 = vpack.c.bf16 %v1298_v40, %v1297_v39  ;;  %v1164_v44 = vmul.f32 %v3742_v10, %v962_v42  ;;  %v964_v46 = vpop.f32.mrb[41].mxu0  ;;  %3356 = vst [vmem:[%s3776_s20 + $0x48] sm:$0xff] %v3205_v41   ;;  %v2051_v47 = vmul.f32 %v3748_v11, %v1849_v45  ;;  %v1851_v48 = vpop.f32.mrb[41].mxu1 }
 0x14f   : > { %v965_v49 = vpop.f32.mrb[42].mxu0  ;;  %v1852_v52 = vpop.f32.mrb[42].mxu1 }
 0x150   : > { %3325 = vst [vmem:[%s3782_s22 + $0x48] sm:$0xff] %v3045_v43   ;;  %v1235_v50 = vadd.f32 %v3754_v13, %v1164_v44  ;;  %v1165_v51 = vmul.f32 %v3742_v10, %v965_v49  ;;  %v967_v53 = vpop.f32.mrb[43].mxu0  ;;  %v2122_v54 = vadd.f32 %v3760_v16, %v2051_v47  ;;  %v2052_v55 = vmul.f32 %v3748_v11, %v1852_v52  ;;  %v1854_v56 = vpop.f32.mrb[43].mxu1 }
 0x152   : > { %v1236_v57 = vadd.f32 %v3754_v13, %v1165_v51  ;;  %v2123_v58 = vadd.f32 %v3760_v16, %v2052_v55  ;;  %v1299_v59 = vmax.f32 %v1235_v50, 0.0 }
 0x154   : > { %v1300_v60 = vmax.f32 %v1236_v57, 0.0  ;;  %v3210_v61 = vpack.c.bf16 %v2123_v58, %v2122_v54 }
 0x155   : > { %v970_v62 = vpop.f32.mrb[44].mxu0  ;;  %v1857_v1 = vpop.f32.mrb[44].mxu1 }
 0x156   : > { %v3050_v63 = vpack.c.bf16 %v1300_v60, %v1299_v59  ;;  %v1166_v0 = vmul.f32 %v3742_v10, %v970_v62  ;;  %v972_v2 = vpop.f32.mrb[45].mxu0  ;;  %3357 = vst [vmem:[%s3776_s20 + $0x50] sm:$0xff] %v3210_v61   ;;  %v2053_v3 = vmul.f32 %v3748_v11, %v1857_v1  ;;  %v1859_v4 = vpop.f32.mrb[45].mxu1 }
 0x157   : > { %v973_v5 = vpop.f32.mrb[46].mxu0  ;;  %v1860_v8 = vpop.f32.mrb[46].mxu1 }
 0x158   : > { %3326 = vst [vmem:[%s3782_s22 + $0x50] sm:$0xff] %v3050_v63   ;;  %v1237_v6 = vadd.f32 %v3754_v13, %v1166_v0  ;;  %v1167_v7 = vmul.f32 %v3742_v10, %v973_v5  ;;  %v975_v9 = vpop.f32.mrb[47].mxu0  ;;  %v2124_v12 = vadd.f32 %v3760_v16, %v2053_v3  ;;  %v2054_v14 = vmul.f32 %v3748_v11, %v1860_v8  ;;  %v1862_v15 = vpop.f32.mrb[47].mxu1 }
 0x15a   : > { %v1238_v17 = vadd.f32 %v3754_v13, %v1167_v7  ;;  %v2125_v18 = vadd.f32 %v3760_v16, %v2054_v14  ;;  %v1301_v19 = vmax.f32 %v1237_v6, 0.0 }
 0x15c   : > { %v1302_v20 = vmax.f32 %v1238_v17, 0.0  ;;  %v3215_v21 = vpack.c.bf16 %v2125_v18, %v2124_v12 }
 0x15d   : > { %v978_v22 = vpop.f32.mrb[48].mxu0  ;;  %v1865_v25 = vpop.f32.mrb[48].mxu1 }
 0x15e   : > { %v3055_v23 = vpack.c.bf16 %v1302_v20, %v1301_v19  ;;  %v1168_v24 = vmul.f32 %v3742_v10, %v978_v22  ;;  %v980_v26 = vpop.f32.mrb[49].mxu0  ;;  %3358 = vst [vmem:[%s3776_s20 + $0x58] sm:$0xff] %v3215_v21   ;;  %v2055_v27 = vmul.f32 %v3748_v11, %v1865_v25  ;;  %v1867_v28 = vpop.f32.mrb[49].mxu1 }
 0x15f   : > { %v981_v29 = vpop.f32.mrb[50].mxu0  ;;  %v1868_v32 = vpop.f32.mrb[50].mxu1 }
 0x160   : > { %3327 = vst [vmem:[%s3782_s22 + $0x58] sm:$0xff] %v3055_v23   ;;  %v1239_v30 = vadd.f32 %v3754_v13, %v1168_v24  ;;  %v1169_v31 = vmul.f32 %v3742_v10, %v981_v29  ;;  %v983_v33 = vpop.f32.mrb[51].mxu0  ;;  %v2126_v34 = vadd.f32 %v3760_v16, %v2055_v27  ;;  %v2056_v35 = vmul.f32 %v3748_v11, %v1868_v32  ;;  %v1870_v36 = vpop.f32.mrb[51].mxu1 }
 0x162   : > { %v1240_v37 = vadd.f32 %v3754_v13, %v1169_v31  ;;  %v2127_v38 = vadd.f32 %v3760_v16, %v2056_v35  ;;  %v1303_v39 = vmax.f32 %v1239_v30, 0.0 }
 0x164   : > { %v1304_v40 = vmax.f32 %v1240_v37, 0.0  ;;  %v3220_v41 = vpack.c.bf16 %v2127_v38, %v2126_v34 }
 0x165   : > { %v986_v42 = vpop.f32.mrb[52].mxu0  ;;  %v1873_v45 = vpop.f32.mrb[52].mxu1 }
 0x166   : > { %v3060_v43 = vpack.c.bf16 %v1304_v40, %v1303_v39  ;;  %v1170_v44 = vmul.f32 %v3742_v10, %v986_v42  ;;  %v988_v46 = vpop.f32.mrb[53].mxu0  ;;  %3359 = vst [vmem:[%s3776_s20 + $0x60] sm:$0xff] %v3220_v41   ;;  %v2057_v47 = vmul.f32 %v3748_v11, %v1873_v45  ;;  %v1875_v48 = vpop.f32.mrb[53].mxu1 }
 0x167   : > { %v989_v49 = vpop.f32.mrb[54].mxu0  ;;  %v1876_v52 = vpop.f32.mrb[54].mxu1 }
 0x168   : > { %3328 = vst [vmem:[%s3782_s22 + $0x60] sm:$0xff] %v3060_v43   ;;  %v1241_v50 = vadd.f32 %v3754_v13, %v1170_v44  ;;  %v1171_v51 = vmul.f32 %v3742_v10, %v989_v49  ;;  %v991_v53 = vpop.f32.mrb[55].mxu0  ;;  %v2128_v54 = vadd.f32 %v3760_v16, %v2057_v47  ;;  %v2058_v55 = vmul.f32 %v3748_v11, %v1876_v52  ;;  %v1878_v56 = vpop.f32.mrb[55].mxu1 }
 0x16a   : > { %v1242_v57 = vadd.f32 %v3754_v13, %v1171_v51  ;;  %v2129_v58 = vadd.f32 %v3760_v16, %v2058_v55  ;;  %v1305_v59 = vmax.f32 %v1241_v50, 0.0 }
 0x16c   : > { %v1306_v60 = vmax.f32 %v1242_v57, 0.0  ;;  %v3225_v61 = vpack.c.bf16 %v2129_v58, %v2128_v54 }
 0x16d   : > { %v994_v62 = vpop.f32.mrb[56].mxu0  ;;  %v1881_v1 = vpop.f32.mrb[56].mxu1 }
 0x16e   : > { %v3065_v63 = vpack.c.bf16 %v1306_v60, %v1305_v59  ;;  %v1172_v0 = vmul.f32 %v3742_v10, %v994_v62  ;;  %v996_v2 = vpop.f32.mrb[57].mxu0  ;;  %3360 = vst [vmem:[%s3776_s20 + $0x68] sm:$0xff] %v3225_v61   ;;  %v2059_v3 = vmul.f32 %v3748_v11, %v1881_v1  ;;  %v1883_v4 = vpop.f32.mrb[57].mxu1 }
 0x16f   : > { %v997_v5 = vpop.f32.mrb[58].mxu0  ;;  %v1884_v8 = vpop.f32.mrb[58].mxu1 }
 0x170   : > { %3329 = vst [vmem:[%s3782_s22 + $0x68] sm:$0xff] %v3065_v63   ;;  %v1243_v6 = vadd.f32 %v3754_v13, %v1172_v0  ;;  %v1173_v7 = vmul.f32 %v3742_v10, %v997_v5  ;;  %v999_v9 = vpop.f32.mrb[59].mxu0  ;;  %v2130_v12 = vadd.f32 %v3760_v16, %v2059_v3  ;;  %v2060_v14 = vmul.f32 %v3748_v11, %v1884_v8  ;;  %v1886_v15 = vpop.f32.mrb[59].mxu1 }
 0x172   : > { %v1244_v17 = vadd.f32 %v3754_v13, %v1173_v7  ;;  %v2131_v18 = vadd.f32 %v3760_v16, %v2060_v14  ;;  %v1307_v19 = vmax.f32 %v1243_v6, 0.0 }
 0x174   : > { %v1308_v20 = vmax.f32 %v1244_v17, 0.0  ;;  %v3230_v21 = vpack.c.bf16 %v2131_v18, %v2130_v12 }
 0x175   : > { %v1002_v22 = vpop.f32.mrb[60].mxu0  ;;  %v1889_v25 = vpop.f32.mrb[60].mxu1 }
 0x176   : > { %v3070_v23 = vpack.c.bf16 %v1308_v20, %v1307_v19  ;;  %v1174_v24 = vmul.f32 %v3742_v10, %v1002_v22  ;;  %v1004_v26 = vpop.f32.mrb[61].mxu0  ;;  %3361 = vst [vmem:[%s3776_s20 + $0x70] sm:$0xff] %v3230_v21   ;;  %v2061_v27 = vmul.f32 %v3748_v11, %v1889_v25  ;;  %v1891_v28 = vpop.f32.mrb[61].mxu1 }
 0x177   : > { %v1005_v29 = vpop.f32.mrb[62].mxu0  ;;  %v1892_v32 = vpop.f32.mrb[62].mxu1 }
 0x178   : > { %3330 = vst [vmem:[%s3782_s22 + $0x70] sm:$0xff] %v3070_v23   ;;  %v1245_v30 = vadd.f32 %v3754_v13, %v1174_v24  ;;  %v1175_v31 = vmul.f32 %v3742_v10, %v1005_v29  ;;  %v1007_v33 = vpop.f32.mrb[63].mxu0  ;;  %v2132_v34 = vadd.f32 %v3760_v16, %v2061_v27  ;;  %v2062_v35 = vmul.f32 %v3748_v11, %v1892_v32  ;;  %v1894_v36 = vpop.f32.mrb[63].mxu1 }
 0x17a   : > { %v1246_v37 = vadd.f32 %v3754_v13, %v1175_v31  ;;  %v2133_v38 = vadd.f32 %v3760_v16, %v2062_v35  ;;  %v1309_v39 = vmax.f32 %v1245_v30, 0.0 }
 0x17c   : > { %v1310_v40 = vmax.f32 %v1246_v37, 0.0  ;;  %v3235_v41 = vpack.c.bf16 %v2133_v38, %v2132_v34 }
 0x17d   : > { %v1010_v42 = vpop.f32.mrb[64].mxu0  ;;  %v1897_v45 = vpop.f32.mrb[64].mxu1 }
 0x17e   : > { %v3075_v43 = vpack.c.bf16 %v1310_v40, %v1309_v39  ;;  %v1176_v44 = vmul.f32 %v3742_v10, %v1010_v42  ;;  %v1012_v46 = vpop.f32.mrb[65].mxu0  ;;  %3362 = vst [vmem:[%s3776_s20 + $0x78] sm:$0xff] %v3235_v41   ;;  %v2063_v47 = vmul.f32 %v3748_v11, %v1897_v45  ;;  %v1899_v48 = vpop.f32.mrb[65].mxu1 }
 0x17f   : > { %v1013_v49 = vpop.f32.mrb[66].mxu0  ;;  %v1900_v52 = vpop.f32.mrb[66].mxu1 }
 0x180   : > { %3331 = vst [vmem:[%s3782_s22 + $0x78] sm:$0xff] %v3075_v43   ;;  %v1247_v50 = vadd.f32 %v3754_v13, %v1176_v44  ;;  %v1177_v51 = vmul.f32 %v3742_v10, %v1013_v49  ;;  %v1015_v53 = vpop.f32.mrb[67].mxu0  ;;  %v2134_v54 = vadd.f32 %v3760_v16, %v2063_v47  ;;  %v2064_v55 = vmul.f32 %v3748_v11, %v1900_v52  ;;  %v1902_v56 = vpop.f32.mrb[67].mxu1 }
 0x182   : > { %v1248_v57 = vadd.f32 %v3754_v13, %v1177_v51  ;;  %v2135_v58 = vadd.f32 %v3760_v16, %v2064_v55  ;;  %v1311_v59 = vmax.f32 %v1247_v50, 0.0 }
 0x184   : > { %v1312_v60 = vmax.f32 %v1248_v57, 0.0  ;;  %v3240_v61 = vpack.c.bf16 %v2135_v58, %v2134_v54 }
 0x185   : > { %v1018_v62 = vpop.f32.mrb[68].mxu0  ;;  %v1905_v1 = vpop.f32.mrb[68].mxu1 }
 0x186   : > { %v3080_v63 = vpack.c.bf16 %v1312_v60, %v1311_v59  ;;  %v1178_v0 = vmul.f32 %v3742_v10, %v1018_v62  ;;  %v1020_v2 = vpop.f32.mrb[69].mxu0  ;;  %3363 = vst [vmem:[%s3776_s20 + $0x80] sm:$0xff] %v3240_v61   ;;  %v2065_v3 = vmul.f32 %v3748_v11, %v1905_v1  ;;  %v1907_v4 = vpop.f32.mrb[69].mxu1 }
 0x187   : > { %v1021_v5 = vpop.f32.mrb[70].mxu0  ;;  %v1908_v8 = vpop.f32.mrb[70].mxu1 }
 0x188   : > { %3332 = vst [vmem:[%s3782_s22 + $0x80] sm:$0xff] %v3080_v63   ;;  %v1249_v6 = vadd.f32 %v3754_v13, %v1178_v0  ;;  %v1179_v7 = vmul.f32 %v3742_v10, %v1021_v5  ;;  %v1023_v9 = vpop.f32.mrb[71].mxu0  ;;  %v2136_v12 = vadd.f32 %v3760_v16, %v2065_v3  ;;  %v2066_v14 = vmul.f32 %v3748_v11, %v1908_v8  ;;  %v1910_v15 = vpop.f32.mrb[71].mxu1 }
 0x18a   : > { %v1250_v17 = vadd.f32 %v3754_v13, %v1179_v7  ;;  %v2137_v18 = vadd.f32 %v3760_v16, %v2066_v14  ;;  %v1313_v19 = vmax.f32 %v1249_v6, 0.0 }
 0x18c   : > { %v1314_v20 = vmax.f32 %v1250_v17, 0.0  ;;  %v3245_v21 = vpack.c.bf16 %v2137_v18, %v2136_v12 }
 0x18d   : > { %v1026_v22 = vpop.f32.mrb[72].mxu0  ;;  %v1913_v25 = vpop.f32.mrb[72].mxu1 }
 0x18e   : > { %v3085_v23 = vpack.c.bf16 %v1314_v20, %v1313_v19  ;;  %v1180_v24 = vmul.f32 %v3742_v10, %v1026_v22  ;;  %v1028_v26 = vpop.f32.mrb[73].mxu0  ;;  %3364 = vst [vmem:[%s3776_s20 + $0x88] sm:$0xff] %v3245_v21   ;;  %v2067_v27 = vmul.f32 %v3748_v11, %v1913_v25  ;;  %v1915_v28 = vpop.f32.mrb[73].mxu1 }
 0x18f   : > { %v1029_v29 = vpop.f32.mrb[74].mxu0  ;;  %v1916_v32 = vpop.f32.mrb[74].mxu1 }
 0x190   : > { %3333 = vst [vmem:[%s3782_s22 + $0x88] sm:$0xff] %v3085_v23   ;;  %v1251_v30 = vadd.f32 %v3754_v13, %v1180_v24  ;;  %v1181_v31 = vmul.f32 %v3742_v10, %v1029_v29  ;;  %v1031_v33 = vpop.f32.mrb[75].mxu0  ;;  %v2138_v34 = vadd.f32 %v3760_v16, %v2067_v27  ;;  %v2068_v35 = vmul.f32 %v3748_v11, %v1916_v32  ;;  %v1918_v36 = vpop.f32.mrb[75].mxu1 }
 0x192   : > { %v1252_v37 = vadd.f32 %v3754_v13, %v1181_v31  ;;  %v2139_v38 = vadd.f32 %v3760_v16, %v2068_v35  ;;  %v1315_v39 = vmax.f32 %v1251_v30, 0.0 }
 0x194   : > { %v1316_v40 = vmax.f32 %v1252_v37, 0.0  ;;  %v3250_v41 = vpack.c.bf16 %v2139_v38, %v2138_v34 }
 0x195   : > { %v1034_v42 = vpop.f32.mrb[76].mxu0  ;;  %v1921_v45 = vpop.f32.mrb[76].mxu1 }
 0x196   : > { %v3090_v43 = vpack.c.bf16 %v1316_v40, %v1315_v39  ;;  %v1182_v44 = vmul.f32 %v3742_v10, %v1034_v42  ;;  %v1036_v46 = vpop.f32.mrb[77].mxu0  ;;  %3365 = vst [vmem:[%s3776_s20 + $0x90] sm:$0xff] %v3250_v41   ;;  %v2069_v47 = vmul.f32 %v3748_v11, %v1921_v45  ;;  %v1923_v48 = vpop.f32.mrb[77].mxu1 }
 0x197   : > { %v1037_v49 = vpop.f32.mrb[78].mxu0  ;;  %v1924_v52 = vpop.f32.mrb[78].mxu1  ;;  %v4024_v48 = vld [vmem:[%s4135_s3] ss:$0 sm:$0xff] }
 0x198   : > { %3334 = vst [vmem:[%s3782_s22 + $0x90] sm:$0xff] %v3090_v43   ;;  %v1253_v50 = vadd.f32 %v3754_v13, %v1182_v44  ;;  %v1183_v51 = vmul.f32 %v3742_v10, %v1037_v49  ;;  %v1039_v53 = vpop.f32.mrb[79].mxu0  ;;  %v2140_v54 = vadd.f32 %v3760_v16, %v2069_v47  ;;  %v2070_v55 = vmul.f32 %v3748_v11, %v1924_v52  ;;  %v1926_v56 = vpop.f32.mrb[79].mxu1 }
 0x199   : > { %v4031_v53 = vld [vmem:[%s4138_s6] ss:$0 sm:$0xff] }
 0x19a   : > { %v1254_v57 = vadd.f32 %v3754_v13, %v1183_v51  ;;  %v2141_v58 = vadd.f32 %v3760_v16, %v2070_v55  ;;  %v1317_v59 = vmax.f32 %v1253_v50, 0.0 }
 0x19c   : > { %v1318_v60 = vmax.f32 %v1254_v57, 0.0  ;;  %v3255_v61 = vpack.c.bf16 %v2141_v58, %v2140_v54 }
 0x19d   : > { %v1042_v62 = vpop.f32.mrb[80].mxu0  ;;  %v1929_v1 = vpop.f32.mrb[80].mxu1 }
 0x19e   : > { %v3095_v63 = vpack.c.bf16 %v1318_v60, %v1317_v59  ;;  %v1184_v0 = vmul.f32 %v3742_v10, %v1042_v62  ;;  %v1044_v2 = vpop.f32.mrb[81].mxu0  ;;  %3366 = vst [vmem:[%s3776_s20 + $0x98] sm:$0xff] %v3255_v61   ;;  %v2071_v3 = vmul.f32 %v3748_v11, %v1929_v1  ;;  %v1931_v4 = vpop.f32.mrb[81].mxu1 }
 0x19f   : > { %v1045_v5 = vpop.f32.mrb[82].mxu0  ;;  %v1932_v8 = vpop.f32.mrb[82].mxu1 }
 0x1a0   : > { %3335 = vst [vmem:[%s3782_s22 + $0x98] sm:$0xff] %v3095_v63   ;;  %v1255_v6 = vadd.f32 %v3754_v13, %v1184_v0  ;;  %v1185_v7 = vmul.f32 %v3742_v10, %v1045_v5  ;;  %v1047_v9 = vpop.f32.mrb[83].mxu0  ;;  %v2142_v12 = vadd.f32 %v3760_v16, %v2071_v3  ;;  %v2072_v14 = vmul.f32 %v3748_v11, %v1932_v8  ;;  %v1934_v15 = vpop.f32.mrb[83].mxu1 }
 0x1a2   : > { %v1256_v17 = vadd.f32 %v3754_v13, %v1185_v7  ;;  %v2143_v18 = vadd.f32 %v3760_v16, %v2072_v14  ;;  %v1319_v19 = vmax.f32 %v1255_v6, 0.0 }
 0x1a4   : > { %v1320_v20 = vmax.f32 %v1256_v17, 0.0  ;;  %v3260_v21 = vpack.c.bf16 %v2143_v18, %v2142_v12 }
 0x1a5   : > { %v1050_v22 = vpop.f32.mrb[84].mxu0  ;;  %v1937_v25 = vpop.f32.mrb[84].mxu1 }
 0x1a6   : > { %v3100_v23 = vpack.c.bf16 %v1320_v20, %v1319_v19  ;;  %v1186_v24 = vmul.f32 %v3742_v10, %v1050_v22  ;;  %v1052_v26 = vpop.f32.mrb[85].mxu0  ;;  %3367 = vst [vmem:[%s3776_s20 + $0xa0] sm:$0xff] %v3260_v21   ;;  %v2073_v27 = vmul.f32 %v3748_v11, %v1937_v25  ;;  %v1939_v28 = vpop.f32.mrb[85].mxu1 }
 0x1a7   : > { %v1053_v29 = vpop.f32.mrb[86].mxu0  ;;  %v1940_v32 = vpop.f32.mrb[86].mxu1 }
 0x1a8   : > { %3336 = vst [vmem:[%s3782_s22 + $0xa0] sm:$0xff] %v3100_v23   ;;  %v1257_v30 = vadd.f32 %v3754_v13, %v1186_v24  ;;  %v1187_v31 = vmul.f32 %v3742_v10, %v1053_v29  ;;  %v1055_v33 = vpop.f32.mrb[87].mxu0  ;;  %v2144_v34 = vadd.f32 %v3760_v16, %v2073_v27  ;;  %v2074_v35 = vmul.f32 %v3748_v11, %v1940_v32  ;;  %v1942_v36 = vpop.f32.mrb[87].mxu1  ;;  %v4010_v10 = vld [vmem:[%s4134_s2] ss:$0 sm:$0xff] }
 0x1aa   : > { %v1258_v37 = vadd.f32 %v3754_v13, %v1187_v31  ;;  %v2145_v38 = vadd.f32 %v3760_v16, %v2074_v35  ;;  %v1321_v39 = vmax.f32 %v1257_v30, 0.0  ;;  %v4017_v13 = vld [vmem:[%s4137_s5] ss:$0 sm:$0xff] }
 0x1ac   : > { %v1322_v40 = vmax.f32 %v1258_v37, 0.0  ;;  %v3265_v41 = vpack.c.bf16 %v2145_v38, %v2144_v34 }
 0x1ad   : > { %v1058_v42 = vpop.f32.mrb[88].mxu0  ;;  %v1945_v45 = vpop.f32.mrb[88].mxu1 }
 0x1ae   : > { %v3105_v43 = vpack.c.bf16 %v1322_v40, %v1321_v39  ;;  %v1188_v44 = vmul.f32 %v4010_v10, %v1058_v42  ;;  %v1060_v11 = vpop.f32.mrb[89].mxu0  ;;  %3368 = vst [vmem:[%s3776_s20 + $0xa8] sm:$0xff] %v3265_v41   ;;  %v2075_v16 = vmul.f32 %v4017_v13, %v1945_v45  ;;  %v1947_v46 = vpop.f32.mrb[89].mxu1 }
 0x1af   : > { %v1061_v47 = vpop.f32.mrb[90].mxu0  ;;  %v1948_v51 = vpop.f32.mrb[90].mxu1 }
 0x1b0   : > { %3337 = vst [vmem:[%s3782_s22 + $0xa8] sm:$0xff] %v3105_v43   ;;  %v1259_v49 = vadd.f32 %v4024_v48, %v1188_v44  ;;  %v1189_v50 = vmul.f32 %v4010_v10, %v1061_v47  ;;  %v1063_v52 = vpop.f32.mrb[91].mxu0  ;;  %v2146_v54 = vadd.f32 %v4031_v53, %v2075_v16  ;;  %v2076_v55 = vmul.f32 %v4017_v13, %v1948_v51  ;;  %v1950_v56 = vpop.f32.mrb[91].mxu1 }
 0x1b2   : > { %v1260_v57 = vadd.f32 %v4024_v48, %v1189_v50  ;;  %v2147_v58 = vadd.f32 %v4031_v53, %v2076_v55  ;;  %v1323_v59 = vmax.f32 %v1259_v49, 0.0 }
 0x1b4   : > { %v1324_v60 = vmax.f32 %v1260_v57, 0.0  ;;  %v3270_v61 = vpack.c.bf16 %v2147_v58, %v2146_v54 }
 0x1b5   : > { %v1066_v62 = vpop.f32.mrb[92].mxu0  ;;  %v1953_v1 = vpop.f32.mrb[92].mxu1 }
 0x1b6   : > { %v3110_v63 = vpack.c.bf16 %v1324_v60, %v1323_v59  ;;  %v1190_v0 = vmul.f32 %v4010_v10, %v1066_v62  ;;  %v1068_v2 = vpop.f32.mrb[93].mxu0  ;;  %3369 = vst [vmem:[%s3776_s20 + $0xb0] sm:$0xff] %v3270_v61   ;;  %v2077_v3 = vmul.f32 %v4017_v13, %v1953_v1  ;;  %v1955_v4 = vpop.f32.mrb[93].mxu1 }
 0x1b7   : > { %v1069_v5 = vpop.f32.mrb[94].mxu0  ;;  %v1956_v8 = vpop.f32.mrb[94].mxu1 }
 0x1b8   : > { %3338 = vst [vmem:[%s3782_s22 + $0xb0] sm:$0xff] %v3110_v63   ;;  %v1261_v6 = vadd.f32 %v4024_v48, %v1190_v0  ;;  %v1191_v7 = vmul.f32 %v4010_v10, %v1069_v5  ;;  %v1071_v9 = vpop.f32.mrb[95].mxu0  ;;  %v2148_v12 = vadd.f32 %v4031_v53, %v2077_v3  ;;  %v2078_v14 = vmul.f32 %v4017_v13, %v1956_v8  ;;  %v1958_v15 = vpop.f32.mrb[95].mxu1 }
 0x1ba   : > { %v1262_v17 = vadd.f32 %v4024_v48, %v1191_v7  ;;  %v2149_v18 = vadd.f32 %v4031_v53, %v2078_v14  ;;  %v1325_v19 = vmax.f32 %v1261_v6, 0.0 }
 0x1bc   : > { %v1326_v20 = vmax.f32 %v1262_v17, 0.0  ;;  %v3275_v21 = vpack.c.bf16 %v2149_v18, %v2148_v12 }
 0x1bd   : > { %v1074_v22 = vpop.f32.mrb[96].mxu0  ;;  %v1961_v25 = vpop.f32.mrb[96].mxu1 }
 0x1be   : > { %v3115_v23 = vpack.c.bf16 %v1326_v20, %v1325_v19  ;;  %v1192_v24 = vmul.f32 %v4010_v10, %v1074_v22  ;;  %v1076_v26 = vpop.f32.mrb[97].mxu0  ;;  %3370 = vst [vmem:[%s3776_s20 + $0xb8] sm:$0xff] %v3275_v21   ;;  %v2079_v27 = vmul.f32 %v4017_v13, %v1961_v25  ;;  %v1963_v28 = vpop.f32.mrb[97].mxu1 }
 0x1bf   : > { %v1077_v29 = vpop.f32.mrb[98].mxu0  ;;  %v1964_v32 = vpop.f32.mrb[98].mxu1 }
 0x1c0   : > { %3339 = vst [vmem:[%s3782_s22 + $0xb8] sm:$0xff] %v3115_v23   ;;  %v1263_v30 = vadd.f32 %v4024_v48, %v1192_v24  ;;  %v1193_v31 = vmul.f32 %v4010_v10, %v1077_v29  ;;  %v1079_v33 = vpop.f32.mrb[99].mxu0  ;;  %v2150_v34 = vadd.f32 %v4031_v53, %v2079_v27  ;;  %v2080_v35 = vmul.f32 %v4017_v13, %v1964_v32  ;;  %v1966_v36 = vpop.f32.mrb[99].mxu1 }
 0x1c2   : > { %v1264_v37 = vadd.f32 %v4024_v48, %v1193_v31  ;;  %v2151_v38 = vadd.f32 %v4031_v53, %v2080_v35  ;;  %v1327_v39 = vmax.f32 %v1263_v30, 0.0 }
 0x1c4   : > { %v1328_v40 = vmax.f32 %v1264_v37, 0.0  ;;  %v3280_v41 = vpack.c.bf16 %v2151_v38, %v2150_v34 }
 0x1c5   : > { %v1082_v42 = vpop.f32.mrb[100].mxu0  ;;  %v1969_v45 = vpop.f32.mrb[100].mxu1 }
 0x1c6   : > { %v3120_v43 = vpack.c.bf16 %v1328_v40, %v1327_v39  ;;  %v1194_v44 = vmul.f32 %v4010_v10, %v1082_v42  ;;  %v1084_v11 = vpop.f32.mrb[101].mxu0  ;;  %3371 = vst [vmem:[%s3776_s20 + $0xc0] sm:$0xff] %v3280_v41   ;;  %v2081_v16 = vmul.f32 %v4017_v13, %v1969_v45  ;;  %v1971_v46 = vpop.f32.mrb[101].mxu1 }
 0x1c7   : > { %v1085_v47 = vpop.f32.mrb[102].mxu0  ;;  %v1972_v51 = vpop.f32.mrb[102].mxu1 }
 0x1c8   : > { %3340 = vst [vmem:[%s3782_s22 + $0xc0] sm:$0xff] %v3120_v43   ;;  %v1265_v49 = vadd.f32 %v4024_v48, %v1194_v44  ;;  %v1195_v50 = vmul.f32 %v4010_v10, %v1085_v47  ;;  %v1087_v52 = vpop.f32.mrb[103].mxu0  ;;  %v2152_v54 = vadd.f32 %v4031_v53, %v2081_v16  ;;  %v2082_v55 = vmul.f32 %v4017_v13, %v1972_v51  ;;  %v1974_v56 = vpop.f32.mrb[103].mxu1 }
 0x1ca   : > { %v1266_v57 = vadd.f32 %v4024_v48, %v1195_v50  ;;  %v2153_v58 = vadd.f32 %v4031_v53, %v2082_v55  ;;  %v1329_v59 = vmax.f32 %v1265_v49, 0.0 }
 0x1cc   : > { %v1330_v60 = vmax.f32 %v1266_v57, 0.0  ;;  %v3285_v61 = vpack.c.bf16 %v2153_v58, %v2152_v54 }
 0x1cd   : > { %v1090_v62 = vpop.f32.mrb[104].mxu0  ;;  %v1977_v1 = vpop.f32.mrb[104].mxu1 }
 0x1ce   : > { %v3125_v63 = vpack.c.bf16 %v1330_v60, %v1329_v59  ;;  %v1196_v0 = vmul.f32 %v4010_v10, %v1090_v62  ;;  %v1092_v2 = vpop.f32.mrb[105].mxu0  ;;  %3372 = vst [vmem:[%s3776_s20 + $0xc8] sm:$0xff] %v3285_v61   ;;  %v2083_v3 = vmul.f32 %v4017_v13, %v1977_v1  ;;  %v1979_v4 = vpop.f32.mrb[105].mxu1 }
 0x1cf   : > { %v1093_v5 = vpop.f32.mrb[106].mxu0  ;;  %v1980_v8 = vpop.f32.mrb[106].mxu1 }
 0x1d0   : > { %3341 = vst [vmem:[%s3782_s22 + $0xc8] sm:$0xff] %v3125_v63   ;;  %v1267_v6 = vadd.f32 %v4024_v48, %v1196_v0  ;;  %v1197_v7 = vmul.f32 %v4010_v10, %v1093_v5  ;;  %v1095_v9 = vpop.f32.mrb[107].mxu0  ;;  %v2154_v12 = vadd.f32 %v4031_v53, %v2083_v3  ;;  %v2084_v14 = vmul.f32 %v4017_v13, %v1980_v8  ;;  %v1982_v15 = vpop.f32.mrb[107].mxu1 }
 0x1d2   : > { %v1268_v17 = vadd.f32 %v4024_v48, %v1197_v7  ;;  %v2155_v18 = vadd.f32 %v4031_v53, %v2084_v14  ;;  %v1331_v19 = vmax.f32 %v1267_v6, 0.0 }
 0x1d4   : > { %v1332_v20 = vmax.f32 %v1268_v17, 0.0  ;;  %v3290_v21 = vpack.c.bf16 %v2155_v18, %v2154_v12 }
 0x1d5   : > { %v1098_v22 = vpop.f32.mrb[108].mxu0  ;;  %v1985_v25 = vpop.f32.mrb[108].mxu1 }
 0x1d6   : > { %v3130_v23 = vpack.c.bf16 %v1332_v20, %v1331_v19  ;;  %v1198_v24 = vmul.f32 %v4010_v10, %v1098_v22  ;;  %v1100_v26 = vpop.f32.mrb[109].mxu0  ;;  %3373 = vst [vmem:[%s3776_s20 + $0xd0] sm:$0xff] %v3290_v21   ;;  %v2085_v27 = vmul.f32 %v4017_v13, %v1985_v25  ;;  %v1987_v28 = vpop.f32.mrb[109].mxu1 }
 0x1d7   : > { %v1101_v29 = vpop.f32.mrb[110].mxu0  ;;  %v1988_v32 = vpop.f32.mrb[110].mxu1 }
 0x1d8   : > { %3342 = vst [vmem:[%s3782_s22 + $0xd0] sm:$0xff] %v3130_v23   ;;  %v1269_v30 = vadd.f32 %v4024_v48, %v1198_v24  ;;  %v1199_v31 = vmul.f32 %v4010_v10, %v1101_v29  ;;  %v1103_v33 = vpop.f32.mrb[111].mxu0  ;;  %v2156_v34 = vadd.f32 %v4031_v53, %v2085_v27  ;;  %v2086_v35 = vmul.f32 %v4017_v13, %v1988_v32  ;;  %v1990_v36 = vpop.f32.mrb[111].mxu1 }
 0x1da   : > { %v1270_v37 = vadd.f32 %v4024_v48, %v1199_v31  ;;  %v2157_v38 = vadd.f32 %v4031_v53, %v2086_v35  ;;  %v1333_v39 = vmax.f32 %v1269_v30, 0.0 }
 0x1dc   : > { %v1334_v40 = vmax.f32 %v1270_v37, 0.0  ;;  %v3295_v41 = vpack.c.bf16 %v2157_v38, %v2156_v34 }
 0x1dd   : > { %v1106_v42 = vpop.f32.mrb[112].mxu0  ;;  %v1993_v45 = vpop.f32.mrb[112].mxu1 }
 0x1de   : > { %v3135_v43 = vpack.c.bf16 %v1334_v40, %v1333_v39  ;;  %v1200_v44 = vmul.f32 %v4010_v10, %v1106_v42  ;;  %v1108_v11 = vpop.f32.mrb[113].mxu0  ;;  %3374 = vst [vmem:[%s3776_s20 + $0xd8] sm:$0xff] %v3295_v41   ;;  %v2087_v16 = vmul.f32 %v4017_v13, %v1993_v45  ;;  %v1995_v46 = vpop.f32.mrb[113].mxu1 }
 0x1df   : > { %v1109_v47 = vpop.f32.mrb[114].mxu0  ;;  %v1996_v51 = vpop.f32.mrb[114].mxu1 }
 0x1e0   : > { %3343 = vst [vmem:[%s3782_s22 + $0xd8] sm:$0xff] %v3135_v43   ;;  %v1271_v49 = vadd.f32 %v4024_v48, %v1200_v44  ;;  %v1201_v50 = vmul.f32 %v4010_v10, %v1109_v47  ;;  %v1111_v52 = vpop.f32.mrb[115].mxu0  ;;  %v2158_v54 = vadd.f32 %v4031_v53, %v2087_v16  ;;  %v2088_v55 = vmul.f32 %v4017_v13, %v1996_v51  ;;  %v1998_v56 = vpop.f32.mrb[115].mxu1 }
 0x1e2   : > { %v1272_v57 = vadd.f32 %v4024_v48, %v1201_v50  ;;  %v2159_v58 = vadd.f32 %v4031_v53, %v2088_v55  ;;  %v1335_v59 = vmax.f32 %v1271_v49, 0.0 }
 0x1e4   : > { %v1336_v60 = vmax.f32 %v1272_v57, 0.0  ;;  %v3300_v61 = vpack.c.bf16 %v2159_v58, %v2158_v54 }
 0x1e5   : > { %v1114_v62 = vpop.f32.mrb[116].mxu0  ;;  %v2001_v1 = vpop.f32.mrb[116].mxu1 }
 0x1e6   : > { %v3140_v63 = vpack.c.bf16 %v1336_v60, %v1335_v59  ;;  %v1202_v0 = vmul.f32 %v4010_v10, %v1114_v62  ;;  %v1116_v2 = vpop.f32.mrb[117].mxu0  ;;  %3375 = vst [vmem:[%s3776_s20 + $0xe0] sm:$0xff] %v3300_v61   ;;  %v2089_v3 = vmul.f32 %v4017_v13, %v2001_v1  ;;  %v2003_v4 = vpop.f32.mrb[117].mxu1 }
 0x1e7   : > { %v1117_v5 = vpop.f32.mrb[118].mxu0  ;;  %v2004_v8 = vpop.f32.mrb[118].mxu1 }
 0x1e8   : > { %3344 = vst [vmem:[%s3782_s22 + $0xe0] sm:$0xff] %v3140_v63   ;;  %v1273_v6 = vadd.f32 %v4024_v48, %v1202_v0  ;;  %v1203_v7 = vmul.f32 %v4010_v10, %v1117_v5  ;;  %v1119_v9 = vpop.f32.mrb[119].mxu0  ;;  %v2160_v12 = vadd.f32 %v4031_v53, %v2089_v3  ;;  %v2090_v14 = vmul.f32 %v4017_v13, %v2004_v8  ;;  %v2006_v15 = vpop.f32.mrb[119].mxu1 }
 0x1ea   : > { %v1274_v17 = vadd.f32 %v4024_v48, %v1203_v7  ;;  %v2161_v18 = vadd.f32 %v4031_v53, %v2090_v14  ;;  %v1337_v19 = vmax.f32 %v1273_v6, 0.0 }
 0x1ec   : > { %v1338_v20 = vmax.f32 %v1274_v17, 0.0  ;;  %v3305_v21 = vpack.c.bf16 %v2161_v18, %v2160_v12 }
 0x1ed   : > { %v1122_v22 = vpop.f32.mrb[120].mxu0  ;;  %v2009_v25 = vpop.f32.mrb[120].mxu1 }
 0x1ee   : > { %v3145_v23 = vpack.c.bf16 %v1338_v20, %v1337_v19  ;;  %v1204_v24 = vmul.f32 %v4010_v10, %v1122_v22  ;;  %v1124_v26 = vpop.f32.mrb[121].mxu0  ;;  %3376 = vst [vmem:[%s3776_s20 + $0xe8] sm:$0xff] %v3305_v21   ;;  %v2091_v27 = vmul.f32 %v4017_v13, %v2009_v25  ;;  %v2011_v28 = vpop.f32.mrb[121].mxu1 }
 0x1ef   : > { %v1125_v29 = vpop.f32.mrb[122].mxu0  ;;  %v2012_v32 = vpop.f32.mrb[122].mxu1 }
 0x1f0   : > { %3345 = vst [vmem:[%s3782_s22 + $0xe8] sm:$0xff] %v3145_v23   ;;  %v1275_v30 = vadd.f32 %v4024_v48, %v1204_v24  ;;  %v1205_v31 = vmul.f32 %v4010_v10, %v1125_v29  ;;  %v1127_v33 = vpop.f32.mrb[123].mxu0  ;;  %v2162_v34 = vadd.f32 %v4031_v53, %v2091_v27  ;;  %v2092_v35 = vmul.f32 %v4017_v13, %v2012_v32  ;;  %v2014_v36 = vpop.f32.mrb[123].mxu1 }
 0x1f2   : > { %v1276_v37 = vadd.f32 %v4024_v48, %v1205_v31  ;;  %v2163_v38 = vadd.f32 %v4031_v53, %v2092_v35  ;;  %v1339_v39 = vmax.f32 %v1275_v30, 0.0 }
 0x1f4   : > { %v1340_v40 = vmax.f32 %v1276_v37, 0.0  ;;  %v3310_v41 = vpack.c.bf16 %v2163_v38, %v2162_v34 }
 0x1f5   : > { %v1130_v42 = vpop.f32.mrb[124].mxu0  ;;  %v2017_v45 = vpop.f32.mrb[124].mxu1 }
 0x1f6   : > { %v3150_v43 = vpack.c.bf16 %v1340_v40, %v1339_v39  ;;  %v1206_v44 = vmul.f32 %v4010_v10, %v1130_v42  ;;  %v1132_v11 = vpop.f32.mrb[125].mxu0  ;;  %3377 = vst [vmem:[%s3776_s20 + $0xf0] sm:$0xff] %v3310_v41   ;;  %v2093_v16 = vmul.f32 %v4017_v13, %v2017_v45  ;;  %v2019_v46 = vpop.f32.mrb[125].mxu1 }
 0x1f7   : > { %v1133_v47 = vpop.f32.mrb[126].mxu0  ;;  %v2020_v51 = vpop.f32.mrb[126].mxu1 }
 0x1f8   : > { %3346 = vst [vmem:[%s3782_s22 + $0xf0] sm:$0xff] %v3150_v43   ;;  %v1277_v49 = vadd.f32 %v4024_v48, %v1206_v44  ;;  %v1207_v50 = vmul.f32 %v4010_v10, %v1133_v47  ;;  %v1135_v52 = vpop.f32.mrb[127].mxu0  ;;  %v2164_v54 = vadd.f32 %v4031_v53, %v2093_v16  ;;  %v2094_v55 = vmul.f32 %v4017_v13, %v2020_v51  ;;  %v2022_v56 = vpop.f32.mrb[127].mxu1 }
 0x1fa   : > { %v1278_v57 = vadd.f32 %v4024_v48, %v1207_v50  ;;  %v2165_v58 = vadd.f32 %v4031_v53, %v2094_v55  ;;  %v1341_v59 = vmax.f32 %v1277_v49, 0.0 }
 0x1fc   : > { %v1342_v60 = vmax.f32 %v1278_v57, 0.0  ;;  %v3315_v61 = vpack.c.bf16 %v2165_v58, %v2164_v54 }
 0x1fe   : > { %v3155_v62 = vpack.c.bf16 %v1342_v60, %v1341_v59  ;;  %3378 = vst [vmem:[%s3776_s20 + $0xf8] sm:$0xff] %v3315_v61  }
 0x200   : > { %3347 = vst [vmem:[%s3782_s22 + $0xf8] sm:$0xff] %v3155_v62  }
 0x201 PF: > { %s19_s27 = sadd.s32 1, %s3512_s27  }
 0x202   : > { %p16_p4 = scmp.ge.s32.totalorder %s19_s27, 6  }
 0x204   :  { %18 = sbr.rel (!%p16_p4) target bundleno = 1 (0x1), region = 90 }

// kernel: _lambda_.10
= control target key start
LH: loop header
LB: loop body
LE: loop exit
PB: predicated region body
PF: predicated region fallthrough
CT: control target
= control target key end

     0   :  { %s2623_s18 = smov 0   ;;  %s2980_s0 = inlined_call_operand.vmem [shape: bf16[2048,144], index: 0, kind: input, shape index: {}]   ;;  %s2981_s1 = inlined_call_operand.vmem [shape: bf16[144,128], index: 1, kind: input, shape index: {}]   ;;  %s2982_s2 = inlined_call_operand.vmem [shape: f32[1,128], index: 2, kind: input, shape index: {}]   ;;  %s2983_s3 = inlined_call_operand.vmem [shape: f32[1,128], index: 3, kind: input, shape index: {}]   ;;  %s2984_s4 = inlined_call_operand.vmem [shape: bf16[2048,128], index: 4, kind: input, shape index: {}]   ;;  %s2985_s5 = inlined_call_operand.vmem [shape: bf16[2048,128], index: 5, kind: output, shape index: {}]  }
   0x1 LB: > { %s1850_s19 = sadd.s32 4294967295, %s2590_s18   ;;  %p1854_p0 = scmp.ge.s32.totalorder %s2590_s18, 1  ;;  %s2590_s18 = sphi %s2623_s18, %s15_s18  }
   0x2   : > { %p200_p1 = scmp.lt.s32.totalorder %s2590_s18, 5 }
   0x4   : > { %p201_p2 = pnand %p1854_p0, %p200_p1 }
   0x5   : > { %v2477_v0 = vld [vmem:[%s2981_s1] sm:$0xff] (!%p201_p2)   ;;  %v2592_v1 = vmov (!%p201_p2), 0   ;;  %s1855_s22 = sshll.u32 (!%p201_p2), %s1850_s19, 6  ;;  %v2478_v2 = vld [vmem:[%s2981_s1 + $0x8] sm:$0xff] (!%p201_p2)   ;;  %v2479_v3 = vld [vmem:[%s2981_s1 + $0x10] sm:$0xff] (!%p201_p2)   ;;  %vm678_vm0 = vcmask (!%p201_p2), 130048  }
   0x6   : > { %204 = sbr.rel (%p201_p2) target bundleno = 388 (0x184), region = 40  ;;  %775 = vmatprep.subr.bf16.mxu0 (!%p201_p2), %v2592_v1  ;;  %2450 = vmatprep.subr.bf16.mxu1 (!%p201_p2), %v2592_v1  ;;  %p235_p3 = scmp.lt.s32.totalorder (!%p201_p2), %s1855_s22, 255  ;;  %v2480_v4 = vld [vmem:[%s2981_s1 + $0x18] sm:$0xff] (!%p201_p2)   ;;  %v2481_v7 = vld [vmem:[%s2981_s1 + $0x20] sm:$0xff] (!%p201_p2)   ;;  %v2482_v8 = vld [vmem:[%s2981_s1 + $0x28] sm:$0xff] (!%p201_p2)  }
   0x7   : > { %776 = vmatpush1.bf16.msra.mxu0 (!%p201_p2), %v2477_v0  ;;  %2459 = vmatpush1.bf16.msra.mxu1 (!%p201_p2), %v2477_v0  ;;  %v2483_v9 = vld [vmem:[%s2981_s1 + $0x30] sm:$0xff] (!%p201_p2)   ;;  %v2484_v10 = vld [vmem:[%s2981_s1 + $0x38] sm:$0xff] (!%p201_p2)   ;;  %v2485_v11 = vld [vmem:[%s2981_s1 + $0x40] sm:$0xff] (!%p201_p2)  }
   0x8   : > { %777 = vmatprep.subr.bf16.mxu0 (!%p201_p2), %v2592_v1  ;;  %2451 = vmatprep.subr.bf16.mxu1 (!%p201_p2), %v2592_v1 }
   0xb   : > { %778 = vmatpush1.bf16.msra.mxu0 (!%p201_p2), %v2478_v2  ;;  %2460 = vmatpush1.bf16.msra.mxu1 (!%p201_p2), %v2478_v2 }
   0xc   : > { %779 = vmatprep.subr.bf16.mxu0 (!%p201_p2), %v2592_v1  ;;  %2452 = vmatprep.subr.bf16.mxu1 (!%p201_p2), %v2592_v1 }
   0xd   : > { %s2987_s22 = smov (!%p235_p3, %s1855_s22), 255 }
   0xe   : > { %s2035_s27 = sshll.u32 %s2987_s22, 3  ;;  %s1859_s19 = sshll.u32 %s2987_s22, 2 }
   0xf   : > { %s2646_s30 = scalar_lea.vmem %s2980_s0, %s2035_s27  ;;  %780 = vmatpush1.bf16.msra.mxu0 %v2479_v3  ;;  %2461 = vmatpush1.bf16.msra.mxu1 %v2479_v3  ;;  %s2768_s23 = scalar_lea.vmem %s2984_s4, %s1859_s19 }
  0x10   : > { %v2488_v5 = vld [vmem:[%s2646_s30 + $0x4] ss:$8 sps:$4 sm:$0xff]   ;;  %781 = vmatprep.subr.bf16.mxu0 %v2592_v1  ;;  %2453 = vmatprep.subr.bf16.mxu1 %v2592_v1  ;;  %v2486_v12 = vld [vmem:[%s2646_s30] ss:$8 sps:$4 sm:$0xff]   ;;  %v2492_v14 = vld [vmem:[%s2646_s30 + $0x14] ss:$8 sps:$4 sm:$0xff]  }
  0x11   : > { %v2491_v6 = vld [vmem:[%s2646_s30 + $0x104] ss:$8 sps:$4 sm:$0xff]   ;;  %1935 = vmatprep.mubr.msk.bf16.mxu0 %vm678_vm0, %v2488_v5  ;;  %v2489_v13 = vld [vmem:[%s2646_s30 + $0x100] ss:$8 sps:$4 sm:$0xff]   ;;  %v2494_v15 = vld [vmem:[%s2646_s30 + $0x114] ss:$8 sps:$4 sm:$0xff]  }
  0x12   : > { %1951 = vmatprep.mubr.msk.bf16.mxu1 %vm678_vm0, %v2491_v6  ;;  %v2496_v16 = vld [vmem:[%s2646_s30 + $0x10] ss:$8 sps:$4 sm:$0xff]   ;;  %v2498_v18 = vld [vmem:[%s2646_s30 + $0x24] ss:$8 sps:$4 sm:$0xff]   ;;  %v2502_v20 = vld [vmem:[%s2646_s30 + $0x20] ss:$8 sps:$4 sm:$0xff]  }
  0x13   : > { %782 = vmatpush1.bf16.msra.mxu0 %v2480_v4  ;;  %2462 = vmatpush1.bf16.msra.mxu1 %v2480_v4  ;;  %v2497_v17 = vld [vmem:[%s2646_s30 + $0x110] ss:$8 sps:$4 sm:$0xff]   ;;  %v2500_v19 = vld [vmem:[%s2646_s30 + $0x124] ss:$8 sps:$4 sm:$0xff]   ;;  %v2503_v21 = vld [vmem:[%s2646_s30 + $0x120] ss:$8 sps:$4 sm:$0xff]  }
  0x14   : > { %783 = vmatprep.subr.bf16.mxu0 %v2592_v1  ;;  %2454 = vmatprep.subr.bf16.mxu1 %v2592_v1  ;;  %v2504_v22 = vld [vmem:[%s2646_s30 + $0x34] ss:$8 sps:$4 sm:$0xff]   ;;  %v2508_v24 = vld [vmem:[%s2646_s30 + $0x30] ss:$8 sps:$4 sm:$0xff]   ;;  %v2510_v26 = vld [vmem:[%s2646_s30 + $0x44] ss:$8 sps:$4 sm:$0xff]  }
  0x15   : > { %v2506_v23 = vld [vmem:[%s2646_s30 + $0x134] ss:$8 sps:$4 sm:$0xff]   ;;  %v2509_v25 = vld [vmem:[%s2646_s30 + $0x130] ss:$8 sps:$4 sm:$0xff]   ;;  %v2512_v27 = vld [vmem:[%s2646_s30 + $0x144] ss:$8 sps:$4 sm:$0xff]  }
  0x16   : > { %v2514_v28 = vld [vmem:[%s2646_s30 + $0x40] ss:$8 sps:$4 sm:$0xff]   ;;  %v2516_v30 = vld [vmem:[%s2646_s30 + $0x54] ss:$8 sps:$4 sm:$0xff]   ;;  %v2520_v32 = vld [vmem:[%s2646_s30 + $0x50] ss:$8 sps:$4 sm:$0xff]  }
  0x17   : > { %784 = vmatpush1.bf16.msra.mxu0 %v2481_v7  ;;  %2463 = vmatpush1.bf16.msra.mxu1 %v2481_v7  ;;  %v2515_v29 = vld [vmem:[%s2646_s30 + $0x140] ss:$8 sps:$4 sm:$0xff]   ;;  %v2518_v31 = vld [vmem:[%s2646_s30 + $0x154] ss:$8 sps:$4 sm:$0xff]   ;;  %v2521_v33 = vld [vmem:[%s2646_s30 + $0x150] ss:$8 sps:$4 sm:$0xff]  }
  0x18   : > { %785 = vmatprep.subr.bf16.mxu0 %v2592_v1  ;;  %2455 = vmatprep.subr.bf16.mxu1 %v2592_v1  ;;  %v2522_v34 = vld [vmem:[%s2646_s30 + $0x64] ss:$8 sps:$4 sm:$0xff]   ;;  %v2526_v36 = vld [vmem:[%s2646_s30 + $0x60] ss:$8 sps:$4 sm:$0xff]   ;;  %v2528_v38 = vld [vmem:[%s2646_s30 + $0x74] ss:$8 sps:$4 sm:$0xff]  }
  0x19   : > { %v2524_v35 = vld [vmem:[%s2646_s30 + $0x164] ss:$8 sps:$4 sm:$0xff]   ;;  %v2527_v37 = vld [vmem:[%s2646_s30 + $0x160] ss:$8 sps:$4 sm:$0xff]   ;;  %v2530_v39 = vld [vmem:[%s2646_s30 + $0x174] ss:$8 sps:$4 sm:$0xff]  }
  0x1a   : > { %v2532_v40 = vld [vmem:[%s2646_s30 + $0x70] ss:$8 sps:$4 sm:$0xff]   ;;  %v2534_v42 = vld [vmem:[%s2646_s30 + $0x84] ss:$8 sps:$4 sm:$0xff]   ;;  %v2538_v44 = vld [vmem:[%s2646_s30 + $0x80] ss:$8 sps:$4 sm:$0xff]  }
  0x1b   : > { %786 = vmatpush1.bf16.msra.mxu0 %v2482_v8  ;;  %2464 = vmatpush1.bf16.msra.mxu1 %v2482_v8  ;;  %v2533_v41 = vld [vmem:[%s2646_s30 + $0x170] ss:$8 sps:$4 sm:$0xff]   ;;  %v2536_v43 = vld [vmem:[%s2646_s30 + $0x184] ss:$8 sps:$4 sm:$0xff]   ;;  %v2539_v45 = vld [vmem:[%s2646_s30 + $0x180] ss:$8 sps:$4 sm:$0xff]  }
  0x1c   : > { %787 = vmatprep.subr.bf16.mxu0 %v2592_v1  ;;  %2456 = vmatprep.subr.bf16.mxu1 %v2592_v1  ;;  %v2540_v46 = vld [vmem:[%s2646_s30 + $0x94] ss:$8 sps:$4 sm:$0xff]   ;;  %v2544_v48 = vld [vmem:[%s2646_s30 + $0x90] ss:$8 sps:$4 sm:$0xff]   ;;  %v2546_v50 = vld [vmem:[%s2646_s30 + $0xa4] ss:$8 sps:$4 sm:$0xff]  }
  0x1d   : > { %v2542_v47 = vld [vmem:[%s2646_s30 + $0x194] ss:$8 sps:$4 sm:$0xff]   ;;  %v2545_v49 = vld [vmem:[%s2646_s30 + $0x190] ss:$8 sps:$4 sm:$0xff]   ;;  %v2548_v51 = vld [vmem:[%s2646_s30 + $0x1a4] ss:$8 sps:$4 sm:$0xff]  }
  0x1e   : > { %v2550_v52 = vld [vmem:[%s2646_s30 + $0xa0] ss:$8 sps:$4 sm:$0xff]   ;;  %v2552_v54 = vld [vmem:[%s2646_s30 + $0xb4] ss:$8 sps:$4 sm:$0xff]   ;;  %v2556_v56 = vld [vmem:[%s2646_s30 + $0xb0] ss:$8 sps:$4 sm:$0xff]  }
  0x1f   : > { %788 = vmatpush1.bf16.msra.mxu0 %v2483_v9  ;;  %2465 = vmatpush1.bf16.msra.mxu1 %v2483_v9  ;;  %v2551_v53 = vld [vmem:[%s2646_s30 + $0x1a0] ss:$8 sps:$4 sm:$0xff]   ;;  %v2554_v55 = vld [vmem:[%s2646_s30 + $0x1b4] ss:$8 sps:$4 sm:$0xff]   ;;  %v2557_v57 = vld [vmem:[%s2646_s30 + $0x1b0] ss:$8 sps:$4 sm:$0xff]  }
  0x20   : > { %789 = vmatprep.subr.bf16.mxu0 %v2592_v1  ;;  %2457 = vmatprep.subr.bf16.mxu1 %v2592_v1  ;;  %v2558_v58 = vld [vmem:[%s2646_s30 + $0xc4] ss:$8 sps:$4 sm:$0xff]   ;;  %v2562_v60 = vld [vmem:[%s2646_s30 + $0xc0] ss:$8 sps:$4 sm:$0xff]   ;;  %v2564_v62 = vld [vmem:[%s2646_s30 + $0xd4] ss:$8 sps:$4 sm:$0xff]  }
  0x21   : > { %v2560_v59 = vld [vmem:[%s2646_s30 + $0x1c4] ss:$8 sps:$4 sm:$0xff]   ;;  %v2563_v61 = vld [vmem:[%s2646_s30 + $0x1c0] ss:$8 sps:$4 sm:$0xff]   ;;  %v2566_v63 = vld [vmem:[%s2646_s30 + $0x1d4] ss:$8 sps:$4 sm:$0xff]  }
  0x22   : > { %v2568_v0 = vld [vmem:[%s2646_s30 + $0xd0] ss:$8 sps:$4 sm:$0xff]   ;;  %v2570_v2 = vld [vmem:[%s2646_s30 + $0xe4] ss:$8 sps:$4 sm:$0xff]   ;;  %v2574_v4 = vld [vmem:[%s2646_s30 + $0xe0] ss:$8 sps:$4 sm:$0xff]  }
  0x23   : > { %790 = vmatpush1.bf16.msra.mxu0 %v2484_v10  ;;  %2466 = vmatpush1.bf16.msra.mxu1 %v2484_v10  ;;  %v2572_v3 = vld [vmem:[%s2646_s30 + $0x1e4] ss:$8 sps:$4 sm:$0xff]   ;;  %v2575_v5 = vld [vmem:[%s2646_s30 + $0x1e0] ss:$8 sps:$4 sm:$0xff]   ;;  %v2576_v6 = vld [vmem:[%s2646_s30 + $0xf4] ss:$8 sps:$4 sm:$0xff]  }
  0x24   : > { %791 = vmatprep.subr.bf16.mxu0 %v2592_v1  ;;  %2458 = vmatprep.subr.bf16.mxu1 %v2592_v1  ;;  %v2569_v1 = vld [vmem:[%s2646_s30 + $0x1d0] ss:$8 sps:$4 sm:$0xff]   ;;  %v2578_v7 = vld [vmem:[%s2646_s30 + $0x1f4] ss:$8 sps:$4 sm:$0xff]   ;;  %v2773_v10 = vld [vmem:[%s2982_s2] ss:$0 sm:$0xff] }
  0x25   : > { %v2580_v8 = vld [vmem:[%s2646_s30 + $0xf0] ss:$8 sps:$4 sm:$0xff]  }
  0x26   : > { %v2581_v9 = vld [vmem:[%s2646_s30 + $0x1f0] ss:$8 sps:$4 sm:$0xff]   ;;  %s2799_s30 = scalar_lea.vmem %s2985_s5, %s1859_s19 }
  0x27   : > { %792 = vmatpush1.bf16.msra.mxu0 %v2485_v11  ;;  %2467 = vmatpush1.bf16.msra.mxu1 %v2485_v11  ;;  %v2101_v11 = vld [vmem:[%s2768_s23] sm:$0xff]  }
  0x2a   : > { %808 = vmatmul.mubr.bf16.vlgmr.msra.gmra.mrb[0].mxu0 %v2486_v12  ;;  %936 = vmatmul.mubr.bf16.vlgmr.msra.gmra.mrb[0].mxu1 %v2489_v13  ;;  %v2403_v12 = vld [vmem:[%s2768_s23 + $0x80] sm:$0xff]  }
  0x2b   : > { %1936 = vmatprep.mubr.msk.bf16.mxu0 %vm678_vm0, %v2492_v14  ;;  %1952 = vmatprep.mubr.msk.bf16.mxu1 %vm678_vm0, %v2494_v15  ;;  %v2780_v14 = vld [vmem:[%s2983_s3] ss:$0 sm:$0xff] }
  0x32   : > { %816 = vmatmul.mubr.bf16.gmra.mrb[4].mxu0 %v2496_v16  ;;  %944 = vmatmul.mubr.bf16.gmra.mrb[4].mxu1 %v2497_v17  ;;  %v2102_v17 = vunpack.c.l.bf16 %v2101_v11 }
  0x33   : > { %1937 = vmatprep.mubr.msk.bf16.mxu0 %vm678_vm0, %v2498_v18  ;;  %1953 = vmatprep.mubr.msk.bf16.mxu1 %vm678_vm0, %v2500_v19  ;;  %v2166_v19 = vunpack.c.l.bf16 %v2403_v12 }
  0x3a   : > { %824 = vmatmul.mubr.bf16.gmra.mrb[8].mxu0 %v2502_v20  ;;  %952 = vmatmul.mubr.bf16.gmra.mrb[8].mxu1 %v2503_v21 }
  0x3b   : > { %1938 = vmatprep.mubr.msk.bf16.mxu0 %vm678_vm0, %v2504_v22  ;;  %1954 = vmatprep.mubr.msk.bf16.mxu1 %vm678_vm0, %v2506_v23  ;;  %v2103_v23 = vunpack.c.h.bf16 %v2101_v11 }
  0x42   : > { %832 = vmatmul.mubr.bf16.gmra.mrb[12].mxu0 %v2508_v24  ;;  %960 = vmatmul.mubr.bf16.gmra.mrb[12].mxu1 %v2509_v25  ;;  %v2167_v25 = vunpack.c.h.bf16 %v2403_v12 }
  0x43   : > { %1939 = vmatprep.mubr.msk.bf16.mxu0 %vm678_vm0, %v2510_v26  ;;  %1955 = vmatprep.mubr.msk.bf16.mxu1 %vm678_vm0, %v2512_v27 }
  0x4a   : > { %840 = vmatmul.mubr.bf16.gmra.mrb[16].mxu0 %v2514_v28  ;;  %968 = vmatmul.mubr.bf16.gmra.mrb[16].mxu1 %v2515_v29 }
  0x4b   : > { %1940 = vmatprep.mubr.msk.bf16.mxu0 %vm678_vm0, %v2516_v30  ;;  %1956 = vmatprep.mubr.msk.bf16.mxu1 %vm678_vm0, %v2518_v31 }
  0x52   : > { %848 = vmatmul.mubr.bf16.gmra.mrb[20].mxu0 %v2520_v32  ;;  %976 = vmatmul.mubr.bf16.gmra.mrb[20].mxu1 %v2521_v33 }
  0x53   : > { %1941 = vmatprep.mubr.msk.bf16.mxu0 %vm678_vm0, %v2522_v34  ;;  %1957 = vmatprep.mubr.msk.bf16.mxu1 %vm678_vm0, %v2524_v35 }
  0x5a   : > { %856 = vmatmul.mubr.bf16.gmra.mrb[24].mxu0 %v2526_v36  ;;  %984 = vmatmul.mubr.bf16.gmra.mrb[24].mxu1 %v2527_v37 }
  0x5b   : > { %1942 = vmatprep.mubr.msk.bf16.mxu0 %vm678_vm0, %v2528_v38  ;;  %1958 = vmatprep.mubr.msk.bf16.mxu1 %vm678_vm0, %v2530_v39  ;;  %v2388_v38 = vld [vmem:[%s2768_s23 + $0x8] sm:$0xff]  }
  0x5c   : > { %v2404_v39 = vld [vmem:[%s2768_s23 + $0x88] sm:$0xff]  }
  0x62   : > { %864 = vmatmul.mubr.bf16.gmra.mrb[28].mxu0 %v2532_v40  ;;  %992 = vmatmul.mubr.bf16.gmra.mrb[28].mxu1 %v2533_v41 }
  0x63   : > { %1943 = vmatprep.mubr.msk.bf16.mxu0 %vm678_vm0, %v2534_v42  ;;  %1959 = vmatprep.mubr.msk.bf16.mxu1 %vm678_vm0, %v2536_v43 }
  0x6a   : > { %872 = vmatmul.mubr.bf16.gmra.mrb[32].mxu0 %v2538_v44  ;;  %1000 = vmatmul.mubr.bf16.gmra.mrb[32].mxu1 %v2539_v45 }
  0x6b   : > { %1944 = vmatprep.mubr.msk.bf16.mxu0 %vm678_vm0, %v2540_v46  ;;  %1960 = vmatprep.mubr.msk.bf16.mxu1 %vm678_vm0, %v2542_v47 }
  0x72   : > { %880 = vmatmul.mubr.bf16.gmra.mrb[36].mxu0 %v2544_v48  ;;  %1008 = vmatmul.mubr.bf16.gmra.mrb[36].mxu1 %v2545_v49 }
  0x73   : > { %1945 = vmatprep.mubr.msk.bf16.mxu0 %vm678_vm0, %v2546_v50  ;;  %1961 = vmatprep.mubr.msk.bf16.mxu1 %vm678_vm0, %v2548_v51  ;;  %v2106_v50 = vunpack.c.l.bf16 %v2388_v38  ;;  %v2170_v51 = vunpack.c.l.bf16 %v2404_v39 }
  0x7a   : > { %888 = vmatmul.mubr.bf16.gmra.mrb[40].mxu0 %v2550_v52  ;;  %1016 = vmatmul.mubr.bf16.gmra.mrb[40].mxu1 %v2551_v53 }
  0x7b   : > { %1946 = vmatprep.mubr.msk.bf16.mxu0 %vm678_vm0, %v2552_v54  ;;  %1962 = vmatprep.mubr.msk.bf16.mxu1 %vm678_vm0, %v2554_v55 }
  0x82   : > { %896 = vmatmul.mubr.bf16.gmra.mrb[44].mxu0 %v2556_v56  ;;  %1024 = vmatmul.mubr.bf16.gmra.mrb[44].mxu1 %v2557_v57 }
  0x83   : > { %1947 = vmatprep.mubr.msk.bf16.mxu0 %vm678_vm0, %v2558_v58  ;;  %1963 = vmatprep.mubr.msk.bf16.mxu1 %vm678_vm0, %v2560_v59 }
  0x8a   : > { %904 = vmatmul.mubr.bf16.gmra.mrb[48].mxu0 %v2562_v60  ;;  %1032 = vmatmul.mubr.bf16.gmra.mrb[48].mxu1 %v2563_v61  ;;  %v2107_v61 = vunpack.c.h.bf16 %v2388_v38 }
  0x8b   : > { %1948 = vmatprep.mubr.msk.bf16.mxu0 %vm678_vm0, %v2564_v62  ;;  %1964 = vmatprep.mubr.msk.bf16.mxu1 %vm678_vm0, %v2566_v63  ;;  %v2171_v63 = vunpack.c.h.bf16 %v2404_v39 }
  0x92   : > { %912 = vmatmul.mubr.bf16.gmra.mrb[52].mxu0 %v2568_v0  ;;  %1040 = vmatmul.mubr.bf16.gmra.mrb[52].mxu1 %v2569_v1  ;;  %v2389_v0 = vld [vmem:[%s2768_s23 + $0x10] sm:$0xff]  }
  0x93   : > { %1949 = vmatprep.mubr.msk.bf16.mxu0 %vm678_vm0, %v2570_v2  ;;  %1965 = vmatprep.mubr.msk.bf16.mxu1 %vm678_vm0, %v2572_v3  ;;  %v2405_v1 = vld [vmem:[%s2768_s23 + $0x90] sm:$0xff]  }
  0x94   : > { %v2174_v12 = vunpack.c.l.bf16 %v2405_v1 }
  0x9a   : > { %920 = vmatmul.mubr.bf16.gmra.mrb[56].mxu0 %v2574_v4  ;;  %1048 = vmatmul.mubr.bf16.gmra.mrb[56].mxu1 %v2575_v5 }
  0x9b   : > { %1950 = vmatprep.mubr.msk.bf16.mxu0 %vm678_vm0, %v2576_v6  ;;  %1966 = vmatprep.mubr.msk.bf16.mxu1 %vm678_vm0, %v2578_v7 }
  0xa2   : > { %928 = vmatmul.mubr.bf16.gmra.mrb[60].mxu0 %v2580_v8  ;;  %1056 = vmatmul.mubr.bf16.gmra.mrb[60].mxu1 %v2581_v9  ;;  %v2110_v9 = vunpack.c.l.bf16 %v2389_v0 }
  0xfd   : > { %v809_v13 = vpop.f32.mrb[0].mxu0  ;;  %v937_v15 = vpop.f32.mrb[0].mxu1 }
  0xfe   : > { %v1071_v16 = vmul.f32 %v2773_v10, %v809_v13  ;;  %v1103_v18 = vmul.f32 %v2773_v10, %v937_v15  ;;  %v811_v20 = vpop.f32.mrb[1].mxu0  ;;  %v939_v21 = vpop.f32.mrb[1].mxu1 }
  0xff   : > { %v812_v22 = vpop.f32.mrb[2].mxu0  ;;  %v940_v24 = vpop.f32.mrb[2].mxu1 }
 0x100   : > { %v1142_v26 = vadd.f32 %v2780_v14, %v1071_v16  ;;  %v1174_v27 = vadd.f32 %v2780_v14, %v1103_v18  ;;  %v1072_v28 = vmul.f32 %v2773_v10, %v812_v22  ;;  %v1104_v29 = vmul.f32 %v2773_v10, %v940_v24  ;;  %v814_v30 = vpop.f32.mrb[3].mxu0  ;;  %v942_v31 = vpop.f32.mrb[3].mxu1 }
 0x101   : > { %v2111_v18 = vunpack.c.h.bf16 %v2389_v0 }
 0x102   : > { %v1334_v32 = vadd.f32 %v2102_v17, %v1142_v26  ;;  %v1366_v33 = vadd.f32 %v2166_v19, %v1174_v27  ;;  %v1143_v34 = vadd.f32 %v2780_v14, %v1072_v28  ;;  %v1175_v35 = vadd.f32 %v2780_v14, %v1104_v29 }
 0x103   : > { %v2175_v19 = vunpack.c.h.bf16 %v2405_v1 }
 0x104   : > { %v1335_v36 = vadd.f32 %v2103_v23, %v1143_v34  ;;  %v1367_v37 = vadd.f32 %v2167_v25, %v1175_v35  ;;  %v1398_v40 = vmax.f32 %v1334_v32, 0.0  ;;  %v1430_v41 = vmax.f32 %v1366_v33, 0.0 }
 0x105   : > { %v817_v42 = vpop.f32.mrb[4].mxu0  ;;  %v945_v43 = vpop.f32.mrb[4].mxu1 }
 0x106   : > { %v1399_v44 = vmax.f32 %v1335_v36, 0.0  ;;  %v1431_v45 = vmax.f32 %v1367_v37, 0.0  ;;  %v1073_v46 = vmul.f32 %v2773_v10, %v817_v42  ;;  %v1105_v47 = vmul.f32 %v2773_v10, %v945_v43  ;;  %v819_v48 = vpop.f32.mrb[5].mxu0  ;;  %v947_v49 = vpop.f32.mrb[5].mxu1 }
 0x107   : > { %v820_v52 = vpop.f32.mrb[6].mxu0  ;;  %v948_v53 = vpop.f32.mrb[6].mxu1 }
 0x108   : > { %v2231_v54 = vpack.c.bf16 %v1399_v44, %v1398_v40  ;;  %v2311_v55 = vpack.c.bf16 %v1431_v45, %v1430_v41  ;;  %v1144_v56 = vadd.f32 %v2780_v14, %v1073_v46  ;;  %v1176_v57 = vadd.f32 %v2780_v14, %v1105_v47  ;;  %v822_v58 = vpop.f32.mrb[7].mxu0  ;;  %v950_v59 = vpop.f32.mrb[7].mxu1  ;;  %v2390_v40 = vld [vmem:[%s2768_s23 + $0x18] sm:$0xff]  }
 0x109   : > { %v1074_v60 = vmul.f32 %v2773_v10, %v820_v52  ;;  %v1106_v62 = vmul.f32 %v2773_v10, %v948_v53  ;;  %v2406_v41 = vld [vmem:[%s2768_s23 + $0x98] sm:$0xff]   ;;  %v2114_v52 = vunpack.c.l.bf16 %v2390_v40 }
 0x10a   : > { %2232 = vst [vmem:[%s2799_s30] sm:$0xff] %v2231_v54   ;;  %2434 = vst [vmem:[%s2799_s30 + $0x80] sm:$0xff] %v2311_v55   ;;  %v1336_v2 = vadd.f32 %v2106_v50, %v1144_v56  ;;  %v1368_v3 = vadd.f32 %v2170_v51, %v1176_v57  ;;  %v2178_v53 = vunpack.c.l.bf16 %v2406_v41  ;;  %v2179_v1 = vunpack.c.h.bf16 %v2406_v41 }
 0x10b   : > { %v1145_v4 = vadd.f32 %v2780_v14, %v1074_v60  ;;  %v1177_v5 = vadd.f32 %v2780_v14, %v1106_v62 }
 0x10c   : > { %v1400_v20 = vmax.f32 %v1336_v2, 0.0  ;;  %v1432_v21 = vmax.f32 %v1368_v3, 0.0  ;;  %v2391_v2 = vld [vmem:[%s2768_s23 + $0x20] sm:$0xff]  }
 0x10d   : > { %v1337_v6 = vadd.f32 %v2107_v61, %v1145_v4  ;;  %v1369_v7 = vadd.f32 %v2171_v63, %v1177_v5  ;;  %v825_v8 = vpop.f32.mrb[8].mxu0  ;;  %v953_v11 = vpop.f32.mrb[8].mxu1  ;;  %v2115_v63 = vunpack.c.h.bf16 %v2390_v40  ;;  %v2407_v3 = vld [vmem:[%s2768_s23 + $0xa0] sm:$0xff]  }
 0x10e   : > { %v1075_v13 = vmul.f32 %v2773_v10, %v825_v8  ;;  %v1107_v15 = vmul.f32 %v2773_v10, %v953_v11  ;;  %v827_v16 = vpop.f32.mrb[9].mxu0  ;;  %v955_v17 = vpop.f32.mrb[9].mxu1 }
 0x10f   : > { %v1401_v22 = vmax.f32 %v1337_v6, 0.0  ;;  %v1433_v23 = vmax.f32 %v1369_v7, 0.0  ;;  %v828_v24 = vpop.f32.mrb[10].mxu0  ;;  %v956_v25 = vpop.f32.mrb[10].mxu1 }
 0x110   : > { %v1146_v26 = vadd.f32 %v2780_v14, %v1075_v13  ;;  %v1178_v27 = vadd.f32 %v2780_v14, %v1107_v15  ;;  %v1076_v28 = vmul.f32 %v2773_v10, %v828_v24  ;;  %v1108_v29 = vmul.f32 %v2773_v10, %v956_v25  ;;  %v830_v30 = vpop.f32.mrb[11].mxu0  ;;  %v958_v31 = vpop.f32.mrb[11].mxu1 }
 0x111   : > { %v2236_v32 = vpack.c.bf16 %v1401_v22, %v1400_v20  ;;  %v2316_v33 = vpack.c.bf16 %v1433_v23, %v1432_v21  ;;  %v2182_v15 = vunpack.c.l.bf16 %v2407_v3  ;;  %v2119_v20 = vunpack.c.h.bf16 %v2391_v2 }
 0x112   : > { %v1338_v34 = vadd.f32 %v2110_v9, %v1146_v26  ;;  %v1370_v35 = vadd.f32 %v2174_v12, %v1178_v27  ;;  %v1147_v36 = vadd.f32 %v2780_v14, %v1076_v28  ;;  %v1179_v37 = vadd.f32 %v2780_v14, %v1108_v29 }
 0x113   : > { %2419 = vst [vmem:[%s2799_s30 + $0x8] sm:$0xff] %v2236_v32   ;;  %2435 = vst [vmem:[%s2799_s30 + $0x88] sm:$0xff] %v2316_v33   ;;  %v2118_v12 = vunpack.c.l.bf16 %v2391_v2  ;;  %v2183_v21 = vunpack.c.h.bf16 %v2407_v3 }
 0x114   : > { %v1339_v38 = vadd.f32 %v2111_v18, %v1147_v36  ;;  %v1371_v39 = vadd.f32 %v2175_v19, %v1179_v37  ;;  %v1402_v42 = vmax.f32 %v1338_v34, 0.0  ;;  %v1434_v43 = vmax.f32 %v1370_v35, 0.0 }
 0x115   : > { %v833_v44 = vpop.f32.mrb[12].mxu0  ;;  %v961_v45 = vpop.f32.mrb[12].mxu1 }
 0x116   : > { %v1403_v46 = vmax.f32 %v1339_v38, 0.0  ;;  %v1435_v47 = vmax.f32 %v1371_v39, 0.0  ;;  %v1077_v48 = vmul.f32 %v2773_v10, %v833_v44  ;;  %v1109_v49 = vmul.f32 %v2773_v10, %v961_v45  ;;  %v835_v50 = vpop.f32.mrb[13].mxu0  ;;  %v963_v51 = vpop.f32.mrb[13].mxu1 }
 0x117   : > { %v836_v54 = vpop.f32.mrb[14].mxu0  ;;  %v964_v55 = vpop.f32.mrb[14].mxu1 }
 0x118   : > { %v2241_v56 = vpack.c.bf16 %v1403_v46, %v1402_v42  ;;  %v2321_v57 = vpack.c.bf16 %v1435_v47, %v1434_v43  ;;  %v1148_v58 = vadd.f32 %v2780_v14, %v1077_v48  ;;  %v1180_v59 = vadd.f32 %v2780_v14, %v1109_v49  ;;  %v838_v60 = vpop.f32.mrb[15].mxu0  ;;  %v966_v61 = vpop.f32.mrb[15].mxu1  ;;  %v2392_v42 = vld [vmem:[%s2768_s23 + $0x28] sm:$0xff]  }
 0x119   : > { %v1078_v62 = vmul.f32 %v2773_v10, %v836_v54  ;;  %v1110_v0 = vmul.f32 %v2773_v10, %v964_v55  ;;  %v2408_v43 = vld [vmem:[%s2768_s23 + $0xa8] sm:$0xff]   ;;  %v2122_v54 = vunpack.c.l.bf16 %v2392_v42 }
 0x11a   : > { %2420 = vst [vmem:[%s2799_s30 + $0x10] sm:$0xff] %v2241_v56   ;;  %2436 = vst [vmem:[%s2799_s30 + $0x90] sm:$0xff] %v2321_v57   ;;  %v1340_v4 = vadd.f32 %v2114_v52, %v1148_v58  ;;  %v1372_v5 = vadd.f32 %v2178_v53, %v1180_v59  ;;  %v2186_v55 = vunpack.c.l.bf16 %v2408_v43  ;;  %v2187_v3 = vunpack.c.h.bf16 %v2408_v43 }
 0x11b   : > { %v1149_v6 = vadd.f32 %v2780_v14, %v1078_v62  ;;  %v1181_v7 = vadd.f32 %v2780_v14, %v1110_v0 }
 0x11c   : > { %v1404_v22 = vmax.f32 %v1340_v4, 0.0  ;;  %v1436_v23 = vmax.f32 %v1372_v5, 0.0  ;;  %v2393_v4 = vld [vmem:[%s2768_s23 + $0x30] sm:$0xff]  }
 0x11d   : > { %v1341_v8 = vadd.f32 %v2115_v63, %v1149_v6  ;;  %v1373_v9 = vadd.f32 %v2179_v1, %v1181_v7  ;;  %v841_v11 = vpop.f32.mrb[16].mxu0  ;;  %v969_v13 = vpop.f32.mrb[16].mxu1  ;;  %v2123_v1 = vunpack.c.h.bf16 %v2392_v42  ;;  %v2409_v5 = vld [vmem:[%s2768_s23 + $0xb0] sm:$0xff]  }
 0x11e   : > { %v1079_v16 = vmul.f32 %v2773_v10, %v841_v11  ;;  %v1111_v17 = vmul.f32 %v2773_v10, %v969_v13  ;;  %v843_v18 = vpop.f32.mrb[17].mxu0  ;;  %v971_v19 = vpop.f32.mrb[17].mxu1 }
 0x11f   : > { %v1405_v24 = vmax.f32 %v1341_v8, 0.0  ;;  %v1437_v25 = vmax.f32 %v1373_v9, 0.0  ;;  %v844_v26 = vpop.f32.mrb[18].mxu0  ;;  %v972_v27 = vpop.f32.mrb[18].mxu1 }
 0x120   : > { %v1150_v28 = vadd.f32 %v2780_v14, %v1079_v16  ;;  %v1182_v29 = vadd.f32 %v2780_v14, %v1111_v17  ;;  %v1080_v30 = vmul.f32 %v2773_v10, %v844_v26  ;;  %v1112_v31 = vmul.f32 %v2773_v10, %v972_v27  ;;  %v846_v32 = vpop.f32.mrb[19].mxu0  ;;  %v974_v33 = vpop.f32.mrb[19].mxu1 }
 0x121   : > { %v2246_v34 = vpack.c.bf16 %v1405_v24, %v1404_v22  ;;  %v2326_v35 = vpack.c.bf16 %v1437_v25, %v1436_v23  ;;  %v2190_v17 = vunpack.c.l.bf16 %v2409_v5  ;;  %v2127_v22 = vunpack.c.h.bf16 %v2393_v4 }
 0x122   : > { %v1342_v36 = vadd.f32 %v2118_v12, %v1150_v28  ;;  %v1374_v37 = vadd.f32 %v2182_v15, %v1182_v29  ;;  %v1151_v38 = vadd.f32 %v2780_v14, %v1080_v30  ;;  %v1183_v39 = vadd.f32 %v2780_v14, %v1112_v31 }
 0x123   : > { %2421 = vst [vmem:[%s2799_s30 + $0x18] sm:$0xff] %v2246_v34   ;;  %2437 = vst [vmem:[%s2799_s30 + $0x98] sm:$0xff] %v2326_v35   ;;  %v2126_v15 = vunpack.c.l.bf16 %v2393_v4  ;;  %v2191_v23 = vunpack.c.h.bf16 %v2409_v5 }
 0x124   : > { %v1343_v40 = vadd.f32 %v2119_v20, %v1151_v38  ;;  %v1375_v41 = vadd.f32 %v2183_v21, %v1183_v39  ;;  %v1406_v44 = vmax.f32 %v1342_v36, 0.0  ;;  %v1438_v45 = vmax.f32 %v1374_v37, 0.0 }
 0x125   : > { %v849_v46 = vpop.f32.mrb[20].mxu0  ;;  %v977_v47 = vpop.f32.mrb[20].mxu1 }
 0x126   : > { %v1407_v48 = vmax.f32 %v1343_v40, 0.0  ;;  %v1439_v49 = vmax.f32 %v1375_v41, 0.0  ;;  %v1081_v50 = vmul.f32 %v2773_v10, %v849_v46  ;;  %v1113_v51 = vmul.f32 %v2773_v10, %v977_v47  ;;  %v851_v52 = vpop.f32.mrb[21].mxu0  ;;  %v979_v53 = vpop.f32.mrb[21].mxu1 }
 0x127   : > { %v852_v56 = vpop.f32.mrb[22].mxu0  ;;  %v980_v57 = vpop.f32.mrb[22].mxu1 }
 0x128   : > { %v2251_v58 = vpack.c.bf16 %v1407_v48, %v1406_v44  ;;  %v2331_v59 = vpack.c.bf16 %v1439_v49, %v1438_v45  ;;  %v1152_v60 = vadd.f32 %v2780_v14, %v1081_v50  ;;  %v1184_v61 = vadd.f32 %v2780_v14, %v1113_v51  ;;  %v854_v62 = vpop.f32.mrb[23].mxu0  ;;  %v982_v63 = vpop.f32.mrb[23].mxu1  ;;  %v2394_v44 = vld [vmem:[%s2768_s23 + $0x38] sm:$0xff]  }
 0x129   : > { %v1082_v0 = vmul.f32 %v2773_v10, %v852_v56  ;;  %v1114_v2 = vmul.f32 %v2773_v10, %v980_v57  ;;  %v2410_v45 = vld [vmem:[%s2768_s23 + $0xb8] sm:$0xff]   ;;  %v2130_v56 = vunpack.c.l.bf16 %v2394_v44 }
 0x12a   : > { %2422 = vst [vmem:[%s2799_s30 + $0x20] sm:$0xff] %v2251_v58   ;;  %2438 = vst [vmem:[%s2799_s30 + $0xa0] sm:$0xff] %v2331_v59   ;;  %v1344_v6 = vadd.f32 %v2122_v54, %v1152_v60  ;;  %v1376_v7 = vadd.f32 %v2186_v55, %v1184_v61  ;;  %v2194_v57 = vunpack.c.l.bf16 %v2410_v45  ;;  %v2195_v5 = vunpack.c.h.bf16 %v2410_v45 }
 0x12b   : > { %v1153_v8 = vadd.f32 %v2780_v14, %v1082_v0  ;;  %v1185_v9 = vadd.f32 %v2780_v14, %v1114_v2 }
 0x12c   : > { %v1408_v24 = vmax.f32 %v1344_v6, 0.0  ;;  %v1440_v25 = vmax.f32 %v1376_v7, 0.0  ;;  %v2395_v6 = vld [vmem:[%s2768_s23 + $0x40] sm:$0xff]  }
 0x12d   : > { %v1345_v11 = vadd.f32 %v2123_v1, %v1153_v8  ;;  %v1377_v12 = vadd.f32 %v2187_v3, %v1185_v9  ;;  %v857_v13 = vpop.f32.mrb[24].mxu0  ;;  %v985_v16 = vpop.f32.mrb[24].mxu1  ;;  %v2131_v3 = vunpack.c.h.bf16 %v2394_v44  ;;  %v2411_v7 = vld [vmem:[%s2768_s23 + $0xc0] sm:$0xff]  }
 0x12e   : > { %v1083_v18 = vmul.f32 %v2773_v10, %v857_v13  ;;  %v1115_v19 = vmul.f32 %v2773_v10, %v985_v16  ;;  %v859_v20 = vpop.f32.mrb[25].mxu0  ;;  %v987_v21 = vpop.f32.mrb[25].mxu1 }
 0x12f   : > { %v1409_v26 = vmax.f32 %v1345_v11, 0.0  ;;  %v1441_v27 = vmax.f32 %v1377_v12, 0.0  ;;  %v860_v28 = vpop.f32.mrb[26].mxu0  ;;  %v988_v29 = vpop.f32.mrb[26].mxu1 }
 0x130   : > { %v1154_v30 = vadd.f32 %v2780_v14, %v1083_v18  ;;  %v1186_v31 = vadd.f32 %v2780_v14, %v1115_v19  ;;  %v1084_v32 = vmul.f32 %v2773_v10, %v860_v28  ;;  %v1116_v33 = vmul.f32 %v2773_v10, %v988_v29  ;;  %v862_v34 = vpop.f32.mrb[27].mxu0  ;;  %v990_v35 = vpop.f32.mrb[27].mxu1 }
 0x131   : > { %v2256_v36 = vpack.c.bf16 %v1409_v26, %v1408_v24  ;;  %v2336_v37 = vpack.c.bf16 %v1441_v27, %v1440_v25  ;;  %v2198_v19 = vunpack.c.l.bf16 %v2411_v7  ;;  %v2135_v24 = vunpack.c.h.bf16 %v2395_v6 }
 0x132   : > { %v1346_v38 = vadd.f32 %v2126_v15, %v1154_v30  ;;  %v1378_v39 = vadd.f32 %v2190_v17, %v1186_v31  ;;  %v1155_v40 = vadd.f32 %v2780_v14, %v1084_v32  ;;  %v1187_v41 = vadd.f32 %v2780_v14, %v1116_v33 }
 0x133   : > { %2423 = vst [vmem:[%s2799_s30 + $0x28] sm:$0xff] %v2256_v36   ;;  %2439 = vst [vmem:[%s2799_s30 + $0xa8] sm:$0xff] %v2336_v37   ;;  %v2134_v17 = vunpack.c.l.bf16 %v2395_v6  ;;  %v2199_v25 = vunpack.c.h.bf16 %v2411_v7 }
 0x134   : > { %v1347_v42 = vadd.f32 %v2127_v22, %v1155_v40  ;;  %v1379_v43 = vadd.f32 %v2191_v23, %v1187_v41  ;;  %v1410_v46 = vmax.f32 %v1346_v38, 0.0  ;;  %v1442_v47 = vmax.f32 %v1378_v39, 0.0 }
 0x135   : > { %v865_v48 = vpop.f32.mrb[28].mxu0  ;;  %v993_v49 = vpop.f32.mrb[28].mxu1 }
 0x136   : > { %v1411_v50 = vmax.f32 %v1347_v42, 0.0  ;;  %v1443_v51 = vmax.f32 %v1379_v43, 0.0  ;;  %v1085_v52 = vmul.f32 %v2773_v10, %v865_v48  ;;  %v1117_v53 = vmul.f32 %v2773_v10, %v993_v49  ;;  %v867_v54 = vpop.f32.mrb[29].mxu0  ;;  %v995_v55 = vpop.f32.mrb[29].mxu1 }
 0x137   : > { %v868_v58 = vpop.f32.mrb[30].mxu0  ;;  %v996_v59 = vpop.f32.mrb[30].mxu1 }
 0x138   : > { %v2261_v60 = vpack.c.bf16 %v1411_v50, %v1410_v46  ;;  %v2341_v61 = vpack.c.bf16 %v1443_v51, %v1442_v47  ;;  %v1156_v62 = vadd.f32 %v2780_v14, %v1085_v52  ;;  %v1188_v63 = vadd.f32 %v2780_v14, %v1117_v53  ;;  %v870_v0 = vpop.f32.mrb[31].mxu0  ;;  %v998_v1 = vpop.f32.mrb[31].mxu1  ;;  %v2396_v46 = vld [vmem:[%s2768_s23 + $0x48] sm:$0xff]  }
 0x139   : > { %v1086_v2 = vmul.f32 %v2773_v10, %v868_v58  ;;  %v1118_v4 = vmul.f32 %v2773_v10, %v996_v59  ;;  %v2412_v47 = vld [vmem:[%s2768_s23 + $0xc8] sm:$0xff]   ;;  %v2138_v58 = vunpack.c.l.bf16 %v2396_v46 }
 0x13a   : > { %2424 = vst [vmem:[%s2799_s30 + $0x30] sm:$0xff] %v2261_v60   ;;  %2440 = vst [vmem:[%s2799_s30 + $0xb0] sm:$0xff] %v2341_v61   ;;  %v1348_v8 = vadd.f32 %v2130_v56, %v1156_v62  ;;  %v1380_v9 = vadd.f32 %v2194_v57, %v1188_v63  ;;  %v2202_v59 = vunpack.c.l.bf16 %v2412_v47  ;;  %v2203_v7 = vunpack.c.h.bf16 %v2412_v47 }
 0x13b   : > { %v1157_v11 = vadd.f32 %v2780_v14, %v1086_v2  ;;  %v1189_v12 = vadd.f32 %v2780_v14, %v1118_v4 }
 0x13c   : > { %v1412_v26 = vmax.f32 %v1348_v8, 0.0  ;;  %v1444_v27 = vmax.f32 %v1380_v9, 0.0  ;;  %v2397_v8 = vld [vmem:[%s2768_s23 + $0x50] sm:$0xff]  }
 0x13d   : > { %v1349_v13 = vadd.f32 %v2131_v3, %v1157_v11  ;;  %v1381_v15 = vadd.f32 %v2195_v5, %v1189_v12  ;;  %v873_v16 = vpop.f32.mrb[32].mxu0  ;;  %v1001_v18 = vpop.f32.mrb[32].mxu1  ;;  %v2139_v5 = vunpack.c.h.bf16 %v2396_v46  ;;  %v2413_v9 = vld [vmem:[%s2768_s23 + $0xd0] sm:$0xff]  }
 0x13e   : > { %v1087_v20 = vmul.f32 %v2773_v10, %v873_v16  ;;  %v1119_v21 = vmul.f32 %v2773_v10, %v1001_v18  ;;  %v875_v22 = vpop.f32.mrb[33].mxu0  ;;  %v1003_v23 = vpop.f32.mrb[33].mxu1 }
 0x13f   : > { %v1413_v28 = vmax.f32 %v1349_v13, 0.0  ;;  %v1445_v29 = vmax.f32 %v1381_v15, 0.0  ;;  %v876_v30 = vpop.f32.mrb[34].mxu0  ;;  %v1004_v31 = vpop.f32.mrb[34].mxu1 }
 0x140   : > { %v1158_v32 = vadd.f32 %v2780_v14, %v1087_v20  ;;  %v1190_v33 = vadd.f32 %v2780_v14, %v1119_v21  ;;  %v1088_v34 = vmul.f32 %v2773_v10, %v876_v30  ;;  %v1120_v35 = vmul.f32 %v2773_v10, %v1004_v31  ;;  %v878_v36 = vpop.f32.mrb[35].mxu0  ;;  %v1006_v37 = vpop.f32.mrb[35].mxu1 }
 0x141   : > { %v2266_v38 = vpack.c.bf16 %v1413_v28, %v1412_v26  ;;  %v2346_v39 = vpack.c.bf16 %v1445_v29, %v1444_v27  ;;  %v2206_v21 = vunpack.c.l.bf16 %v2413_v9  ;;  %v2143_v26 = vunpack.c.h.bf16 %v2397_v8 }
 0x142   : > { %v1350_v40 = vadd.f32 %v2134_v17, %v1158_v32  ;;  %v1382_v41 = vadd.f32 %v2198_v19, %v1190_v33  ;;  %v1159_v42 = vadd.f32 %v2780_v14, %v1088_v34  ;;  %v1191_v43 = vadd.f32 %v2780_v14, %v1120_v35 }
 0x143   : > { %2425 = vst [vmem:[%s2799_s30 + $0x38] sm:$0xff] %v2266_v38   ;;  %2441 = vst [vmem:[%s2799_s30 + $0xb8] sm:$0xff] %v2346_v39   ;;  %v2142_v19 = vunpack.c.l.bf16 %v2397_v8  ;;  %v2207_v27 = vunpack.c.h.bf16 %v2413_v9 }
 0x144   : > { %v1351_v44 = vadd.f32 %v2135_v24, %v1159_v42  ;;  %v1383_v45 = vadd.f32 %v2199_v25, %v1191_v43  ;;  %v1414_v48 = vmax.f32 %v1350_v40, 0.0  ;;  %v1446_v49 = vmax.f32 %v1382_v41, 0.0 }
 0x145   : > { %v881_v50 = vpop.f32.mrb[36].mxu0  ;;  %v1009_v51 = vpop.f32.mrb[36].mxu1 }
 0x146   : > { %v1415_v52 = vmax.f32 %v1351_v44, 0.0  ;;  %v1447_v53 = vmax.f32 %v1383_v45, 0.0  ;;  %v1089_v54 = vmul.f32 %v2773_v10, %v881_v50  ;;  %v1121_v55 = vmul.f32 %v2773_v10, %v1009_v51  ;;  %v883_v56 = vpop.f32.mrb[37].mxu0  ;;  %v1011_v57 = vpop.f32.mrb[37].mxu1 }
 0x147   : > { %v884_v60 = vpop.f32.mrb[38].mxu0  ;;  %v1012_v61 = vpop.f32.mrb[38].mxu1 }
 0x148   : > { %v2271_v62 = vpack.c.bf16 %v1415_v52, %v1414_v48  ;;  %v2351_v63 = vpack.c.bf16 %v1447_v53, %v1446_v49  ;;  %v1160_v0 = vadd.f32 %v2780_v14, %v1089_v54  ;;  %v1192_v1 = vadd.f32 %v2780_v14, %v1121_v55  ;;  %v886_v2 = vpop.f32.mrb[39].mxu0  ;;  %v1014_v3 = vpop.f32.mrb[39].mxu1  ;;  %v2398_v48 = vld [vmem:[%s2768_s23 + $0x58] sm:$0xff]  }
 0x149   : > { %v1090_v4 = vmul.f32 %v2773_v10, %v884_v60  ;;  %v1122_v6 = vmul.f32 %v2773_v10, %v1012_v61  ;;  %v2414_v49 = vld [vmem:[%s2768_s23 + $0xd8] sm:$0xff]   ;;  %v2146_v60 = vunpack.c.l.bf16 %v2398_v48 }
 0x14a   : > { %2426 = vst [vmem:[%s2799_s30 + $0x40] sm:$0xff] %v2271_v62   ;;  %2442 = vst [vmem:[%s2799_s30 + $0xc0] sm:$0xff] %v2351_v63   ;;  %v1352_v11 = vadd.f32 %v2138_v58, %v1160_v0  ;;  %v1384_v12 = vadd.f32 %v2202_v59, %v1192_v1  ;;  %v2210_v61 = vunpack.c.l.bf16 %v2414_v49  ;;  %v2211_v9 = vunpack.c.h.bf16 %v2414_v49 }
 0x14b   : > { %v1161_v13 = vadd.f32 %v2780_v14, %v1090_v4  ;;  %v1193_v15 = vadd.f32 %v2780_v14, %v1122_v6 }
 0x14c   : > { %v1416_v28 = vmax.f32 %v1352_v11, 0.0  ;;  %v1448_v29 = vmax.f32 %v1384_v12, 0.0  ;;  %v2399_v11 = vld [vmem:[%s2768_s23 + $0x60] sm:$0xff]  }
 0x14d   : > { %v1353_v16 = vadd.f32 %v2139_v5, %v1161_v13  ;;  %v1385_v17 = vadd.f32 %v2203_v7, %v1193_v15  ;;  %v889_v18 = vpop.f32.mrb[40].mxu0  ;;  %v1017_v20 = vpop.f32.mrb[40].mxu1  ;;  %v2147_v7 = vunpack.c.h.bf16 %v2398_v48  ;;  %v2415_v12 = vld [vmem:[%s2768_s23 + $0xe0] sm:$0xff]  }
 0x14e   : > { %v1091_v22 = vmul.f32 %v2773_v10, %v889_v18  ;;  %v1123_v23 = vmul.f32 %v2773_v10, %v1017_v20  ;;  %v891_v24 = vpop.f32.mrb[41].mxu0  ;;  %v1019_v25 = vpop.f32.mrb[41].mxu1 }
 0x14f   : > { %v1417_v30 = vmax.f32 %v1353_v16, 0.0  ;;  %v1449_v31 = vmax.f32 %v1385_v17, 0.0  ;;  %v892_v32 = vpop.f32.mrb[42].mxu0  ;;  %v1020_v33 = vpop.f32.mrb[42].mxu1 }
 0x150   : > { %v1162_v34 = vadd.f32 %v2780_v14, %v1091_v22  ;;  %v1194_v35 = vadd.f32 %v2780_v14, %v1123_v23  ;;  %v1092_v36 = vmul.f32 %v2773_v10, %v892_v32  ;;  %v1124_v37 = vmul.f32 %v2773_v10, %v1020_v33  ;;  %v894_v38 = vpop.f32.mrb[43].mxu0  ;;  %v1022_v39 = vpop.f32.mrb[43].mxu1 }
 0x151   : > { %v2276_v40 = vpack.c.bf16 %v1417_v30, %v1416_v28  ;;  %v2356_v41 = vpack.c.bf16 %v1449_v31, %v1448_v29  ;;  %v2214_v23 = vunpack.c.l.bf16 %v2415_v12  ;;  %v2151_v28 = vunpack.c.h.bf16 %v2399_v11 }
 0x152   : > { %v1354_v42 = vadd.f32 %v2142_v19, %v1162_v34  ;;  %v1386_v43 = vadd.f32 %v2206_v21, %v1194_v35  ;;  %v1163_v44 = vadd.f32 %v2780_v14, %v1092_v36  ;;  %v1195_v45 = vadd.f32 %v2780_v14, %v1124_v37 }
 0x153   : > { %2427 = vst [vmem:[%s2799_s30 + $0x48] sm:$0xff] %v2276_v40   ;;  %2443 = vst [vmem:[%s2799_s30 + $0xc8] sm:$0xff] %v2356_v41   ;;  %v2150_v21 = vunpack.c.l.bf16 %v2399_v11  ;;  %v2215_v29 = vunpack.c.h.bf16 %v2415_v12 }
 0x154   : > { %v1355_v46 = vadd.f32 %v2143_v26, %v1163_v44  ;;  %v1387_v47 = vadd.f32 %v2207_v27, %v1195_v45  ;;  %v1418_v50 = vmax.f32 %v1354_v42, 0.0  ;;  %v1450_v51 = vmax.f32 %v1386_v43, 0.0 }
 0x155   : > { %v897_v52 = vpop.f32.mrb[44].mxu0  ;;  %v1025_v53 = vpop.f32.mrb[44].mxu1 }
 0x156   : > { %v1419_v54 = vmax.f32 %v1355_v46, 0.0  ;;  %v1451_v55 = vmax.f32 %v1387_v47, 0.0  ;;  %v1093_v56 = vmul.f32 %v2773_v10, %v897_v52  ;;  %v1125_v57 = vmul.f32 %v2773_v10, %v1025_v53  ;;  %v899_v58 = vpop.f32.mrb[45].mxu0  ;;  %v1027_v59 = vpop.f32.mrb[45].mxu1 }
 0x157   : > { %v900_v62 = vpop.f32.mrb[46].mxu0  ;;  %v1028_v63 = vpop.f32.mrb[46].mxu1 }
 0x158   : > { %v2281_v0 = vpack.c.bf16 %v1419_v54, %v1418_v50  ;;  %v2361_v1 = vpack.c.bf16 %v1451_v55, %v1450_v51  ;;  %v1164_v2 = vadd.f32 %v2780_v14, %v1093_v56  ;;  %v1196_v3 = vadd.f32 %v2780_v14, %v1125_v57  ;;  %v902_v4 = vpop.f32.mrb[47].mxu0  ;;  %v1030_v5 = vpop.f32.mrb[47].mxu1  ;;  %v2400_v50 = vld [vmem:[%s2768_s23 + $0x68] sm:$0xff]  }
 0x159   : > { %v1094_v6 = vmul.f32 %v2773_v10, %v900_v62  ;;  %v1126_v8 = vmul.f32 %v2773_v10, %v1028_v63  ;;  %v2416_v51 = vld [vmem:[%s2768_s23 + $0xe8] sm:$0xff]   ;;  %v2154_v62 = vunpack.c.l.bf16 %v2400_v50 }
 0x15a   : > { %2428 = vst [vmem:[%s2799_s30 + $0x50] sm:$0xff] %v2281_v0   ;;  %2444 = vst [vmem:[%s2799_s30 + $0xd0] sm:$0xff] %v2361_v1   ;;  %v1356_v13 = vadd.f32 %v2146_v60, %v1164_v2  ;;  %v1388_v15 = vadd.f32 %v2210_v61, %v1196_v3  ;;  %v2218_v63 = vunpack.c.l.bf16 %v2416_v51  ;;  %v2219_v12 = vunpack.c.h.bf16 %v2416_v51 }
 0x15b   : > { %v1165_v16 = vadd.f32 %v2780_v14, %v1094_v6  ;;  %v1197_v17 = vadd.f32 %v2780_v14, %v1126_v8 }
 0x15c   : > { %v1420_v30 = vmax.f32 %v1356_v13, 0.0  ;;  %v1452_v31 = vmax.f32 %v1388_v15, 0.0  ;;  %v2401_v13 = vld [vmem:[%s2768_s23 + $0x70] sm:$0xff]  }
 0x15d   : > { %v1357_v18 = vadd.f32 %v2147_v7, %v1165_v16  ;;  %v1389_v19 = vadd.f32 %v2211_v9, %v1197_v17  ;;  %v905_v20 = vpop.f32.mrb[48].mxu0  ;;  %v1033_v22 = vpop.f32.mrb[48].mxu1  ;;  %v2155_v9 = vunpack.c.h.bf16 %v2400_v50  ;;  %v2417_v15 = vld [vmem:[%s2768_s23 + $0xf0] sm:$0xff]  }
 0x15e   : > { %v1095_v24 = vmul.f32 %v2773_v10, %v905_v20  ;;  %v1127_v25 = vmul.f32 %v2773_v10, %v1033_v22  ;;  %v907_v26 = vpop.f32.mrb[49].mxu0  ;;  %v1035_v27 = vpop.f32.mrb[49].mxu1 }
 0x15f   : > { %v1421_v32 = vmax.f32 %v1357_v18, 0.0  ;;  %v1453_v33 = vmax.f32 %v1389_v19, 0.0  ;;  %v908_v34 = vpop.f32.mrb[50].mxu0  ;;  %v1036_v35 = vpop.f32.mrb[50].mxu1 }
 0x160   : > { %v1166_v36 = vadd.f32 %v2780_v14, %v1095_v24  ;;  %v1198_v37 = vadd.f32 %v2780_v14, %v1127_v25  ;;  %v1096_v38 = vmul.f32 %v2773_v10, %v908_v34  ;;  %v1128_v39 = vmul.f32 %v2773_v10, %v1036_v35  ;;  %v910_v40 = vpop.f32.mrb[51].mxu0  ;;  %v1038_v41 = vpop.f32.mrb[51].mxu1 }
 0x161   : > { %v2286_v42 = vpack.c.bf16 %v1421_v32, %v1420_v30  ;;  %v2366_v43 = vpack.c.bf16 %v1453_v33, %v1452_v31  ;;  %v2222_v25 = vunpack.c.l.bf16 %v2417_v15  ;;  %v2159_v30 = vunpack.c.h.bf16 %v2401_v13 }
 0x162   : > { %v1358_v44 = vadd.f32 %v2150_v21, %v1166_v36  ;;  %v1390_v45 = vadd.f32 %v2214_v23, %v1198_v37  ;;  %v1167_v46 = vadd.f32 %v2780_v14, %v1096_v38  ;;  %v1199_v47 = vadd.f32 %v2780_v14, %v1128_v39 }
 0x163   : > { %2429 = vst [vmem:[%s2799_s30 + $0x58] sm:$0xff] %v2286_v42   ;;  %2445 = vst [vmem:[%s2799_s30 + $0xd8] sm:$0xff] %v2366_v43   ;;  %v2158_v23 = vunpack.c.l.bf16 %v2401_v13  ;;  %v2223_v31 = vunpack.c.h.bf16 %v2417_v15 }
 0x164   : > { %v1359_v48 = vadd.f32 %v2151_v28, %v1167_v46  ;;  %v1391_v49 = vadd.f32 %v2215_v29, %v1199_v47  ;;  %v1422_v52 = vmax.f32 %v1358_v44, 0.0  ;;  %v1454_v53 = vmax.f32 %v1390_v45, 0.0 }
 0x165   : > { %v913_v54 = vpop.f32.mrb[52].mxu0  ;;  %v1041_v55 = vpop.f32.mrb[52].mxu1 }
 0x166   : > { %v1423_v56 = vmax.f32 %v1359_v48, 0.0  ;;  %v1455_v57 = vmax.f32 %v1391_v49, 0.0  ;;  %v1097_v58 = vmul.f32 %v2773_v10, %v913_v54  ;;  %v1129_v59 = vmul.f32 %v2773_v10, %v1041_v55  ;;  %v915_v60 = vpop.f32.mrb[53].mxu0  ;;  %v1043_v61 = vpop.f32.mrb[53].mxu1 }
 0x167   : > { %v916_v0 = vpop.f32.mrb[54].mxu0  ;;  %v1044_v1 = vpop.f32.mrb[54].mxu1 }
 0x168   : > { %v2291_v2 = vpack.c.bf16 %v1423_v56, %v1422_v52  ;;  %v2371_v3 = vpack.c.bf16 %v1455_v57, %v1454_v53  ;;  %v1168_v4 = vadd.f32 %v2780_v14, %v1097_v58  ;;  %v1200_v5 = vadd.f32 %v2780_v14, %v1129_v59  ;;  %v918_v6 = vpop.f32.mrb[55].mxu0  ;;  %v1046_v7 = vpop.f32.mrb[55].mxu1  ;;  %v2402_v52 = vld [vmem:[%s2768_s23 + $0x78] sm:$0xff]   ;;  %v2582_v59 = vld [vmem:[%s2982_s2] ss:$0 sm:$0xff] }
 0x169   : > { %v1098_v8 = vmul.f32 %v2773_v10, %v916_v0  ;;  %v1130_v11 = vmul.f32 %v2773_v10, %v1044_v1  ;;  %v2418_v53 = vld [vmem:[%s2768_s23 + $0xf8] sm:$0xff]  }
 0x16a   : > { %2430 = vst [vmem:[%s2799_s30 + $0x60] sm:$0xff] %v2291_v2   ;;  %2446 = vst [vmem:[%s2799_s30 + $0xe0] sm:$0xff] %v2371_v3   ;;  %v1360_v16 = vadd.f32 %v2154_v62, %v1168_v4  ;;  %v1392_v17 = vadd.f32 %v2218_v63, %v1200_v5  ;;  %v2162_v63 = vunpack.c.l.bf16 %v2402_v52  ;;  %v2226_v0 = vunpack.c.l.bf16 %v2418_v53  ;;  %v2583_v5 = vld [vmem:[%s2983_s3] ss:$0 sm:$0xff] }
 0x16b   : > { %v1169_v18 = vadd.f32 %v2780_v14, %v1098_v8  ;;  %v1201_v19 = vadd.f32 %v2780_v14, %v1130_v11  ;;  %v2227_v15 = vunpack.c.h.bf16 %v2418_v53 }
 0x16c   : > { %v1424_v32 = vmax.f32 %v1360_v16, 0.0  ;;  %v1456_v33 = vmax.f32 %v1392_v17, 0.0 }
 0x16d   : > { %v1361_v20 = vadd.f32 %v2155_v9, %v1169_v18  ;;  %v1393_v21 = vadd.f32 %v2219_v12, %v1201_v19  ;;  %v921_v22 = vpop.f32.mrb[56].mxu0  ;;  %v1049_v24 = vpop.f32.mrb[56].mxu1  ;;  %v2163_v12 = vunpack.c.h.bf16 %v2402_v52 }
 0x16e   : > { %v1099_v26 = vmul.f32 %v2773_v10, %v921_v22  ;;  %v1131_v27 = vmul.f32 %v2773_v10, %v1049_v24  ;;  %v923_v28 = vpop.f32.mrb[57].mxu0  ;;  %v1051_v29 = vpop.f32.mrb[57].mxu1 }
 0x16f   : > { %v1425_v34 = vmax.f32 %v1361_v20, 0.0  ;;  %v1457_v35 = vmax.f32 %v1393_v21, 0.0  ;;  %v924_v36 = vpop.f32.mrb[58].mxu0  ;;  %v1052_v37 = vpop.f32.mrb[58].mxu1 }
 0x170   : > { %v1170_v38 = vadd.f32 %v2780_v14, %v1099_v26  ;;  %v1202_v39 = vadd.f32 %v2780_v14, %v1131_v27  ;;  %v1100_v40 = vmul.f32 %v2773_v10, %v924_v36  ;;  %v1132_v41 = vmul.f32 %v2773_v10, %v1052_v37  ;;  %v926_v42 = vpop.f32.mrb[59].mxu0  ;;  %v1054_v43 = vpop.f32.mrb[59].mxu1 }
 0x171   : > { %v2296_v44 = vpack.c.bf16 %v1425_v34, %v1424_v32  ;;  %v2376_v45 = vpack.c.bf16 %v1457_v35, %v1456_v33 }
 0x172   : > { %v1362_v46 = vadd.f32 %v2158_v23, %v1170_v38  ;;  %v1394_v47 = vadd.f32 %v2222_v25, %v1202_v39  ;;  %v1171_v48 = vadd.f32 %v2780_v14, %v1100_v40  ;;  %v1203_v49 = vadd.f32 %v2780_v14, %v1132_v41 }
 0x173   : > { %2431 = vst [vmem:[%s2799_s30 + $0x68] sm:$0xff] %v2296_v44   ;;  %2447 = vst [vmem:[%s2799_s30 + $0xe8] sm:$0xff] %v2376_v45  }
 0x174   : > { %v1363_v50 = vadd.f32 %v2159_v30, %v1171_v48  ;;  %v1395_v51 = vadd.f32 %v2223_v31, %v1203_v49  ;;  %v1426_v54 = vmax.f32 %v1362_v46, 0.0  ;;  %v1458_v55 = vmax.f32 %v1394_v47, 0.0 }
 0x175   : > { %v929_v56 = vpop.f32.mrb[60].mxu0  ;;  %v1057_v10 = vpop.f32.mrb[60].mxu1 }
 0x176   : > { %v1427_v57 = vmax.f32 %v1363_v50, 0.0  ;;  %v1459_v58 = vmax.f32 %v1395_v51, 0.0  ;;  %v1101_v60 = vmul.f32 %v2582_v59, %v929_v56  ;;  %v1133_v61 = vmul.f32 %v2582_v59, %v1057_v10  ;;  %v931_v62 = vpop.f32.mrb[61].mxu0  ;;  %v1059_v14 = vpop.f32.mrb[61].mxu1 }
 0x177   : > { %v932_v1 = vpop.f32.mrb[62].mxu0  ;;  %v1060_v2 = vpop.f32.mrb[62].mxu1 }
 0x178   : > { %v2301_v3 = vpack.c.bf16 %v1427_v57, %v1426_v54  ;;  %v2381_v4 = vpack.c.bf16 %v1459_v58, %v1458_v55  ;;  %v1172_v6 = vadd.f32 %v2583_v5, %v1101_v60  ;;  %v1204_v7 = vadd.f32 %v2583_v5, %v1133_v61  ;;  %v934_v8 = vpop.f32.mrb[63].mxu0  ;;  %v1062_v9 = vpop.f32.mrb[63].mxu1 }
 0x179   : > { %v1102_v11 = vmul.f32 %v2582_v59, %v932_v1  ;;  %v1134_v13 = vmul.f32 %v2582_v59, %v1060_v2 }
 0x17a   : > { %2432 = vst [vmem:[%s2799_s30 + $0x70] sm:$0xff] %v2301_v3   ;;  %2448 = vst [vmem:[%s2799_s30 + $0xf0] sm:$0xff] %v2381_v4   ;;  %v1364_v16 = vadd.f32 %v2162_v63, %v1172_v6  ;;  %v1396_v17 = vadd.f32 %v2226_v0, %v1204_v7 }
 0x17b   : > { %v1173_v18 = vadd.f32 %v2583_v5, %v1102_v11  ;;  %v1205_v19 = vadd.f32 %v2583_v5, %v1134_v13 }
 0x17c   : > { %v1428_v22 = vmax.f32 %v1364_v16, 0.0  ;;  %v1460_v23 = vmax.f32 %v1396_v17, 0.0 }
 0x17d   : > { %v1365_v20 = vadd.f32 %v2163_v12, %v1173_v18  ;;  %v1397_v21 = vadd.f32 %v2227_v15, %v1205_v19 }
 0x17f   : > { %v1429_v24 = vmax.f32 %v1365_v20, 0.0  ;;  %v1461_v25 = vmax.f32 %v1397_v21, 0.0 }
 0x181   : > { %v2306_v26 = vpack.c.bf16 %v1429_v24, %v1428_v22  ;;  %v2386_v27 = vpack.c.bf16 %v1461_v25, %v1460_v23 }
 0x183   : > { %2433 = vst [vmem:[%s2799_s30 + $0x78] sm:$0xff] %v2306_v26   ;;  %2449 = vst [vmem:[%s2799_s30 + $0xf8] sm:$0xff] %v2386_v27  }
 0x184 PF: > { %s15_s18 = sadd.s32 1, %s2590_s18  }
 0x185   : > { %p12_p4 = scmp.ge.s32.totalorder %s15_s18, 6  }
 0x187   :  { %14 = sbr.rel (!%p12_p4) target bundleno = 1 (0x1), region = 73 }

// kernel: _lambda_.11
= control target key start
LH: loop header
LB: loop body
LE: loop exit
PB: predicated region body
PF: predicated region fallthrough
CT: control target
= control target key end

     0   :  { %s2164_s27 = smov 0   ;;  %s2492_s0 = inlined_call_operand.vmem [shape: bf16[512,144], index: 0, kind: input, shape index: {}]   ;;  %s2493_s1 = inlined_call_operand.vmem [shape: bf16[144,128], index: 1, kind: input, shape index: {}]   ;;  %s2494_s2 = inlined_call_operand.vmem [shape: f32[1,128], index: 2, kind: input, shape index: {}]   ;;  %s2495_s3 = inlined_call_operand.vmem [shape: f32[1,128], index: 3, kind: input, shape index: {}]   ;;  %s2496_s4 = inlined_call_operand.vmem [shape: bf16[144,128], index: 4, kind: input, shape index: {}]   ;;  %s2497_s5 = inlined_call_operand.vmem [shape: f32[1,128], index: 5, kind: input, shape index: {}]   ;;  %s2498_s6 = inlined_call_operand.vmem [shape: f32[1,128], index: 6, kind: input, shape index: {}]   ;;  %s2499_s7 = inlined_call_operand.vmem [shape: bf16[512,128], index: 7, kind: output, shape index: {0}]   ;;  %s2500_s8 = inlined_call_operand.vmem [shape: bf16[512,128], index: 8, kind: output, shape index: {1}]  }
   0x1 LB: > { %s1616_s28 = sadd.s32 4294967295, %s2116_s27   ;;  %p1620_p0 = scmp.ge.s32.totalorder %s2116_s27, 1  ;;  %s2116_s27 = sphi %s2164_s27, %s19_s27  }
   0x2   : > { %p267_p1 = scmp.lt.s32.totalorder %s2116_s27, 3 }
   0x4   : > { %p268_p2 = pnand %p1620_p0, %p267_p1 }
   0x5   : > { %v2044_v0 = vld [vmem:[%s2493_s1] sm:$0xff] (!%p268_p2)   ;;  %v2118_v1 = vmov (!%p268_p2), 0   ;;  %v2046_v3 = vld [vmem:[%s2493_s1 + $0x8] sm:$0xff] (!%p268_p2)   ;;  %s1621_s13 = sshll.u32 (!%p268_p2), %s1616_s28, 5  ;;  %v2048_v5 = vld [vmem:[%s2493_s1 + $0x10] sm:$0xff] (!%p268_p2)   ;;  %vm575_vm0 = vcmask (!%p268_p2), 130048  }
   0x6   : > { %271 = sbr.rel (%p268_p2) target bundleno = 385 (0x181), region = 48  ;;  %624 = vmatprep.subr.bf16.mxu0 (!%p268_p2), %v2118_v1  ;;  %1127 = vmatprep.subr.bf16.mxu1 (!%p268_p2), %v2118_v1  ;;  %v2045_v2 = vld [vmem:[%s2496_s4] sm:$0xff] (!%p268_p2)   ;;  %v2047_v4 = vld [vmem:[%s2496_s4 + $0x8] sm:$0xff] (!%p268_p2)   ;;  %p308_p3 = scmp.lt.s32.totalorder (!%p268_p2), %s1621_s13, 63  ;;  %v2049_v6 = vld [vmem:[%s2496_s4 + $0x10] sm:$0xff] (!%p268_p2)  }
   0x7   : > { %625 = vmatpush1.bf16.msra.mxu0 (!%p268_p2), %v2044_v0  ;;  %1128 = vmatpush1.bf16.msra.mxu1 (!%p268_p2), %v2045_v2  ;;  %v2050_v7 = vld [vmem:[%s2493_s1 + $0x18] sm:$0xff] (!%p268_p2)   ;;  %v2052_v9 = vld [vmem:[%s2493_s1 + $0x20] sm:$0xff] (!%p268_p2)   ;;  %v2054_v11 = vld [vmem:[%s2493_s1 + $0x28] sm:$0xff] (!%p268_p2)  }
   0x8   : > { %626 = vmatprep.subr.bf16.mxu0 (!%p268_p2), %v2118_v1  ;;  %1129 = vmatprep.subr.bf16.mxu1 (!%p268_p2), %v2118_v1  ;;  %v2051_v8 = vld [vmem:[%s2496_s4 + $0x18] sm:$0xff] (!%p268_p2)   ;;  %v2053_v10 = vld [vmem:[%s2496_s4 + $0x20] sm:$0xff] (!%p268_p2)   ;;  %v2055_v12 = vld [vmem:[%s2496_s4 + $0x28] sm:$0xff] (!%p268_p2)  }
   0x9   : > { %v2056_v14 = vld [vmem:[%s2493_s1 + $0x30] sm:$0xff] (!%p268_p2)   ;;  %v2058_v16 = vld [vmem:[%s2493_s1 + $0x38] sm:$0xff] (!%p268_p2)   ;;  %v2060_v18 = vld [vmem:[%s2493_s1 + $0x40] sm:$0xff] (!%p268_p2)  }
   0xa   : > { %v2057_v15 = vld [vmem:[%s2496_s4 + $0x30] sm:$0xff] (!%p268_p2)   ;;  %v2059_v17 = vld [vmem:[%s2496_s4 + $0x38] sm:$0xff] (!%p268_p2)   ;;  %v2061_v19 = vld [vmem:[%s2496_s4 + $0x40] sm:$0xff] (!%p268_p2)  }
   0xb   : > { %627 = vmatpush1.bf16.msra.mxu0 (!%p268_p2), %v2046_v3  ;;  %1130 = vmatpush1.bf16.msra.mxu1 (!%p268_p2), %v2047_v4  ;;  %v2301_v51 = vld [vmem:[%s2494_s2] ss:$0 sm:$0xff] (!%p268_p2) }
   0xc   : > { %628 = vmatprep.subr.bf16.mxu0 (!%p268_p2), %v2118_v1  ;;  %1131 = vmatprep.subr.bf16.mxu1 (!%p268_p2), %v2118_v1  ;;  %v2306_v52 = vld [vmem:[%s2497_s5] ss:$0 sm:$0xff] (!%p268_p2) }
   0xd   : > { %s2502_s13 = smov (!%p308_p3, %s1621_s13), 63  ;;  %v2311_v54 = vld [vmem:[%s2495_s3] ss:$0 sm:$0xff] }
   0xe   : > { %s1780_s24 = sshll.u32 %s2502_s13, 3  ;;  %v2317_v57 = vld [vmem:[%s2498_s6] ss:$0 sm:$0xff]  ;;  %s1625_s16 = sshll.u32 %s2502_s13, 2 }
   0xf   : > { %629 = vmatpush1.bf16.msra.mxu0 %v2048_v5  ;;  %1132 = vmatpush1.bf16.msra.mxu1 %v2049_v6  ;;  %s2208_s10 = scalar_lea.vmem %s2492_s0, %s1780_s24  ;;  %s2330_s19 = scalar_lea.vmem %s2500_s8, %s1625_s16 }
  0x10   : > { %630 = vmatprep.subr.bf16.mxu0 %v2118_v1  ;;  %1133 = vmatprep.subr.bf16.mxu1 %v2118_v1  ;;  %v2064_v13 = vld [vmem:[%s2208_s10 + $0x4] ss:$8 sps:$4 sm:$0xff]   ;;  %v2062_v20 = vld [vmem:[%s2208_s10] ss:$8 sps:$4 sm:$0xff]   ;;  %v2065_v21 = vld [vmem:[%s2208_s10 + $0x14] ss:$8 sps:$4 sm:$0xff]   ;;  %s2335_s22 = scalar_lea.vmem %s2499_s7, %s1625_s16 }
  0x11   : > { %1669 = vmatprep.mubr.msk.bf16.mxu0 %vm575_vm0, %v2064_v13  ;;  %1728 = vmatprep.mubr.msk.bf16.mxu1 %vm575_vm0, %v2064_v13  ;;  %v2067_v22 = vld [vmem:[%s2208_s10 + $0x10] ss:$8 sps:$4 sm:$0xff]   ;;  %v2068_v23 = vld [vmem:[%s2208_s10 + $0x24] ss:$8 sps:$4 sm:$0xff]   ;;  %v2070_v24 = vld [vmem:[%s2208_s10 + $0x20] ss:$8 sps:$4 sm:$0xff]  }
  0x12   : > { %v2071_v25 = vld [vmem:[%s2208_s10 + $0x34] ss:$8 sps:$4 sm:$0xff]   ;;  %v2073_v26 = vld [vmem:[%s2208_s10 + $0x30] ss:$8 sps:$4 sm:$0xff]   ;;  %v2074_v27 = vld [vmem:[%s2208_s10 + $0x44] ss:$8 sps:$4 sm:$0xff]  }
  0x13   : > { %631 = vmatpush1.bf16.msra.mxu0 %v2050_v7  ;;  %1134 = vmatpush1.bf16.msra.mxu1 %v2051_v8  ;;  %v2076_v28 = vld [vmem:[%s2208_s10 + $0x40] ss:$8 sps:$4 sm:$0xff]   ;;  %v2077_v29 = vld [vmem:[%s2208_s10 + $0x54] ss:$8 sps:$4 sm:$0xff]   ;;  %v2079_v30 = vld [vmem:[%s2208_s10 + $0x50] ss:$8 sps:$4 sm:$0xff]  }
  0x14   : > { %632 = vmatprep.subr.bf16.mxu0 %v2118_v1  ;;  %1135 = vmatprep.subr.bf16.mxu1 %v2118_v1  ;;  %v2080_v31 = vld [vmem:[%s2208_s10 + $0x64] ss:$8 sps:$4 sm:$0xff]   ;;  %v2082_v32 = vld [vmem:[%s2208_s10 + $0x60] ss:$8 sps:$4 sm:$0xff]   ;;  %v2083_v33 = vld [vmem:[%s2208_s10 + $0x74] ss:$8 sps:$4 sm:$0xff]  }
  0x15   : > { %v2085_v34 = vld [vmem:[%s2208_s10 + $0x70] ss:$8 sps:$4 sm:$0xff]   ;;  %v2086_v35 = vld [vmem:[%s2208_s10 + $0x84] ss:$8 sps:$4 sm:$0xff]   ;;  %v2088_v36 = vld [vmem:[%s2208_s10 + $0x80] ss:$8 sps:$4 sm:$0xff]  }
  0x16   : > { %v2089_v37 = vld [vmem:[%s2208_s10 + $0x94] ss:$8 sps:$4 sm:$0xff]   ;;  %v2091_v38 = vld [vmem:[%s2208_s10 + $0x90] ss:$8 sps:$4 sm:$0xff]   ;;  %v2092_v39 = vld [vmem:[%s2208_s10 + $0xa4] ss:$8 sps:$4 sm:$0xff]  }
  0x17   : > { %633 = vmatpush1.bf16.msra.mxu0 %v2052_v9  ;;  %1136 = vmatpush1.bf16.msra.mxu1 %v2053_v10  ;;  %v2094_v40 = vld [vmem:[%s2208_s10 + $0xa0] ss:$8 sps:$4 sm:$0xff]   ;;  %v2095_v41 = vld [vmem:[%s2208_s10 + $0xb4] ss:$8 sps:$4 sm:$0xff]   ;;  %v2097_v42 = vld [vmem:[%s2208_s10 + $0xb0] ss:$8 sps:$4 sm:$0xff]  }
  0x18   : > { %634 = vmatprep.subr.bf16.mxu0 %v2118_v1  ;;  %1137 = vmatprep.subr.bf16.mxu1 %v2118_v1  ;;  %v2098_v43 = vld [vmem:[%s2208_s10 + $0xc4] ss:$8 sps:$4 sm:$0xff]   ;;  %v2100_v44 = vld [vmem:[%s2208_s10 + $0xc0] ss:$8 sps:$4 sm:$0xff]   ;;  %v2101_v45 = vld [vmem:[%s2208_s10 + $0xd4] ss:$8 sps:$4 sm:$0xff]  }
  0x19   : > { %v2103_v46 = vld [vmem:[%s2208_s10 + $0xd0] ss:$8 sps:$4 sm:$0xff]   ;;  %v2104_v47 = vld [vmem:[%s2208_s10 + $0xe4] ss:$8 sps:$4 sm:$0xff]   ;;  %v2106_v48 = vld [vmem:[%s2208_s10 + $0xe0] ss:$8 sps:$4 sm:$0xff]  }
  0x1a   : > { %v2107_v49 = vld [vmem:[%s2208_s10 + $0xf4] ss:$8 sps:$4 sm:$0xff]   ;;  %v2109_v50 = vld [vmem:[%s2208_s10 + $0xf0] ss:$8 sps:$4 sm:$0xff]  }
  0x1b   : > { %635 = vmatpush1.bf16.msra.mxu0 %v2054_v11  ;;  %1138 = vmatpush1.bf16.msra.mxu1 %v2055_v12 }
  0x1c   : > { %636 = vmatprep.subr.bf16.mxu0 %v2118_v1  ;;  %1139 = vmatprep.subr.bf16.mxu1 %v2118_v1 }
  0x1f   : > { %637 = vmatpush1.bf16.msra.mxu0 %v2056_v14  ;;  %1140 = vmatpush1.bf16.msra.mxu1 %v2057_v15 }
  0x20   : > { %638 = vmatprep.subr.bf16.mxu0 %v2118_v1  ;;  %1141 = vmatprep.subr.bf16.mxu1 %v2118_v1 }
  0x23   : > { %639 = vmatpush1.bf16.msra.mxu0 %v2058_v16  ;;  %1142 = vmatpush1.bf16.msra.mxu1 %v2059_v17 }
  0x24   : > { %640 = vmatprep.subr.bf16.mxu0 %v2118_v1  ;;  %1143 = vmatprep.subr.bf16.mxu1 %v2118_v1 }
  0x27   : > { %641 = vmatpush1.bf16.msra.mxu0 %v2060_v18  ;;  %1144 = vmatpush1.bf16.msra.mxu1 %v2061_v19 }
  0x2a   : > { %657 = vmatmul.mubr.bf16.vlgmr.msra.gmra.mrb[0].mxu0 %v2062_v20  ;;  %1160 = vmatmul.mubr.bf16.vlgmr.msra.gmra.mrb[0].mxu1 %v2062_v20 }
  0x2b   : > { %1670 = vmatprep.mubr.msk.bf16.mxu0 %vm575_vm0, %v2065_v21  ;;  %1729 = vmatprep.mubr.msk.bf16.mxu1 %vm575_vm0, %v2065_v21 }
  0x32   : > { %665 = vmatmul.mubr.bf16.gmra.mrb[4].mxu0 %v2067_v22  ;;  %1168 = vmatmul.mubr.bf16.gmra.mrb[4].mxu1 %v2067_v22 }
  0x33   : > { %1671 = vmatprep.mubr.msk.bf16.mxu0 %vm575_vm0, %v2068_v23  ;;  %1730 = vmatprep.mubr.msk.bf16.mxu1 %vm575_vm0, %v2068_v23 }
  0x3a   : > { %673 = vmatmul.mubr.bf16.gmra.mrb[8].mxu0 %v2070_v24  ;;  %1176 = vmatmul.mubr.bf16.gmra.mrb[8].mxu1 %v2070_v24 }
  0x3b   : > { %1672 = vmatprep.mubr.msk.bf16.mxu0 %vm575_vm0, %v2071_v25  ;;  %1731 = vmatprep.mubr.msk.bf16.mxu1 %vm575_vm0, %v2071_v25 }
  0x42   : > { %681 = vmatmul.mubr.bf16.gmra.mrb[12].mxu0 %v2073_v26  ;;  %1184 = vmatmul.mubr.bf16.gmra.mrb[12].mxu1 %v2073_v26 }
  0x43   : > { %1673 = vmatprep.mubr.msk.bf16.mxu0 %vm575_vm0, %v2074_v27  ;;  %1732 = vmatprep.mubr.msk.bf16.mxu1 %vm575_vm0, %v2074_v27 }
  0x4a   : > { %689 = vmatmul.mubr.bf16.gmra.mrb[16].mxu0 %v2076_v28  ;;  %1192 = vmatmul.mubr.bf16.gmra.mrb[16].mxu1 %v2076_v28 }
  0x4b   : > { %1674 = vmatprep.mubr.msk.bf16.mxu0 %vm575_vm0, %v2077_v29  ;;  %1733 = vmatprep.mubr.msk.bf16.mxu1 %vm575_vm0, %v2077_v29 }
  0x52   : > { %697 = vmatmul.mubr.bf16.gmra.mrb[20].mxu0 %v2079_v30  ;;  %1200 = vmatmul.mubr.bf16.gmra.mrb[20].mxu1 %v2079_v30 }
  0x53   : > { %1675 = vmatprep.mubr.msk.bf16.mxu0 %vm575_vm0, %v2080_v31  ;;  %1734 = vmatprep.mubr.msk.bf16.mxu1 %vm575_vm0, %v2080_v31 }
  0x5a   : > { %705 = vmatmul.mubr.bf16.gmra.mrb[24].mxu0 %v2082_v32  ;;  %1208 = vmatmul.mubr.bf16.gmra.mrb[24].mxu1 %v2082_v32 }
  0x5b   : > { %1676 = vmatprep.mubr.msk.bf16.mxu0 %vm575_vm0, %v2083_v33  ;;  %1735 = vmatprep.mubr.msk.bf16.mxu1 %vm575_vm0, %v2083_v33 }
  0x62   : > { %713 = vmatmul.mubr.bf16.gmra.mrb[28].mxu0 %v2085_v34  ;;  %1216 = vmatmul.mubr.bf16.gmra.mrb[28].mxu1 %v2085_v34 }
  0x63   : > { %1677 = vmatprep.mubr.msk.bf16.mxu0 %vm575_vm0, %v2086_v35  ;;  %1736 = vmatprep.mubr.msk.bf16.mxu1 %vm575_vm0, %v2086_v35 }
  0x6a   : > { %721 = vmatmul.mubr.bf16.gmra.mrb[32].mxu0 %v2088_v36  ;;  %1224 = vmatmul.mubr.bf16.gmra.mrb[32].mxu1 %v2088_v36 }
  0x6b   : > { %1678 = vmatprep.mubr.msk.bf16.mxu0 %vm575_vm0, %v2089_v37  ;;  %1737 = vmatprep.mubr.msk.bf16.mxu1 %vm575_vm0, %v2089_v37 }
  0x72   : > { %729 = vmatmul.mubr.bf16.gmra.mrb[36].mxu0 %v2091_v38  ;;  %1232 = vmatmul.mubr.bf16.gmra.mrb[36].mxu1 %v2091_v38 }
  0x73   : > { %1679 = vmatprep.mubr.msk.bf16.mxu0 %vm575_vm0, %v2092_v39  ;;  %1738 = vmatprep.mubr.msk.bf16.mxu1 %vm575_vm0, %v2092_v39 }
  0x7a   : > { %737 = vmatmul.mubr.bf16.gmra.mrb[40].mxu0 %v2094_v40  ;;  %1240 = vmatmul.mubr.bf16.gmra.mrb[40].mxu1 %v2094_v40 }
  0x7b   : > { %1680 = vmatprep.mubr.msk.bf16.mxu0 %vm575_vm0, %v2095_v41  ;;  %1739 = vmatprep.mubr.msk.bf16.mxu1 %vm575_vm0, %v2095_v41 }
  0x82   : > { %745 = vmatmul.mubr.bf16.gmra.mrb[44].mxu0 %v2097_v42  ;;  %1248 = vmatmul.mubr.bf16.gmra.mrb[44].mxu1 %v2097_v42 }
  0x83   : > { %1681 = vmatprep.mubr.msk.bf16.mxu0 %vm575_vm0, %v2098_v43  ;;  %1740 = vmatprep.mubr.msk.bf16.mxu1 %vm575_vm0, %v2098_v43 }
  0x8a   : > { %753 = vmatmul.mubr.bf16.gmra.mrb[48].mxu0 %v2100_v44  ;;  %1256 = vmatmul.mubr.bf16.gmra.mrb[48].mxu1 %v2100_v44 }
  0x8b   : > { %1682 = vmatprep.mubr.msk.bf16.mxu0 %vm575_vm0, %v2101_v45  ;;  %1741 = vmatprep.mubr.msk.bf16.mxu1 %vm575_vm0, %v2101_v45 }
  0x92   : > { %761 = vmatmul.mubr.bf16.gmra.mrb[52].mxu0 %v2103_v46  ;;  %1264 = vmatmul.mubr.bf16.gmra.mrb[52].mxu1 %v2103_v46 }
  0x93   : > { %1683 = vmatprep.mubr.msk.bf16.mxu0 %vm575_vm0, %v2104_v47  ;;  %1742 = vmatprep.mubr.msk.bf16.mxu1 %vm575_vm0, %v2104_v47 }
  0x9a   : > { %769 = vmatmul.mubr.bf16.gmra.mrb[56].mxu0 %v2106_v48  ;;  %1272 = vmatmul.mubr.bf16.gmra.mrb[56].mxu1 %v2106_v48 }
  0x9b   : > { %1684 = vmatprep.mubr.msk.bf16.mxu0 %vm575_vm0, %v2107_v49  ;;  %1743 = vmatprep.mubr.msk.bf16.mxu1 %vm575_vm0, %v2107_v49 }
  0xa2   : > { %777 = vmatmul.mubr.bf16.gmra.mrb[60].mxu0 %v2109_v50  ;;  %1280 = vmatmul.mubr.bf16.gmra.mrb[60].mxu1 %v2109_v50 }
  0xfd   : > { %v658_v53 = vpop.f32.mrb[0].mxu0  ;;  %v1161_v56 = vpop.f32.mrb[0].mxu1 }
  0xfe   : > { %v792_v55 = vmul.f32 %v2301_v51, %v658_v53  ;;  %v660_v58 = vpop.f32.mrb[1].mxu0  ;;  %v1295_v59 = vmul.f32 %v2306_v52, %v1161_v56  ;;  %v1163_v60 = vpop.f32.mrb[1].mxu1 }
  0xff   : > { %v661_v61 = vpop.f32.mrb[2].mxu0  ;;  %v1164_v0 = vpop.f32.mrb[2].mxu1 }
 0x100   : > { %v831_v62 = vadd.f32 %v2311_v54, %v792_v55  ;;  %v793_v63 = vmul.f32 %v2301_v51, %v661_v61  ;;  %v663_v1 = vpop.f32.mrb[3].mxu0  ;;  %v1334_v2 = vadd.f32 %v2317_v57, %v1295_v59  ;;  %v1296_v3 = vmul.f32 %v2306_v52, %v1164_v0  ;;  %v1166_v4 = vpop.f32.mrb[3].mxu1 }
 0x102   : > { %v832_v5 = vadd.f32 %v2311_v54, %v793_v63  ;;  %v1335_v6 = vadd.f32 %v2317_v57, %v1296_v3  ;;  %v863_v7 = vmax.f32 %v831_v62, 0.0 }
 0x104   : > { %v864_v8 = vmax.f32 %v832_v5, 0.0  ;;  %v1928_v9 = vpack.c.bf16 %v1335_v6, %v1334_v2 }
 0x105   : > { %v666_v10 = vpop.f32.mrb[4].mxu0  ;;  %v1169_v13 = vpop.f32.mrb[4].mxu1 }
 0x106   : > { %v1848_v11 = vpack.c.bf16 %v864_v8, %v863_v7  ;;  %v794_v12 = vmul.f32 %v2301_v51, %v666_v10  ;;  %v668_v14 = vpop.f32.mrb[5].mxu0  ;;  %1929 = vst [vmem:[%s2330_s19] sm:$0xff] %v1928_v9   ;;  %v1297_v15 = vmul.f32 %v2306_v52, %v1169_v13  ;;  %v1171_v16 = vpop.f32.mrb[5].mxu1 }
 0x107   : > { %v669_v17 = vpop.f32.mrb[6].mxu0  ;;  %v1172_v20 = vpop.f32.mrb[6].mxu1 }
 0x108   : > { %1849 = vst [vmem:[%s2335_s22] sm:$0xff] %v1848_v11   ;;  %v833_v18 = vadd.f32 %v2311_v54, %v794_v12  ;;  %v795_v19 = vmul.f32 %v2301_v51, %v669_v17  ;;  %v671_v21 = vpop.f32.mrb[7].mxu0  ;;  %v1336_v22 = vadd.f32 %v2317_v57, %v1297_v15  ;;  %v1298_v23 = vmul.f32 %v2306_v52, %v1172_v20  ;;  %v1174_v24 = vpop.f32.mrb[7].mxu1 }
 0x10a   : > { %v834_v25 = vadd.f32 %v2311_v54, %v795_v19  ;;  %v1337_v26 = vadd.f32 %v2317_v57, %v1298_v23  ;;  %v865_v27 = vmax.f32 %v833_v18, 0.0 }
 0x10c   : > { %v866_v28 = vmax.f32 %v834_v25, 0.0  ;;  %v1933_v29 = vpack.c.bf16 %v1337_v26, %v1336_v22 }
 0x10d   : > { %v674_v30 = vpop.f32.mrb[8].mxu0  ;;  %v1177_v33 = vpop.f32.mrb[8].mxu1 }
 0x10e   : > { %v1853_v31 = vpack.c.bf16 %v866_v28, %v865_v27  ;;  %v796_v32 = vmul.f32 %v2301_v51, %v674_v30  ;;  %v676_v34 = vpop.f32.mrb[9].mxu0  ;;  %2020 = vst [vmem:[%s2330_s19 + $0x8] sm:$0xff] %v1933_v29   ;;  %v1299_v35 = vmul.f32 %v2306_v52, %v1177_v33  ;;  %v1179_v36 = vpop.f32.mrb[9].mxu1 }
 0x10f   : > { %v677_v37 = vpop.f32.mrb[10].mxu0  ;;  %v1180_v40 = vpop.f32.mrb[10].mxu1 }
 0x110   : > { %2005 = vst [vmem:[%s2335_s22 + $0x8] sm:$0xff] %v1853_v31   ;;  %v835_v38 = vadd.f32 %v2311_v54, %v796_v32  ;;  %v797_v39 = vmul.f32 %v2301_v51, %v677_v37  ;;  %v679_v41 = vpop.f32.mrb[11].mxu0  ;;  %v1338_v42 = vadd.f32 %v2317_v57, %v1299_v35  ;;  %v1300_v43 = vmul.f32 %v2306_v52, %v1180_v40  ;;  %v1182_v44 = vpop.f32.mrb[11].mxu1 }
 0x112   : > { %v836_v45 = vadd.f32 %v2311_v54, %v797_v39  ;;  %v1339_v46 = vadd.f32 %v2317_v57, %v1300_v43  ;;  %v867_v47 = vmax.f32 %v835_v38, 0.0 }
 0x114   : > { %v868_v48 = vmax.f32 %v836_v45, 0.0  ;;  %v1938_v49 = vpack.c.bf16 %v1339_v46, %v1338_v42 }
 0x115   : > { %v682_v50 = vpop.f32.mrb[12].mxu0  ;;  %v1185_v56 = vpop.f32.mrb[12].mxu1 }
 0x116   : > { %v1858_v53 = vpack.c.bf16 %v868_v48, %v867_v47  ;;  %v798_v55 = vmul.f32 %v2301_v51, %v682_v50  ;;  %v684_v58 = vpop.f32.mrb[13].mxu0  ;;  %2021 = vst [vmem:[%s2330_s19 + $0x10] sm:$0xff] %v1938_v49   ;;  %v1301_v59 = vmul.f32 %v2306_v52, %v1185_v56  ;;  %v1187_v60 = vpop.f32.mrb[13].mxu1 }
 0x117   : > { %v685_v61 = vpop.f32.mrb[14].mxu0  ;;  %v1188_v0 = vpop.f32.mrb[14].mxu1 }
 0x118   : > { %2006 = vst [vmem:[%s2335_s22 + $0x10] sm:$0xff] %v1858_v53   ;;  %v837_v62 = vadd.f32 %v2311_v54, %v798_v55  ;;  %v799_v63 = vmul.f32 %v2301_v51, %v685_v61  ;;  %v687_v1 = vpop.f32.mrb[15].mxu0  ;;  %v1340_v2 = vadd.f32 %v2317_v57, %v1301_v59  ;;  %v1302_v3 = vmul.f32 %v2306_v52, %v1188_v0  ;;  %v1190_v4 = vpop.f32.mrb[15].mxu1 }
 0x11a   : > { %v838_v5 = vadd.f32 %v2311_v54, %v799_v63  ;;  %v1341_v6 = vadd.f32 %v2317_v57, %v1302_v3  ;;  %v869_v7 = vmax.f32 %v837_v62, 0.0 }
 0x11c   : > { %v870_v8 = vmax.f32 %v838_v5, 0.0  ;;  %v1943_v9 = vpack.c.bf16 %v1341_v6, %v1340_v2 }
 0x11d   : > { %v690_v10 = vpop.f32.mrb[16].mxu0  ;;  %v1193_v13 = vpop.f32.mrb[16].mxu1 }
 0x11e   : > { %v1863_v11 = vpack.c.bf16 %v870_v8, %v869_v7  ;;  %v800_v12 = vmul.f32 %v2301_v51, %v690_v10  ;;  %v692_v14 = vpop.f32.mrb[17].mxu0  ;;  %2022 = vst [vmem:[%s2330_s19 + $0x18] sm:$0xff] %v1943_v9   ;;  %v1303_v15 = vmul.f32 %v2306_v52, %v1193_v13  ;;  %v1195_v16 = vpop.f32.mrb[17].mxu1 }
 0x11f   : > { %v693_v17 = vpop.f32.mrb[18].mxu0  ;;  %v1196_v20 = vpop.f32.mrb[18].mxu1 }
 0x120   : > { %2007 = vst [vmem:[%s2335_s22 + $0x18] sm:$0xff] %v1863_v11   ;;  %v839_v18 = vadd.f32 %v2311_v54, %v800_v12  ;;  %v801_v19 = vmul.f32 %v2301_v51, %v693_v17  ;;  %v695_v21 = vpop.f32.mrb[19].mxu0  ;;  %v1342_v22 = vadd.f32 %v2317_v57, %v1303_v15  ;;  %v1304_v23 = vmul.f32 %v2306_v52, %v1196_v20  ;;  %v1198_v24 = vpop.f32.mrb[19].mxu1 }
 0x122   : > { %v840_v25 = vadd.f32 %v2311_v54, %v801_v19  ;;  %v1343_v26 = vadd.f32 %v2317_v57, %v1304_v23  ;;  %v871_v27 = vmax.f32 %v839_v18, 0.0 }
 0x124   : > { %v872_v28 = vmax.f32 %v840_v25, 0.0  ;;  %v1948_v29 = vpack.c.bf16 %v1343_v26, %v1342_v22 }
 0x125   : > { %v698_v30 = vpop.f32.mrb[20].mxu0  ;;  %v1201_v33 = vpop.f32.mrb[20].mxu1 }
 0x126   : > { %v1868_v31 = vpack.c.bf16 %v872_v28, %v871_v27  ;;  %v802_v32 = vmul.f32 %v2301_v51, %v698_v30  ;;  %v700_v34 = vpop.f32.mrb[21].mxu0  ;;  %2023 = vst [vmem:[%s2330_s19 + $0x20] sm:$0xff] %v1948_v29   ;;  %v1305_v35 = vmul.f32 %v2306_v52, %v1201_v33  ;;  %v1203_v36 = vpop.f32.mrb[21].mxu1 }
 0x127   : > { %v701_v37 = vpop.f32.mrb[22].mxu0  ;;  %v1204_v40 = vpop.f32.mrb[22].mxu1 }
 0x128   : > { %2008 = vst [vmem:[%s2335_s22 + $0x20] sm:$0xff] %v1868_v31   ;;  %v841_v38 = vadd.f32 %v2311_v54, %v802_v32  ;;  %v803_v39 = vmul.f32 %v2301_v51, %v701_v37  ;;  %v703_v41 = vpop.f32.mrb[23].mxu0  ;;  %v1344_v42 = vadd.f32 %v2317_v57, %v1305_v35  ;;  %v1306_v43 = vmul.f32 %v2306_v52, %v1204_v40  ;;  %v1206_v44 = vpop.f32.mrb[23].mxu1 }
 0x12a   : > { %v842_v45 = vadd.f32 %v2311_v54, %v803_v39  ;;  %v1345_v46 = vadd.f32 %v2317_v57, %v1306_v43  ;;  %v873_v47 = vmax.f32 %v841_v38, 0.0 }
 0x12c   : > { %v874_v48 = vmax.f32 %v842_v45, 0.0  ;;  %v1953_v49 = vpack.c.bf16 %v1345_v46, %v1344_v42 }
 0x12d   : > { %v706_v50 = vpop.f32.mrb[24].mxu0  ;;  %v1209_v56 = vpop.f32.mrb[24].mxu1 }
 0x12e   : > { %v1873_v53 = vpack.c.bf16 %v874_v48, %v873_v47  ;;  %v804_v55 = vmul.f32 %v2301_v51, %v706_v50  ;;  %v708_v58 = vpop.f32.mrb[25].mxu0  ;;  %2024 = vst [vmem:[%s2330_s19 + $0x28] sm:$0xff] %v1953_v49   ;;  %v1307_v59 = vmul.f32 %v2306_v52, %v1209_v56  ;;  %v1211_v60 = vpop.f32.mrb[25].mxu1 }
 0x12f   : > { %v709_v61 = vpop.f32.mrb[26].mxu0  ;;  %v1212_v0 = vpop.f32.mrb[26].mxu1 }
 0x130   : > { %2009 = vst [vmem:[%s2335_s22 + $0x28] sm:$0xff] %v1873_v53   ;;  %v843_v62 = vadd.f32 %v2311_v54, %v804_v55  ;;  %v805_v63 = vmul.f32 %v2301_v51, %v709_v61  ;;  %v711_v1 = vpop.f32.mrb[27].mxu0  ;;  %v1346_v2 = vadd.f32 %v2317_v57, %v1307_v59  ;;  %v1308_v3 = vmul.f32 %v2306_v52, %v1212_v0  ;;  %v1214_v4 = vpop.f32.mrb[27].mxu1 }
 0x132   : > { %v844_v5 = vadd.f32 %v2311_v54, %v805_v63  ;;  %v1347_v6 = vadd.f32 %v2317_v57, %v1308_v3  ;;  %v875_v7 = vmax.f32 %v843_v62, 0.0 }
 0x134   : > { %v876_v8 = vmax.f32 %v844_v5, 0.0  ;;  %v1958_v9 = vpack.c.bf16 %v1347_v6, %v1346_v2 }
 0x135   : > { %v714_v10 = vpop.f32.mrb[28].mxu0  ;;  %v1217_v13 = vpop.f32.mrb[28].mxu1 }
 0x136   : > { %v1878_v11 = vpack.c.bf16 %v876_v8, %v875_v7  ;;  %v806_v12 = vmul.f32 %v2301_v51, %v714_v10  ;;  %v716_v14 = vpop.f32.mrb[29].mxu0  ;;  %2025 = vst [vmem:[%s2330_s19 + $0x30] sm:$0xff] %v1958_v9   ;;  %v1309_v15 = vmul.f32 %v2306_v52, %v1217_v13  ;;  %v1219_v16 = vpop.f32.mrb[29].mxu1 }
 0x137   : > { %v717_v17 = vpop.f32.mrb[30].mxu0  ;;  %v1220_v20 = vpop.f32.mrb[30].mxu1 }
 0x138   : > { %2010 = vst [vmem:[%s2335_s22 + $0x30] sm:$0xff] %v1878_v11   ;;  %v845_v18 = vadd.f32 %v2311_v54, %v806_v12  ;;  %v807_v19 = vmul.f32 %v2301_v51, %v717_v17  ;;  %v719_v21 = vpop.f32.mrb[31].mxu0  ;;  %v1348_v22 = vadd.f32 %v2317_v57, %v1309_v15  ;;  %v1310_v23 = vmul.f32 %v2306_v52, %v1220_v20  ;;  %v1222_v24 = vpop.f32.mrb[31].mxu1 }
 0x13a   : > { %v846_v25 = vadd.f32 %v2311_v54, %v807_v19  ;;  %v1349_v26 = vadd.f32 %v2317_v57, %v1310_v23  ;;  %v877_v27 = vmax.f32 %v845_v18, 0.0 }
 0x13c   : > { %v878_v28 = vmax.f32 %v846_v25, 0.0  ;;  %v1963_v29 = vpack.c.bf16 %v1349_v26, %v1348_v22 }
 0x13d   : > { %v722_v30 = vpop.f32.mrb[32].mxu0  ;;  %v1225_v33 = vpop.f32.mrb[32].mxu1 }
 0x13e   : > { %v1883_v31 = vpack.c.bf16 %v878_v28, %v877_v27  ;;  %v808_v32 = vmul.f32 %v2301_v51, %v722_v30  ;;  %v724_v34 = vpop.f32.mrb[33].mxu0  ;;  %2026 = vst [vmem:[%s2330_s19 + $0x38] sm:$0xff] %v1963_v29   ;;  %v1311_v35 = vmul.f32 %v2306_v52, %v1225_v33  ;;  %v1227_v36 = vpop.f32.mrb[33].mxu1 }
 0x13f   : > { %v725_v37 = vpop.f32.mrb[34].mxu0  ;;  %v1228_v40 = vpop.f32.mrb[34].mxu1 }
 0x140   : > { %2011 = vst [vmem:[%s2335_s22 + $0x38] sm:$0xff] %v1883_v31   ;;  %v847_v38 = vadd.f32 %v2311_v54, %v808_v32  ;;  %v809_v39 = vmul.f32 %v2301_v51, %v725_v37  ;;  %v727_v41 = vpop.f32.mrb[35].mxu0  ;;  %v1350_v42 = vadd.f32 %v2317_v57, %v1311_v35  ;;  %v1312_v43 = vmul.f32 %v2306_v52, %v1228_v40  ;;  %v1230_v44 = vpop.f32.mrb[35].mxu1 }
 0x142   : > { %v848_v45 = vadd.f32 %v2311_v54, %v809_v39  ;;  %v1351_v46 = vadd.f32 %v2317_v57, %v1312_v43  ;;  %v879_v47 = vmax.f32 %v847_v38, 0.0 }
 0x144   : > { %v880_v48 = vmax.f32 %v848_v45, 0.0  ;;  %v1968_v49 = vpack.c.bf16 %v1351_v46, %v1350_v42 }
 0x145   : > { %v730_v50 = vpop.f32.mrb[36].mxu0  ;;  %v1233_v56 = vpop.f32.mrb[36].mxu1 }
 0x146   : > { %v1888_v53 = vpack.c.bf16 %v880_v48, %v879_v47  ;;  %v810_v55 = vmul.f32 %v2301_v51, %v730_v50  ;;  %v732_v58 = vpop.f32.mrb[37].mxu0  ;;  %2027 = vst [vmem:[%s2330_s19 + $0x40] sm:$0xff] %v1968_v49   ;;  %v1313_v59 = vmul.f32 %v2306_v52, %v1233_v56  ;;  %v1235_v60 = vpop.f32.mrb[37].mxu1 }
 0x147   : > { %v733_v61 = vpop.f32.mrb[38].mxu0  ;;  %v1236_v0 = vpop.f32.mrb[38].mxu1 }
 0x148   : > { %2012 = vst [vmem:[%s2335_s22 + $0x40] sm:$0xff] %v1888_v53   ;;  %v849_v62 = vadd.f32 %v2311_v54, %v810_v55  ;;  %v811_v63 = vmul.f32 %v2301_v51, %v733_v61  ;;  %v735_v1 = vpop.f32.mrb[39].mxu0  ;;  %v1352_v2 = vadd.f32 %v2317_v57, %v1313_v59  ;;  %v1314_v3 = vmul.f32 %v2306_v52, %v1236_v0  ;;  %v1238_v4 = vpop.f32.mrb[39].mxu1 }
 0x14a   : > { %v850_v5 = vadd.f32 %v2311_v54, %v811_v63  ;;  %v1353_v6 = vadd.f32 %v2317_v57, %v1314_v3  ;;  %v881_v7 = vmax.f32 %v849_v62, 0.0 }
 0x14c   : > { %v882_v8 = vmax.f32 %v850_v5, 0.0  ;;  %v1973_v9 = vpack.c.bf16 %v1353_v6, %v1352_v2 }
 0x14d   : > { %v738_v10 = vpop.f32.mrb[40].mxu0  ;;  %v1241_v13 = vpop.f32.mrb[40].mxu1 }
 0x14e   : > { %v1893_v11 = vpack.c.bf16 %v882_v8, %v881_v7  ;;  %v812_v12 = vmul.f32 %v2301_v51, %v738_v10  ;;  %v740_v14 = vpop.f32.mrb[41].mxu0  ;;  %2028 = vst [vmem:[%s2330_s19 + $0x48] sm:$0xff] %v1973_v9   ;;  %v1315_v15 = vmul.f32 %v2306_v52, %v1241_v13  ;;  %v1243_v16 = vpop.f32.mrb[41].mxu1 }
 0x14f   : > { %v741_v17 = vpop.f32.mrb[42].mxu0  ;;  %v1244_v20 = vpop.f32.mrb[42].mxu1 }
 0x150   : > { %2013 = vst [vmem:[%s2335_s22 + $0x48] sm:$0xff] %v1893_v11   ;;  %v851_v18 = vadd.f32 %v2311_v54, %v812_v12  ;;  %v813_v19 = vmul.f32 %v2301_v51, %v741_v17  ;;  %v743_v21 = vpop.f32.mrb[43].mxu0  ;;  %v1354_v22 = vadd.f32 %v2317_v57, %v1315_v15  ;;  %v1316_v23 = vmul.f32 %v2306_v52, %v1244_v20  ;;  %v1246_v24 = vpop.f32.mrb[43].mxu1 }
 0x152   : > { %v852_v25 = vadd.f32 %v2311_v54, %v813_v19  ;;  %v1355_v26 = vadd.f32 %v2317_v57, %v1316_v23  ;;  %v883_v27 = vmax.f32 %v851_v18, 0.0 }
 0x154   : > { %v884_v28 = vmax.f32 %v852_v25, 0.0  ;;  %v1978_v29 = vpack.c.bf16 %v1355_v26, %v1354_v22 }
 0x155   : > { %v746_v30 = vpop.f32.mrb[44].mxu0  ;;  %v1249_v33 = vpop.f32.mrb[44].mxu1 }
 0x156   : > { %v1898_v31 = vpack.c.bf16 %v884_v28, %v883_v27  ;;  %v814_v32 = vmul.f32 %v2301_v51, %v746_v30  ;;  %v748_v34 = vpop.f32.mrb[45].mxu0  ;;  %2029 = vst [vmem:[%s2330_s19 + $0x50] sm:$0xff] %v1978_v29   ;;  %v1317_v35 = vmul.f32 %v2306_v52, %v1249_v33  ;;  %v1251_v36 = vpop.f32.mrb[45].mxu1 }
 0x157   : > { %v749_v37 = vpop.f32.mrb[46].mxu0  ;;  %v1252_v40 = vpop.f32.mrb[46].mxu1 }
 0x158   : > { %2014 = vst [vmem:[%s2335_s22 + $0x50] sm:$0xff] %v1898_v31   ;;  %v853_v38 = vadd.f32 %v2311_v54, %v814_v32  ;;  %v815_v39 = vmul.f32 %v2301_v51, %v749_v37  ;;  %v751_v41 = vpop.f32.mrb[47].mxu0  ;;  %v1356_v42 = vadd.f32 %v2317_v57, %v1317_v35  ;;  %v1318_v43 = vmul.f32 %v2306_v52, %v1252_v40  ;;  %v1254_v44 = vpop.f32.mrb[47].mxu1 }
 0x15a   : > { %v854_v45 = vadd.f32 %v2311_v54, %v815_v39  ;;  %v1357_v46 = vadd.f32 %v2317_v57, %v1318_v43  ;;  %v885_v47 = vmax.f32 %v853_v38, 0.0 }
 0x15c   : > { %v886_v48 = vmax.f32 %v854_v45, 0.0  ;;  %v1983_v49 = vpack.c.bf16 %v1357_v46, %v1356_v42 }
 0x15d   : > { %v754_v50 = vpop.f32.mrb[48].mxu0  ;;  %v1257_v56 = vpop.f32.mrb[48].mxu1 }
 0x15e   : > { %v1903_v53 = vpack.c.bf16 %v886_v48, %v885_v47  ;;  %v816_v55 = vmul.f32 %v2301_v51, %v754_v50  ;;  %v756_v58 = vpop.f32.mrb[49].mxu0  ;;  %2030 = vst [vmem:[%s2330_s19 + $0x58] sm:$0xff] %v1983_v49   ;;  %v1319_v59 = vmul.f32 %v2306_v52, %v1257_v56  ;;  %v1259_v60 = vpop.f32.mrb[49].mxu1 }
 0x15f   : > { %v757_v61 = vpop.f32.mrb[50].mxu0  ;;  %v1260_v0 = vpop.f32.mrb[50].mxu1 }
 0x160   : > { %2015 = vst [vmem:[%s2335_s22 + $0x58] sm:$0xff] %v1903_v53   ;;  %v855_v62 = vadd.f32 %v2311_v54, %v816_v55  ;;  %v817_v63 = vmul.f32 %v2301_v51, %v757_v61  ;;  %v759_v1 = vpop.f32.mrb[51].mxu0  ;;  %v1358_v2 = vadd.f32 %v2317_v57, %v1319_v59  ;;  %v1320_v3 = vmul.f32 %v2306_v52, %v1260_v0  ;;  %v1262_v4 = vpop.f32.mrb[51].mxu1 }
 0x162   : > { %v856_v5 = vadd.f32 %v2311_v54, %v817_v63  ;;  %v1359_v6 = vadd.f32 %v2317_v57, %v1320_v3  ;;  %v887_v7 = vmax.f32 %v855_v62, 0.0 }
 0x164   : > { %v888_v8 = vmax.f32 %v856_v5, 0.0  ;;  %v1988_v9 = vpack.c.bf16 %v1359_v6, %v1358_v2 }
 0x165   : > { %v762_v10 = vpop.f32.mrb[52].mxu0  ;;  %v1265_v13 = vpop.f32.mrb[52].mxu1 }
 0x166   : > { %v1908_v11 = vpack.c.bf16 %v888_v8, %v887_v7  ;;  %v818_v12 = vmul.f32 %v2301_v51, %v762_v10  ;;  %v764_v14 = vpop.f32.mrb[53].mxu0  ;;  %2031 = vst [vmem:[%s2330_s19 + $0x60] sm:$0xff] %v1988_v9   ;;  %v1321_v15 = vmul.f32 %v2306_v52, %v1265_v13  ;;  %v1267_v16 = vpop.f32.mrb[53].mxu1 }
 0x167   : > { %v765_v17 = vpop.f32.mrb[54].mxu0  ;;  %v1268_v20 = vpop.f32.mrb[54].mxu1 }
 0x168   : > { %2016 = vst [vmem:[%s2335_s22 + $0x60] sm:$0xff] %v1908_v11   ;;  %v857_v18 = vadd.f32 %v2311_v54, %v818_v12  ;;  %v819_v19 = vmul.f32 %v2301_v51, %v765_v17  ;;  %v767_v21 = vpop.f32.mrb[55].mxu0  ;;  %v1360_v22 = vadd.f32 %v2317_v57, %v1321_v15  ;;  %v1322_v23 = vmul.f32 %v2306_v52, %v1268_v20  ;;  %v1270_v24 = vpop.f32.mrb[55].mxu1 }
 0x16a   : > { %v858_v25 = vadd.f32 %v2311_v54, %v819_v19  ;;  %v1361_v26 = vadd.f32 %v2317_v57, %v1322_v23  ;;  %v889_v27 = vmax.f32 %v857_v18, 0.0 }
 0x16c   : > { %v890_v28 = vmax.f32 %v858_v25, 0.0  ;;  %v1993_v29 = vpack.c.bf16 %v1361_v26, %v1360_v22 }
 0x16d   : > { %v770_v30 = vpop.f32.mrb[56].mxu0  ;;  %v1273_v33 = vpop.f32.mrb[56].mxu1 }
 0x16e   : > { %v1913_v31 = vpack.c.bf16 %v890_v28, %v889_v27  ;;  %v820_v32 = vmul.f32 %v2301_v51, %v770_v30  ;;  %v772_v34 = vpop.f32.mrb[57].mxu0  ;;  %2032 = vst [vmem:[%s2330_s19 + $0x68] sm:$0xff] %v1993_v29   ;;  %v1323_v35 = vmul.f32 %v2306_v52, %v1273_v33  ;;  %v1275_v36 = vpop.f32.mrb[57].mxu1 }
 0x16f   : > { %v773_v37 = vpop.f32.mrb[58].mxu0  ;;  %v1276_v40 = vpop.f32.mrb[58].mxu1 }
 0x170   : > { %2017 = vst [vmem:[%s2335_s22 + $0x68] sm:$0xff] %v1913_v31   ;;  %v859_v38 = vadd.f32 %v2311_v54, %v820_v32  ;;  %v821_v39 = vmul.f32 %v2301_v51, %v773_v37  ;;  %v775_v41 = vpop.f32.mrb[59].mxu0  ;;  %v1362_v42 = vadd.f32 %v2317_v57, %v1323_v35  ;;  %v1324_v43 = vmul.f32 %v2306_v52, %v1276_v40  ;;  %v1278_v44 = vpop.f32.mrb[59].mxu1 }
 0x172   : > { %v860_v45 = vadd.f32 %v2311_v54, %v821_v39  ;;  %v1363_v46 = vadd.f32 %v2317_v57, %v1324_v43  ;;  %v891_v47 = vmax.f32 %v859_v38, 0.0 }
 0x174   : > { %v892_v48 = vmax.f32 %v860_v45, 0.0  ;;  %v1998_v49 = vpack.c.bf16 %v1363_v46, %v1362_v42 }
 0x175   : > { %v778_v50 = vpop.f32.mrb[60].mxu0  ;;  %v1281_v56 = vpop.f32.mrb[60].mxu1 }
 0x176   : > { %v1918_v53 = vpack.c.bf16 %v892_v48, %v891_v47  ;;  %v822_v55 = vmul.f32 %v2301_v51, %v778_v50  ;;  %v780_v58 = vpop.f32.mrb[61].mxu0  ;;  %2033 = vst [vmem:[%s2330_s19 + $0x70] sm:$0xff] %v1998_v49   ;;  %v1325_v59 = vmul.f32 %v2306_v52, %v1281_v56  ;;  %v1283_v60 = vpop.f32.mrb[61].mxu1 }
 0x177   : > { %v781_v61 = vpop.f32.mrb[62].mxu0  ;;  %v1284_v0 = vpop.f32.mrb[62].mxu1 }
 0x178   : > { %2018 = vst [vmem:[%s2335_s22 + $0x70] sm:$0xff] %v1918_v53   ;;  %v861_v62 = vadd.f32 %v2311_v54, %v822_v55  ;;  %v823_v63 = vmul.f32 %v2301_v51, %v781_v61  ;;  %v783_v1 = vpop.f32.mrb[63].mxu0  ;;  %v1364_v2 = vadd.f32 %v2317_v57, %v1325_v59  ;;  %v1326_v3 = vmul.f32 %v2306_v52, %v1284_v0  ;;  %v1286_v4 = vpop.f32.mrb[63].mxu1 }
 0x17a   : > { %v862_v5 = vadd.f32 %v2311_v54, %v823_v63  ;;  %v1365_v6 = vadd.f32 %v2317_v57, %v1326_v3  ;;  %v893_v7 = vmax.f32 %v861_v62, 0.0 }
 0x17c   : > { %v894_v8 = vmax.f32 %v862_v5, 0.0  ;;  %v2003_v9 = vpack.c.bf16 %v1365_v6, %v1364_v2 }
 0x17e   : > { %v1923_v10 = vpack.c.bf16 %v894_v8, %v893_v7  ;;  %2034 = vst [vmem:[%s2330_s19 + $0x78] sm:$0xff] %v2003_v9  }
 0x180   : > { %2019 = vst [vmem:[%s2335_s22 + $0x78] sm:$0xff] %v1923_v10  }
 0x181 PF: > { %s19_s27 = sadd.s32 1, %s2116_s27  }
 0x182   : > { %p16_p4 = scmp.ge.s32.totalorder %s19_s27, 4  }
 0x184   :  { %18 = sbr.rel (!%p16_p4) target bundleno = 1 (0x1), region = 90 }

// kernel: _lambda_.12
= control target key start
LH: loop header
LB: loop body
LE: loop exit
PB: predicated region body
PF: predicated region fallthrough
CT: control target
= control target key end

     0   :  { %s2153_s18 = smov 0   ;;  %s2481_s0 = inlined_call_operand.vmem [shape: bf16[512,288], index: 0, kind: input, shape index: {}]   ;;  %s2482_s1 = inlined_call_operand.vmem [shape: bf16[288,128], index: 1, kind: input, shape index: {}]   ;;  %s2483_s2 = inlined_call_operand.vmem [shape: f32[1,128], index: 2, kind: input, shape index: {}]   ;;  %s2484_s3 = inlined_call_operand.vmem [shape: f32[1,128], index: 3, kind: input, shape index: {}]   ;;  %s2485_s4 = inlined_call_operand.vmem [shape: bf16[512,128], index: 4, kind: input, shape index: {}]   ;;  %s2486_s5 = inlined_call_operand.vmem [shape: bf16[512,128], index: 5, kind: output, shape index: {}]  }
   0x1 LB: > { %s1507_s19 = sadd.s32 4294967295, %s2121_s18   ;;  %p1511_p0 = scmp.ge.s32.totalorder %s2121_s18, 1  ;;  %s2121_s18 = sphi %s2153_s18, %s15_s18  }
   0x2   : > { %p200_p1 = scmp.lt.s32.totalorder %s2121_s18, 3 }
   0x4   : > { %p201_p2 = pnand %p1511_p0, %p200_p1 }
   0x5   : > { %v2033_v0 = vld [vmem:[%s2482_s1 + $0x40] sm:$0xff] (!%p201_p2)   ;;  %s1512_s22 = sshll.u32 (!%p201_p2), %s1507_s19, 5  ;;  %v2035_v2 = vld [vmem:[%s2482_s1 + $0x48] sm:$0xff] (!%p201_p2)   ;;  %v2037_v4 = vld [vmem:[%s2482_s1 + $0x50] sm:$0xff] (!%p201_p2)   ;;  %vm702_vm0 = vcmask (!%p201_p2), 261120  }
   0x6   : > { %204 = sbr.rel (%p201_p2) target bundleno = 358 (0x166), region = 40  ;;  %v2034_v1 = vld [vmem:[%s2482_s1] sm:$0xff] (!%p201_p2)   ;;  %1842 = vmatprep.subr.bf16.mxu0 (!%p201_p2), %v2033_v0  ;;  %2008 = vmatprep.subr.bf16.mxu1 (!%p201_p2), %v2033_v0  ;;  %p235_p3 = scmp.lt.s32.totalorder (!%p201_p2), %s1512_s22, 63  ;;  %v2036_v3 = vld [vmem:[%s2482_s1 + $0x8] sm:$0xff] (!%p201_p2)   ;;  %v2038_v5 = vld [vmem:[%s2482_s1 + $0x10] sm:$0xff] (!%p201_p2)  }
   0x7   : > { %1843 = vmatpush3.bf16.msra.mxu0 (!%p201_p2), %v2034_v1  ;;  %2016 = vmatpush3.bf16.msra.mxu1 (!%p201_p2), %v2034_v1  ;;  %v2039_v6 = vld [vmem:[%s2482_s1 + $0x58] sm:$0xff] (!%p201_p2)   ;;  %v2041_v8 = vld [vmem:[%s2482_s1 + $0x60] sm:$0xff] (!%p201_p2)   ;;  %v2043_v10 = vld [vmem:[%s2482_s1 + $0x68] sm:$0xff] (!%p201_p2)  }
   0x8   : > { %1844 = vmatprep.subr.bf16.mxu0 (!%p201_p2), %v2035_v2  ;;  %2009 = vmatprep.subr.bf16.mxu1 (!%p201_p2), %v2035_v2  ;;  %v2040_v7 = vld [vmem:[%s2482_s1 + $0x18] sm:$0xff] (!%p201_p2)   ;;  %v2042_v9 = vld [vmem:[%s2482_s1 + $0x20] sm:$0xff] (!%p201_p2)   ;;  %v2044_v13 = vld [vmem:[%s2482_s1 + $0x28] sm:$0xff] (!%p201_p2)  }
   0x9   : > { %v2045_v14 = vld [vmem:[%s2482_s1 + $0x70] sm:$0xff] (!%p201_p2)   ;;  %v2047_v16 = vld [vmem:[%s2482_s1 + $0x78] sm:$0xff] (!%p201_p2)   ;;  %v2055_v18 = vld [vmem:[%s2482_s1 + $0x80] sm:$0xff] (!%p201_p2)  }
   0xa   : > { %v2046_v15 = vld [vmem:[%s2482_s1 + $0x30] sm:$0xff] (!%p201_p2)   ;;  %v2048_v17 = vld [vmem:[%s2482_s1 + $0x38] sm:$0xff] (!%p201_p2)   ;;  %v2068_v23 = vld [vmem:[%s2482_s1 + $0x88] sm:$0xff] (!%p201_p2)  }
   0xb   : > { %1845 = vmatpush3.bf16.msra.mxu0 (!%p201_p2), %v2036_v3  ;;  %2017 = vmatpush3.bf16.msra.mxu1 (!%p201_p2), %v2036_v3 }
   0xc   : > { %1846 = vmatprep.subr.bf16.mxu0 (!%p201_p2), %v2037_v4  ;;  %2010 = vmatprep.subr.bf16.mxu1 (!%p201_p2), %v2037_v4 }
   0xd   : > { %s2488_s22 = smov (!%p235_p3, %s1512_s22), 63 }
   0xe   : > { %s2024_s10 = smul.u32 12, %s2488_s22  ;;  %s1515_s13 = sshll.u32 %s2488_s22, 2 }
   0xf   : > { %1847 = vmatpush3.bf16.msra.mxu0 %v2038_v5  ;;  %2018 = vmatpush3.bf16.msra.mxu1 %v2038_v5  ;;  %s2313_s16 = scalar_lea.vmem %s2485_s4, %s1515_s13  ;;  %s2348_s25 = scalar_lea.vmem %s2486_s5, %s1515_s13 }
  0x10   : > { %1848 = vmatprep.subr.bf16.mxu0 %v2039_v6  ;;  %2011 = vmatprep.subr.bf16.mxu1 %v2039_v6  ;;  %s2194_s17 = scalar_lea.vmem %s2481_s0, %s2024_s10 }
  0x11   : > { %v2051_v11 = vld [vmem:[%s2194_s17 + $0x4] ss:$12 sps:$4 sm:$0xff]   ;;  %v2049_v19 = vld [vmem:[%s2194_s17] ss:$12 sps:$4 sm:$0xff]   ;;  %v2056_v21 = vld [vmem:[%s2194_s17 + $0x1c] ss:$12 sps:$4 sm:$0xff]  }
  0x12   : > { %v2054_v12 = vld [vmem:[%s2194_s17 + $0x124] ss:$12 sps:$4 sm:$0xff]   ;;  %783 = vmatprep.mubr.bf16.mxu0 %v2051_v11  ;;  %v2052_v20 = vld [vmem:[%s2194_s17 + $0x120] ss:$12 sps:$4 sm:$0xff]   ;;  %v2058_v22 = vld [vmem:[%s2194_s17 + $0x13c] ss:$12 sps:$4 sm:$0xff]  }
  0x13   : > { %1849 = vmatpush3.bf16.msra.mxu0 %v2040_v7  ;;  %2019 = vmatpush3.bf16.msra.mxu1 %v2040_v7  ;;  %v2060_v24 = vld [vmem:[%s2194_s17 + $0x18] ss:$12 sps:$4 sm:$0xff]   ;;  %v2062_v26 = vld [vmem:[%s2194_s17 + $0x34] ss:$12 sps:$4 sm:$0xff]   ;;  %v2066_v28 = vld [vmem:[%s2194_s17 + $0x30] ss:$12 sps:$4 sm:$0xff]  }
  0x14   : > { %1850 = vmatprep.subr.bf16.mxu0 %v2041_v8  ;;  %2012 = vmatprep.subr.bf16.mxu1 %v2041_v8  ;;  %v2061_v25 = vld [vmem:[%s2194_s17 + $0x138] ss:$12 sps:$4 sm:$0xff]   ;;  %v2064_v27 = vld [vmem:[%s2194_s17 + $0x154] ss:$12 sps:$4 sm:$0xff]   ;;  %v2067_v29 = vld [vmem:[%s2194_s17 + $0x150] ss:$12 sps:$4 sm:$0xff]  }
  0x15   : > { %879 = vmatprep.mubr.bf16.mxu1 %v2054_v12  ;;  %v2069_v30 = vld [vmem:[%s2194_s17 + $0x4c] ss:$12 sps:$4 sm:$0xff]   ;;  %v2073_v32 = vld [vmem:[%s2194_s17 + $0x48] ss:$12 sps:$4 sm:$0xff]   ;;  %v2075_v34 = vld [vmem:[%s2194_s17 + $0x64] ss:$12 sps:$4 sm:$0xff]  }
  0x16   : > { %v2071_v31 = vld [vmem:[%s2194_s17 + $0x16c] ss:$12 sps:$4 sm:$0xff]   ;;  %v2074_v33 = vld [vmem:[%s2194_s17 + $0x168] ss:$12 sps:$4 sm:$0xff]   ;;  %v2084_v41 = vld [vmem:[%s2194_s17 + $0x50] ss:$12 sps:$4 sm:$0xff]  }
  0x17   : > { %1851 = vmatpush3.bf16.msra.mxu0 %v2042_v9  ;;  %2020 = vmatpush3.bf16.msra.mxu1 %v2042_v9  ;;  %v2077_v35 = vld [vmem:[%s2194_s17 + $0x8] ss:$12 sps:$4 sm:$0xff]   ;;  %v2078_v36 = vld [vmem:[%s2194_s17 + $0x60] ss:$12 sps:$4 sm:$0xff]   ;;  %v2082_v39 = vld [vmem:[%s2194_s17 + $0x38] ss:$12 sps:$4 sm:$0xff]  }
  0x18   : > { %1852 = vmatprep.subr.bf16.mxu0 %v2043_v10  ;;  %2013 = vmatprep.subr.bf16.mxu1 %v2043_v10  ;;  %v2079_v37 = vld [vmem:[%s2194_s17 + $0x20] ss:$12 sps:$4 sm:$0xff]   ;;  %v2080_v38 = vld [vmem:[%s2194_s17 + $0x7c] ss:$12 sps:$4 sm:$0xff]   ;;  %v2083_v40 = vld [vmem:[%s2194_s17 + $0x78] ss:$12 sps:$4 sm:$0xff]  }
  0x19   : > { %v2085_v42 = vld [vmem:[%s2194_s17 + $0x94] ss:$12 sps:$4 sm:$0xff]   ;;  %v2088_v44 = vld [vmem:[%s2194_s17 + $0x90] ss:$12 sps:$4 sm:$0xff]   ;;  %v2090_v46 = vld [vmem:[%s2194_s17 + $0xac] ss:$12 sps:$4 sm:$0xff]  }
  0x1a   : > { %v2087_v43 = vld [vmem:[%s2194_s17 + $0x68] ss:$12 sps:$4 sm:$0xff]   ;;  %v2089_v45 = vld [vmem:[%s2194_s17 + $0x80] ss:$12 sps:$4 sm:$0xff]   ;;  %v2092_v47 = vld [vmem:[%s2194_s17 + $0x98] ss:$12 sps:$4 sm:$0xff]  }
  0x1b   : > { %1853 = vmatpush3.bf16.msra.mxu0 %v2044_v13  ;;  %2021 = vmatpush3.bf16.msra.mxu1 %v2044_v13  ;;  %v2093_v48 = vld [vmem:[%s2194_s17 + $0xa8] ss:$12 sps:$4 sm:$0xff]   ;;  %v2094_v49 = vld [vmem:[%s2194_s17 + $0xb0] ss:$12 sps:$4 sm:$0xff]   ;;  %v2098_v52 = vld [vmem:[%s2194_s17 + $0xc0] ss:$12 sps:$4 sm:$0xff]  }
  0x1c   : > { %1854 = vmatprep.subr.bf16.mxu0 %v2045_v14  ;;  %2014 = vmatprep.subr.bf16.mxu1 %v2045_v14  ;;  %v2095_v50 = vld [vmem:[%s2194_s17 + $0xc4] ss:$12 sps:$4 sm:$0xff]   ;;  %v2097_v51 = vld [vmem:[%s2194_s17 + $0xc8] ss:$12 sps:$4 sm:$0xff]   ;;  %v2099_v53 = vld [vmem:[%s2194_s17 + $0xe0] ss:$12 sps:$4 sm:$0xff]  }
  0x1d   : > { %v2100_v54 = vld [vmem:[%s2194_s17 + $0xdc] ss:$12 sps:$4 sm:$0xff]   ;;  %v2102_v55 = vld [vmem:[%s2194_s17 + $0xf8] ss:$12 sps:$4 sm:$0xff]   ;;  %v2105_v58 = vld [vmem:[%s2194_s17 + $0xf4] ss:$12 sps:$4 sm:$0xff]  }
  0x1e   : > { %v2103_v56 = vld [vmem:[%s2194_s17 + $0xd8] ss:$12 sps:$4 sm:$0xff]   ;;  %v2104_v57 = vld [vmem:[%s2194_s17 + $0x110] ss:$12 sps:$4 sm:$0xff]   ;;  %v2107_v59 = vld [vmem:[%s2194_s17 + $0x128] ss:$12 sps:$4 sm:$0xff]  }
  0x1f   : > { %1855 = vmatpush3.bf16.msra.mxu0 %v2046_v15  ;;  %2022 = vmatpush3.bf16.msra.mxu1 %v2046_v15  ;;  %v2108_v60 = vld [vmem:[%s2194_s17 + $0xf0] ss:$12 sps:$4 sm:$0xff]   ;;  %v2109_v61 = vld [vmem:[%s2194_s17 + $0x140] ss:$12 sps:$4 sm:$0xff]   ;;  %v2112_v63 = vld [vmem:[%s2194_s17 + $0x158] ss:$12 sps:$4 sm:$0xff]  }
  0x20   : > { %1856 = vmatprep.subr.bf16.mxu0 %v2047_v16  ;;  %2015 = vmatprep.subr.bf16.mxu1 %v2047_v16  ;;  %v2110_v62 = vld [vmem:[%s2194_s17 + $0x10c] ss:$12 sps:$4 sm:$0xff]   ;;  %v2113_v0 = vld [vmem:[%s2194_s17 + $0x108] ss:$12 sps:$4 sm:$0xff]   ;;  %v2114_v1 = vld [vmem:[%s2194_s17 + $0x170] ss:$12 sps:$4 sm:$0xff]  }
  0x23   : > { %1857 = vmatpush3.bf16.msra.mxu0 %v2048_v17  ;;  %2023 = vmatpush3.bf16.msra.mxu1 %v2048_v17 }
  0x24   : > { %1972 = vmatprep.subr.bf16.mxu1 %v2055_v18 }
  0x26   : > { %784 = vmatmul.mubr.bf16.vlgmr.msra.gmra.mrb[0].mxu0 %v2049_v19  ;;  %880 = vmatmul.mubr.bf16.vlgmr.msra.gmra.mrb[0].mxu1 %v2052_v20 }
  0x27   : > { %1973 = vmatpush3.bf16.msra.mxu1 %v2055_v18  ;;  %791 = vmatprep.mubr.bf16.mxu0 %v2056_v21 }
  0x28   : > { %887 = vmatprep.mubr.bf16.mxu1 %v2058_v22  ;;  %1974 = vmatprep.subr.bf16.mxu1 %v2068_v23 }
  0x2b   : > { %1975 = vmatpush3.bf16.msra.mxu1 %v2068_v23 }
  0x2e   : > { %792 = vmatmul.mubr.bf16.gmra.mrb[4].mxu0 %v2060_v24  ;;  %888 = vmatmul.mubr.bf16.gmra.mrb[4].mxu1 %v2061_v25 }
  0x2f   : > { %799 = vmatprep.mubr.bf16.mxu0 %v2062_v26  ;;  %895 = vmatprep.mubr.bf16.mxu1 %v2064_v27 }
  0x36   : > { %800 = vmatmul.mubr.bf16.gmra.mrb[8].mxu0 %v2066_v28  ;;  %896 = vmatmul.mubr.bf16.gmra.mrb[8].mxu1 %v2067_v29 }
  0x37   : > { %807 = vmatprep.mubr.bf16.mxu0 %v2069_v30  ;;  %903 = vmatprep.mubr.bf16.mxu1 %v2071_v31 }
  0x3e   : > { %808 = vmatmul.mubr.bf16.gmra.mrb[12].mxu0 %v2073_v32  ;;  %904 = vmatmul.mubr.bf16.gmra.mrb[12].mxu1 %v2074_v33 }
  0x3f   : > { %815 = vmatprep.mubr.bf16.mxu0 %v2075_v34  ;;  %1976 = vmatprep.mubr.msk.bf16.mxu1 %vm702_vm0, %v2077_v35 }
  0x46   : > { %816 = vmatmul.mubr.bf16.gmra.mrb[16].mxu0 %v2078_v36  ;;  %1977 = vmatmul.mubr.msk.bf16.vlgmr.msra.gmra.mrb[16].mxu1 %vm702_vm0, %v2079_v37 }
  0x47   : > { %823 = vmatprep.mubr.bf16.mxu0 %v2080_v38  ;;  %1980 = vmatprep.mubr.msk.bf16.mxu1 %vm702_vm0, %v2082_v39 }
  0x4e   : > { %824 = vmatmul.mubr.bf16.gmra.mrb[20].mxu0 %v2083_v40  ;;  %1981 = vmatmul.mubr.msk.bf16.gmra.mrb[20].mxu1 %vm702_vm0, %v2084_v41 }
  0x4f   : > { %831 = vmatprep.mubr.bf16.mxu0 %v2085_v42  ;;  %1984 = vmatprep.mubr.msk.bf16.mxu1 %vm702_vm0, %v2087_v43 }
  0x56   : > { %832 = vmatmul.mubr.bf16.gmra.mrb[24].mxu0 %v2088_v44  ;;  %1985 = vmatmul.mubr.msk.bf16.gmra.mrb[24].mxu1 %vm702_vm0, %v2089_v45 }
  0x57   : > { %839 = vmatprep.mubr.bf16.mxu0 %v2090_v46  ;;  %1988 = vmatprep.mubr.msk.bf16.mxu1 %vm702_vm0, %v2092_v47 }
  0x5e   : > { %840 = vmatmul.mubr.bf16.gmra.mrb[28].mxu0 %v2093_v48  ;;  %1989 = vmatmul.mubr.msk.bf16.gmra.mrb[28].mxu1 %vm702_vm0, %v2094_v49 }
  0x5f   : > { %847 = vmatprep.mubr.bf16.mxu0 %v2095_v50  ;;  %1992 = vmatprep.mubr.msk.bf16.mxu1 %vm702_vm0, %v2097_v51 }
  0x66   : > { %848 = vmatmul.mubr.bf16.gmra.mrb[32].mxu0 %v2098_v52  ;;  %1993 = vmatmul.mubr.msk.bf16.gmra.mrb[32].mxu1 %vm702_vm0, %v2099_v53  ;;  %v2318_v52 = vld [vmem:[%s2483_s2] ss:$0 sm:$0xff]  ;;  %v1812_v53 = vld [vmem:[%s2313_s16 + $0x8] sm:$0xff]  }
  0x67   : > { %855 = vmatprep.mubr.bf16.mxu0 %v2100_v54  ;;  %1996 = vmatprep.mubr.msk.bf16.mxu1 %vm702_vm0, %v2102_v55 }
  0x6e   : > { %856 = vmatmul.mubr.bf16.gmra.mrb[36].mxu0 %v2103_v56  ;;  %1997 = vmatmul.mubr.msk.bf16.gmra.mrb[36].mxu1 %vm702_vm0, %v2104_v57  ;;  %v1669_v57 = vld [vmem:[%s2313_s16] sm:$0xff]  }
  0x6f   : > { %863 = vmatprep.mubr.bf16.mxu0 %v2105_v58  ;;  %2000 = vmatprep.mubr.msk.bf16.mxu1 %vm702_vm0, %v2107_v59  ;;  %v2325_v58 = vld [vmem:[%s2484_s3] ss:$0 sm:$0xff] }
  0x76   : > { %864 = vmatmul.mubr.bf16.gmra.mrb[40].mxu0 %v2108_v60  ;;  %2001 = vmatmul.mubr.msk.bf16.gmra.mrb[40].mxu1 %vm702_vm0, %v2109_v61 }
  0x77   : > { %871 = vmatprep.mubr.bf16.mxu0 %v2110_v62  ;;  %2004 = vmatprep.mubr.msk.bf16.mxu1 %vm702_vm0, %v2112_v63 }
  0x7e   : > { %872 = vmatmul.mubr.bf16.gmra.mrb[44].mxu0 %v2113_v0  ;;  %2005 = vmatmul.mubr.msk.bf16.gmra.mrb[44].mxu1 %vm702_vm0, %v2114_v1  ;;  %v1674_v0 = vunpack.c.l.bf16 %v1812_v53 }
  0xf9   : > { %v1858_v2 = vpop.f32.mrb[0].mxu0  ;;  %v1930_v3 = vpop.f32.mrb[0].mxu1 }
  0xfa   : > { %v1859_v4 = vpop.f32.mrb[1].mxu0  ;;  %v1931_v5 = vpop.f32.mrb[1].mxu1 }
  0xfb   : > { %v1860_v6 = vadd.f32 %v1859_v4, %v1858_v2  ;;  %v2287_v7 = vadd.f32 %v1931_v5, %v1930_v3  ;;  %v1861_v8 = vpop.f32.mrb[2].mxu0  ;;  %v1933_v9 = vpop.f32.mrb[2].mxu1  ;;  %v1670_v5 = vunpack.c.l.bf16 %v1669_v57 }
  0xfc   : > { %v1862_v10 = vpop.f32.mrb[3].mxu0  ;;  %v1934_v11 = vpop.f32.mrb[3].mxu1 }
  0xfd   : > { %v1863_v12 = vadd.f32 %v1862_v10, %v1861_v8  ;;  %v2289_v13 = vadd.f32 %v1934_v11, %v1933_v9  ;;  %v1675_v11 = vunpack.c.h.bf16 %v1812_v53 }
 0x101   : > { %v1864_v14 = vpop.f32.mrb[4].mxu0  ;;  %v1936_v15 = vpop.f32.mrb[4].mxu1 }
 0x102   : > { %v1865_v16 = vpop.f32.mrb[5].mxu0  ;;  %v1937_v17 = vpop.f32.mrb[5].mxu1 }
 0x103   : > { %v1866_v18 = vadd.f32 %v1865_v16, %v1864_v14  ;;  %v2291_v19 = vadd.f32 %v1937_v17, %v1936_v15  ;;  %v1867_v20 = vpop.f32.mrb[6].mxu0  ;;  %v1939_v21 = vpop.f32.mrb[6].mxu1  ;;  %v1671_v16 = vunpack.c.h.bf16 %v1669_v57  ;;  %v1814_v17 = vld [vmem:[%s2313_s16 + $0x18] sm:$0xff]  }
 0x104   : > { %v1868_v22 = vpop.f32.mrb[7].mxu0  ;;  %v1940_v23 = vpop.f32.mrb[7].mxu1  ;;  %v1683_v57 = vunpack.c.h.bf16 %v1814_v17 }
 0x105   : > { %v1869_v24 = vadd.f32 %v1868_v22, %v1867_v20  ;;  %v2293_v25 = vadd.f32 %v1940_v23, %v1939_v21 }
 0x109   : > { %v1870_v26 = vpop.f32.mrb[8].mxu0  ;;  %v1942_v27 = vpop.f32.mrb[8].mxu1 }
 0x10a   : > { %v1871_v28 = vpop.f32.mrb[9].mxu0  ;;  %v1943_v29 = vpop.f32.mrb[9].mxu1 }
 0x10b   : > { %v2295_v30 = vadd.f32 %v1871_v28, %v1870_v26  ;;  %v2297_v31 = vadd.f32 %v1943_v29, %v1942_v27  ;;  %v1873_v32 = vpop.f32.mrb[10].mxu0  ;;  %v1945_v33 = vpop.f32.mrb[10].mxu1  ;;  %v1682_v28 = vunpack.c.l.bf16 %v1814_v17 }
 0x10c   : > { %v1874_v34 = vpop.f32.mrb[11].mxu0  ;;  %v1946_v35 = vpop.f32.mrb[11].mxu1 }
 0x10d   : > { %v2299_v36 = vadd.f32 %v1874_v34, %v1873_v32  ;;  %v2301_v37 = vadd.f32 %v1946_v35, %v1945_v33 }
 0x111   : > { %v1876_v38 = vpop.f32.mrb[12].mxu0  ;;  %v1948_v39 = vpop.f32.mrb[12].mxu1 }
 0x112   : > { %v1877_v40 = vpop.f32.mrb[13].mxu0  ;;  %v1949_v41 = vpop.f32.mrb[13].mxu1 }
 0x113   : > { %v1878_v42 = vadd.f32 %v1877_v40, %v1876_v38  ;;  %v2303_v43 = vadd.f32 %v1949_v41, %v1948_v39  ;;  %v1879_v44 = vpop.f32.mrb[14].mxu0  ;;  %v1951_v45 = vpop.f32.mrb[14].mxu1 }
 0x114   : > { %v1880_v46 = vpop.f32.mrb[15].mxu0  ;;  %v1952_v47 = vpop.f32.mrb[15].mxu1 }
 0x115   : > { %v1881_v48 = vadd.f32 %v1880_v46, %v1879_v44  ;;  %v2306_v49 = vadd.f32 %v1952_v47, %v1951_v45 }
 0x119   : > { %v1882_v50 = vpop.f32.mrb[16].mxu0  ;;  %v1978_v51 = vpop.f32.mrb[16].mxu1 }
 0x11a   : > { %v955_v54 = vadd.f32 %v1978_v51, %v1866_v18  ;;  %v1883_v55 = vpop.f32.mrb[17].mxu0  ;;  %v946_v56 = vpop.f32.mrb[17].mxu1  ;;  %v1813_v18 = vld [vmem:[%s2313_s16 + $0x10] sm:$0xff]  }
 0x11b   : > { %v2327_v59 = vadd.f32 %v1883_v55, %v1882_v50  ;;  %v947_v60 = vadd.f32 %v1860_v6, %v946_v56  ;;  %v1885_v61 = vpop.f32.mrb[18].mxu0  ;;  %v1979_v62 = vpop.f32.mrb[18].mxu1  ;;  %v1678_v33 = vunpack.c.l.bf16 %v1813_v18 }
 0x11c   : > { %v1082_v63 = vmul.f32 %v2318_v52, %v955_v54  ;;  %v958_v1 = vadd.f32 %v1979_v62, %v1869_v24  ;;  %v1886_v2 = vpop.f32.mrb[19].mxu0  ;;  %v949_v3 = vpop.f32.mrb[19].mxu1 }
 0x11d   : > { %v1080_v4 = vmul.f32 %v2318_v52, %v947_v60  ;;  %v2331_v8 = vadd.f32 %v1886_v2, %v1885_v61  ;;  %v950_v9 = vadd.f32 %v1863_v12, %v949_v3 }
 0x11e   : > { %v1121_v10 = vadd.f32 %v2325_v58, %v1082_v63  ;;  %v1083_v6 = vmul.f32 %v2318_v52, %v958_v1  ;;  %v1679_v63 = vunpack.c.h.bf16 %v1813_v18  ;;  %v1815_v1 = vld [vmem:[%s2313_s16 + $0x20] sm:$0xff]  }
 0x11f   : > { %v1119_v14 = vadd.f32 %v2325_v58, %v1080_v4  ;;  %v1081_v15 = vmul.f32 %v2318_v52, %v950_v9 }
 0x120   : > { %v1217_v20 = vadd.f32 %v1674_v0, %v1121_v10  ;;  %v1122_v21 = vadd.f32 %v2325_v58, %v1083_v6  ;;  %v1816_v0 = vld [vmem:[%s2313_s16 + $0x28] sm:$0xff]  }
 0x121   : > { %v1215_v22 = vadd.f32 %v1670_v5, %v1119_v14  ;;  %v1120_v23 = vadd.f32 %v2325_v58, %v1081_v15  ;;  %v1888_v24 = vpop.f32.mrb[20].mxu0  ;;  %v1982_v12 = vpop.f32.mrb[20].mxu1 }
 0x122   : > { %v1218_v26 = vadd.f32 %v1675_v11, %v1122_v21  ;;  %v971_v27 = vadd.f32 %v1982_v12, %v1878_v42  ;;  %v1889_v29 = vpop.f32.mrb[21].mxu0  ;;  %v962_v32 = vpop.f32.mrb[21].mxu1  ;;  %v1249_v34 = vmax.f32 %v1217_v20, 0.0  ;;  %v1690_v11 = vunpack.c.l.bf16 %v1816_v0 }
 0x123   : > { %v1216_v35 = vadd.f32 %v1671_v16, %v1120_v23  ;;  %v1890_v38 = vadd.f32 %v1889_v29, %v1888_v24  ;;  %v963_v39 = vadd.f32 %v2295_v30, %v962_v32  ;;  %v1891_v40 = vpop.f32.mrb[22].mxu0  ;;  %v1983_v41 = vpop.f32.mrb[22].mxu1  ;;  %v1247_v44 = vmax.f32 %v1215_v22, 0.0 }
 0x124   : > { %v1250_v45 = vmax.f32 %v1218_v26, 0.0  ;;  %v1086_v46 = vmul.f32 %v2318_v52, %v971_v27  ;;  %v974_v47 = vadd.f32 %v1983_v41, %v1881_v48  ;;  %v1892_v50 = vpop.f32.mrb[23].mxu0  ;;  %v965_v42 = vpop.f32.mrb[23].mxu1  ;;  %v1686_v16 = vunpack.c.l.bf16 %v1815_v1 }
 0x125   : > { %v1248_v51 = vmax.f32 %v1216_v35, 0.0  ;;  %v1084_v30 = vmul.f32 %v2318_v52, %v963_v39  ;;  %v1893_v53 = vadd.f32 %v1892_v50, %v1891_v40  ;;  %v966_v54 = vadd.f32 %v2299_v36, %v965_v42 }
 0x126   : > { %v1740_v55 = vpack.c.bf16 %v1250_v45, %v1249_v34  ;;  %v1125_v48 = vadd.f32 %v2325_v58, %v1086_v46  ;;  %v1087_v56 = vmul.f32 %v2318_v52, %v974_v47  ;;  %v1691_v40 = vunpack.c.h.bf16 %v1816_v0 }
 0x127   : > { %v1735_v60 = vpack.c.bf16 %v1248_v51, %v1247_v44  ;;  %v1123_v61 = vadd.f32 %v2325_v58, %v1084_v30  ;;  %v1085_v62 = vmul.f32 %v2318_v52, %v966_v54  ;;  %v1687_v46 = vunpack.c.h.bf16 %v1815_v1 }
 0x128   : > { %1827 = vst [vmem:[%s2348_s25 + $0x8] sm:$0xff] %v1740_v55   ;;  %v1221_v2 = vadd.f32 %v1682_v28, %v1125_v48  ;;  %v1126_v3 = vadd.f32 %v2325_v58, %v1087_v56 }
 0x129   : > { %1736 = vst [vmem:[%s2348_s25] sm:$0xff] %v1735_v60   ;;  %v1219_v36 = vadd.f32 %v1678_v33, %v1123_v61  ;;  %v1124_v4 = vadd.f32 %v2325_v58, %v1085_v62  ;;  %v1894_v5 = vpop.f32.mrb[24].mxu0  ;;  %v1986_v9 = vpop.f32.mrb[24].mxu1  ;;  %v1817_v61 = vld [vmem:[%s2313_s16 + $0x30] sm:$0xff]  }
 0x12a   : > { %v1222_v10 = vadd.f32 %v1683_v57, %v1126_v3  ;;  %v987_v6 = vadd.f32 %v1986_v9, %v1890_v38  ;;  %v1895_v14 = vpop.f32.mrb[25].mxu0  ;;  %v978_v15 = vpop.f32.mrb[25].mxu1  ;;  %v1253_v17 = vmax.f32 %v1221_v2, 0.0  ;;  %v1818_v57 = vld [vmem:[%s2313_s16 + $0x38] sm:$0xff]  }
 0x12b   : > { %v1220_v18 = vadd.f32 %v1679_v63, %v1124_v4  ;;  %v1896_v20 = vadd.f32 %v1895_v14, %v1894_v5  ;;  %v979_v21 = vadd.f32 %v2327_v59, %v978_v15  ;;  %v1897_v22 = vpop.f32.mrb[26].mxu0  ;;  %v1987_v23 = vpop.f32.mrb[26].mxu1  ;;  %v1251_v24 = vmax.f32 %v1219_v36, 0.0 }
 0x12c   : > { %v1254_v12 = vmax.f32 %v1222_v10, 0.0  ;;  %v1090_v26 = vmul.f32 %v2318_v52, %v987_v6  ;;  %v990_v27 = vadd.f32 %v1987_v23, %v1893_v53  ;;  %v1898_v28 = vpop.f32.mrb[27].mxu0  ;;  %v981_v29 = vpop.f32.mrb[27].mxu1  ;;  %v1694_v14 = vunpack.c.l.bf16 %v1817_v61 }
 0x12d   : > { %v1252_v32 = vmax.f32 %v1220_v18, 0.0  ;;  %v1088_v33 = vmul.f32 %v2318_v52, %v979_v21  ;;  %v1899_v34 = vadd.f32 %v1898_v28, %v1897_v22  ;;  %v982_v35 = vadd.f32 %v2331_v8, %v981_v29 }
 0x12e   : > { %v1750_v38 = vpack.c.bf16 %v1254_v12, %v1253_v17  ;;  %v1129_v59 = vadd.f32 %v2325_v58, %v1090_v26  ;;  %v1091_v39 = vmul.f32 %v2318_v52, %v990_v27  ;;  %v1695_v22 = vunpack.c.h.bf16 %v1817_v61 }
 0x12f   : > { %v1745_v41 = vpack.c.bf16 %v1252_v32, %v1251_v24  ;;  %v1127_v44 = vadd.f32 %v2325_v58, %v1088_v33  ;;  %v1089_v45 = vmul.f32 %v2318_v52, %v982_v35  ;;  %v1699_v12 = vunpack.c.h.bf16 %v1818_v57 }
 0x130   : > { %1829 = vst [vmem:[%s2348_s25 + $0x18] sm:$0xff] %v1750_v38   ;;  %v1225_v47 = vadd.f32 %v1690_v11, %v1129_v59  ;;  %v1130_v50 = vadd.f32 %v2325_v58, %v1091_v39  ;;  %v1698_v11 = vunpack.c.l.bf16 %v1818_v57  ;;  %v1819_v59 = vld [vmem:[%s2313_s16 + $0x40] sm:$0xff]  }
 0x131   : > { %1828 = vst [vmem:[%s2348_s25 + $0x10] sm:$0xff] %v1745_v41   ;;  %v1223_v8 = vadd.f32 %v1686_v16, %v1127_v44  ;;  %v1128_v42 = vadd.f32 %v2325_v58, %v1089_v45  ;;  %v1900_v51 = vpop.f32.mrb[28].mxu0  ;;  %v1990_v30 = vpop.f32.mrb[28].mxu1  ;;  %v1703_v61 = vunpack.c.h.bf16 %v1819_v59 }
 0x132   : > { %v1226_v53 = vadd.f32 %v1691_v40, %v1130_v50  ;;  %v1901_v54 = vpop.f32.mrb[29].mxu0  ;;  %v994_v55 = vpop.f32.mrb[29].mxu1  ;;  %v1257_v0 = vmax.f32 %v1225_v47, 0.0 }
 0x133   : > { %v1224_v48 = vadd.f32 %v1687_v46, %v1128_v42  ;;  %v1902_v56 = vadd.f32 %v1901_v54, %v1900_v51  ;;  %v995_v60 = vadd.f32 %v1896_v20, %v994_v55  ;;  %v1903_v62 = vpop.f32.mrb[30].mxu0  ;;  %v1991_v63 = vpop.f32.mrb[30].mxu1  ;;  %v1255_v1 = vmax.f32 %v1223_v8, 0.0 }
 0x134   : > { %v1258_v2 = vmax.f32 %v1226_v53, 0.0  ;;  %v1904_v3 = vpop.f32.mrb[31].mxu0  ;;  %v997_v36 = vpop.f32.mrb[31].mxu1  ;;  %v1702_v51 = vunpack.c.l.bf16 %v1819_v59  ;;  %v2417_v59 = vld [vmem:[%s2313_s16 + $0x70] sm:$0xff]  }
 0x135   : > { %v1256_v4 = vmax.f32 %v1224_v48, 0.0  ;;  %v1003_v5 = vadd.f32 %v1990_v30, %v1902_v56  ;;  %v1092_v9 = vmul.f32 %v2318_v52, %v995_v60  ;;  %v1905_v10 = vadd.f32 %v1904_v3, %v1903_v62 }
 0x136   : > { %v1760_v6 = vpack.c.bf16 %v1258_v2, %v1257_v0  ;;  %v998_v15 = vadd.f32 %v1899_v34, %v997_v36 }
 0x137   : > { %v1755_v16 = vpack.c.bf16 %v1256_v4, %v1255_v1  ;;  %v1094_v17 = vmul.f32 %v2318_v52, %v1003_v5  ;;  %v1131_v18 = vadd.f32 %v2325_v58, %v1092_v9  ;;  %v1006_v20 = vadd.f32 %v1991_v63, %v1905_v10  ;;  %v1820_v4 = vld [vmem:[%s2313_s16 + $0x48] sm:$0xff]  }
 0x138   : > { %1831 = vst [vmem:[%s2348_s25 + $0x28] sm:$0xff] %v1760_v6   ;;  %v1093_v21 = vmul.f32 %v2318_v52, %v998_v15 }
 0x139   : > { %1830 = vst [vmem:[%s2348_s25 + $0x20] sm:$0xff] %v1755_v16   ;;  %v1133_v23 = vadd.f32 %v2325_v58, %v1094_v17  ;;  %v1095_v24 = vmul.f32 %v2318_v52, %v1006_v20  ;;  %v1906_v26 = vpop.f32.mrb[32].mxu0  ;;  %v1994_v27 = vpop.f32.mrb[32].mxu1  ;;  %v1227_v28 = vadd.f32 %v1694_v14, %v1131_v18  ;;  %v2399_v16 = vld [vmem:[%s2313_s16 + $0x68] sm:$0xff]   ;;  %v2402_v17 = vld [vmem:[%s2313_s16 + $0x60] sm:$0xff]   ;;  %v1706_v18 = vunpack.c.l.bf16 %v1820_v4 }
 0x13a   : > { %v1132_v29 = vadd.f32 %v2325_v58, %v1093_v21  ;;  %v1907_v32 = vpop.f32.mrb[33].mxu0  ;;  %v1010_v33 = vpop.f32.mrb[33].mxu1 }
 0x13b   : > { %v1229_v34 = vadd.f32 %v1698_v11, %v1133_v23  ;;  %v1134_v35 = vadd.f32 %v2325_v58, %v1095_v24  ;;  %v1908_v38 = vadd.f32 %v1907_v32, %v1906_v26  ;;  %v1909_v39 = vpop.f32.mrb[34].mxu0  ;;  %v1995_v40 = vpop.f32.mrb[34].mxu1  ;;  %v1259_v8 = vmax.f32 %v1227_v28, 0.0  ;;  %v2406_v24 = vld [vmem:[%s2313_s16 + $0x50] sm:$0xff]  }
 0x13c   : > { %v1228_v41 = vadd.f32 %v1695_v22, %v1132_v29  ;;  %v1910_v44 = vpop.f32.mrb[35].mxu0  ;;  %v1013_v45 = vpop.f32.mrb[35].mxu1  ;;  %v1722_v26 = vunpack.c.l.bf16 %v2399_v16 }
 0x13d   : > { %v1230_v46 = vadd.f32 %v1699_v12, %v1134_v35  ;;  %v1011_v47 = vadd.f32 %v1908_v38, %v1010_v33  ;;  %v1911_v50 = vadd.f32 %v1910_v44, %v1909_v39  ;;  %v1261_v30 = vmax.f32 %v1229_v34, 0.0  ;;  %v2414_v38 = vld [vmem:[%s2313_s16 + $0x78] sm:$0xff]  }
 0x13e   : > { %v1260_v42 = vmax.f32 %v1228_v41, 0.0  ;;  %v1707_v12 = vunpack.c.h.bf16 %v1820_v4  ;;  %v1723_v35 = vunpack.c.h.bf16 %v2399_v16  ;;  %v1710_v41 = vunpack.c.l.bf16 %v2406_v24 }
 0x13f   : > { %v1262_v53 = vmax.f32 %v1230_v46, 0.0  ;;  %v1096_v54 = vmul.f32 %v2318_v52, %v1011_v47  ;;  %v1014_v55 = vadd.f32 %v1911_v50, %v1013_v45  ;;  %v1711_v45 = vunpack.c.h.bf16 %v2406_v24 }
 0x140   : > { %v1765_v48 = vpack.c.bf16 %v1260_v42, %v1259_v8  ;;  %v1719_v46 = vunpack.c.h.bf16 %v2402_v17 }
 0x141   : > { %v1770_v56 = vpack.c.bf16 %v1262_v53, %v1261_v30  ;;  %v1135_v57 = vadd.f32 %v2325_v58, %v1096_v54  ;;  %v1097_v60 = vmul.f32 %v2318_v52, %v1014_v55  ;;  %v1912_v62 = vpop.f32.mrb[36].mxu0  ;;  %v2390_v63 = vpop.f32.mrb[36].mxu1 }
 0x142   : > { %1832 = vst [vmem:[%s2348_s25 + $0x30] sm:$0xff] %v1765_v48   ;;  %v1913_v0 = vpop.f32.mrb[37].mxu0  ;;  %v1026_v1 = vpop.f32.mrb[37].mxu1  ;;  %v1730_v48 = vunpack.c.l.bf16 %v2414_v38 }
 0x143   : > { %1833 = vst [vmem:[%s2348_s25 + $0x38] sm:$0xff] %v1770_v56   ;;  %v1231_v2 = vadd.f32 %v1702_v51, %v1135_v57  ;;  %v1136_v3 = vadd.f32 %v2325_v58, %v1097_v60  ;;  %v1914_v36 = vadd.f32 %v1913_v0, %v1912_v62  ;;  %v1915_v5 = vpop.f32.mrb[38].mxu0  ;;  %v2396_v9 = vpop.f32.mrb[38].mxu1  ;;  %v1726_v56 = vunpack.c.l.bf16 %v2417_v59 }
 0x144   : > { %v1916_v10 = vpop.f32.mrb[39].mxu0  ;;  %v1029_v6 = vpop.f32.mrb[39].mxu1  ;;  %v1731_v62 = vunpack.c.h.bf16 %v2414_v38 }
 0x145   : > { %v1232_v11 = vadd.f32 %v1703_v61, %v1136_v3  ;;  %v1019_v14 = vadd.f32 %v1994_v27, %v1914_v36  ;;  %v1917_v15 = vadd.f32 %v1916_v10, %v1915_v5  ;;  %v1263_v20 = vmax.f32 %v1231_v2, 0.0 }
 0x146   : > { %v1718_v27 = vunpack.c.l.bf16 %v2402_v17 }
 0x147   : > { %v1264_v21 = vmax.f32 %v1232_v11, 0.0  ;;  %v1098_v22 = vmul.f32 %v2318_v52, %v1019_v14  ;;  %v1022_v23 = vadd.f32 %v1995_v40, %v1917_v15 }
 0x149   : > { %v1775_v28 = vpack.c.bf16 %v1264_v21, %v1263_v20  ;;  %v1137_v29 = vadd.f32 %v2325_v58, %v1098_v22  ;;  %v1099_v32 = vmul.f32 %v2318_v52, %v1022_v23  ;;  %v1918_v33 = vpop.f32.mrb[40].mxu0  ;;  %v2002_v34 = vpop.f32.mrb[40].mxu1 }
 0x14a   : > { %v1051_v39 = vadd.f32 %v2002_v34, %v2291_v19  ;;  %v1919_v40 = vpop.f32.mrb[41].mxu0  ;;  %v1042_v44 = vpop.f32.mrb[41].mxu1 }
 0x14b   : > { %1834 = vst [vmem:[%s2348_s25 + $0x40] sm:$0xff] %v1775_v28   ;;  %v1233_v47 = vadd.f32 %v1706_v18, %v1137_v29  ;;  %v1138_v50 = vadd.f32 %v2325_v58, %v1099_v32  ;;  %v1920_v8 = vadd.f32 %v1919_v40, %v1918_v33  ;;  %v1043_v42 = vadd.f32 %v2287_v7, %v1042_v44  ;;  %v1921_v51 = vpop.f32.mrb[42].mxu0  ;;  %v2003_v30 = vpop.f32.mrb[42].mxu1 }
 0x14c   : > { %v1106_v19 = vmul.f32 %v2318_v52, %v1051_v39  ;;  %v1054_v53 = vadd.f32 %v2003_v30, %v2293_v25  ;;  %v1922_v54 = vpop.f32.mrb[43].mxu0  ;;  %v1045_v55 = vpop.f32.mrb[43].mxu1  ;;  %v2436_v25 = vld [vmem:[%s2313_s16 + $0x58] sm:$0xff]  }
 0x14d   : > { %v1234_v57 = vadd.f32 %v1707_v12, %v1138_v50  ;;  %v1027_v60 = vadd.f32 %v1920_v8, %v1026_v1  ;;  %v1104_v61 = vmul.f32 %v2318_v52, %v1043_v42  ;;  %v1923_v2 = vadd.f32 %v1922_v54, %v1921_v51 }
 0x14e   : > { %v1145_v7 = vadd.f32 %v2325_v58, %v1106_v19  ;;  %v1107_v0 = vmul.f32 %v2318_v52, %v1054_v53  ;;  %v1046_v3 = vadd.f32 %v2289_v13, %v1045_v55  ;;  %v1265_v36 = vmax.f32 %v1233_v47, 0.0 }
 0x14f   : > { %v1266_v4 = vmax.f32 %v1234_v57, 0.0  ;;  %v1100_v5 = vmul.f32 %v2318_v52, %v1027_v60  ;;  %v1143_v10 = vadd.f32 %v2325_v58, %v1104_v61  ;;  %v1030_v14 = vadd.f32 %v1923_v2, %v1029_v6 }
 0x150   : > { %v1241_v1 = vadd.f32 %v1722_v26, %v1145_v7  ;;  %v1146_v11 = vadd.f32 %v2325_v58, %v1107_v0  ;;  %v1105_v15 = vmul.f32 %v2318_v52, %v1046_v3  ;;  %v1714_v21 = vunpack.c.l.bf16 %v2436_v25 }
 0x151   : > { %v1780_v16 = vpack.c.bf16 %v1266_v4, %v1265_v36  ;;  %v1139_v17 = vadd.f32 %v2325_v58, %v1100_v5  ;;  %v1239_v18 = vadd.f32 %v1718_v27, %v1143_v10  ;;  %v1924_v13 = vpop.f32.mrb[44].mxu0  ;;  %v2006_v20 = vpop.f32.mrb[44].mxu1  ;;  %v1101_v24 = vmul.f32 %v2318_v52, %v1030_v14 }
 0x152   : > { %v1273_v22 = vmax.f32 %v1241_v1, 0.0  ;;  %v1242_v23 = vadd.f32 %v1723_v35, %v1146_v11  ;;  %v1144_v12 = vadd.f32 %v2325_v58, %v1105_v15  ;;  %v1925_v26 = vpop.f32.mrb[45].mxu0  ;;  %v1058_v28 = vpop.f32.mrb[45].mxu1  ;;  %v1067_v32 = vadd.f32 %v2006_v20, %v2303_v43 }
 0x153   : > { %1835 = vst [vmem:[%s2348_s25 + $0x48] sm:$0xff] %v1780_v16   ;;  %v1235_v6 = vadd.f32 %v1710_v41, %v1139_v17  ;;  %v1271_v29 = vmax.f32 %v1239_v18, 0.0  ;;  %v1926_v33 = vadd.f32 %v1925_v26, %v1924_v13  ;;  %v1927_v34 = vpop.f32.mrb[46].mxu0  ;;  %v2007_v27 = vpop.f32.mrb[46].mxu1  ;;  %v1140_v40 = vadd.f32 %v2325_v58, %v1101_v24 }
 0x154   : > { %v1274_v39 = vmax.f32 %v1242_v23, 0.0  ;;  %v1240_v44 = vadd.f32 %v1719_v46, %v1144_v12  ;;  %v1059_v35 = vadd.f32 %v2297_v31, %v1058_v28  ;;  %v1928_v47 = vpop.f32.mrb[47].mxu0  ;;  %v1061_v50 = vpop.f32.mrb[47].mxu1  ;;  %v1110_v42 = vmul.f32 %v2318_v52, %v1067_v32 }
 0x155   : > { %v1267_v8 = vmax.f32 %v1235_v6, 0.0  ;;  %v1035_v41 = vadd.f32 %v2390_v63, %v1926_v33  ;;  %v1070_v51 = vadd.f32 %v2007_v27, %v2306_v49  ;;  %v1236_v30 = vadd.f32 %v1711_v45, %v1140_v40 }
 0x156   : > { %v1800_v43 = vpack.c.bf16 %v1274_v39, %v1273_v22  ;;  %v1272_v19 = vmax.f32 %v1240_v44, 0.0  ;;  %v1108_v53 = vmul.f32 %v2318_v52, %v1059_v35  ;;  %v1149_v46 = vadd.f32 %v2325_v58, %v1110_v42 }
 0x157   : > { %v1102_v54 = vmul.f32 %v2318_v52, %v1035_v41  ;;  %v1111_v31 = vmul.f32 %v2318_v52, %v1070_v51  ;;  %v1929_v55 = vadd.f32 %v1928_v47, %v1927_v34  ;;  %v1268_v57 = vmax.f32 %v1236_v30, 0.0 }
 0x158   : > { %1839 = vst [vmem:[%s2348_s25 + $0x68] sm:$0xff] %v1800_v43   ;;  %v1795_v60 = vpack.c.bf16 %v1272_v19, %v1271_v29  ;;  %v1147_v63 = vadd.f32 %v2325_v58, %v1108_v53  ;;  %v1062_v49 = vadd.f32 %v2301_v37, %v1061_v50  ;;  %v1245_v45 = vadd.f32 %v1730_v48, %v1149_v46 }
 0x159   : > { %v1141_v61 = vadd.f32 %v2325_v58, %v1102_v54  ;;  %v1150_v7 = vadd.f32 %v2325_v58, %v1111_v31  ;;  %v1038_v0 = vadd.f32 %v2396_v9, %v1929_v55  ;;  %v1785_v2 = vpack.c.bf16 %v1268_v57, %v1267_v8 }
 0x15a   : > { %1838 = vst [vmem:[%s2348_s25 + $0x60] sm:$0xff] %v1795_v60   ;;  %v1109_v3 = vmul.f32 %v2318_v52, %v1062_v49  ;;  %v1727_v36 = vunpack.c.h.bf16 %v2417_v59  ;;  %v1715_v37 = vunpack.c.h.bf16 %v2436_v25  ;;  %v1243_v48 = vadd.f32 %v1726_v56, %v1147_v63 }
 0x15b   : > { %v1246_v4 = vadd.f32 %v1731_v62, %v1150_v7  ;;  %v1103_v5 = vmul.f32 %v2318_v52, %v1038_v0  ;;  %1836 = vst [vmem:[%s2348_s25 + $0x50] sm:$0xff] %v1785_v2   ;;  %v1277_v10 = vmax.f32 %v1245_v45, 0.0  ;;  %v1237_v1 = vadd.f32 %v1714_v21, %v1141_v61 }
 0x15c   : > { %v1148_v9 = vadd.f32 %v2325_v58, %v1109_v3  ;;  %v1275_v16 = vmax.f32 %v1243_v48, 0.0 }
 0x15d   : > { %v1278_v11 = vmax.f32 %v1246_v4, 0.0  ;;  %v1142_v14 = vadd.f32 %v2325_v58, %v1103_v5  ;;  %v1269_v17 = vmax.f32 %v1237_v1, 0.0 }
 0x15e   : > { %v1244_v38 = vadd.f32 %v1727_v36, %v1148_v9 }
 0x15f   : > { %v1810_v62 = vpack.c.bf16 %v1278_v11, %v1277_v10  ;;  %v1238_v15 = vadd.f32 %v1715_v37, %v1142_v14 }
 0x160   : > { %v1276_v52 = vmax.f32 %v1244_v38, 0.0 }
 0x161   : > { %1841 = vst [vmem:[%s2348_s25 + $0x78] sm:$0xff] %v1810_v62   ;;  %v1270_v25 = vmax.f32 %v1238_v15, 0.0 }
 0x162   : > { %v1805_v18 = vpack.c.bf16 %v1276_v52, %v1275_v16 }
 0x163   : > { %v1790_v59 = vpack.c.bf16 %v1270_v25, %v1269_v17 }
 0x164   : > { %1840 = vst [vmem:[%s2348_s25 + $0x70] sm:$0xff] %v1805_v18  }
 0x165   : > { %1837 = vst [vmem:[%s2348_s25 + $0x58] sm:$0xff] %v1790_v59  }
 0x166 PF: > { %s15_s18 = sadd.s32 1, %s2121_s18  }
 0x167   : > { %p12_p4 = scmp.ge.s32.totalorder %s15_s18, 4  }
 0x169   :  { %14 = sbr.rel (!%p12_p4) target bundleno = 1 (0x1), region = 73 }

// kernel: _lambda_.13
= control target key start
LH: loop header
LB: loop body
LE: loop exit
PB: predicated region body
PF: predicated region fallthrough
CT: control target
= control target key end

     0   :  { %s1583_s27 = smov 0   ;;  %s1793_s0 = inlined_call_operand.vmem [shape: bf16[128,288], index: 0, kind: input, shape index: {}]   ;;  %s1794_s1 = inlined_call_operand.vmem [shape: bf16[288,128], index: 1, kind: input, shape index: {}]   ;;  %s1795_s2 = inlined_call_operand.vmem [shape: f32[1,128], index: 2, kind: input, shape index: {}]   ;;  %s1796_s3 = inlined_call_operand.vmem [shape: f32[1,128], index: 3, kind: input, shape index: {}]   ;;  %s1797_s4 = inlined_call_operand.vmem [shape: bf16[288,128], index: 4, kind: input, shape index: {}]   ;;  %s1798_s5 = inlined_call_operand.vmem [shape: f32[1,128], index: 5, kind: input, shape index: {}]   ;;  %s1799_s6 = inlined_call_operand.vmem [shape: f32[1,128], index: 6, kind: input, shape index: {}]   ;;  %s1800_s7 = inlined_call_operand.vmem [shape: bf16[128,128], index: 7, kind: output, shape index: {0}]   ;;  %s1801_s8 = inlined_call_operand.vmem [shape: bf16[128,128], index: 8, kind: output, shape index: {1}]  }
   0x1 LB: > { %s1202_s28 = sadd.s32 4294967295, %s1536_s27   ;;  %p1206_p0 = scmp.ge.s32.totalorder %s1536_s27, 1  ;;  %s1536_s27 = sphi %s1583_s27, %s19_s27  }
   0x2   : > { %p267_p1 = scmp.lt.s32.totalorder %s1536_s27, 3 }
   0x4   : > { %p268_p2 = pnand %p1206_p0, %p267_p1 }
   0x5   : > { %v1478_v0 = vld [vmem:[%s1794_s1 + $0x40] sm:$0xff] (!%p268_p2)   ;;  %s1207_s9 = sshll.u32 (!%p268_p2), %s1202_s28, 3  ;;  %v1480_v2 = vld [vmem:[%s1794_s1 + $0x48] sm:$0xff] (!%p268_p2)   ;;  %v1483_v5 = vld [vmem:[%s1794_s1 + $0x50] sm:$0xff] (!%p268_p2)   ;;  %vm547_vm0 = vcmask (!%p268_p2), 261120  }
   0x6   : > { %271 = sbr.rel (%p268_p2) target bundleno = 302 (0x12e), region = 48  ;;  %v1479_v1 = vld [vmem:[%s1794_s1] sm:$0xff] (!%p268_p2)   ;;  %p308_p3 = scmp.lt.s32.totalorder (!%p268_p2), %s1207_s9, 15  ;;  %1353 = vmatprep.subr.bf16.mxu0 (!%p268_p2), %v1478_v0  ;;  %v1482_v4 = vld [vmem:[%s1794_s1 + $0x8] sm:$0xff] (!%p268_p2)   ;;  %v1485_v7 = vld [vmem:[%s1794_s1 + $0x10] sm:$0xff] (!%p268_p2)  }
   0x7   : > { %1354 = vmatpush3.bf16.msra.mxu0 (!%p268_p2), %v1479_v1  ;;  %v1481_v3 = vld [vmem:[%s1794_s1 + $0x80] sm:$0xff] (!%p268_p2)   ;;  %v1484_v6 = vld [vmem:[%s1794_s1 + $0x88] sm:$0xff] (!%p268_p2)   ;;  %v1486_v8 = vld [vmem:[%s1794_s1 + $0x58] sm:$0xff] (!%p268_p2)  }
   0x8   : > { %1355 = vmatprep.subr.bf16.mxu0 (!%p268_p2), %v1480_v2  ;;  %1445 = vmatprep.subr.bf16.mxu1 (!%p268_p2), %v1481_v3  ;;  %v1488_v10 = vld [vmem:[%s1797_s4 + $0x40] sm:$0xff] (!%p268_p2)   ;;  %v1489_v11 = vld [vmem:[%s1794_s1 + $0x18] sm:$0xff] (!%p268_p2)   ;;  %v1493_v15 = vld [vmem:[%s1797_s4 + $0x48] sm:$0xff] (!%p268_p2)  }
   0x9   : > { %1446 = vmatpush3.bf16.msra.mxu1 (!%p268_p2), %v1481_v3  ;;  %v1491_v13 = vld [vmem:[%s1797_s4] sm:$0xff] (!%p268_p2)   ;;  %v1495_v17 = vld [vmem:[%s1797_s4 + $0x8] sm:$0xff] (!%p268_p2)   ;;  %v1497_v19 = vld [vmem:[%s1797_s4 + $0x50] sm:$0xff] (!%p268_p2)  }
   0xa   : > { %1447 = vmatprep.subr.bf16.mxu1 (!%p268_p2), %v1484_v6  ;;  %v1492_v14 = vld [vmem:[%s1794_s1 + $0x60] sm:$0xff] (!%p268_p2)   ;;  %v1496_v18 = vld [vmem:[%s1794_s1 + $0x68] sm:$0xff] (!%p268_p2)   ;;  %v1499_v21 = vld [vmem:[%s1797_s4 + $0x10] sm:$0xff] (!%p268_p2)  }
   0xb   : > { %1356 = vmatpush3.bf16.msra.mxu0 (!%p268_p2), %v1482_v4  ;;  %v1494_v16 = vld [vmem:[%s1794_s1 + $0x20] sm:$0xff] (!%p268_p2)   ;;  %v1498_v20 = vld [vmem:[%s1794_s1 + $0x28] sm:$0xff] (!%p268_p2)   ;;  %v1500_v22 = vld [vmem:[%s1794_s1 + $0x70] sm:$0xff] (!%p268_p2)  }
   0xc   : > { %1357 = vmatprep.subr.bf16.mxu0 (!%p268_p2), %v1483_v5  ;;  %v1501_v23 = vld [vmem:[%s1797_s4 + $0x58] sm:$0xff] (!%p268_p2)   ;;  %v1502_v24 = vld [vmem:[%s1794_s1 + $0x30] sm:$0xff] (!%p268_p2)   ;;  %v1505_v27 = vld [vmem:[%s1797_s4 + $0x60] sm:$0xff] (!%p268_p2)  }
   0xd   : > { %s1803_s9 = smov (!%p308_p3, %s1207_s9), 15  ;;  %1448 = vmatpush3.bf16.msra.mxu1 %v1484_v6  ;;  %v1503_v25 = vld [vmem:[%s1797_s4 + $0x18] sm:$0xff]   ;;  %v1507_v29 = vld [vmem:[%s1797_s4 + $0x20] sm:$0xff]   ;;  %v1511_v32 = vld [vmem:[%s1797_s4 + $0x68] sm:$0xff]  }
   0xe   : > { %s1469_s20 = smul.u32 12, %s1803_s9  ;;  %1399 = vmatprep.subr.bf16.mxu1 %v1488_v10  ;;  %v1504_v26 = vld [vmem:[%s1794_s1 + $0x78] sm:$0xff]   ;;  %v1512_v33 = vld [vmem:[%s1797_s4 + $0x80] sm:$0xff]   ;;  %v1513_v34 = vld [vmem:[%s1797_s4 + $0x28] sm:$0xff]   ;;  %s1210_s10 = sshll.u32 %s1803_s9, 2 }
   0xf   : > { %1358 = vmatpush3.bf16.msra.mxu0 %v1485_v7  ;;  %v1506_v28 = vld [vmem:[%s1794_s1 + $0x38] sm:$0xff]   ;;  %v1516_v37 = vld [vmem:[%s1797_s4 + $0x70] sm:$0xff]   ;;  %v1526_v44 = vld [vmem:[%s1797_s4 + $0x88] sm:$0xff]   ;;  %s1759_s13 = scalar_lea.vmem %s1800_s7, %s1210_s10 }
  0x10   : > { %s1621_s28 = scalar_lea.vmem %s1793_s0, %s1469_s20  ;;  %1359 = vmatprep.subr.bf16.mxu0 %v1486_v8  ;;  %v1517_v38 = vld [vmem:[%s1797_s4 + $0x30] sm:$0xff]   ;;  %v1521_v41 = vld [vmem:[%s1797_s4 + $0x78] sm:$0xff]   ;;  %v1738_v56 = vld [vmem:[%s1795_s2] ss:$0 sm:$0xff]  ;;  %s324_s20 = scalar_lea.vmem %s1801_s8, %s1210_s10 }
  0x11   : > { %v1627_v9 = vld [vmem:[%s1621_s28 + $0x8] ss:$12 sps:$4 sm:$0xff]   ;;  %v1638_v12 = vld [vmem:[%s1621_s28 + $0x20] ss:$12 sps:$4 sm:$0xff]   ;;  %v1510_v31 = vld [vmem:[%s1621_s28 + $0x4] ss:$12 sps:$4 sm:$0xff]  }
  0x12   : > { %1449 = vmatprep.mubr.msk.bf16.mxu1 %vm547_vm0, %v1627_v9  ;;  %v1508_v30 = vld [vmem:[%s1621_s28] ss:$12 sps:$4 sm:$0xff]   ;;  %592 = vmatprep.mubr.bf16.mxu0 %v1510_v31  ;;  %v1514_v35 = vld [vmem:[%s1621_s28 + $0x38] ss:$12 sps:$4 sm:$0xff]   ;;  %v1515_v36 = vld [vmem:[%s1621_s28 + $0x50] ss:$12 sps:$4 sm:$0xff]  }
  0x13   : > { %1450 = vmatmul.mubr.msk.bf16.vlgmr.msra.gmra.mrb[0].mxu1 %vm547_vm0, %v1638_v12  ;;  %1360 = vmatpush3.bf16.msra.mxu0 %v1489_v11  ;;  %v1518_v39 = vld [vmem:[%s1621_s28 + $0x1c] ss:$12 sps:$4 sm:$0xff]   ;;  %v1520_v40 = vld [vmem:[%s1621_s28 + $0x18] ss:$12 sps:$4 sm:$0xff]   ;;  %v1523_v43 = vld [vmem:[%s1621_s28 + $0x34] ss:$12 sps:$4 sm:$0xff]  }
  0x14   : > { %1400 = vmatpush3.bf16.msra.mxu1 %v1491_v13  ;;  %1361 = vmatprep.subr.bf16.mxu0 %v1492_v14  ;;  %v1522_v42 = vld [vmem:[%s1797_s4 + $0x38] sm:$0xff]   ;;  %v1529_v47 = vld [vmem:[%s1621_s28 + $0x48] ss:$12 sps:$4 sm:$0xff]   ;;  %v1745_v61 = vld [vmem:[%s1796_s3] ss:$0 sm:$0xff] }
  0x15   : > { %1401 = vmatprep.subr.bf16.mxu1 %v1493_v15  ;;  %1453 = vmatprep.mubr.msk.bf16.mxu1 %vm547_vm0, %v1514_v35  ;;  %v1525_v45 = vld [vmem:[%s1621_s28 + $0x30] ss:$12 sps:$4 sm:$0xff]   ;;  %v1527_v46 = vld [vmem:[%s1621_s28 + $0x4c] ss:$12 sps:$4 sm:$0xff]  }
  0x17   : > { %1362 = vmatpush3.bf16.msra.mxu0 %v1494_v16 }
  0x18   : > { %1402 = vmatpush3.bf16.msra.mxu1 %v1495_v17  ;;  %1363 = vmatprep.subr.bf16.mxu0 %v1496_v18 }
  0x19   : > { %1403 = vmatprep.subr.bf16.mxu1 %v1497_v19 }
  0x1b   : > { %1364 = vmatpush3.bf16.msra.mxu0 %v1498_v20  ;;  %1454 = vmatmul.mubr.msk.bf16.gmra.mrb[4].mxu1 %vm547_vm0, %v1515_v36 }
  0x1c   : > { %1404 = vmatpush3.bf16.msra.mxu1 %v1499_v21  ;;  %1365 = vmatprep.subr.bf16.mxu0 %v1500_v22 }
  0x1d   : > { %1405 = vmatprep.subr.bf16.mxu1 %v1501_v23  ;;  %944 = vmatprep.mubr.bf16.mxu1 %v1510_v31 }
  0x1f   : > { %1366 = vmatpush3.bf16.msra.mxu0 %v1502_v24 }
  0x20   : > { %1406 = vmatpush3.bf16.msra.mxu1 %v1503_v25  ;;  %1367 = vmatprep.subr.bf16.mxu0 %v1504_v26 }
  0x21   : > { %1407 = vmatprep.subr.bf16.mxu1 %v1505_v27 }
  0x23   : > { %1368 = vmatpush3.bf16.msra.mxu0 %v1506_v28 }
  0x24   : > { %1408 = vmatpush3.bf16.msra.mxu1 %v1507_v29  ;;  %1457 = vmatprep.subr.bf16.mxu0 %v1512_v33 }
  0x25   : > { %1409 = vmatprep.subr.bf16.mxu1 %v1511_v32 }
  0x26   : > { %593 = vmatmul.mubr.bf16.vlgmr.msra.gmra.mrb[0].mxu0 %v1508_v30 }
  0x27   : > { %1458 = vmatpush3.bf16.msra.mxu0 %v1512_v33  ;;  %600 = vmatprep.mubr.bf16.mxu0 %v1518_v39 }
  0x28   : > { %1410 = vmatpush3.bf16.msra.mxu1 %v1513_v34  ;;  %1459 = vmatprep.subr.bf16.mxu0 %v1526_v44 }
  0x29   : > { %1411 = vmatprep.subr.bf16.mxu1 %v1516_v37 }
  0x2b   : > { %1460 = vmatpush3.bf16.msra.mxu0 %v1526_v44 }
  0x2c   : > { %1412 = vmatpush3.bf16.msra.mxu1 %v1517_v38 }
  0x2d   : > { %1413 = vmatprep.subr.bf16.mxu1 %v1521_v41 }
  0x2e   : > { %601 = vmatmul.mubr.bf16.gmra.mrb[4].mxu0 %v1520_v40 }
  0x2f   : > { %608 = vmatprep.mubr.bf16.mxu0 %v1523_v43 }
  0x30   : > { %1414 = vmatpush3.bf16.msra.mxu1 %v1522_v42 }
  0x33   : > { %945 = vmatmul.mubr.bf16.vlgmr.msra.gmra.mrb[8].mxu1 %v1508_v30 }
  0x34   : > { %952 = vmatprep.mubr.bf16.mxu1 %v1518_v39 }
  0x36   : > { %609 = vmatmul.mubr.bf16.gmra.mrb[8].mxu0 %v1525_v45 }
  0x37   : > { %616 = vmatprep.mubr.bf16.mxu0 %v1527_v46 }
  0x3b   : > { %953 = vmatmul.mubr.bf16.gmra.mrb[12].mxu1 %v1520_v40 }
  0x3c   : > { %960 = vmatprep.mubr.bf16.mxu1 %v1523_v43 }
  0x3e   : > { %617 = vmatmul.mubr.bf16.gmra.mrb[12].mxu0 %v1529_v47 }
  0x3f   : > { %1461 = vmatprep.mubr.msk.bf16.mxu0 %vm547_vm0, %v1627_v9 }
  0x43   : > { %961 = vmatmul.mubr.bf16.gmra.mrb[16].mxu1 %v1525_v45 }
  0x44   : > { %968 = vmatprep.mubr.bf16.mxu1 %v1527_v46 }
  0x46   : > { %1462 = vmatmul.mubr.msk.bf16.vlgmr.msra.gmra.mrb[16].mxu0 %vm547_vm0, %v1638_v12 }
  0x47   : > { %1465 = vmatprep.mubr.msk.bf16.mxu0 %vm547_vm0, %v1514_v35 }
  0x4b   : > { %969 = vmatmul.mubr.bf16.gmra.mrb[20].mxu1 %v1529_v47 }
  0x4e   : > { %1466 = vmatmul.mubr.msk.bf16.gmra.mrb[20].mxu0 %vm547_vm0, %v1515_v36 }
  0xe6   : > { %v1451_v48 = vpop.f32.mrb[0].mxu1 }
  0xe7   : > { %v659_v49 = vpop.f32.mrb[1].mxu1 }
  0xe8   : > { %v1452_v50 = vpop.f32.mrb[2].mxu1 }
  0xe9   : > { %v662_v51 = vpop.f32.mrb[3].mxu1 }
  0xee   : > { %v1740_v60 = vpop.f32.mrb[4].mxu1 }
  0xef   : > { %v675_v62 = vpop.f32.mrb[5].mxu1 }
  0xf0   : > { %v1748_v1 = vpop.f32.mrb[6].mxu1 }
  0xf1   : > { %v678_v2 = vpop.f32.mrb[7].mxu1 }
  0xf9   : > { %v1369_v52 = vpop.f32.mrb[0].mxu0 }
  0xfa   : > { %v1370_v53 = vpop.f32.mrb[1].mxu0 }
  0xfb   : > { %v1371_v54 = vadd.f32 %v1370_v53, %v1369_v52  ;;  %v1372_v55 = vpop.f32.mrb[2].mxu0 }
  0xfc   : > { %v1373_v57 = vpop.f32.mrb[3].mxu0 }
  0xfd   : > { %v660_v58 = vadd.f32 %v1371_v54, %v659_v49  ;;  %v1374_v59 = vadd.f32 %v1373_v57, %v1372_v55 }
  0xff   : > { %v697_v63 = vmul.f32 %v1738_v56, %v660_v58  ;;  %v663_v0 = vadd.f32 %v1374_v59, %v662_v51 }
 0x101   : > { %v712_v3 = vadd.f32 %v1745_v61, %v697_v63  ;;  %v698_v4 = vmul.f32 %v1738_v56, %v663_v0  ;;  %v1375_v5 = vpop.f32.mrb[4].mxu0 }
 0x102   : > { %v1376_v6 = vpop.f32.mrb[5].mxu0 }
 0x103   : > { %v713_v7 = vadd.f32 %v1745_v61, %v698_v4  ;;  %v1377_v8 = vadd.f32 %v1376_v6, %v1375_v5  ;;  %v1378_v9 = vpop.f32.mrb[6].mxu0  ;;  %v720_v11 = vmax.f32 %v712_v3, 0.0 }
 0x104   : > { %v1379_v10 = vpop.f32.mrb[7].mxu0 }
 0x105   : > { %v721_v12 = vmax.f32 %v713_v7, 0.0  ;;  %v668_v13 = vadd.f32 %v1451_v48, %v1377_v8  ;;  %v1380_v14 = vadd.f32 %v1379_v10, %v1378_v9 }
 0x106   : > { %v1415_v15 = vpop.f32.mrb[8].mxu1 }
 0x107   : > { %v1310_v16 = vpack.c.bf16 %v721_v12, %v720_v11  ;;  %v699_v17 = vmul.f32 %v1738_v56, %v668_v13  ;;  %v671_v18 = vadd.f32 %v1452_v50, %v1380_v14  ;;  %v1416_v19 = vpop.f32.mrb[9].mxu1 }
 0x108   : > { %v1417_v20 = vadd.f32 %v1416_v19, %v1415_v15  ;;  %v1418_v21 = vpop.f32.mrb[10].mxu1 }
 0x109   : > { %1311 = vst [vmem:[%s1759_s13] sm:$0xff] %v1310_v16   ;;  %v714_v22 = vadd.f32 %v1745_v61, %v699_v17  ;;  %v700_v23 = vmul.f32 %v1738_v56, %v671_v18  ;;  %v1419_v24 = vpop.f32.mrb[11].mxu1  ;;  %v1381_v25 = vpop.f32.mrb[8].mxu0  ;;  %v1280_v17 = vld [vmem:[%s1799_s6] ss:$0 sm:$0xff] }
 0x10a   : > { %v1420_v26 = vadd.f32 %v1419_v24, %v1418_v21  ;;  %v1382_v27 = vpop.f32.mrb[9].mxu0 }
 0x10b   : > { %v715_v28 = vadd.f32 %v1745_v61, %v700_v23  ;;  %v1383_v29 = vadd.f32 %v1382_v27, %v1381_v25  ;;  %v1384_v30 = vpop.f32.mrb[10].mxu0  ;;  %v722_v32 = vmax.f32 %v714_v22, 0.0 }
 0x10c   : > { %v1385_v31 = vpop.f32.mrb[11].mxu0 }
 0x10d   : > { %v723_v33 = vmax.f32 %v715_v28, 0.0  ;;  %v676_v34 = vadd.f32 %v1383_v29, %v675_v62  ;;  %v1386_v35 = vadd.f32 %v1385_v31, %v1384_v30 }
 0x10e   : > { %v1421_v36 = vpop.f32.mrb[12].mxu1 }
 0x10f   : > { %v1315_v37 = vpack.c.bf16 %v723_v33, %v722_v32  ;;  %v701_v38 = vmul.f32 %v1738_v56, %v676_v34  ;;  %v679_v39 = vadd.f32 %v1386_v35, %v678_v2  ;;  %v1422_v40 = vpop.f32.mrb[13].mxu1 }
 0x110   : > { %v1423_v41 = vadd.f32 %v1422_v40, %v1421_v36  ;;  %v1424_v42 = vpop.f32.mrb[14].mxu1 }
 0x111   : > { %1347 = vst [vmem:[%s1759_s13 + $0x8] sm:$0xff] %v1315_v37   ;;  %v716_v43 = vadd.f32 %v1745_v61, %v701_v38  ;;  %v702_v44 = vmul.f32 %v1738_v56, %v679_v39  ;;  %v1425_v45 = vpop.f32.mrb[15].mxu1  ;;  %v1387_v46 = vpop.f32.mrb[12].mxu0 }
 0x112   : > { %v1426_v47 = vadd.f32 %v1425_v45, %v1424_v42  ;;  %v1388_v48 = vpop.f32.mrb[13].mxu0 }
 0x113   : > { %v717_v49 = vadd.f32 %v1745_v61, %v702_v44  ;;  %v1389_v50 = vadd.f32 %v1388_v48, %v1387_v46  ;;  %v1390_v51 = vpop.f32.mrb[14].mxu0  ;;  %v724_v53 = vmax.f32 %v716_v43, 0.0 }
 0x114   : > { %v1391_v52 = vpop.f32.mrb[15].mxu0 }
 0x115   : > { %v725_v54 = vmax.f32 %v717_v49, 0.0  ;;  %v684_v55 = vadd.f32 %v1740_v60, %v1389_v50  ;;  %v1392_v57 = vadd.f32 %v1391_v52, %v1390_v51  ;;  %v1279_v60 = vld [vmem:[%s1798_s5] ss:$0 sm:$0xff] }
 0x116   : > { %v1427_v58 = vpop.f32.mrb[16].mxu1 }
 0x117   : > { %v1320_v59 = vpack.c.bf16 %v725_v54, %v724_v53  ;;  %v703_v62 = vmul.f32 %v1738_v56, %v684_v55  ;;  %v687_v63 = vadd.f32 %v1748_v1, %v1392_v57  ;;  %v1428_v0 = vpop.f32.mrb[17].mxu1 }
 0x118   : > { %v1429_v2 = vadd.f32 %v1428_v0, %v1427_v58  ;;  %v1430_v3 = vpop.f32.mrb[18].mxu1 }
 0x119   : > { %1348 = vst [vmem:[%s1759_s13 + $0x10] sm:$0xff] %v1320_v59   ;;  %v718_v4 = vadd.f32 %v1745_v61, %v703_v62  ;;  %v704_v5 = vmul.f32 %v1738_v56, %v687_v63  ;;  %v1431_v6 = vpop.f32.mrb[19].mxu1  ;;  %v1463_v7 = vpop.f32.mrb[16].mxu0 }
 0x11a   : > { %v1432_v8 = vadd.f32 %v1431_v6, %v1430_v3  ;;  %v1020_v9 = vadd.f32 %v1463_v7, %v1423_v41  ;;  %v1011_v10 = vpop.f32.mrb[17].mxu0 }
 0x11b   : > { %v719_v11 = vadd.f32 %v1745_v61, %v704_v5  ;;  %v1012_v1 = vadd.f32 %v1417_v20, %v1011_v10  ;;  %v1464_v12 = vpop.f32.mrb[18].mxu0  ;;  %v726_v16 = vmax.f32 %v718_v4, 0.0 }
 0x11c   : > { %v1051_v13 = vmul.f32 %v1279_v60, %v1020_v9  ;;  %v1023_v14 = vadd.f32 %v1464_v12, %v1426_v47  ;;  %v1014_v15 = vpop.f32.mrb[19].mxu0 }
 0x11d   : > { %v727_v56 = vmax.f32 %v719_v11, 0.0  ;;  %v1049_v18 = vmul.f32 %v1279_v60, %v1012_v1  ;;  %v1015_v19 = vadd.f32 %v1420_v26, %v1014_v15 }
 0x11e   : > { %v1052_v21 = vmul.f32 %v1279_v60, %v1023_v14  ;;  %v1433_v22 = vpop.f32.mrb[20].mxu1  ;;  %v1066_v20 = vadd.f32 %v1280_v17, %v1051_v13 }
 0x11f   : > { %v1325_v23 = vpack.c.bf16 %v727_v56, %v726_v16  ;;  %v1050_v24 = vmul.f32 %v1279_v60, %v1015_v19  ;;  %v1434_v61 = vpop.f32.mrb[21].mxu1  ;;  %v1064_v29 = vadd.f32 %v1280_v17, %v1049_v18 }
 0x120   : > { %v1067_v25 = vadd.f32 %v1280_v17, %v1052_v21  ;;  %v1435_v27 = vadd.f32 %v1434_v61, %v1433_v22  ;;  %v1436_v28 = vpop.f32.mrb[22].mxu1 }
 0x121   : > { %1349 = vst [vmem:[%s1759_s13 + $0x18] sm:$0xff] %v1325_v23   ;;  %v1065_v30 = vadd.f32 %v1280_v17, %v1050_v24  ;;  %v1437_v31 = vpop.f32.mrb[23].mxu1  ;;  %v1467_v32 = vpop.f32.mrb[20].mxu0 }
 0x122   : > { %v1335_v26 = vpack.c.bf16 %v1067_v25, %v1066_v20  ;;  %v1438_v33 = vadd.f32 %v1437_v31, %v1436_v28  ;;  %v1036_v34 = vadd.f32 %v1467_v32, %v1435_v27  ;;  %v1027_v35 = vpop.f32.mrb[21].mxu0 }
 0x123   : > { %v1330_v36 = vpack.c.bf16 %v1065_v30, %v1064_v29  ;;  %v1028_v37 = vadd.f32 %v1429_v2, %v1027_v35  ;;  %v1468_v38 = vpop.f32.mrb[22].mxu0 }
 0x124   : > { %1350 = vst [vmem:[%s324_s20 + $0x8] sm:$0xff] %v1335_v26   ;;  %v1055_v39 = vmul.f32 %v1279_v60, %v1036_v34  ;;  %v1039_v40 = vadd.f32 %v1468_v38, %v1438_v33  ;;  %v1030_v41 = vpop.f32.mrb[23].mxu0 }
 0x125   : > { %1331 = vst [vmem:[%s324_s20] sm:$0xff] %v1330_v36   ;;  %v1053_v42 = vmul.f32 %v1279_v60, %v1028_v37  ;;  %v1031_v43 = vadd.f32 %v1432_v8, %v1030_v41 }
 0x126   : > { %v1056_v44 = vmul.f32 %v1279_v60, %v1039_v40  ;;  %v1070_v46 = vadd.f32 %v1280_v17, %v1055_v39 }
 0x127   : > { %v1054_v45 = vmul.f32 %v1279_v60, %v1031_v43  ;;  %v1068_v48 = vadd.f32 %v1280_v17, %v1053_v42 }
 0x128   : > { %v1071_v47 = vadd.f32 %v1280_v17, %v1056_v44 }
 0x129   : > { %v1069_v49 = vadd.f32 %v1280_v17, %v1054_v45 }
 0x12a   : > { %v1345_v50 = vpack.c.bf16 %v1071_v47, %v1070_v46 }
 0x12b   : > { %v1340_v51 = vpack.c.bf16 %v1069_v49, %v1068_v48 }
 0x12c   : > { %1352 = vst [vmem:[%s324_s20 + $0x18] sm:$0xff] %v1345_v50  }
 0x12d   : > { %1351 = vst [vmem:[%s324_s20 + $0x10] sm:$0xff] %v1340_v51  }
 0x12e PF: > { %s19_s27 = sadd.s32 1, %s1536_s27  }
 0x12f   : > { %p16_p4 = scmp.ge.s32.totalorder %s19_s27, 4  }
 0x131   :  { %18 = sbr.rel (!%p16_p4) target bundleno = 1 (0x1), region = 90 }

// kernel: _lambda_.15
= control target key start
LH: loop header
LB: loop body
LE: loop exit
PB: predicated region body
PF: predicated region fallthrough
CT: control target
= control target key end

     0   :  { %10 = vsyncpa [#allocation3], 0  ;;  %v371_v3 = vmov 0.0|0.0   ;;  %vm372_vm0 = vmmov 0   ;;  %v373_v6 = vmov 0.0   ;;  %vm50_vm1 = vcmask 523264   ;;  %s493_s0 = inlined_call_operand.vmem [shape: bf16[2,64,64], index: 0, kind: input, shape index: {}]   ;;  %s494_s1 = inlined_call_operand.vmem [shape: f32[64,128], index: 1, kind: input, shape index: {}]   ;;  %s495_s2 = inlined_call_operand.vmem [shape: f32[1,128], index: 2, kind: input, shape index: {}]   ;;  %s496_s3 = inlined_call_operand.hbm [shape: f32[2,128], index: 3, kind: output, shape index: {0}]   ;;  %s497_s4 = inlined_call_operand.hbm [shape: f32[2,128], index: 4, kind: output, shape index: {1}]  }
   0x1   :  { %v96_v0 = vld [vmem:[%s494_s1] sm:$0xff]  ;;  %v97_v1 = vld [vmem:[%s494_s1 + $0x8] sm:$0xff]  ;;  %v98_v2 = vld [vmem:[%s494_s1 + $0x10] sm:$0xff]  ;;  %302 = vmatprep.subr.bf16.mxu0 %v371_v3  ;;  %299 = vmatprep.mubr.msk.f32.mxu0 %vm372_vm0, %v373_v6 }
   0x2   :  { %v303_v4 = vpack.c.bf16 %v97_v1, %v96_v0  ;;  %v99_v5 = vld [vmem:[%s494_s1 + $0x18] sm:$0xff]  ;;  %v236_v7 = vld [vmem:[%s493_s0] sm:$0xff]   ;;  %v101_v10 = vld [vmem:[%s494_s1 + $0x28] sm:$0xff] }
   0x3   :  { %v306_v8 = vpack.c.bf16 %v99_v5, %v98_v2  ;;  %v100_v9 = vld [vmem:[%s494_s1 + $0x20] sm:$0xff]  ;;  %v237_v11 = vunpack.c.l.bf16 %v236_v7  ;;  %v238_v12 = vunpack.c.h.bf16 %v236_v7  ;;  %v267_v13 = vld [vmem:[%s493_s0 + $0x8] sm:$0xff]   ;;  %v268_v15 = vld [vmem:[%s493_s0 + $0x10] sm:$0xff]  }
   0x4   :  { %304 = vmatpush3.bf16.msra.mxu0 %v303_v4  ;;  %v241_v14 = vunpack.c.l.bf16 %v267_v13  ;;  %v270_v16 = vld [vmem:[%s493_s0 + $0x20] sm:$0xff]   ;;  %v271_v17 = vld [vmem:[%s493_s0 + $0x28] sm:$0xff]   ;;  %v242_v18 = vunpack.c.h.bf16 %v267_v13 }
   0x5   :  { %305 = vmatprep.subr.bf16.mxu0 %v371_v3  ;;  %v253_v19 = vunpack.c.l.bf16 %v270_v16 }
   0x6   :  { %11 = vsyncpa [#allocation5], 0  ;;  %v254_v20 = vunpack.c.h.bf16 %v270_v16  ;;  %v257_v21 = vunpack.c.l.bf16 %v271_v17  ;;  %v309_v22 = vpack.c.bf16 %v101_v10, %v100_v9  ;;  %v245_v23 = vunpack.c.l.bf16 %v268_v15  ;;  %v272_v24 = vld [vmem:[%s493_s0 + $0x30] sm:$0xff]   ;;  %v103_v28 = vld [vmem:[%s494_s1 + $0x38] sm:$0xff]  ;;  %s374_s21 = smov [#allocation2]  }
   0x7   :  { %v51_v25 = vsel %vm50_vm1, %v237_v11, 0.0  ;;  %v52_v26 = vsel %vm50_vm1, %v238_v12, 0.0  ;;  %v102_v27 = vld [vmem:[%s494_s1 + $0x30] sm:$0xff]  ;;  %v269_v29 = vld [vmem:[%s493_s0 + $0x18] sm:$0xff]   ;;  %v258_v30 = vunpack.c.h.bf16 %v271_v17  ;;  %v54_v32 = vsel %vm50_vm1, %v241_v14, 0.0  ;;  %s211_s22 = sshll.u32 %s374_s21, 4  ;;  %s212_s22 = int_to_ptr.vmem [resolvable:$true] %s211_s22 }
   0x8   :  { %307 = vmatpush3.bf16.msra.mxu0 %v306_v8  ;;  %v53_v31 = vadd.f32 %v52_v26, %v51_v25  ;;  %v246_v33 = vunpack.c.h.bf16 %v268_v15  ;;  %v56_v34 = vsel %vm50_vm1, %v242_v18, 0.0  ;;  %v72_v35 = vsel %vm50_vm1, %v253_v19, 0.0  ;;  %v273_v42 = vld [vmem:[%s493_s0 + $0x38] sm:$0xff]   ;;  %p328_p1 = scmp.lt.s32.totalorder %s212_s22, %s212_s22 }
   0x9   :  { %308 = vmatprep.subr.bf16.mxu0 %v371_v3  ;;  %v261_v36 = vunpack.c.l.bf16 %v272_v24  ;;  %v73_v38 = vsel %vm50_vm1, %v254_v20, 0.0  ;;  %v75_v39 = vsel %vm50_vm1, %v257_v21, 0.0  ;;  %v312_v40 = vpack.c.bf16 %v103_v28, %v102_v27  ;;  %v233_v21 = vld [vmem:[%s495_s2] ss:$0 sm:$0xff]  ;;  %s323_s2 = scalar_lea.vmem %s212_s22, 32 }
   0xa   :  { %v55_v37 = vadd.f32 %v54_v32, %v53_v31  ;;  %v249_v41 = vunpack.c.l.bf16 %v269_v29  ;;  %v58_v43 = vsel %vm50_vm1, %v245_v23, 0.0  ;;  %v74_v44 = vadd.f32 %v73_v38, %v72_v35  ;;  %p324_p0 = scmp.ne.s32.totalorder %s212_s22, %s323_s2  ;;  %p329_p2 = scmp.lt.s32.totalorder %s323_s2, %s323_s2 }
   0xb   :  { %v262_v45 = vunpack.c.h.bf16 %v272_v24  ;;  %v77_v47 = vsel %vm50_vm1, %v258_v30, 0.0  ;;  %v250_v48 = vunpack.c.h.bf16 %v269_v29  ;;  %v60_v49 = vsel %vm50_vm1, %v246_v33, 0.0 }
   0xc   :  { %310 = vmatpush3.bf16.msra.mxu0 %v309_v22  ;;  %v57_v46 = vadd.f32 %v56_v34, %v55_v37  ;;  %v76_v50 = vadd.f32 %v75_v39, %v74_v44  ;;  %v265_v51 = vunpack.c.l.bf16 %v273_v42  ;;  %v79_v53 = vsel %vm50_vm1, %v261_v36, 0.0  ;;  %p330_p3 = por %p329_p2, %p328_p1 }
   0xd   :  { %311 = vmatprep.subr.bf16.mxu0 %v371_v3  ;;  %v62_v54 = vsel %vm50_vm1, %v249_v41, 0.0  ;;  %v266_v56 = vunpack.c.h.bf16 %v273_v42  ;;  %v81_v58 = vsel %vm50_vm1, %v262_v45, 0.0  ;;  %v64_v59 = vsel %vm50_vm1, %v250_v48, 0.0 }
   0xe   :  { %v59_v52 = vadd.f32 %v58_v43, %v57_v46  ;;  %v78_v55 = vadd.f32 %v77_v47, %v76_v50  ;;  %v83_v62 = vsel %vm50_vm1, %v265_v51, 0.0  ;;  %vm113_vm2 = vcmask 1041409   ;;  %p331_p4 = pnand %p330_p3, %p324_p0 }
   0xf   :  { %v85_v1 = vsel %vm50_vm1, %v266_v56, 0.0  ;;  %v187_v19 = vlaneseq  ;;  %vm191_vm4 = vcmask 1041408  }
  0x10   :  { %313 = vmatpush3.bf16.msra.mxu0 %v312_v40  ;;  %v61_v57 = vadd.f32 %v60_v49, %v59_v52  ;;  %v80_v60 = vadd.f32 %v79_v53, %v78_v55 }
  0x11   :  { %v188_v20 = vand.u32 127, %v187_v19 }
  0x12   :  { %v63_v61 = vadd.f32 %v62_v54, %v61_v57  ;;  %v82_v63 = vadd.f32 %v81_v58, %v80_v60 }
  0x13   :  { %vm189_vm3 = vcmp.lt.s32.totalorder %v188_v20, 10 }
  0x14   :  { %v65_v0 = vadd.f32 %v64_v59, %v63_v61  ;;  %v84_v2 = vadd.f32 %v83_v62, %v82_v63 }
  0x16   :  { %v66_v3 = vrot.slane %v65_v0, 4  ;;  %v86_v4 = vadd.f32 %v85_v1, %v84_v2 }
  0x18   :  { %v67_v5 = vadd.f32 %v66_v3, %v65_v0  ;;  %v87_v6 = vrot.slane %v86_v4, 4 }
  0x1a   :  { %v68_v7 = vrot.slane %v67_v5, 2  ;;  %v88_v8 = vadd.f32 %v87_v6, %v86_v4 }
  0x1c   :  { %v69_v9 = vadd.f32 %v68_v7, %v67_v5  ;;  %v89_v10 = vrot.slane %v88_v8, 2 }
  0x1e   :  { %v70_v11 = vrot.slane %v69_v9, 1  ;;  %v90_v12 = vadd.f32 %v89_v10, %v88_v8 }
  0x20   :  { %v71_v13 = vadd.f32 %v70_v11, %v69_v9  ;;  %v91_v14 = vrot.slane %v90_v12, 1 }
  0x22   :  { %v92_v15 = vadd.f32 %v91_v14, %v90_v12  ;;  %v94_v16 = vmul.f32 0.015625, %v71_v13 }
  0x24   :  { %v95_v17 = vmul.f32 0.015625, %v92_v15 }
  0x26   :  { %v114_v18 = vsel %vm113_vm2, %v95_v17, %v94_v16 }
  0x27   :  { %300 = vmatmul.mubr.msk.f32.vlgmr.msra.gmra.mrb[0].mxu0 %vm50_vm1, %v114_v18 }
  0xfa   :  { %v183_v22 = vpop.f32.mrb[0].mxu0 }
  0xfb   :  { %v184_v23 = vadd.f32 %v233_v21, %v183_v22  ;;  %v301_v24 = vpop.f32.mrb[1].mxu0 }
  0xfd   :  { %203 = vst [vmem:[#allocation2] sm:$0x3] %v184_v23  ;;  %v190_v25 = vsel %vm189_vm3, %v184_v23, -1e+30 }
  0xfe   :  { %v192_v26 = vsel %vm191_vm4, %v190_v25, -inf }
  0xff   :  { %193 = vmax.xlane.f32.xlu0 %v192_v26 }
 0x18c   :  { %v194_v27 = vpop.xlane.xlu0 %193 }
 0x18d   :  { %v195_v28 = vsub.f32 %v190_v25, %v194_v27 }
 0x18f   :  { %v196_v29 = vmul.f32 1.442695, %v195_v28 }
 0x191   :  { %319 = vpow2.f32 %v196_v29 }
 0x19b   :  { %v320_v30 = vpop.eup %319 }
 0x19c   :  { %v198_v31 = vsel %vm191_vm4, %v320_v30, 0.0 }
 0x19d   :  { %199 = vadd.xlane.f32.xlu0 %v198_v31 }
 0x19e   :  { %334 = shalt.err (!%p331_p4)
}
 0x19f   :  { %s335_s25 = scalar_lea.hbm %s496_s3, 32 }
 0x1a0   :  { %p336_p5 = scmp.ne.s32.totalorder %s496_s3, %s335_s25  ;;  %p339_p6 = scmp.lt.u32.totalorder %s335_s25, %s496_s3 }
 0x1a2   :  { %p341_p7 = pnand %p339_p6, %p336_p5 }
 0x1a4   :  { %344 = shalt.err (!%p341_p7)
}
 0x1a5   :  { %214 = dma.vmem_to_hbm [thread:$0]  %s212_s22, 32, %s496_s3, [#allocation3]  }
 0x1a6   :  { %s375_s6 = smov [#allocation4]  }
 0x1a7   :  { %s221_s7 = sshll.u32 %s375_s6, 4  ;;  %s222_s7 = int_to_ptr.vmem [resolvable:$true] %s221_s7 }
 0x1a8   :  { %s345_s8 = scalar_lea.vmem %s222_s7, 32  ;;  %p350_p9 = scmp.lt.s32.totalorder %s222_s7, %s222_s7 }
 0x1a9   :  { %p346_p8 = scmp.ne.s32.totalorder %s222_s7, %s345_s8  ;;  %p351_p10 = scmp.lt.s32.totalorder %s345_s8, %s345_s8 }
 0x1ab   :  { %p352_p11 = por %p351_p10, %p350_p9 }
 0x1ad   :  { %p353_p12 = pnand %p352_p11, %p346_p8 }
 0x22a   :  { %v200_v32 = vpop.xlane.xlu0 %199 }
 0x22b   :  { %321 = vrcp.f32 %v200_v32 }
 0x235   :  { %v322_v33 = vpop.eup %321 }
 0x236   :  { %v202_v34 = vmul.f32 %v322_v33, %v320_v30 }
 0x238   :  { %204 = vst [vmem:[#allocation4] sm:$0x3] %v202_v34 }
 0x239   :  { %356 = shalt.err (!%p353_p12)
}
 0x23a   :  { %s357_s11 = scalar_lea.hbm %s497_s4, 32 }
 0x23b   :  { %p358_p13 = scmp.ne.s32.totalorder %s497_s4, %s357_s11  ;;  %p361_p0 = scmp.lt.u32.totalorder %s357_s11, %s497_s4 }
 0x23d   :  { %p363_p1 = pnand %p361_p0, %p358_p13 }
 0x23f   :  { %366 = shalt.err (!%p363_p1)
}
 0x240   :  { %224 = dma.vmem_to_hbm [thread:$0]  %s222_s7, 32, %s497_s4, [#allocation5]  }
 0x241   :  { %367 = dma.done.wait [#allocation3], 32  }
 0x242   :  { %368 = vsyncadd [#allocation3], 4294967264 }
 0x243   :  { %369 = dma.done.wait [#allocation5], 32  }
 0x244   :  { %370 = vsyncadd [#allocation5], 4294967264 }
 0x245   :  { %231 = vsyncpa [#allocation3], 1 }
 0x246   :  { %232 = vsyncpa [#allocation5], 1 }

// kernel: _lambda_.14
= control target key start
LH: loop header
LB: loop body
LE: loop exit
PB: predicated region body
PF: predicated region fallthrough
CT: control target
= control target key end

     0   :  { %s1400_s18 = smov 0   ;;  %s1569_s0 = inlined_call_operand.vmem [shape: bf16[128,576], index: 0, kind: input, shape index: {}]   ;;  %s1570_s1 = inlined_call_operand.vmem [shape: bf16[576,128], index: 1, kind: input, shape index: {}]   ;;  %s1571_s2 = inlined_call_operand.vmem [shape: f32[1,128], index: 2, kind: input, shape index: {}]   ;;  %s1572_s3 = inlined_call_operand.vmem [shape: f32[1,128], index: 3, kind: input, shape index: {}]   ;;  %s1573_s4 = inlined_call_operand.vmem [shape: bf16[128,128], index: 4, kind: input, shape index: {}]   ;;  %s1574_s5 = inlined_call_operand.vmem [shape: bf16[128,128], index: 5, kind: output, shape index: {}]  }
   0x1 LB: > { %s1044_s19 = sadd.s32 4294967295, %s1368_s18   ;;  %p1048_p0 = scmp.ge.s32.totalorder %s1368_s18, 1  ;;  %s1368_s18 = sphi %s1400_s18, %s15_s18  }
   0x2   : > { %p200_p1 = scmp.lt.s32.totalorder %s1368_s18, 3 }
   0x4   : > { %p201_p2 = pnand %p1048_p0, %p200_p1 }
   0x5   : > { %v1298_v0 = vld [vmem:[%s1570_s1 + $0x40] sm:$0xff] (!%p201_p2)   ;;  %v1302_v4 = vld [vmem:[%s1570_s1 + $0x48] sm:$0xff] (!%p201_p2)   ;;  %v1306_v8 = vld [vmem:[%s1570_s1 + $0x50] sm:$0xff] (!%p201_p2)   ;;  %s1049_s27 = sshll.u32 (!%p201_p2), %s1044_s19, 3  ;;  %vm666_vm0 = vcmask (!%p201_p2), 523264  }
   0x6   : > { %204 = sbr.rel (%p201_p2) target bundleno = 300 (0x12c), region = 40  ;;  %v1299_v1 = vld [vmem:[%s1570_s1 + $0xc0] sm:$0xff] (!%p201_p2)   ;;  %1177 = vmatprep.subr.bf16.mxu0 (!%p201_p2), %v1298_v0  ;;  %v1303_v5 = vld [vmem:[%s1570_s1 + $0xc8] sm:$0xff] (!%p201_p2)   ;;  %v1307_v9 = vld [vmem:[%s1570_s1 + $0xd0] sm:$0xff] (!%p201_p2)   ;;  %p235_p3 = scmp.lt.s32.totalorder (!%p201_p2), %s1049_s27, 15 }
   0x7   : > { %v1300_v2 = vld [vmem:[%s1570_s1] sm:$0xff] (!%p201_p2)   ;;  %1217 = vmatprep.subr.bf16.mxu1 (!%p201_p2), %v1299_v1  ;;  %v1304_v6 = vld [vmem:[%s1570_s1 + $0x8] sm:$0xff] (!%p201_p2)   ;;  %v1308_v10 = vld [vmem:[%s1570_s1 + $0x10] sm:$0xff] (!%p201_p2)  }
   0x8   : > { %v1301_v3 = vld [vmem:[%s1570_s1 + $0x80] sm:$0xff] (!%p201_p2)   ;;  %1178 = vmatpush3.bf16.msra.mxu0 (!%p201_p2), %v1300_v2  ;;  %v1305_v7 = vld [vmem:[%s1570_s1 + $0x88] sm:$0xff] (!%p201_p2)   ;;  %v1309_v11 = vld [vmem:[%s1570_s1 + $0x90] sm:$0xff] (!%p201_p2)  }
   0x9   : > { %1218 = vmatpush3.bf16.msra.mxu1 (!%p201_p2), %v1301_v3  ;;  %1179 = vmatprep.subr.bf16.mxu0 (!%p201_p2), %v1302_v4  ;;  %v1310_v12 = vld [vmem:[%s1570_s1 + $0x58] sm:$0xff] (!%p201_p2)   ;;  %v1314_v16 = vld [vmem:[%s1570_s1 + $0x60] sm:$0xff] (!%p201_p2)   ;;  %v1318_v20 = vld [vmem:[%s1570_s1 + $0x68] sm:$0xff] (!%p201_p2)  }
   0xa   : > { %1219 = vmatprep.subr.bf16.mxu1 (!%p201_p2), %v1303_v5  ;;  %v1311_v13 = vld [vmem:[%s1570_s1 + $0xd8] sm:$0xff] (!%p201_p2)   ;;  %v1315_v17 = vld [vmem:[%s1570_s1 + $0xe0] sm:$0xff] (!%p201_p2)   ;;  %v1319_v21 = vld [vmem:[%s1570_s1 + $0xe8] sm:$0xff] (!%p201_p2)  }
   0xb   : > { %v1312_v14 = vld [vmem:[%s1570_s1 + $0x18] sm:$0xff] (!%p201_p2)   ;;  %v1316_v18 = vld [vmem:[%s1570_s1 + $0x20] sm:$0xff] (!%p201_p2)   ;;  %v1320_v22 = vld [vmem:[%s1570_s1 + $0x28] sm:$0xff] (!%p201_p2)  }
   0xc   : > { %1180 = vmatpush3.bf16.msra.mxu0 (!%p201_p2), %v1304_v6  ;;  %v1313_v15 = vld [vmem:[%s1570_s1 + $0x98] sm:$0xff] (!%p201_p2)   ;;  %v1317_v19 = vld [vmem:[%s1570_s1 + $0xa0] sm:$0xff] (!%p201_p2)   ;;  %v1321_v23 = vld [vmem:[%s1570_s1 + $0xa8] sm:$0xff] (!%p201_p2)  }
   0xd   : > { %1220 = vmatpush3.bf16.msra.mxu1 %v1305_v7  ;;  %1181 = vmatprep.subr.bf16.mxu0 %v1306_v8  ;;  %s1576_s27 = smov (!%p235_p3, %s1049_s27), 15  ;;  %v1322_v24 = vld [vmem:[%s1570_s1 + $0x70] sm:$0xff]   ;;  %v1326_v28 = vld [vmem:[%s1570_s1 + $0x78] sm:$0xff]   ;;  %v1336_v36 = vld [vmem:[%s1570_s1 + $0x100] sm:$0xff]  }
   0xe   : > { %1221 = vmatprep.subr.bf16.mxu1 %v1307_v9  ;;  %v1323_v25 = vld [vmem:[%s1570_s1 + $0xf0] sm:$0xff]   ;;  %s1289_s26 = smul.u32 20, %s1576_s27  ;;  %v1327_v29 = vld [vmem:[%s1570_s1 + $0xf8] sm:$0xff]   ;;  %v1343_v39 = vld [vmem:[%s1570_s1 + $0x108] sm:$0xff]   ;;  %s1052_s28 = sshll.u32 %s1576_s27, 2 }
   0xf   : > { %v1324_v26 = vld [vmem:[%s1570_s1 + $0x30] sm:$0xff]   ;;  %v1328_v30 = vld [vmem:[%s1570_s1 + $0x38] sm:$0xff]   ;;  %s245_s6 = scalar_lea.vmem %s1573_s4, %s1052_s28 }
  0x10   : > { %1182 = vmatpush3.bf16.msra.mxu0 %v1308_v10  ;;  %v1325_v27 = vld [vmem:[%s1570_s1 + $0xb0] sm:$0xff]   ;;  %s1506_s12 = scalar_lea.vmem %s1569_s0, %s1289_s26  ;;  %v1329_v31 = vld [vmem:[%s1570_s1 + $0xb8] sm:$0xff]  }
  0x11   : > { %1222 = vmatpush3.bf16.msra.mxu1 %v1309_v11  ;;  %1183 = vmatprep.subr.bf16.mxu0 %v1310_v12  ;;  %v1330_v32 = vld [vmem:[%s1506_s12] ss:$20 sps:$4 sm:$0xff]   ;;  %v1332_v33 = vld [vmem:[%s1506_s12 + $0x4] ss:$20 sps:$4 sm:$0xff]   ;;  %v1333_v34 = vld [vmem:[%s1506_s12 + $0x8] ss:$20 sps:$4 sm:$0xff]  }
  0x12   : > { %1223 = vmatprep.subr.bf16.mxu1 %v1311_v13  ;;  %v1335_v35 = vld [vmem:[%s1506_s12 + $0xc] ss:$20 sps:$4 sm:$0xff]   ;;  %711 = vmatprep.mubr.bf16.mxu0 %v1332_v33  ;;  %v1339_v38 = vld [vmem:[%s1506_s12 + $0x34] ss:$20 sps:$4 sm:$0xff]   ;;  %v1342_v41 = vld [vmem:[%s1506_s12 + $0x30] ss:$20 sps:$4 sm:$0xff]  }
  0x13   : > { %776 = vmatprep.mubr.bf16.mxu1 %v1335_v35  ;;  %v1337_v37 = vld [vmem:[%s1506_s12 + $0x2c] ss:$20 sps:$4 sm:$0xff]   ;;  %v1341_v40 = vld [vmem:[%s1506_s12 + $0x28] ss:$20 sps:$4 sm:$0xff]   ;;  %v1350_v44 = vld [vmem:[%s1570_s1 + $0x110] sm:$0xff]  }
  0x14   : > { %1184 = vmatpush3.bf16.msra.mxu0 %v1312_v14  ;;  %v1344_v42 = vld [vmem:[%s1506_s12 + $0x54] ss:$20 sps:$4 sm:$0xff]   ;;  %v1346_v43 = vld [vmem:[%s1506_s12 + $0x5c] ss:$20 sps:$4 sm:$0xff]   ;;  %v1349_v47 = vld [vmem:[%s1506_s12 + $0x58] ss:$20 sps:$4 sm:$0xff]  }
  0x15   : > { %1224 = vmatpush3.bf16.msra.mxu1 %v1313_v15  ;;  %1185 = vmatprep.subr.bf16.mxu0 %v1314_v16  ;;  %v1357_v45 = vld [vmem:[%s1570_s1 + $0x118] sm:$0xff]   ;;  %v1348_v46 = vld [vmem:[%s1506_s12 + $0x50] ss:$20 sps:$4 sm:$0xff]   ;;  %v1356_v51 = vld [vmem:[%s1506_s12 + $0x80] ss:$20 sps:$4 sm:$0xff]  }
  0x16   : > { %1225 = vmatprep.subr.bf16.mxu1 %v1315_v17  ;;  %v1351_v48 = vld [vmem:[%s1506_s12 + $0x7c] ss:$20 sps:$4 sm:$0xff]   ;;  %v1353_v49 = vld [vmem:[%s1506_s12 + $0x84] ss:$20 sps:$4 sm:$0xff]   ;;  %v1359_v53 = vld [vmem:[%s1506_s12 + $0x60] ss:$20 sps:$4 sm:$0xff]  }
  0x17   : > { %v1355_v50 = vld [vmem:[%s1506_s12 + $0x78] ss:$20 sps:$4 sm:$0xff]   ;;  %v1358_v52 = vld [vmem:[%s1506_s12 + $0x10] ss:$20 sps:$4 sm:$0xff]   ;;  %v1361_v55 = vld [vmem:[%s1506_s12 + $0x88] ss:$20 sps:$4 sm:$0xff]  }
  0x18   : > { %1186 = vmatpush3.bf16.msra.mxu0 %v1316_v18  ;;  %v1360_v54 = vld [vmem:[%s1506_s12 + $0x38] ss:$20 sps:$4 sm:$0xff]   ;;  %s251_s12 = scalar_lea.vmem %s1574_s5, %s1052_s28 }
  0x19   : > { %1226 = vmatpush3.bf16.msra.mxu1 %v1317_v19  ;;  %1187 = vmatprep.subr.bf16.mxu0 %v1318_v20 }
  0x1a   : > { %1227 = vmatprep.subr.bf16.mxu1 %v1319_v21 }
  0x1c   : > { %1188 = vmatpush3.bf16.msra.mxu0 %v1320_v22 }
  0x1d   : > { %1228 = vmatpush3.bf16.msra.mxu1 %v1321_v23  ;;  %1189 = vmatprep.subr.bf16.mxu0 %v1322_v24 }
  0x1e   : > { %1229 = vmatprep.subr.bf16.mxu1 %v1323_v25 }
  0x20   : > { %1190 = vmatpush3.bf16.msra.mxu0 %v1324_v26 }
  0x21   : > { %1230 = vmatpush3.bf16.msra.mxu1 %v1325_v27  ;;  %1191 = vmatprep.subr.bf16.mxu0 %v1326_v28 }
  0x22   : > { %1231 = vmatprep.subr.bf16.mxu1 %v1327_v29 }
  0x24   : > { %1192 = vmatpush3.bf16.msra.mxu0 %v1328_v30 }
  0x25   : > { %1232 = vmatpush3.bf16.msra.mxu1 %v1329_v31  ;;  %1265 = vmatprep.subr.bf16.mxu0 %v1336_v36 }
  0x26   : > { %1281 = vmatprep.subr.bf16.mxu1 %v1336_v36 }
  0x27   : > { %712 = vmatmul.mubr.bf16.vlgmr.msra.gmra.mrb[0].mxu0 %v1330_v32 }
  0x28   : > { %777 = vmatmul.mubr.bf16.vlgmr.msra.gmra.mrb[0].mxu1 %v1333_v34  ;;  %1266 = vmatpush3.bf16.msra.mxu0 %v1336_v36 }
  0x29   : > { %1285 = vmatpush3.bf16.msra.mxu1 %v1336_v36  ;;  %719 = vmatprep.mubr.bf16.mxu0 %v1337_v37 }
  0x2a   : > { %784 = vmatprep.mubr.bf16.mxu1 %v1339_v38  ;;  %1267 = vmatprep.subr.bf16.mxu0 %v1343_v39 }
  0x2b   : > { %1282 = vmatprep.subr.bf16.mxu1 %v1343_v39 }
  0x2c   : > { %1268 = vmatpush3.bf16.msra.mxu0 %v1343_v39 }
  0x2d   : > { %1286 = vmatpush3.bf16.msra.mxu1 %v1343_v39  ;;  %1269 = vmatprep.subr.bf16.mxu0 %v1350_v44 }
  0x2e   : > { %1283 = vmatprep.subr.bf16.mxu1 %v1350_v44 }
  0x2f   : > { %720 = vmatmul.mubr.bf16.gmra.mrb[4].mxu0 %v1341_v40 }
  0x30   : > { %785 = vmatmul.mubr.bf16.gmra.mrb[4].mxu1 %v1342_v41  ;;  %727 = vmatprep.mubr.bf16.mxu0 %v1344_v42 }
  0x31   : > { %792 = vmatprep.mubr.bf16.mxu1 %v1346_v43  ;;  %1270 = vmatpush3.bf16.msra.mxu0 %v1350_v44 }
  0x32   : > { %1287 = vmatpush3.bf16.msra.mxu1 %v1350_v44  ;;  %1271 = vmatprep.subr.bf16.mxu0 %v1357_v45 }
  0x33   : > { %1284 = vmatprep.subr.bf16.mxu1 %v1357_v45 }
  0x35   : > { %1272 = vmatpush3.bf16.msra.mxu0 %v1357_v45 }
  0x36   : > { %1288 = vmatpush3.bf16.msra.mxu1 %v1357_v45 }
  0x37   : > { %728 = vmatmul.mubr.bf16.gmra.mrb[8].mxu0 %v1348_v46  ;;  %v1171_v46 = vld [vmem:[%s245_s6 + $0x8] sm:$0xff]  }
  0x38   : > { %793 = vmatmul.mubr.bf16.gmra.mrb[8].mxu1 %v1349_v47  ;;  %735 = vmatprep.mubr.bf16.mxu0 %v1351_v48  ;;  %v1173_v48 = vld [vmem:[%s245_s6 + $0x18] sm:$0xff]  }
  0x39   : > { %800 = vmatprep.mubr.bf16.mxu1 %v1353_v49  ;;  %v1136_v49 = vld [vmem:[%s245_s6] sm:$0xff]  }
  0x3f   : > { %736 = vmatmul.mubr.bf16.gmra.mrb[12].mxu0 %v1355_v50  ;;  %v1172_v50 = vld [vmem:[%s245_s6 + $0x10] sm:$0xff]  }
  0x40   : > { %801 = vmatmul.mubr.bf16.gmra.mrb[12].mxu1 %v1356_v51  ;;  %1273 = vmatprep.mubr.msk.bf16.mxu0 %vm666_vm0, %v1358_v52 }
  0x41   : > { %1277 = vmatprep.mubr.msk.bf16.mxu1 %vm666_vm0, %v1359_v53  ;;  %v1115_v53 = vld [vmem:[%s1571_s2] ss:$0 sm:$0xff] }
  0x47   : > { %1274 = vmatmul.mubr.msk.bf16.vlgmr.msra.gmra.mrb[16].mxu0 %vm666_vm0, %v1360_v54  ;;  %v1141_v54 = vunpack.c.l.bf16 %v1171_v46 }
  0x48   : > { %1278 = vmatmul.mubr.msk.bf16.vlgmr.msra.gmra.mrb[16].mxu1 %vm666_vm0, %v1361_v55  ;;  %v1149_v55 = vunpack.c.l.bf16 %v1173_v48 }
  0xfa   : > { %v1193_v56 = vpop.f32.mrb[0].mxu0 }
  0xfb   : > { %v1233_v57 = vpop.f32.mrb[0].mxu1  ;;  %v1194_v58 = vpop.f32.mrb[1].mxu0 }
  0xfc   : > { %v1195_v59 = vadd.f32 %v1194_v58, %v1193_v56  ;;  %v1234_v60 = vpop.f32.mrb[1].mxu1  ;;  %v1196_v61 = vpop.f32.mrb[2].mxu0 }
  0xfd   : > { %v1235_v62 = vadd.f32 %v1234_v60, %v1233_v57  ;;  %v1236_v63 = vpop.f32.mrb[2].mxu1  ;;  %v1197_v0 = vpop.f32.mrb[3].mxu0  ;;  %v1145_v60 = vunpack.c.l.bf16 %v1172_v50 }
  0xfe   : > { %v1198_v1 = vadd.f32 %v1197_v0, %v1196_v61  ;;  %v1237_v2 = vpop.f32.mrb[3].mxu1  ;;  %v1142_v61 = vunpack.c.h.bf16 %v1171_v46 }
  0xff   : > { %v1238_v3 = vadd.f32 %v1237_v2, %v1236_v63  ;;  %v779_v4 = vadd.f32 %v1235_v62, %v1195_v59  ;;  %v1137_v59 = vunpack.c.l.bf16 %v1136_v49  ;;  %v1116_v62 = vld [vmem:[%s1572_s3] ss:$0 sm:$0xff] }
 0x101   : > { %v1546_v5 = vadd.f32 %v1238_v3, %v1198_v1  ;;  %v1150_v3 = vunpack.c.h.bf16 %v1173_v48 }
 0x102   : > { %v1199_v6 = vpop.f32.mrb[4].mxu0 }
 0x103   : > { %v1239_v7 = vpop.f32.mrb[4].mxu1  ;;  %v1200_v8 = vpop.f32.mrb[5].mxu0 }
 0x104   : > { %v1201_v9 = vadd.f32 %v1200_v8, %v1199_v6  ;;  %v1240_v10 = vpop.f32.mrb[5].mxu1  ;;  %v1202_v11 = vpop.f32.mrb[6].mxu0  ;;  %v1138_v6 = vunpack.c.h.bf16 %v1136_v49 }
 0x105   : > { %v1241_v12 = vadd.f32 %v1240_v10, %v1239_v7  ;;  %v1242_v13 = vpop.f32.mrb[6].mxu1  ;;  %v1203_v14 = vpop.f32.mrb[7].mxu0 }
 0x106   : > { %v1204_v15 = vadd.f32 %v1203_v14, %v1202_v11  ;;  %v1243_v16 = vpop.f32.mrb[7].mxu1 }
 0x107   : > { %v1244_v17 = vadd.f32 %v1243_v16, %v1242_v13  ;;  %v787_v18 = vadd.f32 %v1241_v12, %v1201_v9  ;;  %v1146_v12 = vunpack.c.h.bf16 %v1172_v50 }
 0x109   : > { %v790_v19 = vadd.f32 %v1244_v17, %v1204_v15 }
 0x10a   : > { %v1205_v20 = vpop.f32.mrb[8].mxu0 }
 0x10b   : > { %v1245_v21 = vpop.f32.mrb[8].mxu1  ;;  %v1206_v22 = vpop.f32.mrb[9].mxu0 }
 0x10c   : > { %v1207_v23 = vadd.f32 %v1206_v22, %v1205_v20  ;;  %v1246_v24 = vpop.f32.mrb[9].mxu1  ;;  %v1208_v25 = vpop.f32.mrb[10].mxu0 }
 0x10d   : > { %v1247_v26 = vadd.f32 %v1246_v24, %v1245_v21  ;;  %v1248_v27 = vpop.f32.mrb[10].mxu1  ;;  %v1209_v28 = vpop.f32.mrb[11].mxu0 }
 0x10e   : > { %v1210_v29 = vadd.f32 %v1209_v28, %v1208_v25  ;;  %v1249_v30 = vpop.f32.mrb[11].mxu1 }
 0x10f   : > { %v1250_v31 = vadd.f32 %v1249_v30, %v1248_v27  ;;  %v795_v32 = vadd.f32 %v1247_v26, %v1207_v23 }
 0x111   : > { %v798_v33 = vadd.f32 %v1250_v31, %v1210_v29 }
 0x112   : > { %v1211_v34 = vpop.f32.mrb[12].mxu0 }
 0x113   : > { %v1251_v35 = vpop.f32.mrb[12].mxu1  ;;  %v1212_v36 = vpop.f32.mrb[13].mxu0 }
 0x114   : > { %v1213_v37 = vadd.f32 %v1212_v36, %v1211_v34  ;;  %v1252_v38 = vpop.f32.mrb[13].mxu1  ;;  %v1214_v39 = vpop.f32.mrb[14].mxu0 }
 0x115   : > { %v1253_v40 = vadd.f32 %v1252_v38, %v1251_v35  ;;  %v1254_v41 = vpop.f32.mrb[14].mxu1  ;;  %v1215_v42 = vpop.f32.mrb[15].mxu0 }
 0x116   : > { %v1216_v43 = vadd.f32 %v1215_v42, %v1214_v39  ;;  %v1255_v44 = vpop.f32.mrb[15].mxu1 }
 0x117   : > { %v1256_v45 = vadd.f32 %v1255_v44, %v1254_v41  ;;  %v803_v47 = vadd.f32 %v1253_v40, %v1213_v37 }
 0x119   : > { %v806_v51 = vadd.f32 %v1256_v45, %v1216_v43 }
 0x11a   : > { %v1275_v52 = vpop.f32.mrb[16].mxu0 }
 0x11b   : > { %v852_v56 = vadd.f32 %v1275_v52, %v787_v18  ;;  %v1279_v57 = vpop.f32.mrb[16].mxu1  ;;  %v843_v58 = vpop.f32.mrb[17].mxu0 }
 0x11c   : > { %v868_v63 = vadd.f32 %v1279_v57, %v803_v47  ;;  %v844_v0 = vadd.f32 %v843_v58, %v779_v4  ;;  %v859_v1 = vpop.f32.mrb[17].mxu1  ;;  %v1276_v2 = vpop.f32.mrb[18].mxu0 }
 0x11d   : > { %v883_v7 = vmul.f32 %v1115_v53, %v852_v56  ;;  %v860_v8 = vadd.f32 %v859_v1, %v795_v32  ;;  %v855_v9 = vadd.f32 %v1276_v2, %v790_v19  ;;  %v1280_v10 = vpop.f32.mrb[18].mxu1  ;;  %v846_v11 = vpop.f32.mrb[19].mxu0 }
 0x11e   : > { %v887_v13 = vmul.f32 %v1115_v53, %v868_v63  ;;  %v881_v14 = vmul.f32 %v1115_v53, %v844_v0  ;;  %v871_v15 = vadd.f32 %v1280_v10, %v806_v51  ;;  %v847_v16 = vadd.f32 %v846_v11, %v1546_v5  ;;  %v862_v17 = vpop.f32.mrb[19].mxu1 }
 0x11f   : > { %v898_v18 = vadd.f32 %v1116_v62, %v883_v7  ;;  %v885_v20 = vmul.f32 %v1115_v53, %v860_v8  ;;  %v884_v21 = vmul.f32 %v1115_v53, %v855_v9  ;;  %v863_v4 = vadd.f32 %v862_v17, %v798_v33 }
 0x120   : > { %v902_v22 = vadd.f32 %v1116_v62, %v887_v13  ;;  %v896_v23 = vadd.f32 %v1116_v62, %v881_v14  ;;  %v888_v24 = vmul.f32 %v1115_v53, %v871_v15  ;;  %v882_v25 = vmul.f32 %v1115_v53, %v847_v16 }
 0x121   : > { %v922_v26 = vadd.f32 %v1141_v54, %v898_v18  ;;  %v900_v27 = vadd.f32 %v1116_v62, %v885_v20  ;;  %v899_v19 = vadd.f32 %v1116_v62, %v884_v21  ;;  %v886_v28 = vmul.f32 %v1115_v53, %v863_v4 }
 0x122   : > { %v926_v29 = vadd.f32 %v1149_v55, %v902_v22  ;;  %v920_v30 = vadd.f32 %v1137_v59, %v896_v23  ;;  %v903_v31 = vadd.f32 %v1116_v62, %v888_v24  ;;  %v897_v32 = vadd.f32 %v1116_v62, %v882_v25 }
 0x123   : > { %v924_v34 = vadd.f32 %v1145_v60, %v900_v27  ;;  %v923_v5 = vadd.f32 %v1142_v61, %v899_v19  ;;  %v901_v35 = vadd.f32 %v1116_v62, %v886_v28  ;;  %v930_v38 = vmax.f32 %v922_v26, 0.0 }
 0x124   : > { %v927_v36 = vadd.f32 %v1150_v3, %v903_v31  ;;  %v921_v37 = vadd.f32 %v1138_v6, %v897_v32  ;;  %v934_v40 = vmax.f32 %v926_v29, 0.0  ;;  %v928_v41 = vmax.f32 %v920_v30, 0.0 }
 0x125   : > { %v931_v33 = vmax.f32 %v923_v5, 0.0  ;;  %v925_v39 = vadd.f32 %v1146_v12, %v901_v35  ;;  %v932_v44 = vmax.f32 %v924_v34, 0.0 }
 0x126   : > { %v935_v42 = vmax.f32 %v927_v36, 0.0  ;;  %v929_v43 = vmax.f32 %v921_v37, 0.0 }
 0x127   : > { %v1159_v45 = vpack.c.bf16 %v931_v33, %v930_v38  ;;  %v933_v46 = vmax.f32 %v925_v39, 0.0 }
 0x128   : > { %v1169_v47 = vpack.c.bf16 %v935_v42, %v934_v40  ;;  %v1154_v48 = vpack.c.bf16 %v929_v43, %v928_v41 }
 0x129   : > { %1174 = vst [vmem:[%s251_s12 + $0x8] sm:$0xff] %v1159_v45   ;;  %v1164_v49 = vpack.c.bf16 %v933_v46, %v932_v44 }
 0x12a   : > { %1176 = vst [vmem:[%s251_s12 + $0x18] sm:$0xff] %v1169_v47   ;;  %1155 = vst [vmem:[%s251_s12] sm:$0xff] %v1154_v48  }
 0x12b   : > { %1175 = vst [vmem:[%s251_s12 + $0x10] sm:$0xff] %v1164_v49  }
 0x12c PF: > { %s15_s18 = sadd.s32 1, %s1368_s18  }
 0x12d   : > { %p12_p4 = scmp.ge.s32.totalorder %s15_s18, 4  }
 0x12f   :  { %14 = sbr.rel (!%p12_p4) target bundleno = 1 (0x1), region = 73 }

</bundles_post_ra>
